<compile_context>
chip_gen: v5e
topology: v5e:2x2
jax: 0.10.0
libtpu: 0.0.40
codegen_flags: <defaults>
</compile_context>

<pallas_src>
import functools

import jax
import jax.numpy as jnp
from jax.experimental import pallas as pl
from jax.experimental.pallas import tpu as pltpu


# ----------------------------------------------------------------------------
# Network geometry (fixed by the PyTorch module: 8/4 -> 4/2 -> 3/1 convs).
# ----------------------------------------------------------------------------
CONV_SPECS = ((8, 4, 32), (4, 2, 64), (3, 1, 64))   # (kernel, stride, out_ch)


def _conv_out(size, k, s):
    return (size - k) // s + 1


def feature_dims(in_hw):
    h, w = in_hw
    for k, s, _ in CONV_SPECS:
        h, w = _conv_out(h, k, s), _conv_out(w, k, s)
    return 64, h, w          # (Cf, Hf, Wf)


def _round_up(v, m):
    return ((v + m - 1) // m) * m


# ----------------------------------------------------------------------------
# In-kernel helpers (activations are [H, W, batch_tile, channels] values)
# ----------------------------------------------------------------------------
def _conv_tap(a, i, j, oh, ow, s):
    """a[i:i+s*oh:s, j:j+s*ow:s, :, :] built from unit-stride slices only.

    The strided spatial access is decomposed into stride-phase splits of the
    leading (non-tiled) dims, so no strided slicing / relayout is needed."""
    if s == 1:
        return a[i:i + oh, j:j + ow]
    h, w, bn, c = a.shape
    pi, ri = divmod(i, s)
    pj, rj = divmod(j, s)
    a = a.reshape(h // s, s, w, bn, c)[pi:pi + oh, ri]        # [oh, w, bn, c]
    return a.reshape(oh, w // s, s, bn, c)[:, pj:pj + ow, rj]  # [oh, ow, bn, c]


def _conv_relu(a, wmat, bias, k, s):
    """Valid conv + bias + ReLU on a [H, W, bn, Cin] tile.

    wmat is the tap-major im2col weight matrix [k*k*Cin, Cout]; patches are
    assembled in VMEM (lane concat of the k*k taps) and fed to one MXU matmul
    with f32 accumulation."""
    h, w, bn, cin = a.shape
    oh = (h - k) // s + 1
    ow = (w - k) // s + 1
    taps = [_conv_tap(a, i, j, oh, ow, s)
            for i in range(k) for j in range(k)]
    patches = jnp.concatenate(taps, axis=-1)                  # [oh, ow, bn, k*k*cin]
    acc = jnp.dot(patches.reshape(oh * ow * bn, k * k * cin), wmat,
                  preferred_element_type=jnp.float32)
    acc = jnp.maximum(acc + bias, 0.0)
    return acc.astype(a.dtype).reshape(oh, ow, bn, wmat.shape[1])


def _cnn_dqn_kernel(x_ref, w1_ref, b1_ref, w2_ref, b2_ref, w3_ref, b3_ref,
                    wf1_ref, bf1_ref, wf2_ref, bf2_ref, o_ref):
    x = x_ref[...]                                            # [H/4, W/4, bn, 16*C]
    # conv1: the 8x8 stride-4 conv == a 2x2 stride-1 conv on the s2d(x4) input.
    h1 = _conv_relu(x, w1_ref[...], b1_ref[...], k=2, s=1)    # [oh1, ow1, bn, 32]
    h2 = _conv_relu(h1, w2_ref[...], b2_ref[...], k=4, s=2)   # [oh2, ow2, bn, 64]
    h3 = _conv_relu(h2, w3_ref[...], b3_ref[...], k=3, s=1)   # [oh3, ow3, bn, 64]

    # flatten in (h, w, c) order -> fc1 -> ReLU -> fc2, all in VMEM.
    oh3, ow3, _, _ = h3.shape
    feats = jnp.concatenate(
        [h3[p, q] for p in range(oh3) for q in range(ow3)], axis=-1)   # [bn, F]
    hfc = jnp.dot(feats, wf1_ref[...], preferred_element_type=jnp.float32)
    hfc = jnp.maximum(hfc + bf1_ref[...], 0.0).astype(wf1_ref.dtype)   # [bn, 512]
    q = jnp.dot(hfc, wf2_ref[...], preferred_element_type=jnp.float32)
    o_ref[...] = (q + bf2_ref[...]).astype(o_ref.dtype)


# ----------------------------------------------------------------------------
# Host-side wrappers
# ----------------------------------------------------------------------------
def _pick_batch_tile(n, batch_tile):
    """Batch-tile size (multiple of 16 for bf16 sublane packing) + padded N.
    Keeps >= 2 grid steps when possible so v7x can shard the parallel axis."""
    batch_tile = max(16, _round_up(batch_tile, 16))
    n16 = _round_up(n, 16)
    bn = min(batch_tile, n16)
    if n16 >= 32 and n16 <= bn:
        bn = _round_up(n16 // 2, 16)
    npad = _round_up(n, bn)
    return bn, npad


def _prep_input(x, npad, compute_dtype):
    """NCHW float input -> x4 space-to-depth tile, [H/4, W/4, Npad, C*16],
    batch on sublanes / channels on lanes, cast to the compute dtype.  This is
    the single non-replicating layout pass that also absorbs the old
    NCHW->NHWC transpose and the f32->bf16 cast."""
    n, c, h, w = x.shape
    x = jnp.pad(x, ((0, npad - n), (0, 0), (0, 0), (0, 0)))
    x = x.reshape(npad, c, h // 4, 4, w // 4, 4)
    x = x.transpose(2, 4, 0, 1, 3, 5)                 # [H/4, W/4, N, C, 4, 4]
    return x.reshape(h // 4, w // 4, npad, c * 16).astype(compute_dtype)


def prepare_params(params, in_hw, compute_dtype=jnp.bfloat16):
    """One-time re-layout of the PyTorch-convention parameters into the
    matmul layouts the fused kernel consumes (runs once, outside the fwd)."""
    cf, hf, wf = feature_dims(in_hw)
    f32 = jnp.float32
    p = {}

    # conv1 (8x8 / stride 4) folded with the x4 space-to-depth of the input:
    # effective 2x2 stride-1 conv over C*16 channels, tap-major rows.
    w1 = params["conv1_w"]                            # [32, C, 8, 8]  (OIHW)
    co1, c = w1.shape[0], w1.shape[1]
    w1 = w1.reshape(co1, c, 2, 4, 2, 4).transpose(2, 4, 1, 3, 5, 0)
    p["conv1_w"] = w1.reshape(4 * c * 16, co1).astype(compute_dtype)
    p["conv1_b"] = params["conv1_b"].reshape(1, -1).astype(f32)

    # conv2 / conv3: tap-major ((p, q), cin) im2col weight matrices.
    for name in ("conv2", "conv3"):
        w = params[name + "_w"]                       # [Cout, Cin, k, k]
        co, ci, k, _ = w.shape
        p[name + "_w"] = (w.transpose(2, 3, 1, 0)
                          .reshape(k * k * ci, co).astype(compute_dtype))
        p[name + "_b"] = params[name + "_b"].reshape(1, -1).astype(f32)

    # fc1: permute rows from PyTorch's NCHW flatten order to the kernel's
    # (h, w, c) flatten order.
    fc1 = params["fc1_w"].reshape(cf, hf, wf, -1).transpose(1, 2, 0, 3)
    p["fc1_w"] = fc1.reshape(cf * hf * wf, -1).astype(compute_dtype)
    p["fc1_b"] = params["fc1_b"].reshape(1, -1).astype(f32)
    p["fc2_w"] = params["fc2_w"].astype(compute_dtype)
    p["fc2_b"] = params["fc2_b"].reshape(1, -1).astype(f32)
    return p


@functools.partial(jax.jit, static_argnames=("batch_tile",))
def cnn_dqn_forward(prep, x, batch_tile=64):
    """x: [N, C, H, W] (NCHW like PyTorch).  Returns Q-values [N, num_actions]."""
    n, _, h, w = x.shape
    assert h % 4 == 0 and w % 4 == 0, "spatial dims must be multiples of 4"
    oh1, ow1 = (h - 8) // 4 + 1, (w - 8) // 4 + 1
    # TODO(synk): general input sizes (odd conv1 output) need pad+crop support.
    assert oh1 % 2 == 0 and ow1 % 2 == 0 and oh1 >= 8 and ow1 >= 8, (
        "unsupported input size")

    cdt = prep["conv1_w"].dtype
    bn, npad = _pick_batch_tile(n, batch_tile)
    xs = _prep_input(x, npad, cdt)                    # [H/4, W/4, Npad, 16*C]
    hs, ws, _, cs = xs.shape
    num_actions = prep["fc2_w"].shape[1]

    w_args = []
    for name in ("conv1", "conv2", "conv3", "fc1", "fc2"):
        w_args += [prep[name + "_w"], prep[name + "_b"]]
    w_specs = [pl.BlockSpec(a.shape, lambda i: (0, 0)) for a in w_args]

    out = pl.pallas_call(
        _cnn_dqn_kernel,
        out_shape=jax.ShapeDtypeStruct((npad, num_actions), jnp.float32),
        grid=(npad // bn,),
        in_specs=[pl.BlockSpec((hs, ws, bn, cs), lambda i: (0, 0, i, 0))]
                 + w_specs,
        out_specs=pl.BlockSpec((bn, num_actions), lambda i: (i, 0)),
        compiler_params=pltpu.CompilerParams(
            dimension_semantics=("parallel",)),
    )(xs, *w_args)
    return out[:n]


# ----------------------------------------------------------------------------
# Pure-JAX reference (XLA conv, original PyTorch parameter conventions)
# ----------------------------------------------------------------------------
def reference_forward(params, x):
    def conv(x, w, b, s):
        y = jax.lax.conv_general_dilated(
            x, w, (s, s), "VALID", dimension_numbers=("NCHW", "OIHW", "NCHW"))
        return jnp.maximum(y + b[None, :, None, None], 0.0)

    x = conv(x, params["conv1_w"], params["conv1_b"], 4)
    x = conv(x, params["conv2_w"], params["conv2_b"], 2)
    x = conv(x, params["conv3_w"], params["conv3_b"], 1)
    x = x.reshape(x.shape[0], -1)
    x = jnp.maximum(x @ params["fc1_w"] + params["fc1_b"], 0.0)
    return x @ params["fc2_w"] + params["fc2_b"]


def init_params(key, in_channels, feature_size, num_actions):
    keys = jax.random.split(key, 10)
    scale = 0.05
    return {
        # Conv weights stored in PyTorch OIHW layout.
        "conv1_w": scale * jax.random.normal(keys[0], (32, in_channels, 8, 8), jnp.float32),
        "conv1_b": scale * jax.random.normal(keys[1], (32,), jnp.float32),
        "conv2_w": scale * jax.random.normal(keys[2], (64, 32, 4, 4), jnp.float32),
        "conv2_b": scale * jax.random.normal(keys[3], (64,), jnp.float32),
        "conv3_w": scale * jax.random.normal(keys[4], (64, 64, 3, 3), jnp.float32),
        "conv3_b": scale * jax.random.normal(keys[5], (64,), jnp.float32),
        # FC weights stored [in, out] (== transpose of PyTorch Linear.weight),
        # with the feature axis in PyTorch's NCHW flatten order.
        "fc1_w": scale * jax.random.normal(keys[6], (feature_size, 512), jnp.float32),
        "fc1_b": scale * jax.random.normal(keys[7], (512,), jnp.float32),
        "fc2_w": scale * jax.random.normal(keys[8], (512, num_actions), jnp.float32),
        "fc2_b": scale * jax.random.normal(keys[9], (num_actions,), jnp.float32),
    }


if __name__ == "__main__":
    # Small-but-consistent shapes: input (4, 44, 44) -> conv sizes 44 -> 10 -> 4 -> 2,
    # feature_size = 64 * 2 * 2 = 256.
    batch, in_c, spatial, num_actions = 2, 4, 44, 6
    cf, hf, wf = feature_dims((spatial, spatial))
    feature_size = cf * hf * wf

    key = jax.random.PRNGKey(0)
    pkey, xkey = jax.random.split(key)
    params = init_params(pkey, in_c, feature_size, num_actions)
    x = jax.random.normal(xkey, (batch, in_c, spatial, spatial), jnp.float32)

    q_ref = jax.block_until_ready(reference_forward(params, x))

    # Float32 compute path: exactness vs. the XLA reference.
    prep32 = prepare_params(params, (spatial, spatial), jnp.float32)
    q32 = jax.block_until_ready(cnn_dqn_forward(prep32, x))
    assert q32.shape == (batch, num_actions), q32.shape
    assert jnp.allclose(q32, q_ref, rtol=1e-3, atol=1e-3), (
        float(jnp.max(jnp.abs(q32 - q_ref))))

    # bf16-operand path (MXU fast path on v5e/v6e/v7x), f32 accumulation.
    prep16 = prepare_params(params, (spatial, spatial), jnp.bfloat16)
    q16 = jax.block_until_ready(cnn_dqn_forward(prep16, x))
    assert q16.shape == (batch, num_actions), q16.shape
    assert jnp.allclose(q16, q_ref, rtol=3e-2, atol=3e-2), (
        float(jnp.max(jnp.abs(q16 - q_ref))))

    print("KERNEL_OK")
</pallas_src>

<mosaic_0001>
module attributes {stable_mosaic.version = 11 : i64} {
  func.func @_cnn_dqn_kernel(%arg0: i32, %arg1: memref<11x11x16x64xf32, #tpu.memory_space<vmem>>, %arg2: memref<256x32xf32, #tpu.memory_space<vmem>>, %arg3: memref<1x32xf32, #tpu.memory_space<vmem>>, %arg4: memref<512x64xf32, #tpu.memory_space<vmem>>, %arg5: memref<1x64xf32, #tpu.memory_space<vmem>>, %arg6: memref<576x64xf32, #tpu.memory_space<vmem>>, %arg7: memref<1x64xf32, #tpu.memory_space<vmem>>, %arg8: memref<256x512xf32, #tpu.memory_space<vmem>>, %arg9: memref<1x512xf32, #tpu.memory_space<vmem>>, %arg10: memref<512x6xf32, #tpu.memory_space<vmem>>, %arg11: memref<1x6xf32, #tpu.memory_space<vmem>>, %arg12: memref<16x6xf32, #tpu.memory_space<vmem>>) attributes {dimension_semantics = [#tpu.dimension_semantics<parallel>], iteration_bounds = array<i64: 1>, scalar_prefetch = 0 : i64, scratch_operands = 0 : i64, tpu.core_type = #tpu.core_type<tc>, window_params = [{transform_indices = @transform_0, window_bounds = array<i64: 11, 11, 16, 64>}, {pipeline_mode = #tpu.pipeline_mode<synchronous>, transform_indices = @transform_1, window_bounds = array<i64: 256, 32>}, {pipeline_mode = #tpu.pipeline_mode<synchronous>, transform_indices = @transform_2, window_bounds = array<i64: 1, 32>}, {pipeline_mode = #tpu.pipeline_mode<synchronous>, transform_indices = @transform_3, window_bounds = array<i64: 512, 64>}, {pipeline_mode = #tpu.pipeline_mode<synchronous>, transform_indices = @transform_4, window_bounds = array<i64: 1, 64>}, {pipeline_mode = #tpu.pipeline_mode<synchronous>, transform_indices = @transform_5, window_bounds = array<i64: 576, 64>}, {pipeline_mode = #tpu.pipeline_mode<synchronous>, transform_indices = @transform_6, window_bounds = array<i64: 1, 64>}, {pipeline_mode = #tpu.pipeline_mode<synchronous>, transform_indices = @transform_7, window_bounds = array<i64: 256, 512>}, {pipeline_mode = #tpu.pipeline_mode<synchronous>, transform_indices = @transform_8, window_bounds = array<i64: 1, 512>}, {pipeline_mode = #tpu.pipeline_mode<synchronous>, transform_indices = @transform_9, window_bounds = array<i64: 512, 6>}, {pipeline_mode = #tpu.pipeline_mode<synchronous>, transform_indices = @transform_10, window_bounds = array<i64: 1, 6>}, {transform_indices = @transform_11, window_bounds = array<i64: 16, 6>}]} {
    %c0 = arith.constant 0 : index
    %c0_0 = arith.constant 0 : index
    %c0_1 = arith.constant 0 : index
    %c0_2 = arith.constant 0 : index
    %0 = vector.load %arg1[%c0, %c0_0, %c0_1, %c0_2] : memref<11x11x16x64xf32, #tpu.memory_space<vmem>>, vector<11x11x16x64xf32>
    %c0_3 = arith.constant 0 : index
    %c0_4 = arith.constant 0 : index
    %1 = vector.load %arg2[%c0_3, %c0_4] : memref<256x32xf32, #tpu.memory_space<vmem>>, vector<256x32xf32>
    %c0_5 = arith.constant 0 : index
    %c0_6 = arith.constant 0 : index
    %2 = vector.load %arg3[%c0_5, %c0_6] : memref<1x32xf32, #tpu.memory_space<vmem>>, vector<1x32xf32>
    %3 = vector.extract_strided_slice %0 {offsets = [0, 0, 0, 0], sizes = [10, 10, 16, 64], strides = [1, 1, 1, 1]} : vector<11x11x16x64xf32> to vector<10x10x16x64xf32>
    %4 = vector.extract_strided_slice %0 {offsets = [0, 1, 0, 0], sizes = [10, 10, 16, 64], strides = [1, 1, 1, 1]} : vector<11x11x16x64xf32> to vector<10x10x16x64xf32>
    %5 = vector.extract_strided_slice %0 {offsets = [1, 0, 0, 0], sizes = [10, 10, 16, 64], strides = [1, 1, 1, 1]} : vector<11x11x16x64xf32> to vector<10x10x16x64xf32>
    %6 = vector.extract_strided_slice %0 {offsets = [1, 1, 0, 0], sizes = [10, 10, 16, 64], strides = [1, 1, 1, 1]} : vector<11x11x16x64xf32> to vector<10x10x16x64xf32>
    %7 = tpu.concatenate %3, %4, %5, %6 in 3 : vector<10x10x16x64xf32>, vector<10x10x16x64xf32>, vector<10x10x16x64xf32>, vector<10x10x16x64xf32> -> vector<10x10x16x256xf32>
    %8 = vector.shape_cast %7 : vector<10x10x16x256xf32> to vector<1600x256xf32>
    %cst = arith.constant dense<0.000000e+00> : vector<1600x32xf32>
    %9 = tpu.matmul %8, %1, %cst {dimension_numbers = #tpu.dot_dimension_numbers<[1], [0], [0], [1], [0, 0, 1, 1], [], []>} : vector<1600x256xf32>, vector<256x32xf32>, vector<1600x32xf32> -> vector<1600x32xf32>
    %10 = vector.broadcast %2 : vector<1x32xf32> to vector<1600x32xf32>
    %11 = arith.addf %9, %10 : vector<1600x32xf32>
    %cst_7 = arith.constant 0.000000e+00 : f32
    %12 = vector.broadcast %cst_7 : f32 to vector<1600x32xf32>
    %13 = arith.maximumf %11, %12 : vector<1600x32xf32>
    %14 = vector.shape_cast %13 : vector<1600x32xf32> to vector<10x10x16x32xf32>
    %c0_8 = arith.constant 0 : index
    %c0_9 = arith.constant 0 : index
    %15 = vector.load %arg4[%c0_8, %c0_9] : memref<512x64xf32, #tpu.memory_space<vmem>>, vector<512x64xf32>
    %c0_10 = arith.constant 0 : index
    %c0_11 = arith.constant 0 : index
    %16 = vector.load %arg5[%c0_10, %c0_11] : memref<1x64xf32, #tpu.memory_space<vmem>>, vector<1x64xf32>
    %17 = vector.shape_cast %14 : vector<10x10x16x32xf32> to vector<5x2x10x16x32xf32>
    %18 = vector.extract_strided_slice %17 {offsets = [0, 0, 0, 0, 0], sizes = [4, 1, 10, 16, 32], strides = [1, 1, 1, 1, 1]} : vector<5x2x10x16x32xf32> to vector<4x1x10x16x32xf32>
    %19 = vector.shape_cast %18 : vector<4x1x10x16x32xf32> to vector<4x10x16x32xf32>
    %20 = vector.shape_cast %19 : vector<4x10x16x32xf32> to vector<4x5x2x16x32xf32>
    %21 = vector.extract_strided_slice %20 {offsets = [0, 0, 0, 0, 0], sizes = [4, 4, 1, 16, 32], strides = [1, 1, 1, 1, 1]} : vector<4x5x2x16x32xf32> to vector<4x4x1x16x32xf32>
    %22 = vector.shape_cast %21 : vector<4x4x1x16x32xf32> to vector<4x4x16x32xf32>
    %23 = vector.shape_cast %14 : vector<10x10x16x32xf32> to vector<5x2x10x16x32xf32>
    %24 = vector.extract_strided_slice %23 {offsets = [0, 0, 0, 0, 0], sizes = [4, 1, 10, 16, 32], strides = [1, 1, 1, 1, 1]} : vector<5x2x10x16x32xf32> to vector<4x1x10x16x32xf32>
    %25 = vector.shape_cast %24 : vector<4x1x10x16x32xf32> to vector<4x10x16x32xf32>
    %26 = vector.shape_cast %25 : vector<4x10x16x32xf32> to vector<4x5x2x16x32xf32>
    %27 = vector.extract_strided_slice %26 {offsets = [0, 0, 1, 0, 0], sizes = [4, 4, 1, 16, 32], strides = [1, 1, 1, 1, 1]} : vector<4x5x2x16x32xf32> to vector<4x4x1x16x32xf32>
    %28 = vector.shape_cast %27 : vector<4x4x1x16x32xf32> to vector<4x4x16x32xf32>
    %29 = vector.shape_cast %14 : vector<10x10x16x32xf32> to vector<5x2x10x16x32xf32>
    %30 = vector.extract_strided_slice %29 {offsets = [0, 0, 0, 0, 0], sizes = [4, 1, 10, 16, 32], strides = [1, 1, 1, 1, 1]} : vector<5x2x10x16x32xf32> to vector<4x1x10x16x32xf32>
    %31 = vector.shape_cast %30 : vector<4x1x10x16x32xf32> to vector<4x10x16x32xf32>
    %32 = vector.shape_cast %31 : vector<4x10x16x32xf32> to vector<4x5x2x16x32xf32>
    %33 = vector.extract_strided_slice %32 {offsets = [0, 1, 0, 0, 0], sizes = [4, 4, 1, 16, 32], strides = [1, 1, 1, 1, 1]} : vector<4x5x2x16x32xf32> to vector<4x4x1x16x32xf32>
    %34 = vector.shape_cast %33 : vector<4x4x1x16x32xf32> to vector<4x4x16x32xf32>
    %35 = vector.shape_cast %14 : vector<10x10x16x32xf32> to vector<5x2x10x16x32xf32>
    %36 = vector.extract_strided_slice %35 {offsets = [0, 0, 0, 0, 0], sizes = [4, 1, 10, 16, 32], strides = [1, 1, 1, 1, 1]} : vector<5x2x10x16x32xf32> to vector<4x1x10x16x32xf32>
    %37 = vector.shape_cast %36 : vector<4x1x10x16x32xf32> to vector<4x10x16x32xf32>
    %38 = vector.shape_cast %37 : vector<4x10x16x32xf32> to vector<4x5x2x16x32xf32>
    %39 = vector.extract_strided_slice %38 {offsets = [0, 1, 1, 0, 0], sizes = [4, 4, 1, 16, 32], strides = [1, 1, 1, 1, 1]} : vector<4x5x2x16x32xf32> to vector<4x4x1x16x32xf32>
    %40 = vector.shape_cast %39 : vector<4x4x1x16x32xf32> to vector<4x4x16x32xf32>
    %41 = vector.shape_cast %14 : vector<10x10x16x32xf32> to vector<5x2x10x16x32xf32>
    %42 = vector.extract_strided_slice %41 {offsets = [0, 1, 0, 0, 0], sizes = [4, 1, 10, 16, 32], strides = [1, 1, 1, 1, 1]} : vector<5x2x10x16x32xf32> to vector<4x1x10x16x32xf32>
    %43 = vector.shape_cast %42 : vector<4x1x10x16x32xf32> to vector<4x10x16x32xf32>
    %44 = vector.shape_cast %43 : vector<4x10x16x32xf32> to vector<4x5x2x16x32xf32>
    %45 = vector.extract_strided_slice %44 {offsets = [0, 0, 0, 0, 0], sizes = [4, 4, 1, 16, 32], strides = [1, 1, 1, 1, 1]} : vector<4x5x2x16x32xf32> to vector<4x4x1x16x32xf32>
    %46 = vector.shape_cast %45 : vector<4x4x1x16x32xf32> to vector<4x4x16x32xf32>
    %47 = vector.shape_cast %14 : vector<10x10x16x32xf32> to vector<5x2x10x16x32xf32>
    %48 = vector.extract_strided_slice %47 {offsets = [0, 1, 0, 0, 0], sizes = [4, 1, 10, 16, 32], strides = [1, 1, 1, 1, 1]} : vector<5x2x10x16x32xf32> to vector<4x1x10x16x32xf32>
    %49 = vector.shape_cast %48 : vector<4x1x10x16x32xf32> to vector<4x10x16x32xf32>
    %50 = vector.shape_cast %49 : vector<4x10x16x32xf32> to vector<4x5x2x16x32xf32>
    %51 = vector.extract_strided_slice %50 {offsets = [0, 0, 1, 0, 0], sizes = [4, 4, 1, 16, 32], strides = [1, 1, 1, 1, 1]} : vector<4x5x2x16x32xf32> to vector<4x4x1x16x32xf32>
    %52 = vector.shape_cast %51 : vector<4x4x1x16x32xf32> to vector<4x4x16x32xf32>
    %53 = vector.shape_cast %14 : vector<10x10x16x32xf32> to vector<5x2x10x16x32xf32>
    %54 = vector.extract_strided_slice %53 {offsets = [0, 1, 0, 0, 0], sizes = [4, 1, 10, 16, 32], strides = [1, 1, 1, 1, 1]} : vector<5x2x10x16x32xf32> to vector<4x1x10x16x32xf32>
    %55 = vector.shape_cast %54 : vector<4x1x10x16x32xf32> to vector<4x10x16x32xf32>
    %56 = vector.shape_cast %55 : vector<4x10x16x32xf32> to vector<4x5x2x16x32xf32>
    %57 = vector.extract_strided_slice %56 {offsets = [0, 1, 0, 0, 0], sizes = [4, 4, 1, 16, 32], strides = [1, 1, 1, 1, 1]} : vector<4x5x2x16x32xf32> to vector<4x4x1x16x32xf32>
    %58 = vector.shape_cast %57 : vector<4x4x1x16x32xf32> to vector<4x4x16x32xf32>
    %59 = vector.shape_cast %14 : vector<10x10x16x32xf32> to vector<5x2x10x16x32xf32>
    %60 = vector.extract_strided_slice %59 {offsets = [0, 1, 0, 0, 0], sizes = [4, 1, 10, 16, 32], strides = [1, 1, 1, 1, 1]} : vector<5x2x10x16x32xf32> to vector<4x1x10x16x32xf32>
    %61 = vector.shape_cast %60 : vector<4x1x10x16x32xf32> to vector<4x10x16x32xf32>
    %62 = vector.shape_cast %61 : vector<4x10x16x32xf32> to vector<4x5x2x16x32xf32>
    %63 = vector.extract_strided_slice %62 {offsets = [0, 1, 1, 0, 0], sizes = [4, 4, 1, 16, 32], strides = [1, 1, 1, 1, 1]} : vector<4x5x2x16x32xf32> to vector<4x4x1x16x32xf32>
    %64 = vector.shape_cast %63 : vector<4x4x1x16x32xf32> to vector<4x4x16x32xf32>
    %65 = vector.shape_cast %14 : vector<10x10x16x32xf32> to vector<5x2x10x16x32xf32>
    %66 = vector.extract_strided_slice %65 {offsets = [1, 0, 0, 0, 0], sizes = [4, 1, 10, 16, 32], strides = [1, 1, 1, 1, 1]} : vector<5x2x10x16x32xf32> to vector<4x1x10x16x32xf32>
    %67 = vector.shape_cast %66 : vector<4x1x10x16x32xf32> to vector<4x10x16x32xf32>
    %68 = vector.shape_cast %67 : vector<4x10x16x32xf32> to vector<4x5x2x16x32xf32>
    %69 = vector.extract_strided_slice %68 {offsets = [0, 0, 0, 0, 0], sizes = [4, 4, 1, 16, 32], strides = [1, 1, 1, 1, 1]} : vector<4x5x2x16x32xf32> to vector<4x4x1x16x32xf32>
    %70 = vector.shape_cast %69 : vector<4x4x1x16x32xf32> to vector<4x4x16x32xf32>
    %71 = vector.shape_cast %14 : vector<10x10x16x32xf32> to vector<5x2x10x16x32xf32>
    %72 = vector.extract_strided_slice %71 {offsets = [1, 0, 0, 0, 0], sizes = [4, 1, 10, 16, 32], strides = [1, 1, 1, 1, 1]} : vector<5x2x10x16x32xf32> to vector<4x1x10x16x32xf32>
    %73 = vector.shape_cast %72 : vector<4x1x10x16x32xf32> to vector<4x10x16x32xf32>
    %74 = vector.shape_cast %73 : vector<4x10x16x32xf32> to vector<4x5x2x16x32xf32>
    %75 = vector.extract_strided_slice %74 {offsets = [0, 0, 1, 0, 0], sizes = [4, 4, 1, 16, 32], strides = [1, 1, 1, 1, 1]} : vector<4x5x2x16x32xf32> to vector<4x4x1x16x32xf32>
    %76 = vector.shape_cast %75 : vector<4x4x1x16x32xf32> to vector<4x4x16x32xf32>
    %77 = vector.shape_cast %14 : vector<10x10x16x32xf32> to vector<5x2x10x16x32xf32>
    %78 = vector.extract_strided_slice %77 {offsets = [1, 0, 0, 0, 0], sizes = [4, 1, 10, 16, 32], strides = [1, 1, 1, 1, 1]} : vector<5x2x10x16x32xf32> to vector<4x1x10x16x32xf32>
    %79 = vector.shape_cast %78 : vector<4x1x10x16x32xf32> to vector<4x10x16x32xf32>
    %80 = vector.shape_cast %79 : vector<4x10x16x32xf32> to vector<4x5x2x16x32xf32>
    %81 = vector.extract_strided_slice %80 {offsets = [0, 1, 0, 0, 0], sizes = [4, 4, 1, 16, 32], strides = [1, 1, 1, 1, 1]} : vector<4x5x2x16x32xf32> to vector<4x4x1x16x32xf32>
    %82 = vector.shape_cast %81 : vector<4x4x1x16x32xf32> to vector<4x4x16x32xf32>
    %83 = vector.shape_cast %14 : vector<10x10x16x32xf32> to vector<5x2x10x16x32xf32>
    %84 = vector.extract_strided_slice %83 {offsets = [1, 0, 0, 0, 0], sizes = [4, 1, 10, 16, 32], strides = [1, 1, 1, 1, 1]} : vector<5x2x10x16x32xf32> to vector<4x1x10x16x32xf32>
    %85 = vector.shape_cast %84 : vector<4x1x10x16x32xf32> to vector<4x10x16x32xf32>
    %86 = vector.shape_cast %85 : vector<4x10x16x32xf32> to vector<4x5x2x16x32xf32>
    %87 = vector.extract_strided_slice %86 {offsets = [0, 1, 1, 0, 0], sizes = [4, 4, 1, 16, 32], strides = [1, 1, 1, 1, 1]} : vector<4x5x2x16x32xf32> to vector<4x4x1x16x32xf32>
    %88 = vector.shape_cast %87 : vector<4x4x1x16x32xf32> to vector<4x4x16x32xf32>
    %89 = vector.shape_cast %14 : vector<10x10x16x32xf32> to vector<5x2x10x16x32xf32>
    %90 = vector.extract_strided_slice %89 {offsets = [1, 1, 0, 0, 0], sizes = [4, 1, 10, 16, 32], strides = [1, 1, 1, 1, 1]} : vector<5x2x10x16x32xf32> to vector<4x1x10x16x32xf32>
    %91 = vector.shape_cast %90 : vector<4x1x10x16x32xf32> to vector<4x10x16x32xf32>
    %92 = vector.shape_cast %91 : vector<4x10x16x32xf32> to vector<4x5x2x16x32xf32>
    %93 = vector.extract_strided_slice %92 {offsets = [0, 0, 0, 0, 0], sizes = [4, 4, 1, 16, 32], strides = [1, 1, 1, 1, 1]} : vector<4x5x2x16x32xf32> to vector<4x4x1x16x32xf32>
    %94 = vector.shape_cast %93 : vector<4x4x1x16x32xf32> to vector<4x4x16x32xf32>
    %95 = vector.shape_cast %14 : vector<10x10x16x32xf32> to vector<5x2x10x16x32xf32>
    %96 = vector.extract_strided_slice %95 {offsets = [1, 1, 0, 0, 0], sizes = [4, 1, 10, 16, 32], strides = [1, 1, 1, 1, 1]} : vector<5x2x10x16x32xf32> to vector<4x1x10x16x32xf32>
    %97 = vector.shape_cast %96 : vector<4x1x10x16x32xf32> to vector<4x10x16x32xf32>
    %98 = vector.shape_cast %97 : vector<4x10x16x32xf32> to vector<4x5x2x16x32xf32>
    %99 = vector.extract_strided_slice %98 {offsets = [0, 0, 1, 0, 0], sizes = [4, 4, 1, 16, 32], strides = [1, 1, 1, 1, 1]} : vector<4x5x2x16x32xf32> to vector<4x4x1x16x32xf32>
    %100 = vector.shape_cast %99 : vector<4x4x1x16x32xf32> to vector<4x4x16x32xf32>
    %101 = vector.shape_cast %14 : vector<10x10x16x32xf32> to vector<5x2x10x16x32xf32>
    %102 = vector.extract_strided_slice %101 {offsets = [1, 1, 0, 0, 0], sizes = [4, 1, 10, 16, 32], strides = [1, 1, 1, 1, 1]} : vector<5x2x10x16x32xf32> to vector<4x1x10x16x32xf32>
    %103 = vector.shape_cast %102 : vector<4x1x10x16x32xf32> to vector<4x10x16x32xf32>
    %104 = vector.shape_cast %103 : vector<4x10x16x32xf32> to vector<4x5x2x16x32xf32>
    %105 = vector.extract_strided_slice %104 {offsets = [0, 1, 0, 0, 0], sizes = [4, 4, 1, 16, 32], strides = [1, 1, 1, 1, 1]} : vector<4x5x2x16x32xf32> to vector<4x4x1x16x32xf32>
    %106 = vector.shape_cast %105 : vector<4x4x1x16x32xf32> to vector<4x4x16x32xf32>
    %107 = vector.shape_cast %14 : vector<10x10x16x32xf32> to vector<5x2x10x16x32xf32>
    %108 = vector.extract_strided_slice %107 {offsets = [1, 1, 0, 0, 0], sizes = [4, 1, 10, 16, 32], strides = [1, 1, 1, 1, 1]} : vector<5x2x10x16x32xf32> to vector<4x1x10x16x32xf32>
    %109 = vector.shape_cast %108 : vector<4x1x10x16x32xf32> to vector<4x10x16x32xf32>
    %110 = vector.shape_cast %109 : vector<4x10x16x32xf32> to vector<4x5x2x16x32xf32>
    %111 = vector.extract_strided_slice %110 {offsets = [0, 1, 1, 0, 0], sizes = [4, 4, 1, 16, 32], strides = [1, 1, 1, 1, 1]} : vector<4x5x2x16x32xf32> to vector<4x4x1x16x32xf32>
    %112 = vector.shape_cast %111 : vector<4x4x1x16x32xf32> to vector<4x4x16x32xf32>
    %113 = tpu.concatenate %22, %28, %34, %40, %46, %52, %58, %64, %70, %76, %82, %88, %94, %100, %106, %112 in 3 : vector<4x4x16x32xf32>, vector<4x4x16x32xf32>, vector<4x4x16x32xf32>, vector<4x4x16x32xf32>, vector<4x4x16x32xf32>, vector<4x4x16x32xf32>, vector<4x4x16x32xf32>, vector<4x4x16x32xf32>, vector<4x4x16x32xf32>, vector<4x4x16x32xf32>, vector<4x4x16x32xf32>, vector<4x4x16x32xf32>, vector<4x4x16x32xf32>, vector<4x4x16x32xf32>, vector<4x4x16x32xf32>, vector<4x4x16x32xf32> -> vector<4x4x16x512xf32>
    %114 = vector.shape_cast %113 : vector<4x4x16x512xf32> to vector<256x512xf32>
    %cst_12 = arith.constant dense<0.000000e+00> : vector<256x64xf32>
    %115 = tpu.matmul %114, %15, %cst_12 {dimension_numbers = #tpu.dot_dimension_numbers<[1], [0], [0], [1], [0, 0, 1, 1], [], []>} : vector<256x512xf32>, vector<512x64xf32>, vector<256x64xf32> -> vector<256x64xf32>
    %116 = vector.broadcast %16 : vector<1x64xf32> to vector<256x64xf32>
    %117 = arith.addf %115, %116 : vector<256x64xf32>
    %cst_13 = arith.constant 0.000000e+00 : f32
    %118 = vector.broadcast %cst_13 : f32 to vector<256x64xf32>
    %119 = arith.maximumf %117, %118 : vector<256x64xf32>
    %120 = vector.shape_cast %119 : vector<256x64xf32> to vector<4x4x16x64xf32>
    %c0_14 = arith.constant 0 : index
    %c0_15 = arith.constant 0 : index
    %121 = vector.load %arg6[%c0_14, %c0_15] : memref<576x64xf32, #tpu.memory_space<vmem>>, vector<576x64xf32>
    %c0_16 = arith.constant 0 : index
    %c0_17 = arith.constant 0 : index
    %122 = vector.load %arg7[%c0_16, %c0_17] : memref<1x64xf32, #tpu.memory_space<vmem>>, vector<1x64xf32>
    %123 = vector.extract_strided_slice %120 {offsets = [0, 0, 0, 0], sizes = [2, 2, 16, 64], strides = [1, 1, 1, 1]} : vector<4x4x16x64xf32> to vector<2x2x16x64xf32>
    %124 = vector.extract_strided_slice %120 {offsets = [0, 1, 0, 0], sizes = [2, 2, 16, 64], strides = [1, 1, 1, 1]} : vector<4x4x16x64xf32> to vector<2x2x16x64xf32>
    %125 = vector.extract_strided_slice %120 {offsets = [0, 2, 0, 0], sizes = [2, 2, 16, 64], strides = [1, 1, 1, 1]} : vector<4x4x16x64xf32> to vector<2x2x16x64xf32>
    %126 = vector.extract_strided_slice %120 {offsets = [1, 0, 0, 0], sizes = [2, 2, 16, 64], strides = [1, 1, 1, 1]} : vector<4x4x16x64xf32> to vector<2x2x16x64xf32>
    %127 = vector.extract_strided_slice %120 {offsets = [1, 1, 0, 0], sizes = [2, 2, 16, 64], strides = [1, 1, 1, 1]} : vector<4x4x16x64xf32> to vector<2x2x16x64xf32>
    %128 = vector.extract_strided_slice %120 {offsets = [1, 2, 0, 0], sizes = [2, 2, 16, 64], strides = [1, 1, 1, 1]} : vector<4x4x16x64xf32> to vector<2x2x16x64xf32>
    %129 = vector.extract_strided_slice %120 {offsets = [2, 0, 0, 0], sizes = [2, 2, 16, 64], strides = [1, 1, 1, 1]} : vector<4x4x16x64xf32> to vector<2x2x16x64xf32>
    %130 = vector.extract_strided_slice %120 {offsets = [2, 1, 0, 0], sizes = [2, 2, 16, 64], strides = [1, 1, 1, 1]} : vector<4x4x16x64xf32> to vector<2x2x16x64xf32>
    %131 = vector.extract_strided_slice %120 {offsets = [2, 2, 0, 0], sizes = [2, 2, 16, 64], strides = [1, 1, 1, 1]} : vector<4x4x16x64xf32> to vector<2x2x16x64xf32>
    %132 = tpu.concatenate %123, %124, %125, %126, %127, %128, %129, %130, %131 in 3 : vector<2x2x16x64xf32>, vector<2x2x16x64xf32>, vector<2x2x16x64xf32>, vector<2x2x16x64xf32>, vector<2x2x16x64xf32>, vector<2x2x16x64xf32>, vector<2x2x16x64xf32>, vector<2x2x16x64xf32>, vector<2x2x16x64xf32> -> vector<2x2x16x576xf32>
    %133 = vector.shape_cast %132 : vector<2x2x16x576xf32> to vector<64x576xf32>
    %cst_18 = arith.constant dense<0.000000e+00> : vector<64x64xf32>
    %134 = tpu.matmul %133, %121, %cst_18 {dimension_numbers = #tpu.dot_dimension_numbers<[1], [0], [0], [1], [0, 0, 1, 1], [], []>} : vector<64x576xf32>, vector<576x64xf32>, vector<64x64xf32> -> vector<64x64xf32>
    %135 = vector.broadcast %122 : vector<1x64xf32> to vector<64x64xf32>
    %136 = arith.addf %134, %135 : vector<64x64xf32>
    %cst_19 = arith.constant 0.000000e+00 : f32
    %137 = vector.broadcast %cst_19 : f32 to vector<64x64xf32>
    %138 = arith.maximumf %136, %137 : vector<64x64xf32>
    %139 = vector.shape_cast %138 : vector<64x64xf32> to vector<2x2x16x64xf32>
    %140 = vector.extract_strided_slice %139 {offsets = [0, 0, 0, 0], sizes = [1, 1, 16, 64], strides = [1, 1, 1, 1]} : vector<2x2x16x64xf32> to vector<1x1x16x64xf32>
    %141 = vector.shape_cast %140 : vector<1x1x16x64xf32> to vector<16x64xf32>
    %142 = vector.extract_strided_slice %139 {offsets = [0, 1, 0, 0], sizes = [1, 1, 16, 64], strides = [1, 1, 1, 1]} : vector<2x2x16x64xf32> to vector<1x1x16x64xf32>
    %143 = vector.shape_cast %142 : vector<1x1x16x64xf32> to vector<16x64xf32>
    %144 = vector.extract_strided_slice %139 {offsets = [1, 0, 0, 0], sizes = [1, 1, 16, 64], strides = [1, 1, 1, 1]} : vector<2x2x16x64xf32> to vector<1x1x16x64xf32>
    %145 = vector.shape_cast %144 : vector<1x1x16x64xf32> to vector<16x64xf32>
    %146 = vector.extract_strided_slice %139 {offsets = [1, 1, 0, 0], sizes = [1, 1, 16, 64], strides = [1, 1, 1, 1]} : vector<2x2x16x64xf32> to vector<1x1x16x64xf32>
    %147 = vector.shape_cast %146 : vector<1x1x16x64xf32> to vector<16x64xf32>
    %148 = tpu.concatenate %141, %143, %145, %147 in 1 : vector<16x64xf32>, vector<16x64xf32>, vector<16x64xf32>, vector<16x64xf32> -> vector<16x256xf32>
    %c0_20 = arith.constant 0 : index
    %c0_21 = arith.constant 0 : index
    %149 = vector.load %arg8[%c0_20, %c0_21] : memref<256x512xf32, #tpu.memory_space<vmem>>, vector<256x512xf32>
    %cst_22 = arith.constant dense<0.000000e+00> : vector<16x512xf32>
    %150 = tpu.matmul %148, %149, %cst_22 {dimension_numbers = #tpu.dot_dimension_numbers<[1], [0], [0], [1], [0, 0, 1, 1], [], []>} : vector<16x256xf32>, vector<256x512xf32>, vector<16x512xf32> -> vector<16x512xf32>
    %c0_23 = arith.constant 0 : index
    %c0_24 = arith.constant 0 : index
    %151 = vector.load %arg9[%c0_23, %c0_24] : memref<1x512xf32, #tpu.memory_space<vmem>>, vector<1x512xf32>
    %152 = vector.broadcast %151 : vector<1x512xf32> to vector<16x512xf32>
    %153 = arith.addf %150, %152 : vector<16x512xf32>
    %cst_25 = arith.constant 0.000000e+00 : f32
    %154 = vector.broadcast %cst_25 : f32 to vector<16x512xf32>
    %155 = arith.maximumf %153, %154 : vector<16x512xf32>
    %c0_26 = arith.constant 0 : index
    %c0_27 = arith.constant 0 : index
    %156 = vector.load %arg10[%c0_26, %c0_27] : memref<512x6xf32, #tpu.memory_space<vmem>>, vector<512x6xf32>
    %cst_28 = arith.constant dense<0.000000e+00> : vector<16x6xf32>
    %157 = tpu.matmul %155, %156, %cst_28 {dimension_numbers = #tpu.dot_dimension_numbers<[1], [0], [0], [1], [0, 0, 1, 1], [], []>} : vector<16x512xf32>, vector<512x6xf32>, vector<16x6xf32> -> vector<16x6xf32>
    %c0_29 = arith.constant 0 : index
    %c0_30 = arith.constant 0 : index
    %158 = vector.load %arg11[%c0_29, %c0_30] : memref<1x6xf32, #tpu.memory_space<vmem>>, vector<1x6xf32>
    %159 = vector.broadcast %158 : vector<1x6xf32> to vector<16x6xf32>
    %160 = arith.addf %157, %159 : vector<16x6xf32>
    %c0_31 = arith.constant 0 : index
    %c0_32 = arith.constant 0 : index
    %161 = vector.load %arg12[%c0_31, %c0_32] : memref<16x6xf32, #tpu.memory_space<vmem>>, vector<16x6xf32>
    tpu.vector_store %arg12[%c0_31, %c0_32], %160 {strides = array<i32>} : memref<16x6xf32, #tpu.memory_space<vmem>>, vector<16x6xf32>,
    return
  }
  func.func @transform_0(%arg0: i32) -> (i32, i32, i32, i32) {
    %c0_i32 = arith.constant 0 : i32
    %c0_i32_0 = arith.constant 0 : i32
    %c0_i32_1 = arith.constant 0 : i32
    %c0_i32_2 = arith.constant 0 : i32
    return %c0_i32, %c0_i32_0, %arg0, %c0_i32_1 : i32, i32, i32, i32
  }
  func.func @transform_1(%arg0: i32) -> (i32, i32) {
    %c0_i32 = arith.constant 0 : i32
    %c0_i32_0 = arith.constant 0 : i32
    %c0_i32_1 = arith.constant 0 : i32
    return %c0_i32, %c0_i32_0 : i32, i32
  }
  func.func @transform_2(%arg0: i32) -> (i32, i32) {
    %c0_i32 = arith.constant 0 : i32
    %c0_i32_0 = arith.constant 0 : i32
    %c0_i32_1 = arith.constant 0 : i32
    return %c0_i32, %c0_i32_0 : i32, i32
  }
  func.func @transform_3(%arg0: i32) -> (i32, i32) {
    %c0_i32 = arith.constant 0 : i32
    %c0_i32_0 = arith.constant 0 : i32
    %c0_i32_1 = arith.constant 0 : i32
    return %c0_i32, %c0_i32_0 : i32, i32
  }
  func.func @transform_4(%arg0: i32) -> (i32, i32) {
    %c0_i32 = arith.constant 0 : i32
    %c0_i32_0 = arith.constant 0 : i32
    %c0_i32_1 = arith.constant 0 : i32
    return %c0_i32, %c0_i32_0 : i32, i32
  }
  func.func @transform_5(%arg0: i32) -> (i32, i32) {
    %c0_i32 = arith.constant 0 : i32
    %c0_i32_0 = arith.constant 0 : i32
    %c0_i32_1 = arith.constant 0 : i32
    return %c0_i32, %c0_i32_0 : i32, i32
  }
  func.func @transform_6(%arg0: i32) -> (i32, i32) {
    %c0_i32 = arith.constant 0 : i32
    %c0_i32_0 = arith.constant 0 : i32
    %c0_i32_1 = arith.constant 0 : i32
    return %c0_i32, %c0_i32_0 : i32, i32
  }
  func.func @transform_7(%arg0: i32) -> (i32, i32) {
    %c0_i32 = arith.constant 0 : i32
    %c0_i32_0 = arith.constant 0 : i32
    %c0_i32_1 = arith.constant 0 : i32
    return %c0_i32, %c0_i32_0 : i32, i32
  }
  func.func @transform_8(%arg0: i32) -> (i32, i32) {
    %c0_i32 = arith.constant 0 : i32
    %c0_i32_0 = arith.constant 0 : i32
    %c0_i32_1 = arith.constant 0 : i32
    return %c0_i32, %c0_i32_0 : i32, i32
  }
  func.func @transform_9(%arg0: i32) -> (i32, i32) {
    %c0_i32 = arith.constant 0 : i32
    %c0_i32_0 = arith.constant 0 : i32
    %c0_i32_1 = arith.constant 0 : i32
    return %c0_i32, %c0_i32_0 : i32, i32
  }
  func.func @transform_10(%arg0: i32) -> (i32, i32) {
    %c0_i32 = arith.constant 0 : i32
    %c0_i32_0 = arith.constant 0 : i32
    %c0_i32_1 = arith.constant 0 : i32
    return %c0_i32, %c0_i32_0 : i32, i32
  }
  func.func @transform_11(%arg0: i32) -> (i32, i32) {
    %c0_i32 = arith.constant 0 : i32
    %c0_i32_0 = arith.constant 0 : i32
    return %arg0, %c0_i32 : i32, i32
  }
}

</mosaic_0001>

<bundles_post_ra>
// kernel: cnn_dqn_forward.1
= control target key start
LH: loop header
LB: loop body
LE: loop exit
PB: predicated region body
PF: predicated region fallthrough
CT: control target
= control target key end

     0   :  { %s6760_s29 = smov 64   ;;  %vm1193_vm0 = vcmask 523264   ;;  %s6761_s17 = smov 96   ;;  %vm3816_vm1 = vcmask 261120   ;;  %vm3881_vm2 = vcmask 785408   ;;  %vm5486_vm3 = vcmask 48128   ;;  %s13341_s0 = inlined_call_operand.vmem [shape: f32[11,11,16,64], index: 0, kind: input, shape index: {}]   ;;  %s13342_s1 = inlined_call_operand.vmem [shape: f32[256,32], index: 1, kind: input, shape index: {}]   ;;  %s13343_s2 = inlined_call_operand.vmem [shape: f32[1,32], index: 2, kind: input, shape index: {}]   ;;  %s13344_s3 = inlined_call_operand.vmem [shape: f32[512,64], index: 3, kind: input, shape index: {}]   ;;  %s13345_s4 = inlined_call_operand.vmem [shape: f32[1,64], index: 4, kind: input, shape index: {}]   ;;  %s13346_s5 = inlined_call_operand.vmem [shape: f32[576,64], index: 5, kind: input, shape index: {}]   ;;  %s13347_s6 = inlined_call_operand.vmem [shape: f32[1,64], index: 6, kind: input, shape index: {}]   ;;  %s13348_s7 = inlined_call_operand.vmem [shape: f32[256,512], index: 7, kind: input, shape index: {}]   ;;  %s13349_s9 = inlined_call_operand.vmem [shape: f32[512,6], index: 9, kind: input, shape index: {}]   ;;  %s13350_s10 = inlined_call_operand.vmem [shape: f32[1,6], index: 10, kind: input, shape index: {}]   ;;  %s13351_s8 = inlined_call_operand.vmem [shape: f32[1,512], index: 8, kind: input, shape index: {}]   ;;  %s13352_s11 = inlined_call_operand.vmem [shape: f32[16,6], index: 11, kind: output, shape index: {}]  }
   0x1   :  { %v6826_v0 = vld [vmem:[%s13341_s0 + $0x30] sm:$0xff]  ;;  %v6831_v1 = vld [vmem:[%s13341_s0 + $0xe0] sm:$0xff]  ;;  %v6863_v9 = vld [vmem:[%s13341_s0 + $0x38] sm:$0xff]  ;;  %s6762_s18 = smov 32  }
   0x2   :  { %v6836_v2 = vld [vmem:[%s13341_s0 + $0x20] sm:$0xff]  ;;  %v5556_v3 = vpack.i.bf16 %v6831_v1, %v6826_v0  ;;  %v6843_v4 = vld [vmem:[%s13341_s0 + $0xd0] sm:$0xff]  ;;  %v6870_v10 = vld [vmem:[%s13341_s0 + $0xe8] sm:$0xff] }
   0x3   :  { %v6848_v5 = vld [vmem:[%s13341_s0 + $0x10] sm:$0xff]  ;;  %v6853_v6 = vld [vmem:[%s13341_s0 + $0xc0] sm:$0xff]  ;;  %v5546_v7 = vpack.i.bf16 %v6843_v4, %v6836_v2  ;;  %v6875_v11 = vld [vmem:[%s13341_s0 + $0x28] sm:$0xff]  ;;  %v5561_v15 = vpack.i.bf16 %v6870_v10, %v6863_v9 }
   0x4   :  { %v5536_v8 = vpack.i.bf16 %v6853_v6, %v6848_v5  ;;  %5557 = vrot.lane.b32.xlu2 %v5556_v3, %s6760_s29  ;;  %v6880_v12 = vld [vmem:[%s13341_s0 + $0xd8] sm:$0xff]  ;;  %v6890_v14 = vld [vmem:[%s13341_s0 + $0xc8] sm:$0xff]  ;;  %v6902_v18 = vld [vmem:[%s13341_s0 + $0x50] sm:$0xff] }
   0x5   :  { %5547 = vrot.lane.b32.xlu1 %v5546_v7, %s6760_s29  ;;  %v6885_v13 = vld [vmem:[%s13341_s0 + $0x18] sm:$0xff]  ;;  %v5551_v16 = vpack.i.bf16 %v6880_v12, %v6875_v11  ;;  %v6909_v19 = vld [vmem:[%s13341_s0 + $0x100] sm:$0xff]  ;;  %v6914_v20 = vld [vmem:[%s13341_s0 + $0x48] sm:$0xff] }
   0x6   :  { %5537 = vrot.lane.b32.xlu0 %v5536_v8, %s6760_s29  ;;  %v5541_v17 = vpack.i.bf16 %v6890_v14, %v6885_v13  ;;  %v6919_v21 = vld [vmem:[%s13341_s0 + $0xf8] sm:$0xff]  ;;  %v6924_v22 = vld [vmem:[%s13341_s0 + $0x40] sm:$0xff]  ;;  %v6929_v23 = vld [vmem:[%s13341_s0 + $0xf0] sm:$0xff]  ;;  %v5576_v24 = vpack.i.bf16 %v6909_v19, %v6902_v18 }
   0x7   :  { %v5571_v25 = vpack.i.bf16 %v6919_v21, %v6914_v20  ;;  %v5566_v26 = vpack.i.bf16 %v6929_v23, %v6924_v22  ;;  %v6941_v27 = vld [vmem:[%s13341_s0 + $0x68] sm:$0xff]  ;;  %v6948_v28 = vld [vmem:[%s13341_s0 + $0x118] sm:$0xff]  ;;  %v6953_v29 = vld [vmem:[%s13341_s0 + $0x60] sm:$0xff] }
   0x8   :  { %v6958_v30 = vld [vmem:[%s13341_s0 + $0x110] sm:$0xff]  ;;  %v6963_v31 = vld [vmem:[%s13341_s0 + $0x58] sm:$0xff]  ;;  %v6968_v32 = vld [vmem:[%s13341_s0 + $0x108] sm:$0xff]  ;;  %v5591_v33 = vpack.i.bf16 %v6948_v28, %v6941_v27 }
   0x9   :  { %v5586_v34 = vpack.i.bf16 %v6958_v30, %v6953_v29  ;;  %v5581_v35 = vpack.i.bf16 %v6968_v32, %v6963_v31  ;;  %v54_v36 = vld [vmem:[%s13341_s0 + $0x80] sm:$0xff]  ;;  %v76_v37 = vld [vmem:[%s13341_s0 + $0x130] sm:$0xff]  ;;  %v6988_v38 = vld [vmem:[%s13341_s0 + $0x78] sm:$0xff] }
   0xa   :  { %v6993_v39 = vld [vmem:[%s13341_s0 + $0x128] sm:$0xff]  ;;  %v6998_v40 = vld [vmem:[%s13341_s0 + $0x70] sm:$0xff]  ;;  %v7003_v41 = vld [vmem:[%s13341_s0 + $0x120] sm:$0xff]  ;;  %v5606_v42 = vpack.i.bf16 %v76_v37, %v54_v36 }
   0xb   :  { %v5601_v43 = vpack.i.bf16 %v6993_v39, %v6988_v38  ;;  %v5596_v44 = vpack.i.bf16 %v7003_v41, %v6998_v40  ;;  %v57_v45 = vld [vmem:[%s13341_s0 + $0x98] sm:$0xff]  ;;  %v79_v46 = vld [vmem:[%s13341_s0 + $0x148] sm:$0xff]  ;;  %v56_v47 = vld [vmem:[%s13341_s0 + $0x90] sm:$0xff] }
   0xc   :  { %5562 = vrot.lane.b32.xlu2 %v5561_v15, %s6760_s29  ;;  %v78_v48 = vld [vmem:[%s13341_s0 + $0x140] sm:$0xff]  ;;  %v55_v49 = vld [vmem:[%s13341_s0 + $0x88] sm:$0xff]  ;;  %v77_v50 = vld [vmem:[%s13341_s0 + $0x138] sm:$0xff]  ;;  %v5621_v51 = vpack.i.bf16 %v79_v46, %v57_v45 }
   0xd   :  { %5552 = vrot.lane.b32.xlu1 %v5551_v16, %s6760_s29  ;;  %v5616_v52 = vpack.i.bf16 %v78_v48, %v56_v47  ;;  %v5611_v53 = vpack.i.bf16 %v77_v50, %v55_v49  ;;  %v59_v54 = vld [vmem:[%s13341_s0 + $0xa8] sm:$0xff]  ;;  %v81_v55 = vld [vmem:[%s13341_s0 + $0x158] sm:$0xff]  ;;  %v58_v56 = vld [vmem:[%s13341_s0 + $0xa0] sm:$0xff] }
   0xe   :  { %5542 = vrot.lane.b32.xlu0 %v5541_v17, %s6760_s29  ;;  %v80_v57 = vld [vmem:[%s13341_s0 + $0x150] sm:$0xff]  ;;  %v5631_v59 = vpack.i.bf16 %v81_v55, %v59_v54  ;;  %v295_v61 = vld [vmem:[%s13342_s1 + $0x78] sm:$0xff]  ;;  %v87_v63 = vld [vmem:[%s13341_s0 + $0x188] sm:$0xff] }
   0xf   :  { %v84_v58 = vld [vmem:[%s13341_s0 + $0x170] sm:$0xff]  ;;  %v5626_v60 = vpack.i.bf16 %v80_v57, %v58_v56  ;;  %v311_v62 = vld [vmem:[%s13342_s1 + $0xf8] sm:$0xff]  ;;  %1417 = vmatpush.msra.mxu0 %v295_v61  ;;  %5501 = vmatpush.msra.mxu2 %v295_v61  ;;  %v86_v3 = vld [vmem:[%s13341_s0 + $0x180] sm:$0xff] }
  0x10   :  { %2034 = vmatpush.msra.mxu1 %v311_v62  ;;  %5517 = vmatpush.msra.mxu3 %v311_v62  ;;  %v85_v7 = vld [vmem:[%s13341_s0 + $0x178] sm:$0xff]  ;;  %v294_v8 = vld [vmem:[%s13342_s1 + $0x70] sm:$0xff]  ;;  %v293_v16 = vld [vmem:[%s13342_s1 + $0x68] sm:$0xff] }
  0x11   :  { %v310_v15 = vld [vmem:[%s13342_s1 + $0xf0] sm:$0xff]  ;;  %1418 = vmatpush.msra.mxu0 %v294_v8  ;;  %v309_v17 = vld [vmem:[%s13342_s1 + $0xe8] sm:$0xff]  ;;  %5502 = vmatpush.msra.mxu2 %v294_v8  ;;  %v307_v36 = vld [vmem:[%s13342_s1 + $0xd8] sm:$0xff] }
  0x12   :  { %2035 = vmatpush.msra.mxu1 %v310_v15  ;;  %5518 = vmatpush.msra.mxu3 %v310_v15  ;;  %v290_v37 = vld [vmem:[%s13342_s1 + $0x50] sm:$0xff]  ;;  %v288_v45 = vld [vmem:[%s13342_s1 + $0x40] sm:$0xff]  ;;  %v93_v46 = vld [vmem:[%s13341_s0 + $0x1b8] sm:$0xff] }
  0x13   :  { %1419 = vmatpush.msra.mxu0 %v293_v16  ;;  %5503 = vmatpush.msra.mxu2 %v293_v16  ;;  %v304_v47 = vld [vmem:[%s13342_s1 + $0xc0] sm:$0xff]  ;;  %v92_v48 = vld [vmem:[%s13341_s0 + $0x1b0] sm:$0xff]  ;;  %v91_v49 = vld [vmem:[%s13341_s0 + $0x1a8] sm:$0xff] }
  0x14   :  { %5577 = vrot.lane.b32.xlu2 %v5576_v24, %s6760_s29  ;;  %v292_v24 = vld [vmem:[%s13342_s1 + $0x60] sm:$0xff]  ;;  %2036 = vmatpush.msra.mxu1 %v309_v17  ;;  %v287_v50 = vld [vmem:[%s13342_s1 + $0x38] sm:$0xff]  ;;  %v285_v54 = vld [vmem:[%s13342_s1 + $0x28] sm:$0xff] }
  0x15   :  { %5572 = vrot.lane.b32.xlu1 %v5571_v25, %s6760_s29  ;;  %v308_v25 = vld [vmem:[%s13342_s1 + $0xe0] sm:$0xff]  ;;  %5519 = vmatpush.msra.mxu3 %v309_v17  ;;  %v301_v55 = vld [vmem:[%s13342_s1 + $0xa8] sm:$0xff]  ;;  %v96_v56 = vld [vmem:[%s13341_s0 + $0x1d0] sm:$0xff] }
  0x16   :  { %5567 = vrot.lane.b32.xlu0 %v5566_v26, %s6760_s29  ;;  %v90_v26 = vld [vmem:[%s13341_s0 + $0x1a0] sm:$0xff]  ;;  %1420 = vmatpush.msra.mxu0 %v292_v24  ;;  %v283_v61 = vld [vmem:[%s13342_s1 + $0x18] sm:$0xff]  ;;  %v99_v8 = vld [vmem:[%s13341_s0 + $0x1e8] sm:$0xff] }
  0x17   :  { %2037 = vmatpush.msra.mxu1 %v308_v25  ;;  %5504 = vmatpush.msra.mxu2 %v292_v24  ;;  %v284_v57 = vld [vmem:[%s13342_s1 + $0x20] sm:$0xff]  ;;  %v299_v62 = vld [vmem:[%s13342_s1 + $0x98] sm:$0xff]  ;;  %v297_v15 = vld [vmem:[%s13342_s1 + $0x88] sm:$0xff] }
  0x18   :  { %5520 = vmatpush.msra.mxu3 %v308_v25  ;;  %v98_v16 = vld [vmem:[%s13341_s0 + $0x1e0] sm:$0xff]  ;;  %v97_v17 = vld [vmem:[%s13341_s0 + $0x1d8] sm:$0xff] }
  0x19   :  { %2038 = vmatpush.msra.mxu1 %v307_v36  ;;  %v280_v24 = vld [vmem:[%s13342_s1] sm:$0xff] }
  0x1a   :  { %5521 = vmatpush.msra.mxu3 %v307_v36  ;;  %v296_v25 = vld [vmem:[%s13342_s1 + $0x80] sm:$0xff] }
  0x1c   :  { %5592 = vrot.lane.b32.xlu2 %v5591_v33, %s6760_s29  ;;  %v291_v33 = vld [vmem:[%s13342_s1 + $0x58] sm:$0xff] }
  0x1d   :  { %5587 = vrot.lane.b32.xlu1 %v5586_v34, %s6760_s29  ;;  %v89_v34 = vld [vmem:[%s13341_s0 + $0x198] sm:$0xff]  ;;  %1421 = vmatpush.msra.mxu0 %v291_v33 }
  0x1e   :  { %5582 = vrot.lane.b32.xlu0 %v5581_v35, %s6760_s29  ;;  %v88_v35 = vld [vmem:[%s13341_s0 + $0x190] sm:$0xff]  ;;  %5505 = vmatpush.msra.mxu2 %v291_v33  ;;  %v102_v33 = vld [vmem:[%s13341_s0 + $0x200] sm:$0xff] }
  0x1f   :  { %1422 = vmatpush.msra.mxu0 %v290_v37 }
  0x20   :  { %5506 = vmatpush.msra.mxu2 %v290_v37  ;;  %v107_v37 = vld [vmem:[%s13341_s0 + $0x228] sm:$0xff] }
  0x24   :  { %5607 = vrot.lane.b32.xlu2 %v5606_v42, %s6760_s29  ;;  %v306_v42 = vld [vmem:[%s13342_s1 + $0xd0] sm:$0xff] }
  0x25   :  { %5602 = vrot.lane.b32.xlu1 %v5601_v43, %s6760_s29  ;;  %v289_v43 = vld [vmem:[%s13342_s1 + $0x48] sm:$0xff]  ;;  %2039 = vmatpush.msra.mxu1 %v306_v42 }
  0x26   :  { %5597 = vrot.lane.b32.xlu0 %v5596_v44, %s6760_s29  ;;  %v305_v44 = vld [vmem:[%s13342_s1 + $0xc8] sm:$0xff]  ;;  %1423 = vmatpush.msra.mxu0 %v289_v43 }
  0x27   :  { %5522 = vmatpush.msra.mxu3 %v306_v42  ;;  %2040 = vmatpush.msra.mxu1 %v305_v44  ;;  %v106_v42 = vld [vmem:[%s13341_s0 + $0x220] sm:$0xff] }
  0x28   :  { %1424 = vmatpush.msra.mxu0 %v288_v45  ;;  %5507 = vmatpush.msra.mxu2 %v289_v43  ;;  %v103_v43 = vld [vmem:[%s13341_s0 + $0x208] sm:$0xff] }
  0x29   :  { %5523 = vmatpush.msra.mxu3 %v305_v44  ;;  %2041 = vmatpush.msra.mxu1 %v304_v47 }
  0x2a   :  { %1425 = vmatpush.msra.mxu0 %v287_v50  ;;  %5508 = vmatpush.msra.mxu2 %v288_v45  ;;  %v110_v45 = vld [vmem:[%s13341_s0 + $0x240] sm:$0xff] }
  0x2b   :  { %5524 = vmatpush.msra.mxu3 %v304_v47  ;;  %v108_v47 = vld [vmem:[%s13341_s0 + $0x230] sm:$0xff] }
  0x2c   :  { %5622 = vrot.lane.b32.xlu2 %v5621_v51, %s6760_s29  ;;  %v303_v51 = vld [vmem:[%s13342_s1 + $0xb8] sm:$0xff]  ;;  %5509 = vmatpush.msra.mxu2 %v287_v50 }
  0x2d   :  { %5617 = vrot.lane.b32.xlu1 %v5616_v52, %s6760_s29  ;;  %v286_v52 = vld [vmem:[%s13342_s1 + $0x30] sm:$0xff]  ;;  %2042 = vmatpush.msra.mxu1 %v303_v51 }
  0x2e   :  { %5612 = vrot.lane.b32.xlu0 %v5611_v53, %s6760_s29  ;;  %v302_v53 = vld [vmem:[%s13342_s1 + $0xb0] sm:$0xff]  ;;  %1426 = vmatpush.msra.mxu0 %v286_v52 }
  0x2f   :  { %2043 = vmatpush.msra.mxu1 %v302_v53  ;;  %5525 = vmatpush.msra.mxu3 %v303_v51  ;;  %v38_v51 = vld [vmem:[%s13341_s0] sm:$0xff] }
  0x30   :  { %1427 = vmatpush.msra.mxu0 %v285_v54  ;;  %5510 = vmatpush.msra.mxu2 %v286_v52  ;;  %v60_v52 = vld [vmem:[%s13341_s0 + $0xb0] sm:$0xff] }
  0x31   :  { %2044 = vmatpush.msra.mxu1 %v301_v55  ;;  %5526 = vmatpush.msra.mxu3 %v302_v53 }
  0x32   :  { %1428 = vmatpush.msra.mxu0 %v284_v57  ;;  %5511 = vmatpush.msra.mxu2 %v285_v54 }
  0x33   :  { %5527 = vmatpush.msra.mxu3 %v301_v55  ;;  %v113_v55 = vld [vmem:[%s13341_s0 + $0x258] sm:$0xff] }
  0x34   :  { %593 = vrot.lane.b32.xlu2 %v84_v58, %s6760_s29  ;;  %v95_v58 = vld [vmem:[%s13341_s0 + $0x1c8] sm:$0xff]  ;;  %1429 = vmatpush.msra.mxu0 %v283_v61 }
  0x35   :  { %5632 = vrot.lane.b32.xlu1 %v5631_v59, %s6760_s29  ;;  %v94_v59 = vld [vmem:[%s13341_s0 + $0x1c0] sm:$0xff]  ;;  %5512 = vmatpush.msra.mxu2 %v284_v57 }
  0x36   :  { %5627 = vrot.lane.b32.xlu0 %v5626_v60, %s6760_s29  ;;  %v300_v60 = vld [vmem:[%s13342_s1 + $0xa0] sm:$0xff] }
  0x37   :  { %2045 = vmatpush.msra.mxu1 %v300_v60  ;;  %5528 = vmatpush.msra.mxu3 %v300_v60  ;;  %v118_v60 = vld [vmem:[%s13341_s0 + $0x280] sm:$0xff] }
  0x38   :  { %5513 = vmatpush.msra.mxu2 %v283_v61  ;;  %v119_v61 = vld [vmem:[%s13341_s0 + $0x288] sm:$0xff] }
  0x39   :  { %2046 = vmatpush.msra.mxu1 %v299_v62  ;;  %5529 = vmatpush.msra.mxu3 %v299_v62  ;;  %v116_v62 = vld [vmem:[%s13341_s0 + $0x270] sm:$0xff] }
  0x3c   :  { %599 = vrot.lane.b32.xlu2 %v87_v63, %s6760_s29  ;;  %v282_v63 = vld [vmem:[%s13342_s1 + $0x10] sm:$0xff] }
  0x3d   :  { %597 = vrot.lane.b32.xlu1 %v86_v3, %s6760_s29  ;;  %v298_v3 = vld [vmem:[%s13342_s1 + $0x90] sm:$0xff]  ;;  %1430 = vmatpush.msra.mxu0 %v282_v63 }
  0x3e   :  { %595 = vrot.lane.b32.xlu0 %v85_v7, %s6760_s29  ;;  %v281_v7 = vld [vmem:[%s13342_s1 + $0x8] sm:$0xff]  ;;  %2047 = vmatpush.msra.mxu1 %v298_v3 }
  0x3f   :  { %1431 = vmatpush.msra.mxu0 %v281_v7  ;;  %5514 = vmatpush.msra.mxu2 %v282_v63 }
  0x40   :  { %2048 = vmatpush.msra.mxu1 %v297_v15  ;;  %5530 = vmatpush.msra.mxu3 %v298_v3  ;;  %v117_v3 = vld [vmem:[%s13341_s0 + $0x278] sm:$0xff] }
  0x41   :  { %1432 = vmatpush.msra.mxu0 %v280_v24  ;;  %5515 = vmatpush.msra.mxu2 %v281_v7  ;;  %v114_v7 = vld [vmem:[%s13341_s0 + $0x260] sm:$0xff] }
  0x42   :  { %2049 = vmatpush.msra.mxu1 %v296_v25  ;;  %5531 = vmatpush.msra.mxu3 %v297_v15 }
  0x43   :  { %5516 = vmatpush.msra.mxu2 %v280_v24  ;;  %v61_v24 = vld [vmem:[%s13341_s0 + $0xb8] sm:$0xff] }
  0x44   :  { %605 = vrot.lane.b32.xlu2 %v90_v26, %s6760_s29  ;;  %5532 = vmatpush.msra.mxu3 %v296_v25 }
  0x45   :  { %603 = vrot.lane.b32.xlu1 %v89_v34, %s6760_s29  ;;  %v101_v34 = vld [vmem:[%s13341_s0 + $0x1f8] sm:$0xff] }
  0x46   :  { %601 = vrot.lane.b32.xlu0 %v88_v35, %s6760_s29  ;;  %v100_v35 = vld [vmem:[%s13341_s0 + $0x1f0] sm:$0xff] }
  0x4c   :  { %611 = vrot.lane.b32.xlu2 %v93_v46, %s6760_s29  ;;  %v109_v46 = vld [vmem:[%s13341_s0 + $0x238] sm:$0xff] }
  0x4d   :  { %609 = vrot.lane.b32.xlu1 %v92_v48, %s6760_s29 }
  0x4e   :  { %607 = vrot.lane.b32.xlu0 %v91_v49, %s6760_s29 }
  0x54   :  { %617 = vrot.lane.b32.xlu2 %v96_v56, %s6760_s29 }
  0x55   :  { %615 = vrot.lane.b32.xlu1 %v95_v58, %s6760_s29  ;;  %v112_v58 = vld [vmem:[%s13341_s0 + $0x250] sm:$0xff] }
  0x56   :  { %613 = vrot.lane.b32.xlu0 %v94_v59, %s6760_s29  ;;  %v111_v59 = vld [vmem:[%s13341_s0 + $0x248] sm:$0xff] }
  0x5c   :  { %623 = vrot.lane.b32.xlu2 %v99_v8, %s6760_s29  ;;  %v115_v8 = vld [vmem:[%s13341_s0 + $0x268] sm:$0xff] }
  0x5d   :  { %621 = vrot.lane.b32.xlu1 %v98_v16, %s6760_s29 }
  0x5e   :  { %619 = vrot.lane.b32.xlu0 %v97_v17, %s6760_s29  ;;  %v7207_v26 = vpop.permute.xlu2 %5557  ;;  %v39_v17 = vld [vmem:[%s13341_s0 + $0x8] sm:$0xff] }
  0x64   :  { %629 = vrot.lane.b32.xlu2 %v102_v33, %s6760_s29 }
  0x65   :  { %627 = vrot.lane.b32.xlu1 %v101_v34, %s6760_s29  ;;  %v5646_v34 = vpack.i.bf16 %v119_v61, %v118_v60 }
  0x66   :  { %625 = vrot.lane.b32.xlu0 %v100_v35, %s6760_s29  ;;  %v7221_v36 = vpop.permute.xlu2 %5562  ;;  %v5641_v35 = vpack.i.bf16 %v117_v3, %v116_v62 }
  0x6c   :  { %635 = vrot.lane.b32.xlu2 %v107_v37, %s6760_s29  ;;  %v5636_v37 = vpack.i.bf16 %v115_v8, %v114_v7  ;;  %v132_v8 = vld [vmem:[%s13341_s0 + $0x2f0] sm:$0xff] }
  0x6d   :  { %633 = vrot.lane.b32.xlu1 %v106_v42, %s6760_s29 }
  0x6e   :  { %631 = vrot.lane.b32.xlu0 %v103_v43, %s6760_s29  ;;  %v7235_v44 = vpop.permute.xlu2 %5577 }
  0x74   :  { %641 = vrot.lane.b32.xlu2 %v110_v45, %s6760_s29 }
  0x75   :  { %639 = vrot.lane.b32.xlu1 %v109_v46, %s6760_s29 }
  0x76   :  { %637 = vrot.lane.b32.xlu0 %v108_v47, %s6760_s29  ;;  %v7249_v48 = vpop.permute.xlu2 %5592  ;;  %v124_v47 = vld [vmem:[%s13341_s0 + $0x2b0] sm:$0xff] }
  0x77   :  { %v5548_v49 = vpop.permute.xlu1 %5547 }
  0x78   :  { %v5538_v50 = vpop.permute.xlu0 %5537  ;;  %v5550_v45 = vunpack.i.h.bf16 %v5548_v49  ;;  %v5549_v46 = vunpack.i.l.bf16 %v5548_v49  ;;  %v123_v49 = vld [vmem:[%s13341_s0 + $0x2a8] sm:$0xff] }
  0x79   :  { %v5540_v53 = vunpack.i.h.bf16 %v5538_v50  ;;  %v5539_v54 = vunpack.i.l.bf16 %v5538_v50  ;;  %v125_v50 = vld [vmem:[%s13341_s0 + $0x2b8] sm:$0xff] }
  0x7a   :  { %v5661_v60 = vpack.i.bf16 %v125_v50, %v124_v47  ;;  %v5559_v47 = vunpack.i.l.bf16 %v7207_v26  ;;  %v136_v50 = vld [vmem:[%s13341_s0 + $0x310] sm:$0xff] }
  0x7b   :  { %v1194_v56 = vsel %vm1193_vm0, %v38_v51, %v5539_v54  ;;  %v7262_v57 = vsel %vm1193_vm0, %v60_v52, %v5540_v53  ;;  %v122_v51 = vld [vmem:[%s13341_s0 + $0x2a0] sm:$0xff]  ;;  %v120_v53 = vld [vmem:[%s13341_s0 + $0x290] sm:$0xff]  ;;  %v121_v54 = vld [vmem:[%s13341_s0 + $0x298] sm:$0xff] }
  0x7c   :  { %1433 = vmatmul.f32.vlgmr.msra.gmra.mxu0 %v1194_v56  ;;  %2050 = vmatmul.f32.vlgmr.msra.gmra.mxu1 %v7262_v57  ;;  %v5656_v61 = vpack.i.bf16 %v123_v49, %v122_v51  ;;  %v5651_v62 = vpack.i.bf16 %v121_v54, %v120_v53  ;;  %v134_v49 = vld [vmem:[%s13341_s0 + $0x300] sm:$0xff]  ;;  %v135_v53 = vld [vmem:[%s13341_s0 + $0x308] sm:$0xff] }
  0x7d   :  { %647 = vrot.lane.b32.xlu2 %v113_v55, %s6760_s29  ;;  %645 = vrot.lane.b32.xlu1 %v112_v58, %s6760_s29  ;;  %v1196_v58 = vsel %vm1193_vm0, %v6848_v5, %v5549_v46  ;;  %v133_v5 = vld [vmem:[%s13341_s0 + $0x2f8] sm:$0xff]  ;;  %v5560_v46 = vunpack.i.h.bf16 %v7207_v26 }
  0x7e   :  { %643 = vrot.lane.b32.xlu0 %v111_v59, %s6760_s29  ;;  %v7283_v63 = vpop.permute.xlu2 %5607  ;;  %v7336_v59 = vsel %vm1193_vm0, %v6853_v6, %v5550_v45  ;;  %v130_v6 = vld [vmem:[%s13341_s0 + $0x2e0] sm:$0xff]  ;;  %v137_v26 = vld [vmem:[%s13341_s0 + $0x318] sm:$0xff] }
  0x7f   :  { %v5553_v15 = vpop.permute.xlu1 %5552 }
  0x80   :  { %v5543_v16 = vpop.permute.xlu0 %5542  ;;  %v5555_v3 = vunpack.i.h.bf16 %v5553_v15  ;;  %v5554_v7 = vunpack.i.l.bf16 %v5553_v15  ;;  %v131_v15 = vld [vmem:[%s13341_s0 + $0x2e8] sm:$0xff] }
  0x81   :  { %v5545_v25 = vunpack.i.h.bf16 %v5543_v16  ;;  %v5544_v33 = vunpack.i.l.bf16 %v5543_v16 }
  0x83   :  { %v1195_v42 = vsel %vm1193_vm0, %v39_v17, %v5544_v33  ;;  %v7302_v43 = vsel %vm1193_vm0, %v61_v24, %v5545_v25  ;;  %v128_v17 = vld [vmem:[%s13341_s0 + $0x2d0] sm:$0xff]  ;;  %v129_v24 = vld [vmem:[%s13341_s0 + $0x2d8] sm:$0xff] }
  0x84   :  { %1436 = vmatmul.f32.gmra.mxu0 %v1195_v42  ;;  %2053 = vmatmul.f32.gmra.mxu1 %v7302_v43  ;;  %v5671_v42 = vpack.i.bf16 %v131_v15, %v130_v6  ;;  %v5666_v45 = vpack.i.bf16 %v129_v24, %v128_v17  ;;  %v142_v6 = vld [vmem:[%s13341_s0 + $0x340] sm:$0xff]  ;;  %v140_v15 = vld [vmem:[%s13341_s0 + $0x330] sm:$0xff]  ;;  %v141_v17 = vld [vmem:[%s13341_s0 + $0x338] sm:$0xff] }
  0x85   :  { %5647 = vrot.lane.b32.xlu2 %v5646_v34, %s6760_s29  ;;  %5642 = vrot.lane.b32.xlu1 %v5641_v35, %s6760_s29  ;;  %v1197_v34 = vsel %vm1193_vm0, %v6885_v13, %v5554_v7  ;;  %v7370_v35 = vsel %vm1193_vm0, %v6890_v14, %v5555_v3  ;;  %v138_v13 = vld [vmem:[%s13341_s0 + $0x320] sm:$0xff]  ;;  %v139_v14 = vld [vmem:[%s13341_s0 + $0x328] sm:$0xff]  ;;  %v5686_v3 = vpack.i.bf16 %v137_v26, %v136_v50 }
  0x86   :  { %5637 = vrot.lane.b32.xlu0 %v5636_v37, %s6760_s29  ;;  %v7317_v52 = vpop.permute.xlu2 %5622  ;;  %v5676_v37 = vpack.i.bf16 %v133_v5, %v132_v8  ;;  %v5681_v7 = vpack.i.bf16 %v135_v53, %v134_v49  ;;  %v5565_v8 = vunpack.i.h.bf16 %v7221_v36  ;;  %v5564_v5 = vunpack.i.l.bf16 %v7221_v36  ;;  %v143_v36 = vld [vmem:[%s13341_s0 + $0x348] sm:$0xff]  ;;  %v150_v26 = vld [vmem:[%s13341_s0 + $0x380] sm:$0xff] }
  0x87   :  { %v7328_v55 = vpop.permute.xlu1 %5572  ;;  %v146_v49 = vld [vmem:[%s13341_s0 + $0x360] sm:$0xff]  ;;  %v147_v53 = vld [vmem:[%s13341_s0 + $0x368] sm:$0xff] }
  0x88   :  { %v7330_v56 = vpop.permute.xlu0 %5567 }
  0x89   :  { %v5569_v50 = vunpack.i.l.bf16 %v7330_v56 }
  0x8c   :  { %1439 = vmatmul.f32.gmra.mxu0 %v1196_v58  ;;  %2056 = vmatmul.f32.gmra.mxu1 %v7336_v59 }
  0x8d   :  { %5662 = vrot.lane.b32.xlu2 %v5661_v60, %s6760_s29  ;;  %5657 = vrot.lane.b32.xlu1 %v5656_v61, %s6760_s29  ;;  %v1198_v60 = vsel %vm1193_vm0, %v6836_v2, %v5559_v47  ;;  %v7406_v61 = vsel %vm1193_vm0, %v6843_v4, %v5560_v46  ;;  %v144_v2 = vld [vmem:[%s13341_s0 + $0x350] sm:$0xff]  ;;  %v145_v4 = vld [vmem:[%s13341_s0 + $0x358] sm:$0xff]  ;;  %v5701_v47 = vpack.i.bf16 %v143_v36, %v142_v6  ;;  %v5575_v6 = vunpack.i.h.bf16 %v7328_v55 }
  0x8e   :  { %5652 = vrot.lane.b32.xlu0 %v5651_v62, %s6760_s29  ;;  %v7351_v16 = vpop.permute.xlu2 %593  ;;  %v5691_v62 = vpack.i.bf16 %v139_v14, %v138_v13  ;;  %v5706_v46 = vpack.i.bf16 %v145_v4, %v144_v2  ;;  %v5696_v13 = vpack.i.bf16 %v141_v17, %v140_v15  ;;  %v5570_v14 = vunpack.i.h.bf16 %v7330_v56  ;;  %v151_v56 = vld [vmem:[%s13341_s0 + $0x388] sm:$0xff]  ;;  %v156_v15 = vld [vmem:[%s13341_s0 + $0x3b0] sm:$0xff]  ;;  %v154_v17 = vld [vmem:[%s13341_s0 + $0x3a0] sm:$0xff] }
  0x8f   :  { %v7362_v25 = vpop.permute.xlu1 %5587  ;;  %v5711_v2 = vpack.i.bf16 %v147_v53, %v146_v49  ;;  %v5574_v36 = vunpack.i.l.bf16 %v7328_v55  ;;  %v157_v55 = vld [vmem:[%s13341_s0 + $0x3b8] sm:$0xff]  ;;  %v163_v53 = vld [vmem:[%s13341_s0 + $0x3e8] sm:$0xff] }
  0x90   :  { %v7364_v33 = vpop.permute.xlu0 %5582 }
  0x94   :  { %1442 = vmatmul.f32.gmra.mxu0 %v1197_v34  ;;  %2059 = vmatmul.f32.gmra.mxu1 %v7370_v35 }
  0x95   :  { %5677 = vrot.lane.b32.xlu2 %v5676_v37, %s6760_s29  ;;  %5672 = vrot.lane.b32.xlu1 %v5671_v42, %s6760_s29  ;;  %v1199_v42 = vsel %vm1193_vm0, %v6875_v11, %v5564_v5  ;;  %v152_v11 = vld [vmem:[%s13341_s0 + $0x390] sm:$0xff]  ;;  %v5716_v5 = vpack.i.bf16 %v151_v56, %v150_v26  ;;  %v5580_v26 = vunpack.i.h.bf16 %v7235_v44  ;;  %v5579_v56 = vunpack.i.l.bf16 %v7235_v44  ;;  %v162_v44 = vld [vmem:[%s13341_s0 + $0x3e0] sm:$0xff] }
  0x96   :  { %5667 = vrot.lane.b32.xlu0 %v5666_v45, %s6760_s29  ;;  %v7387_v51 = vpop.permute.xlu2 %599  ;;  %v7442_v45 = vsel %vm1193_vm0, %v6880_v12, %v5565_v8  ;;  %v153_v12 = vld [vmem:[%s13341_s0 + $0x398] sm:$0xff] }
  0x97   :  { %v7398_v54 = vpop.permute.xlu1 %5602  ;;  %v5721_v8 = vpack.i.bf16 %v153_v12, %v152_v11  ;;  %v5731_v11 = vpack.i.bf16 %v157_v55, %v156_v15  ;;  %v5585_v55 = vunpack.i.h.bf16 %v7364_v33 }
  0x98   :  { %v7400_v58 = vpop.permute.xlu0 %5597 }
  0x9c   :  { %1445 = vmatmul.f32.gmra.mxu0 %v1198_v60  ;;  %2062 = vmatmul.f32.gmra.mxu1 %v7406_v61 }
  0x9d   :  { %5692 = vrot.lane.b32.xlu2 %v5691_v62, %s6760_s29  ;;  %5687 = vrot.lane.b32.xlu1 %v5686_v3, %s6760_s29  ;;  %v1200_v3 = vsel %vm1193_vm0, %v6826_v0, %v5569_v50  ;;  %v158_v0 = vld [vmem:[%s13341_s0 + $0x3c0] sm:$0xff] }
  0x9e   :  { %5682 = vrot.lane.b32.xlu0 %v5681_v7, %s6760_s29  ;;  %v7436_v37 = vpop.permute.xlu2 %605  ;;  %v7476_v7 = vsel %vm1193_vm0, %v6831_v1, %v5570_v14  ;;  %v159_v1 = vld [vmem:[%s13341_s0 + $0x3c8] sm:$0xff]  ;;  %v7512_v14 = vsel %vm1193_vm0, %v6870_v10, %v5575_v6  ;;  %v165_v10 = vld [vmem:[%s13341_s0 + $0x3f8] sm:$0xff]  ;;  %v1202_v6 = vsel %vm1193_vm0, %v6924_v22, %v5579_v56  ;;  %v168_v22 = vld [vmem:[%s13341_s0 + $0x410] sm:$0xff] }
  0x9f   :  { %v7432_v24 = vpop.permute.xlu1 %5617  ;;  %v5736_v50 = vpack.i.bf16 %v159_v1, %v158_v0  ;;  %v5746_v1 = vpack.i.bf16 %v163_v53, %v162_v44 }
  0xa0   :  { %v7434_v34 = vpop.permute.xlu0 %5612 }
  0xa4   :  { %1448 = vmatmul.f32.gmra.mxu0 %v1199_v42  ;;  %2065 = vmatmul.f32.gmra.mxu1 %v7442_v45  ;;  %v155_v42 = vld [vmem:[%s13341_s0 + $0x3a8] sm:$0xff] }
  0xa5   :  { %5707 = vrot.lane.b32.xlu2 %v5706_v46, %s6760_s29  ;;  %5702 = vrot.lane.b32.xlu1 %v5701_v47, %s6760_s29  ;;  %v5726_v12 = vpack.i.bf16 %v155_v42, %v154_v17  ;;  %v5584_v17 = vunpack.i.l.bf16 %v7364_v33  ;;  %v167_v42 = vld [vmem:[%s13341_s0 + $0x408] sm:$0xff] }
  0xa6   :  { %5697 = vrot.lane.b32.xlu0 %v5696_v13, %s6760_s29  ;;  %v7478_v4 = vpop.permute.xlu2 %611  ;;  %v1201_v13 = vsel %vm1193_vm0, %v6863_v9, %v5574_v36  ;;  %v164_v9 = vld [vmem:[%s13341_s0 + $0x3f0] sm:$0xff]  ;;  %v7548_v36 = vsel %vm1193_vm0, %v6929_v23, %v5580_v26  ;;  %v7562_v23 = vld [vmem:[%s13341_s0 + $0x558] sm:$0xff] }
  0xa7   :  { %v7468_v60 = vpop.permute.xlu1 %5632  ;;  %v5751_v0 = vpack.i.bf16 %v165_v10, %v164_v9  ;;  %v1203_v56 = vsel %vm1193_vm0, %v6914_v20, %v5584_v17  ;;  %v7590_v9 = vsel %vm1193_vm0, %v6919_v21, %v5585_v55  ;;  %v5766_v10 = vpack.i.bf16 %v7562_v23, %v168_v22  ;;  %v172_v20 = vld [vmem:[%s13341_s0 + $0x430] sm:$0xff]  ;;  %v7607_v21 = vld [vmem:[%s13341_s0 + $0x568] sm:$0xff] }
  0xa8   :  { %v7470_v62 = vpop.permute.xlu0 %5627 }
  0xac   :  { %1451 = vmatmul.f32.gmra.mxu0 %v1200_v3  ;;  %2068 = vmatmul.f32.gmra.mxu1 %v7476_v7  ;;  %v160_v3 = vld [vmem:[%s13341_s0 + $0x3d0] sm:$0xff] }
  0xad   :  { %5722 = vrot.lane.b32.xlu2 %v5721_v8, %s6760_s29  ;;  %5717 = vrot.lane.b32.xlu1 %v5716_v5, %s6760_s29  ;;  %v161_v8 = vld [vmem:[%s13341_s0 + $0x3d8] sm:$0xff] }
  0xae   :  { %5712 = vrot.lane.b32.xlu0 %v5711_v2, %s6760_s29  ;;  %v7517_v49 = vpop.permute.xlu2 %617  ;;  %v5741_v15 = vpack.i.bf16 %v161_v8, %v160_v3  ;;  %v5590_v3 = vunpack.i.h.bf16 %v7362_v25  ;;  %v5589_v8 = vunpack.i.l.bf16 %v7362_v25  ;;  %v7617_v25 = vld [vmem:[%s13341_s0 + $0x600] sm:$0xff] }
  0xaf   :  { %v7504_v46 = vpop.permute.xlu1 %597  ;;  %13616 = vst [vmem:[#allocation2_spill] sm:$0xff] %v7517_v49 }
  0xb0   :  { %v7506_v47 = vpop.permute.xlu0 %595  ;;  %v1204_v22 = vsel %vm1193_vm0, %v6902_v18, %v5589_v8  ;;  %v174_v18 = vld [vmem:[%s13341_s0 + $0x440] sm:$0xff]  ;;  %v173_v8 = vld [vmem:[%s13341_s0 + $0x438] sm:$0xff] }
  0xb4   :  { %1454 = vmatmul.f32.gmra.mxu0 %v1201_v13  ;;  %2071 = vmatmul.f32.gmra.mxu1 %v7512_v14  ;;  %v7572_v13 = vld [vmem:[%s13341_s0 + $0x550] sm:$0xff] }
  0xb5   :  { %5737 = vrot.lane.b32.xlu2 %v5736_v50, %s6760_s29  ;;  %5732 = vrot.lane.b32.xlu1 %v5731_v11, %s6760_s29  ;;  %v166_v50 = vld [vmem:[%s13341_s0 + $0x400] sm:$0xff]  ;;  %v7580_v11 = vld [vmem:[%s13341_s0 + $0x548] sm:$0xff]  ;;  %v5761_v44 = vpack.i.bf16 %v7572_v13, %v167_v42  ;;  %v7637_v42 = vsel %vm1193_vm0, %v6909_v19, %v5590_v3 }
  0xb6   :  { %5727 = vrot.lane.b32.xlu0 %v5726_v12, %s6760_s29  ;;  %v7567_v33 = vpop.permute.xlu2 %623  ;;  %v5756_v53 = vpack.i.bf16 %v7580_v11, %v166_v50  ;;  %v5781_v50 = vpack.i.bf16 %v7607_v21, %v172_v20  ;;  %v213_v19 = vld [vmem:[%s13341_s0 + $0x578] sm:$0xff]  ;;  %v212_v3 = vld [vmem:[%s13341_s0 + $0x570] sm:$0xff]  ;;  %v7669_v20 = vld [vmem:[%s13341_s0 + $0x608] sm:$0xff] }
  0xb7   :  { %v7540_v5 = vpop.permute.xlu1 %603  ;;  %13617 = vst [vmem:[#allocation3_spill] sm:$0xff] %v7567_v33  ;;  %v5786_v33 = vpack.i.bf16 %v173_v8, %v7669_v20 }
  0xb8   :  { %v7542_v2 = vpop.permute.xlu0 %601 }
  0xbc   :  { %1457 = vmatmul.f32.gmra.mxu0 %v1202_v6  ;;  %2074 = vmatmul.f32.gmra.mxu1 %v7548_v36  ;;  %v7612_v6 = vld [vmem:[%s13341_s0 + $0x560] sm:$0xff] }
  0xbd   :  { %5752 = vrot.lane.b32.xlu2 %v5751_v0, %s6760_s29  ;;  %5747 = vrot.lane.b32.xlu1 %v5746_v1, %s6760_s29  ;;  %v169_v0 = vld [vmem:[%s13341_s0 + $0x418] sm:$0xff] }
  0xbe   :  { %5742 = vrot.lane.b32.xlu0 %v5741_v15, %s6760_s29  ;;  %v7625_v1 = vld [vmem:[%s13341_s0 + $0x5f8] sm:$0xff]  ;;  %v7631_v17 = vpop.permute.xlu2 %629 }
  0xbf   :  { %v7582_v12 = vpop.permute.xlu1 %609  ;;  %13618 = vst [vmem:[#allocation4_spill] sm:$0xff] %v7631_v17 }
  0xc0   :  { %v7584_v26 = vpop.permute.xlu0 %607 }
  0xc4   :  { %1460 = vmatmul.f32.gmra.mxu0 %v1203_v56  ;;  %2077 = vmatmul.f32.gmra.mxu1 %v7590_v9  ;;  %v5776_v56 = vpack.i.bf16 %v7617_v25, %v7612_v6 }
  0xc5   :  { %5767 = vrot.lane.b32.xlu2 %v5766_v10, %s6760_s29  ;;  %5762 = vrot.lane.b32.xlu1 %v5761_v44, %s6760_s29  ;;  %v5771_v10 = vpack.i.bf16 %v169_v0, %v7625_v1  ;;  %v5595_v44 = vunpack.i.h.bf16 %v7249_v48 }
  0xc6   :  { %5757 = vrot.lane.b32.xlu0 %v5756_v53, %s6760_s29  ;;  %v5594_v53 = vunpack.i.l.bf16 %v7249_v48  ;;  %v7661_v48 = vld [vmem:[%s13341_s0 + $0x610] sm:$0xff]  ;;  %v7683_v49 = vpop.permute.xlu2 %635 }
  0xc7   :  { %v7627_v15 = vpop.permute.xlu1 %615  ;;  %v5791_v17 = vpack.i.bf16 %v7661_v48, %v212_v3  ;;  %13621 = vst [vmem:[#allocation7_spill] sm:$0xff] %v7683_v49  ;;  %v5605_v49 = vunpack.i.h.bf16 %v7398_v54 }
  0xc8   :  { %v7629_v55 = vpop.permute.xlu0 %613 }
  0xcc   :  { %1463 = vmatmul.f32.gmra.mxu0 %v1204_v22  ;;  %2080 = vmatmul.f32.gmra.mxu1 %v7637_v42 }
  0xcd   :  { %5782 = vrot.lane.b32.xlu2 %v5781_v50, %s6760_s29  ;;  %5777 = vrot.lane.b32.xlu1 %v5776_v56, %s6760_s29  ;;  %v1205_v50 = vsel %vm1193_vm0, %v6963_v31, %v5594_v53  ;;  %v7679_v56 = vsel %vm1193_vm0, %v6968_v32, %v5595_v44  ;;  %v176_v31 = vld [vmem:[%s13341_s0 + $0x450] sm:$0xff]  ;;  %v7697_v32 = vld [vmem:[%s13341_s0 + $0x598] sm:$0xff] }
  0xce   :  { %5772 = vrot.lane.b32.xlu0 %v5771_v10, %s6760_s29  ;;  %v5796_v10 = vpack.i.bf16 %v213_v19, %v174_v18  ;;  %v7702_v44 = vld [vmem:[%s13341_s0 + $0x590] sm:$0xff]  ;;  %v5811_v8 = vpack.i.bf16 %v7697_v32, %v176_v31  ;;  %v235_v31 = vld [vmem:[%s13341_s0 + $0x628] sm:$0xff] }
  0xcf   :  { %v7671_v0 = vpop.permute.xlu1 %621 }
  0xd0   :  { %13619 = vst [vmem:[#allocation5_spill] sm:$0xff] %v7671_v0  ;;  %v7673_v22 = vpop.permute.xlu0 %619  ;;  %v5600_v0 = vunpack.i.h.bf16 %v7400_v58 }
  0xd1   :  { %13620 = vst [vmem:[#allocation6_spill] sm:$0xff] %v7673_v22  ;;  %v5599_v22 = vunpack.i.l.bf16 %v7400_v58  ;;  %v234_v58 = vld [vmem:[%s13341_s0 + $0x620] sm:$0xff] }
  0xd2   :  { %v7723_v3 = vsel %vm1193_vm0, %v6958_v30, %v5600_v0  ;;  %v7742_v30 = vld [vmem:[%s13341_s0 + $0x5a8] sm:$0xff]  ;;  %v7752_v0 = vld [vmem:[%s13341_s0 + $0x640] sm:$0xff] }
  0xd3   :  { %v1206_v19 = vsel %vm1193_vm0, %v6953_v29, %v5599_v22  ;;  %v178_v29 = vld [vmem:[%s13341_s0 + $0x460] sm:$0xff]  ;;  %13625 = vst [vmem:[#allocation11_spill] sm:$0xff] %v7742_v30  ;;  %v177_v22 = vld [vmem:[%s13341_s0 + $0x458] sm:$0xff] }
  0xd4   :  { %1466 = vmatmul.f32.gmra.mxu0 %v1205_v50  ;;  %2083 = vmatmul.f32.gmra.mxu1 %v7679_v56  ;;  %v5806_v50 = vpack.i.bf16 %v234_v58, %v7702_v44 }
  0xd5   :  { %5797 = vrot.lane.b32.xlu2 %v5796_v10, %s6760_s29  ;;  %5792 = vrot.lane.b32.xlu1 %v5791_v17, %s6760_s29  ;;  %v175_v17 = vld [vmem:[%s13341_s0 + $0x448] sm:$0xff] }
  0xd6   :  { %5787 = vrot.lane.b32.xlu0 %v5786_v33, %s6760_s29  ;;  %v7713_v33 = vld [vmem:[%s13341_s0 + $0x618] sm:$0xff] }
  0xd7   :  { %v7715_v53 = vpop.permute.xlu1 %627  ;;  %v5801_v10 = vpack.i.bf16 %v175_v17, %v7713_v33 }
  0xd8   :  { %13622 = vst [vmem:[#allocation8_spill] sm:$0xff] %v7715_v53  ;;  %v7717_v18 = vpop.permute.xlu0 %625  ;;  %v5604_v53 = vunpack.i.l.bf16 %v7398_v54  ;;  %v7747_v54 = vld [vmem:[%s13341_s0 + $0x5a0] sm:$0xff] }
  0xd9   :  { %13623 = vst [vmem:[#allocation9_spill] sm:$0xff] %v7717_v18  ;;  %v7731_v18 = vpop.permute.xlu2 %641 }
  0xda   :  { %13624 = vst [vmem:[#allocation10_spill] sm:$0xff] %v7731_v18  ;;  %v5816_v18 = vpack.i.bf16 %v177_v22, %v235_v31 }
  0xdb   :  { %13626 = vst [vmem:[#allocation12_spill] sm:$0xff] %v7747_v54 }
  0xdc   :  { %1469 = vmatmul.f32.gmra.mxu0 %v1206_v19  ;;  %2086 = vmatmul.f32.gmra.mxu1 %v7723_v3  ;;  %v1207_v19 = vsel %vm1193_vm0, %v6941_v27, %v5604_v53  ;;  %v180_v27 = vld [vmem:[%s13341_s0 + $0x470] sm:$0xff] }
  0xdd   :  { %5812 = vrot.lane.b32.xlu2 %v5811_v8, %s6760_s29  ;;  %5807 = vrot.lane.b32.xlu1 %v5806_v50, %s6760_s29  ;;  %v7768_v8 = vsel %vm1193_vm0, %v6948_v28, %v5605_v49  ;;  %v5826_v50 = vpack.i.bf16 %v7742_v30, %v178_v29  ;;  %v7785_v28 = vld [vmem:[%s13341_s0 + $0x5b8] sm:$0xff]  ;;  %v7790_v49 = vld [vmem:[%s13341_s0 + $0x5b0] sm:$0xff] }
  0xde   :  { %5802 = vrot.lane.b32.xlu0 %v5801_v10, %s6760_s29  ;;  %v5821_v10 = vpack.i.bf16 %v7752_v0, %v7747_v54  ;;  %13629 = vst [vmem:[#allocation15_spill] sm:$0xff] %v7785_v28  ;;  %v7797_v53 = vld [vmem:[%s13341_s0 + $0x650] sm:$0xff]  ;;  %v7805_v29 = vld [vmem:[%s13341_s0 + $0x648] sm:$0xff] }
  0xdf   :  { %v7760_v58 = vpop.permute.xlu1 %633  ;;  %13630 = vst [vmem:[#allocation16_spill] sm:$0xff] %v7790_v49 }
  0xe0   :  { %13627 = vst [vmem:[#allocation13_spill] sm:$0xff] %v7760_v58  ;;  %v7762_v17 = vpop.permute.xlu0 %631  ;;  %v5610_v58 = vunpack.i.h.bf16 %v7283_v63 }
  0xe1   :  { %13628 = vst [vmem:[#allocation14_spill] sm:$0xff] %v7762_v17  ;;  %v5609_v17 = vunpack.i.l.bf16 %v7283_v63  ;;  %v7792_v63 = vpop.permute.xlu2 %647 }
  0xe2   :  { %13631 = vst [vmem:[#allocation17_spill] sm:$0xff] %v7792_v63  ;;  %v5836_v63 = vpack.i.bf16 %v7797_v53, %v7790_v49 }
  0xe3   :  { %13632 = vst [vmem:[#allocation18_spill] sm:$0xff] %v7797_v53 }
  0xe4   :  { %1472 = vmatmul.f32.gmra.mxu0 %v1207_v19  ;;  %2089 = vmatmul.f32.gmra.mxu1 %v7768_v8  ;;  %13633 = vst [vmem:[#allocation19_spill] sm:$0xff] %v7805_v29  ;;  %v1208_v19 = vsel %vm1193_vm0, %v6998_v40, %v5609_v17  ;;  %v182_v40 = vld [vmem:[%s13341_s0 + $0x480] sm:$0xff]  ;;  %v181_v17 = vld [vmem:[%s13341_s0 + $0x478] sm:$0xff] }
  0xe5   :  { %5827 = vrot.lane.b32.xlu2 %v5826_v50, %s6760_s29  ;;  %5822 = vrot.lane.b32.xlu1 %v5821_v10, %s6760_s29  ;;  %v7815_v50 = vsel %vm1193_vm0, %v7003_v41, %v5610_v58  ;;  %v5841_v10 = vpack.i.bf16 %v7785_v28, %v180_v27  ;;  %v7833_v41 = vld [vmem:[%s13341_s0 + $0x5c8] sm:$0xff]  ;;  %v7838_v58 = vld [vmem:[%s13341_s0 + $0x5c0] sm:$0xff] }
  0xe6   :  { %5817 = vrot.lane.b32.xlu0 %v5816_v18, %s6760_s29  ;;  %v179_v18 = vld [vmem:[%s13341_s0 + $0x468] sm:$0xff]  ;;  %13636 = vst [vmem:[#allocation22_spill] sm:$0xff] %v7833_v41  ;;  %v5856_v28 = vpack.i.bf16 %v7833_v41, %v182_v40  ;;  %v6621_v41 = vld [vmem:[%s13341_s0 + $0x130] sm:$0xff] }
  0xe7   :  { %v7807_v22 = vpop.permute.xlu1 %639  ;;  %v5831_v30 = vpack.i.bf16 %v179_v18, %v7805_v29  ;;  %13637 = vst [vmem:[#allocation23_spill] sm:$0xff] %v7838_v58 }
  0xe8   :  { %13634 = vst [vmem:[#allocation20_spill] sm:$0xff] %v7807_v22  ;;  %v7809_v31 = vpop.permute.xlu0 %637  ;;  %v5615_v22 = vunpack.i.h.bf16 %v7434_v34 }
  0xe9   :  { %13635 = vst [vmem:[#allocation21_spill] sm:$0xff] %v7809_v31  ;;  %v5614_v31 = vunpack.i.l.bf16 %v7434_v34  ;;  %v7843_v34 = vld [vmem:[%s13341_s0 + $0x660] sm:$0xff]  ;;  %v7857_v18 = vpop.permute.xlu2 %5647 }
  0xea   :  { %13638 = vst [vmem:[#allocation24_spill] sm:$0xff] %v7843_v34  ;;  %v5851_v49 = vpack.i.bf16 %v7843_v34, %v7838_v58 }
  0xeb   :  { %13642 = vst [vmem:[#allocation28_spill] sm:$0xff] %v7857_v18  ;;  %v5619_v18 = vunpack.i.l.bf16 %v7432_v24 }
  0xec   :  { %1475 = vmatmul.f32.gmra.mxu0 %v1208_v19  ;;  %2092 = vmatmul.f32.gmra.mxu1 %v7815_v50  ;;  %v1209_v19 = vsel %vm1193_vm0, %v6988_v38, %v5614_v31  ;;  %v184_v38 = vld [vmem:[%s13341_s0 + $0x490] sm:$0xff] }
  0xed   :  { %5842 = vrot.lane.b32.xlu2 %v5841_v10, %s6760_s29  ;;  %5837 = vrot.lane.b32.xlu1 %v5836_v63, %s6760_s29  ;;  %v7863_v10 = vsel %vm1193_vm0, %v6993_v39, %v5615_v22  ;;  %v7881_v39 = vld [vmem:[%s13341_s0 + $0x5d8] sm:$0xff]  ;;  %v7886_v22 = vld [vmem:[%s13341_s0 + $0x5d0] sm:$0xff] }
  0xee   :  { %5832 = vrot.lane.b32.xlu0 %v5831_v30, %s6760_s29  ;;  %v7851_v30 = vld [vmem:[%s13341_s0 + $0x658] sm:$0xff]  ;;  %13643 = vst [vmem:[#allocation29_spill] sm:$0xff] %v7863_v10 }
  0xef   :  { %13639 = vst [vmem:[#allocation25_spill] sm:$0xff] %v7851_v30  ;;  %v7853_v27 = vpop.permute.xlu1 %645  ;;  %v5846_v53 = vpack.i.bf16 %v181_v17, %v7851_v30  ;;  %v5635_v30 = vunpack.i.h.bf16 %v7468_v60 }
  0xf0   :  { %13640 = vst [vmem:[#allocation26_spill] sm:$0xff] %v7853_v27  ;;  %v7855_v63 = vpop.permute.xlu0 %643  ;;  %v5620_v27 = vunpack.i.h.bf16 %v7432_v24  ;;  %v7891_v24 = vld [vmem:[%s13341_s0 + $0x670] sm:$0xff] }
  0xf1   :  { %13641 = vst [vmem:[#allocation27_spill] sm:$0xff] %v7855_v63 }
  0xf2   :  { %13644 = vst [vmem:[#allocation30_spill] sm:$0xff] %v7881_v39  ;;  %v7917_v58 = vsel %vm1193_vm0, %v6621_v41, %v5620_v27  ;;  %v186_v41 = vld [vmem:[%s13341_s0 + $0x4a0] sm:$0xff]  ;;  %v7937_v27 = vld [vmem:[%s13341_s0 + $0x5e8] sm:$0xff] }
  0xf3   :  { %13645 = vst [vmem:[#allocation31_spill] sm:$0xff] %v7886_v22 }
  0xf4   :  { %1478 = vmatmul.f32.gmra.mxu0 %v1209_v19  ;;  %2095 = vmatmul.f32.gmra.mxu1 %v7863_v10  ;;  %13646 = vst [vmem:[#allocation32_spill] sm:$0xff] %v7891_v24  ;;  %v6620_v19 = vld [vmem:[%s13341_s0 + $0x80] sm:$0xff] }
  0xf5   :  { %5857 = vrot.lane.b32.xlu2 %v5856_v28, %s6760_s29  ;;  %5852 = vrot.lane.b32.xlu1 %v5851_v49, %s6760_s29  ;;  %v183_v28 = vld [vmem:[%s13341_s0 + $0x488] sm:$0xff]  ;;  %v1210_v63 = vsel %vm1193_vm0, %v6620_v19, %v5619_v18  ;;  %13652 = vst [vmem:[#allocation38_spill] sm:$0xff] %v7917_v58  ;;  %v5625_v18 = vunpack.i.h.bf16 %v7317_v52  ;;  %v5624_v19 = vunpack.i.l.bf16 %v7317_v52  ;;  %v7947_v52 = vld [vmem:[%s13341_s0 + $0x680] sm:$0xff] }
  0xf6   :  { %5847 = vrot.lane.b32.xlu0 %v5846_v53, %s6760_s29  ;;  %v7899_v49 = vld [vmem:[%s13341_s0 + $0x668] sm:$0xff]  ;;  %13655 = vst [vmem:[#allocation41_spill] sm:$0xff] %v7947_v52  ;;  %v82_v10 = vld [vmem:[%s13341_s0 + $0x160] sm:$0xff] }
  0xf7   :  { %13647 = vst [vmem:[#allocation33_spill] sm:$0xff] %v7899_v49  ;;  %v7901_v53 = vpop.permute.xlu1 %5642 }
  0xf8   :  { %13648 = vst [vmem:[#allocation34_spill] sm:$0xff] %v7901_v53  ;;  %v7903_v31 = vpop.permute.xlu0 %5637  ;;  %v5871_v53 = vpack.i.bf16 %v7881_v39, %v184_v38  ;;  %v185_v38 = vld [vmem:[%s13341_s0 + $0x498] sm:$0xff]  ;;  %v6622_v39 = vld [vmem:[%s13341_s0 + $0x88] sm:$0xff] }
  0xf9   :  { %13649 = vst [vmem:[#allocation35_spill] sm:$0xff] %v7903_v31  ;;  %v7905_v40 = vpop.f32.mrf.mxu0  ;;  %v7907_v17 = vpop.f32.mrf.mxu1 }
  0xfa   :  { %13650 = vst [vmem:[#allocation36_spill] sm:$0xff] %v7905_v40  ;;  %v5866_v40 = vpack.i.bf16 %v7891_v24, %v7886_v22  ;;  %v7923_v31 = vpop.permute.xlu2 %5662  ;;  %v1211_v22 = vsel %vm1193_vm0, %v6622_v39, %v5624_v19  ;;  %v6623_v24 = vld [vmem:[%s13341_s0 + $0x138] sm:$0xff]  ;;  %v5629_v39 = vunpack.i.l.bf16 %v7470_v62 }
  0xfb   :  { %13651 = vst [vmem:[#allocation37_spill] sm:$0xff] %v7907_v17  ;;  %v5861_v17 = vpack.i.bf16 %v183_v28, %v7899_v49  ;;  %v7955_v28 = vld [vmem:[%s13341_s0 + $0x678] sm:$0xff]  ;;  %v7973_v49 = vsel %vm1193_vm0, %v6623_v24, %v5625_v18  ;;  %v188_v24 = vld [vmem:[%s13341_s0 + $0x4b0] sm:$0xff] }
  0xfc   :  { %13653 = vst [vmem:[#allocation39_spill] sm:$0xff] %v7923_v31  ;;  %1481 = vmatmul.f32.gmra.mxu0 %v1210_v63  ;;  %2098 = vmatmul.f32.gmra.mxu1 %v7917_v58  ;;  %v7942_v63 = vld [vmem:[%s13341_s0 + $0x5e0] sm:$0xff]  ;;  %v8001_v18 = vld [vmem:[%s13341_s0 + $0x690] sm:$0xff] }
  0xfd   :  { %5872 = vrot.lane.b32.xlu2 %v5871_v53, %s6760_s29  ;;  %5867 = vrot.lane.b32.xlu1 %v5866_v40, %s6760_s29  ;;  %13654 = vst [vmem:[#allocation40_spill] sm:$0xff] %v7942_v63 }
  0xfe   :  { %5862 = vrot.lane.b32.xlu0 %v5861_v17, %s6760_s29  ;;  %13656 = vst [vmem:[#allocation42_spill] sm:$0xff] %v7955_v28 }
  0xff   :  { %v7957_v53 = vpop.permute.xlu1 %5657  ;;  %13661 = vst [vmem:[#allocation47_spill] sm:$0xff] %v7973_v49 }
 0x100   :  { %13657 = vst [vmem:[#allocation43_spill] sm:$0xff] %v7957_v53  ;;  %v7959_v40 = vpop.permute.xlu0 %5652  ;;  %v5886_v53 = vpack.i.bf16 %v7937_v27, %v186_v41  ;;  %v187_v41 = vld [vmem:[%s13341_s0 + $0x4a8] sm:$0xff] }
 0x101   :  { %13658 = vst [vmem:[#allocation44_spill] sm:$0xff] %v7959_v40  ;;  %v7961_v17 = vpop.f32.mrf.mxu0  ;;  %v7963_v31 = vpop.f32.mrf.mxu1  ;;  %v5630_v40 = vunpack.i.h.bf16 %v7470_v62  ;;  %v7996_v62 = vld [vmem:[%s13341_s0 + $0x5f0] sm:$0xff] }
 0x102   :  { %13659 = vst [vmem:[#allocation45_spill] sm:$0xff] %v7961_v17  ;;  %v5881_v17 = vpack.i.bf16 %v7947_v52, %v7942_v63  ;;  %v7982_v19 = vpop.permute.xlu2 %5677  ;;  %v6624_v63 = vld [vmem:[%s13341_s0 + $0x90] sm:$0xff] }
 0x103   :  { %13660 = vst [vmem:[#allocation46_spill] sm:$0xff] %v7963_v31  ;;  %v5876_v31 = vpack.i.bf16 %v185_v38, %v7955_v28  ;;  %v1212_v52 = vsel %vm1193_vm0, %v6624_v63, %v5629_v39  ;;  %v6625_v28 = vld [vmem:[%s13341_s0 + $0x140] sm:$0xff]  ;;  %v5634_v63 = vunpack.i.l.bf16 %v7468_v60  ;;  %v251_v60 = vld [vmem:[%s13341_s0 + $0x6a8] sm:$0xff] }
 0x104   :  { %1484 = vmatmul.f32.gmra.mxu0 %v1211_v22  ;;  %2101 = vmatmul.f32.gmra.mxu1 %v7973_v49  ;;  %13662 = vst [vmem:[#allocation48_spill] sm:$0xff] %v7982_v19  ;;  %v249_v22 = vld [vmem:[%s13341_s0 + $0x698] sm:$0xff]  ;;  %v8027_v34 = vsel %vm1193_vm0, %v6625_v28, %v5630_v40  ;;  %v191_v28 = vld [vmem:[%s13341_s0 + $0x4c8] sm:$0xff]  ;;  %v190_v40 = vld [vmem:[%s13341_s0 + $0x4c0] sm:$0xff] }
 0x105   :  { %5887 = vrot.lane.b32.xlu2 %v5886_v53, %s6760_s29  ;;  %5882 = vrot.lane.b32.xlu1 %v5881_v17, %s6760_s29  ;;  %13663 = vst [vmem:[#allocation49_spill] sm:$0xff] %v8001_v18  ;;  %v5911_v58 = vpack.i.bf16 %v251_v60, %v190_v40 }
 0x106   :  { %5877 = vrot.lane.b32.xlu0 %v5876_v31, %s6760_s29  ;;  %v8009_v31 = vld [vmem:[%s13341_s0 + $0x688] sm:$0xff]  ;;  %13667 = vst [vmem:[#allocation53_spill] sm:$0xff] %v8027_v34 }
 0x107   :  { %13664 = vst [vmem:[#allocation50_spill] sm:$0xff] %v8009_v31  ;;  %v8011_v38 = vpop.permute.xlu1 %5672  ;;  %v5891_v49 = vpack.i.bf16 %v187_v41, %v8009_v31  ;;  %v6627_v31 = vld [vmem:[%s13341_s0 + $0x148] sm:$0xff] }
 0x108   :  { %13665 = vst [vmem:[#allocation51_spill] sm:$0xff] %v8011_v38  ;;  %v8013_v53 = vpop.permute.xlu0 %5667  ;;  %v5901_v38 = vpack.i.bf16 %v249_v22, %v188_v24  ;;  %v189_v24 = vld [vmem:[%s13341_s0 + $0x4b8] sm:$0xff] }
 0x109   :  { %13666 = vst [vmem:[#allocation52_spill] sm:$0xff] %v8013_v53  ;;  %v8015_v17 = vpop.f32.mrf.mxu0  ;;  %v8017_v19 = vpop.f32.mrf.mxu1  ;;  %v5896_v53 = vpack.i.bf16 %v8001_v18, %v7996_v62 }
 0x10a   :  { %v8047_v39 = vpop.permute.xlu2 %5692 }
 0x10b   :  { %13668 = vst [vmem:[#allocation54_spill] sm:$0xff] %v8047_v39  ;;  %v6626_v39 = vld [vmem:[%s13341_s0 + $0x98] sm:$0xff] }
 0x10c   :  { %1487 = vmatmul.f32.gmra.mxu0 %v1212_v52  ;;  %2104 = vmatmul.f32.gmra.mxu1 %v8027_v34  ;;  %v252_v52 = vld [vmem:[%s13341_s0 + $0x6b0] sm:$0xff]  ;;  %v1213_v18 = vsel %vm1193_vm0, %v6626_v39, %v5634_v63  ;;  %v8074_v34 = vsel %vm1193_vm0, %v6627_v31, %v5635_v30  ;;  %v255_v30 = vld [vmem:[%s13341_s0 + $0x6c8] sm:$0xff]  ;;  %v254_v31 = vld [vmem:[%s13341_s0 + $0x6c0] sm:$0xff] }
 0x10d   :  { %5902 = vrot.lane.b32.xlu2 %v5901_v38, %s6760_s29  ;;  %5897 = vrot.lane.b32.xlu1 %v5896_v53, %s6760_s29  ;;  %13671 = vst [vmem:[#allocation57_spill] sm:$0xff] %v8074_v34  ;;  %v196_v63 = vld [vmem:[%s13341_s0 + $0x4f0] sm:$0xff] }
 0x10e   :  { %5892 = vrot.lane.b32.xlu0 %v5891_v49, %s6760_s29  ;;  %v250_v49 = vld [vmem:[%s13341_s0 + $0x6a0] sm:$0xff] }
 0x10f   :  { %v8058_v22 = vpop.permute.xlu1 %5687 }
 0x110   :  { %13669 = vst [vmem:[#allocation55_spill] sm:$0xff] %v8058_v22  ;;  %v8060_v41 = vpop.permute.xlu0 %5682  ;;  %v5916_v22 = vpack.i.bf16 %v252_v52, %v191_v28  ;;  %v194_v28 = vld [vmem:[%s13341_s0 + $0x4e0] sm:$0xff] }
 0x111   :  { %13670 = vst [vmem:[#allocation56_spill] sm:$0xff] %v8060_v41  ;;  %v8062_v38 = vpop.f32.mrf.mxu0  ;;  %v8064_v53 = vpop.f32.mrf.mxu1  ;;  %v5906_v41 = vpack.i.bf16 %v250_v49, %v189_v24  ;;  %v8111_v24 = vsel %vm1193_vm0, %v82_v10, %v7351_v16  ;;  %v5931_v49 = vpack.i.bf16 %v255_v30, %v196_v63  ;;  %v199_v16 = vld [vmem:[%s13341_s0 + $0x508] sm:$0xff]  ;;  %v198_v10 = vld [vmem:[%s13341_s0 + $0x500] sm:$0xff]  ;;  %v257_v63 = vld [vmem:[%s13341_s0 + $0x6d8] sm:$0xff] }
 0x112   :  { %13674 = vst [vmem:[#allocation60_spill] sm:$0xff] %v8111_v24  ;;  %v197_v30 = vld [vmem:[%s13341_s0 + $0x4f8] sm:$0xff] }
 0x114   :  { %1490 = vmatmul.f32.gmra.mxu0 %v1213_v18  ;;  %2107 = vmatmul.f32.gmra.mxu1 %v8074_v34  ;;  %v195_v18 = vld [vmem:[%s13341_s0 + $0x4e8] sm:$0xff]  ;;  %v8113_v34 = vpop.permute.xlu2 %5707 }
 0x115   :  { %5917 = vrot.lane.b32.xlu2 %v5916_v22, %s6760_s29  ;;  %5912 = vrot.lane.b32.xlu1 %v5911_v58, %s6760_s29  ;;  %v253_v58 = vld [vmem:[%s13341_s0 + $0x6b8] sm:$0xff]  ;;  %v5926_v22 = vpack.i.bf16 %v254_v31, %v195_v18  ;;  %13675 = vst [vmem:[#allocation61_spill] sm:$0xff] %v8113_v34  ;;  %v256_v18 = vld [vmem:[%s13341_s0 + $0x6d0] sm:$0xff]  ;;  %v5941_v34 = vpack.i.bf16 %v257_v63, %v198_v10 }
 0x116   :  { %5907 = vrot.lane.b32.xlu0 %v5906_v41, %s6760_s29  ;;  %v5921_v41 = vpack.i.bf16 %v253_v58, %v194_v28 }
 0x117   :  { %v8101_v52 = vpop.permute.xlu1 %5702 }
 0x118   :  { %13672 = vst [vmem:[#allocation58_spill] sm:$0xff] %v8101_v52  ;;  %v8103_v40 = vpop.permute.xlu0 %5697  ;;  %v83_v52 = vld [vmem:[%s13341_s0 + $0x168] sm:$0xff] }
 0x119   :  { %13673 = vst [vmem:[#allocation59_spill] sm:$0xff] %v8103_v40  ;;  %v8105_v39 = vpop.f32.mrf.mxu0  ;;  %v8107_v60 = vpop.f32.mrf.mxu1  ;;  %v5936_v40 = vpack.i.bf16 %v256_v18, %v197_v30  ;;  %v6628_v30 = vld [vmem:[%s13341_s0 + $0x170] sm:$0xff] }
 0x11a   :  { %v8191_v18 = vsel %vm1193_vm0, %v6628_v30, %v7504_v46  ;;  %v266_v46 = vld [vmem:[%s13341_s0 + $0x720] sm:$0xff]  ;;  %v6629_v30 = vld [vmem:[%s13341_s0 + $0x178] sm:$0xff] }
 0x11b   :  { %13682 = vst [vmem:[#allocation68_spill] sm:$0xff] %v8191_v18 }
 0x11c   :  { %1493 = vmatmul.f32.gmra.mxu0 %v7262_v57  ;;  %2110 = vmatmul.f32.gmra.mxu1 %v8111_v24  ;;  %v260_v57 = vld [vmem:[%s13341_s0 + $0x6f0] sm:$0xff]  ;;  %v8155_v24 = vpop.permute.xlu2 %5722 }
 0x11d   :  { %5932 = vrot.lane.b32.xlu2 %v5931_v49, %s6760_s29  ;;  %5927 = vrot.lane.b32.xlu1 %v5926_v22, %s6760_s29  ;;  %v8151_v22 = vsel %vm1193_vm0, %v83_v52, %v7506_v47  ;;  %13679 = vst [vmem:[#allocation65_spill] sm:$0xff] %v8155_v24  ;;  %v263_v47 = vld [vmem:[%s13341_s0 + $0x708] sm:$0xff]  ;;  %v262_v52 = vld [vmem:[%s13341_s0 + $0x700] sm:$0xff] }
 0x11e   :  { %5922 = vrot.lane.b32.xlu0 %v5921_v41, %s6760_s29  ;;  %13678 = vst [vmem:[#allocation64_spill] sm:$0xff] %v8151_v22  ;;  %v5946_v41 = vpack.i.bf16 %v260_v57, %v199_v16  ;;  %v200_v16 = vld [vmem:[%s13341_s0 + $0x510] sm:$0xff] }
 0x11f   :  { %v8141_v31 = vpop.permute.xlu1 %5717 }
 0x120   :  { %13676 = vst [vmem:[#allocation62_spill] sm:$0xff] %v8141_v31  ;;  %v8143_v28 = vpop.permute.xlu0 %5712  ;;  %v202_v31 = vld [vmem:[%s13341_s0 + $0x520] sm:$0xff] }
 0x121   :  { %13677 = vst [vmem:[#allocation63_spill] sm:$0xff] %v8143_v28  ;;  %v8145_v58 = vpop.f32.mrf.mxu0  ;;  %v8147_v49 = vpop.f32.mrf.mxu1 }
 0x124   :  { %1496 = vmatmul.f32.gmra.mxu0 %v7302_v43  ;;  %2113 = vmatmul.f32.gmra.mxu1 %v8151_v22  ;;  %v201_v43 = vld [vmem:[%s13341_s0 + $0x518] sm:$0xff] }
 0x125   :  { %5947 = vrot.lane.b32.xlu2 %v5946_v41, %s6760_s29  ;;  %5942 = vrot.lane.b32.xlu1 %v5941_v34, %s6760_s29  ;;  %v261_v34 = vld [vmem:[%s13341_s0 + $0x6f8] sm:$0xff]  ;;  %v5961_v41 = vpack.i.bf16 %v263_v47, %v202_v31  ;;  %v5956_v24 = vpack.i.bf16 %v262_v52, %v201_v43  ;;  %v8207_v31 = vpop.permute.xlu2 %5737 }
 0x126   :  { %5937 = vrot.lane.b32.xlu0 %v5936_v40, %s6760_s29  ;;  %v5951_v28 = vpack.i.bf16 %v261_v34, %v200_v16  ;;  %13683 = vst [vmem:[#allocation69_spill] sm:$0xff] %v8207_v31  ;;  %v265_v47 = vld [vmem:[%s13341_s0 + $0x718] sm:$0xff] }
 0x127   :  { %v8178_v40 = vpop.permute.xlu1 %5732 }
 0x128   :  { %13680 = vst [vmem:[#allocation66_spill] sm:$0xff] %v8178_v40  ;;  %v8180_v57 = vpop.permute.xlu0 %5727  ;;  %v205_v40 = vld [vmem:[%s13341_s0 + $0x538] sm:$0xff] }
 0x129   :  { %13681 = vst [vmem:[#allocation67_spill] sm:$0xff] %v8180_v57  ;;  %v8182_v10 = vpop.f32.mrf.mxu0  ;;  %v8184_v63 = vpop.f32.mrf.mxu1  ;;  %v5976_v31 = vpack.i.bf16 %v266_v46, %v205_v40  ;;  %v269_v46 = vld [vmem:[%s13341_s0 + $0x738] sm:$0xff] }
 0x12c   :  { %1499 = vmatmul.f32.gmra.mxu0 %v7336_v59  ;;  %2116 = vmatmul.f32.gmra.mxu1 %v8191_v18  ;;  %v204_v59 = vld [vmem:[%s13341_s0 + $0x530] sm:$0xff] }
 0x12d   :  { %5962 = vrot.lane.b32.xlu2 %v5961_v41, %s6760_s29  ;;  %5957 = vrot.lane.b32.xlu1 %v5956_v24, %s6760_s29  ;;  %v203_v24 = vld [vmem:[%s13341_s0 + $0x528] sm:$0xff]  ;;  %v8227_v41 = vsel %vm1193_vm0, %v6629_v30, %v7387_v51  ;;  %v5971_v57 = vpack.i.bf16 %v265_v47, %v204_v59  ;;  %v206_v59 = vld [vmem:[%s13341_s0 + $0x540] sm:$0xff]  ;;  %v8259_v30 = vpop.permute.xlu2 %5752 }
 0x12e   :  { %5952 = vrot.lane.b32.xlu0 %v5951_v28, %s6760_s29  ;;  %v264_v28 = vld [vmem:[%s13341_s0 + $0x710] sm:$0xff]  ;;  %13686 = vst [vmem:[#allocation72_spill] sm:$0xff] %v8227_v41  ;;  %v271_v51 = vld [vmem:[%s13341_s0 + $0x748] sm:$0xff] }
 0x12f   :  { %v8218_v43 = vpop.permute.xlu1 %5747  ;;  %v5966_v18 = vpack.i.bf16 %v264_v28, %v203_v24  ;;  %13689 = vst [vmem:[#allocation75_spill] sm:$0xff] %v8259_v30  ;;  %v6631_v30 = vld [vmem:[%s13341_s0 + $0x188] sm:$0xff] }
 0x130   :  { %13684 = vst [vmem:[#allocation70_spill] sm:$0xff] %v8218_v43  ;;  %v8220_v52 = vpop.permute.xlu0 %5742  ;;  %v270_v43 = vld [vmem:[%s13341_s0 + $0x740] sm:$0xff] }
 0x131   :  { %13685 = vst [vmem:[#allocation71_spill] sm:$0xff] %v8220_v52  ;;  %v1455_v16 = vpop.f32.mrf.mxu0  ;;  %v2072_v34 = vpop.f32.mrf.mxu1  ;;  %v5991_v28 = vpack.i.bf16 %v271_v51, %v270_v43  ;;  %v6630_v52 = vld [vmem:[%s13341_s0 + $0x180] sm:$0xff]  ;;  %v275_v51 = vld [vmem:[%s13341_s0 + $0x768] sm:$0xff] }
 0x134   :  { %1502 = vmatmul.f32.gmra.mxu0 %v7370_v35  ;;  %2119 = vmatmul.f32.gmra.mxu1 %v8227_v41  ;;  %v268_v35 = vld [vmem:[%s13341_s0 + $0x730] sm:$0xff]  ;;  %v8266_v41 = vsel %vm1193_vm0, %v6630_v52, %v7542_v2  ;;  %v8281_v2 = vld [vmem:[%s13343_s2] ss:$0 sm:$0xff] }
 0x135   :  { %5977 = vrot.lane.b32.xlu2 %v5976_v31, %s6760_s29  ;;  %5972 = vrot.lane.b32.xlu1 %v5971_v57, %s6760_s29  ;;  %v267_v57 = vld [vmem:[%s13341_s0 + $0x728] sm:$0xff]  ;;  %13690 = vst [vmem:[#allocation76_spill] sm:$0xff] %v8266_v41  ;;  %v5986_v22 = vpack.i.bf16 %v269_v46, %v268_v35  ;;  %v274_v52 = vld [vmem:[%s13341_s0 + $0x760] sm:$0xff] }
 0x136   :  { %5967 = vrot.lane.b32.xlu0 %v5966_v18, %s6760_s29  ;;  %v5981_v29 = vpack.i.bf16 %v267_v57, %v206_v59  ;;  %v272_v46 = vld [vmem:[%s13341_s0 + $0x750] sm:$0xff]  ;;  %v273_v57 = vld [vmem:[%s13341_s0 + $0x758] sm:$0xff] }
 0x137   :  { %v8268_v54 = vpop.permute.xlu1 %5762 }
 0x138   :  { %v8252_v18 = vpop.permute.xlu0 %5757  ;;  %13691 = vst [vmem:[#allocation77_spill] sm:$0xff] %v8268_v54  ;;  %v5765_v43 = vunpack.i.h.bf16 %v8268_v54  ;;  %v1453_v54 = vadd.f32 %v8281_v2, %v8182_v10 }
 0x139   :  { %13687 = vst [vmem:[#allocation73_spill] sm:$0xff] %v8252_v18  ;;  %v5760_v31 = vunpack.i.h.bf16 %v8252_v18  ;;  %v8255_v47 = vpop.f32.mrf.mxu0  ;;  %v8257_v24 = vpop.f32.mrf.mxu1 }
 0x13a   :  { %13688 = vst [vmem:[#allocation74_spill] sm:$0xff] %v8257_v24 }
 0x13b   :  { %v8271_v18 = vsel %vm1193_vm0, %v205_v40, %v5760_v31  ;;  %v277_v40 = vld [vmem:[%s13341_s0 + $0x778] sm:$0xff]  ;;  %v1444_v31 = vadd.f32 %v8281_v2, %v8062_v38 }
 0x13c   :  { %13692 = vst [vmem:[#allocation78_spill] sm:$0xff] %v8271_v18  ;;  %1505 = vmatmul.f32.gmra.mxu0 %v7406_v61  ;;  %1892 = vmatmul.f32.vlgmr.msra.gmra.mxu2 %v8271_v18  ;;  %v276_v61 = vld [vmem:[%s13341_s0 + $0x770] sm:$0xff] }
 0x13d   :  { %2122 = vmatmul.f32.gmra.mxu1 %v8266_v41  ;;  %5992 = vrot.lane.b32.xlu2 %v5991_v28, %s6760_s29  ;;  %v8325_v41 = vsel %vm1193_vm0, %v6631_v30, %v7540_v5  ;;  %v6006_v38 = vpack.i.bf16 %v277_v40, %v276_v61  ;;  %v2061_v5 = vadd.f32 %v8064_v53, %v1444_v31 }
 0x13e   :  { %5987 = vrot.lane.b32.xlu1 %v5986_v22, %s6760_s29  ;;  %5982 = vrot.lane.b32.xlu0 %v5981_v29, %s6760_s29  ;;  %v1447_v22 = vadd.f32 %v8281_v2, %v8105_v39  ;;  %v1456_v29 = vadd.f32 %v8281_v2, %v1455_v16  ;;  %v8316_v16 = vsel %vm1193_vm0, %v206_v59, %v5765_v43 }
 0x13f   :  { %13696 = vst [vmem:[#allocation82_spill] sm:$0xff] %v8316_v16  ;;  %v5996_v43 = vpack.i.bf16 %v273_v57, %v272_v46  ;;  %v5778_v30 = vpop.permute.xlu1 %5777  ;;  %v2654_v61 = vmax.f32 %v2061_v5, 0.0  ;;  %v1450_v40 = vadd.f32 %v8281_v2, %v8145_v58 }
 0x140   :  { %v8300_v35 = vpop.permute.xlu0 %5772  ;;  %v8334_v10 = vadd.f32 %v8107_v60, %v1447_v22  ;;  %v8338_v24 = vadd.f32 %v2072_v34, %v1456_v29  ;;  %v5780_v60 = vunpack.i.h.bf16 %v5778_v30  ;;  %v5779_v46 = vunpack.i.l.bf16 %v5778_v30  ;;  %v279_v30 = vld [vmem:[%s13341_s0 + $0x788] sm:$0xff] }
 0x141   :  { %13693 = vst [vmem:[#allocation79_spill] sm:$0xff] %v8300_v35  ;;  %v5774_v28 = vunpack.i.l.bf16 %v8300_v35  ;;  %v8311_v18 = vpop.f32.mrf.mxu0  ;;  %v8313_v39 = vpop.f32.mrf.mxu1  ;;  %v6001_v35 = vpack.i.bf16 %v275_v51, %v274_v52  ;;  %v6632_v51 = vld [vmem:[%s13341_s0 + $0x190] sm:$0xff] }
 0x142   :  { %13694 = vst [vmem:[#allocation80_spill] sm:$0xff] %v8311_v18  ;;  %v1441_v18 = vadd.f32 %v8281_v2, %v8015_v17  ;;  %v13411_v53 = vmax.f32 %v8334_v10, 0.0  ;;  %v13412_v34 = vmax.f32 %v8338_v24, 0.0  ;;  %v8374_v58 = vsel %vm1193_vm0, %v6632_v51, %v7436_v37 }
 0x143   :  { %13695 = vst [vmem:[#allocation81_spill] sm:$0xff] %v8313_v39  ;;  %v8331_v59 = vsel %vm1193_vm0, %v7937_v27, %v5774_v28  ;;  %v8336_v39 = vpop.permute.xlu2 %5767  ;;  %v8347_v27 = vadd.f32 %v8184_v63, %v1453_v54  ;;  %v8378_v22 = vsel %vm1193_vm0, %v7996_v62, %v5780_v60  ;;  %v8389_v37 = vadd.f32 %v8147_v49, %v1450_v40 }
 0x144   :  { %13697 = vst [vmem:[#allocation83_spill] sm:$0xff] %v8334_v10  ;;  %1508 = vmatmul.f32.gmra.mxu0 %v7442_v45  ;;  %1895 = vmatmul.f32.gmra.mxu2 %v8316_v16  ;;  %v5770_v17 = vunpack.i.h.bf16 %v8336_v39  ;;  %v2058_v45 = vadd.f32 %v8017_v19, %v1441_v18  ;;  %v278_v19 = vld [vmem:[%s13341_s0 + $0x780] sm:$0xff] }
 0x145   :  { %13698 = vst [vmem:[#allocation84_spill] sm:$0xff] %v8336_v39  ;;  %2125 = vmatmul.f32.gmra.mxu1 %v8325_v41  ;;  %2509 = vmatmul.f32.vlgmr.msra.gmra.mxu3 %v8331_v59  ;;  %v13413_v18 = vmax.f32 %v8347_v27, 0.0  ;;  %v13410_v49 = vmax.f32 %v8389_v37, 0.0 }
 0x146   :  { %6007 = vrot.lane.b32.xlu2 %v6006_v38, %s6760_s29  ;;  %6002 = vrot.lane.b32.xlu1 %v6001_v35, %s6760_s29  ;;  %v8363_v63 = vsel %vm1193_vm0, %v7580_v11, %v5770_v17  ;;  %v2653_v11 = vmax.f32 %v2058_v45, 0.0  ;;  %v6016_v35 = vpack.i.bf16 %v278_v19, %v13411_v53  ;;  %13700 = vst [vmem:[#allocation86_spill] sm:$0xff] %v8389_v37  ;;  %v6634_v19 = vld [vmem:[%s13341_s0 + $0x1a0] sm:$0xff]  ;;  %v13744_v37 = vld [vmem:[#allocation47_spill] sm:$0xff] }
 0x147   :  { %5997 = vrot.lane.b32.xlu0 %v5996_v43, %s6760_s29  ;;  %13699 = vst [vmem:[#allocation85_spill] sm:$0xff] %v8363_v63  ;;  %v6021_v29 = vpack.i.bf16 %v13412_v34, %v13413_v18  ;;  %v8406_v38 = vsel %vm1193_vm0, %v7572_v13, %v5779_v46  ;;  %v6633_v43 = vld [vmem:[%s13341_s0 + $0x198] sm:$0xff]  ;;  %v5793_v45 = vpop.permute.xlu1 %5792  ;;  %v8445_v51 = vsel %vm1193_vm0, %v6634_v19, %v7582_v12  ;;  %v13713_v53 = vld [vmem:[#allocation2_spill] sm:$0xff] }
 0x148   :  { %v8391_v57 = vpop.permute.xlu0 %5787  ;;  %13702 = vst [vmem:[#allocation88_spill] sm:$0xff] %v8406_v38  ;;  %v8413_v5 = vsel %vm1193_vm0, %v6633_v43, %v7584_v26  ;;  %v6026_v26 = vpack.i.bf16 %v279_v30, %v13410_v49  ;;  %v6638_v49 = vld [vmem:[%s13341_s0 + $0x1c0] sm:$0xff] }
 0x149   :  { %v8357_v52 = vpop.f32.mrf.mxu0  ;;  %v8359_v54 = vpop.f32.mrf.mxu1  ;;  %13701 = vst [vmem:[#allocation87_spill] sm:$0xff] %v8391_v57  ;;  %v5789_v62 = vunpack.i.l.bf16 %v8391_v57  ;;  %v8556_v34 = vsel %vm1193_vm0, %v6638_v49, %v13713_v53  ;;  %v237_v53 = vld [vmem:[%s13341_s0 + $0x638] sm:$0xff] }
 0x14b   :  { %v8417_v17 = vsel %vm1193_vm0, %v7625_v1, %v5789_v62  ;;  %v8422_v60 = vpop.permute.xlu2 %5782  ;;  %v5795_v1 = vunpack.i.h.bf16 %v5793_v45 }
 0x14c   :  { %1511 = vmatmul.f32.gmra.mxu0 %v7476_v7  ;;  %1898 = vmatmul.f32.gmra.mxu2 %v8363_v63  ;;  %v6011_v7 = vpack.i.bf16 %v2654_v61, %v2653_v11  ;;  %13703 = vst [vmem:[#allocation89_spill] sm:$0xff] %v8422_v60  ;;  %v5785_v13 = vunpack.i.h.bf16 %v8422_v60 }
 0x14d   :  { %2128 = vmatmul.f32.gmra.mxu1 %v8374_v58  ;;  %2512 = vmatmul.f32.gmra.mxu3 %v8378_v22  ;;  %v8449_v11 = vsel %vm1193_vm0, %v7617_v25, %v5795_v1 }
 0x14e   :  { %6022 = vrot.lane.b32.xlu2 %v6021_v29, %s6761_s17  ;;  %6017 = vrot.lane.b32.xlu1 %v6016_v35, %s6760_s29  ;;  %v5794_v29 = vunpack.i.l.bf16 %v5793_v45 }
 0x14f   :  { %6012 = vrot.lane.b32.xlu0 %v6011_v7, %s6762_s18  ;;  %v5808_v30 = vpop.permute.xlu1 %5807 }
 0x150   :  { %v8453_v35 = vpop.permute.xlu0 %5802  ;;  %v8464_v25 = vsel %vm1193_vm0, %v7612_v6, %v5794_v29  ;;  %v5809_v19 = vunpack.i.l.bf16 %v5808_v30 }
 0x151   :  { %v8400_v31 = vpop.f32.mrf.mxu0  ;;  %v8402_v28 = vpop.f32.mrf.mxu1  ;;  %13705 = vst [vmem:[#allocation91_spill] sm:$0xff] %v8453_v35 }
 0x152   :  { %13706 = vst [vmem:[#allocation92_spill] sm:$0xff] %v8464_v25 }
 0x153   :  { %v8477_v43 = vpop.permute.xlu2 %5797 }
 0x154   :  { %1514 = vmatmul.f32.gmra.mxu0 %v7512_v14  ;;  %1901 = vmatmul.f32.gmra.mxu2 %v8406_v38  ;;  %v8438_v14 = vsel %vm1193_vm0, %v7562_v23, %v5785_v13  ;;  %v5804_v23 = vunpack.i.l.bf16 %v8453_v35  ;;  %13707 = vst [vmem:[#allocation93_spill] sm:$0xff] %v8477_v43  ;;  %v5800_v6 = vunpack.i.h.bf16 %v8477_v43  ;;  %v5810_v13 = vunpack.i.h.bf16 %v5808_v30  ;;  %v13733_v43 = vld [vmem:[#allocation38_spill] sm:$0xff] }
 0x155   :  { %2131 = vmatmul.f32.gmra.mxu1 %v8413_v5  ;;  %2515 = vmatmul.f32.gmra.mxu3 %v8417_v17  ;;  %13704 = vst [vmem:[#allocation90_spill] sm:$0xff] %v8438_v14 }
 0x156   :  { %v8475_v62 = vsel %vm1193_vm0, %v7669_v20, %v5804_v23  ;;  %v8490_v20 = vsel %vm1193_vm0, %v7607_v21, %v5800_v6  ;;  %v8501_v1 = vsel %vm1193_vm0, %v7661_v48, %v5810_v13 }
 0x157   :  { %6027 = vrot.lane.b32.xlu0 %v6026_v26, %s6760_s29  ;;  %13708 = vst [vmem:[#allocation94_spill] sm:$0xff] %v8490_v20 }
 0x158   :  { %v8505_v29 = vpop.permute.xlu0 %5817 }
 0x159   :  { %v8432_v61 = vpop.f32.mrf.mxu0  ;;  %v8434_v40 = vpop.f32.mrf.mxu1  ;;  %13709 = vst [vmem:[#allocation95_spill] sm:$0xff] %v8505_v29  ;;  %v5819_v21 = vunpack.i.l.bf16 %v8505_v29 }
 0x15b   :  { %v8529_v30 = vsel %vm1193_vm0, %v7713_v33, %v5819_v21  ;;  %v8531_v13 = vpop.permute.xlu2 %5812  ;;  %v236_v33 = vld [vmem:[%s13341_s0 + $0x630] sm:$0xff] }
 0x15c   :  { %1517 = vmatmul.f32.gmra.mxu0 %v7548_v36  ;;  %1904 = vmatmul.f32.gmra.mxu2 %v8438_v14  ;;  %v6635_v36 = vld [vmem:[%s13341_s0 + $0x1a8] sm:$0xff]  ;;  %13711 = vst [vmem:[#allocation97_spill] sm:$0xff] %v8531_v13 }
 0x15d   :  { %2134 = vmatmul.f32.gmra.mxu1 %v8445_v51  ;;  %2518 = vmatmul.f32.gmra.mxu3 %v8449_v11  ;;  %v8471_v7 = vsel %vm1193_vm0, %v6635_v36, %v7478_v4  ;;  %v6637_v36 = vld [vmem:[%s13341_s0 + $0x1b8] sm:$0xff] }
 0x15e   :  { %v8525_v6 = vsel %vm1193_vm0, %v6637_v36, %v7627_v15  ;;  %v215_v15 = vld [vmem:[%s13341_s0 + $0x588] sm:$0xff] }
 0x161   :  { %v8458_v46 = vpop.f32.mrf.mxu0  ;;  %v8460_v12 = vpop.f32.mrf.mxu1 }
 0x164   :  { %1520 = vmatmul.f32.gmra.mxu0 %v7590_v9  ;;  %1907 = vmatmul.f32.gmra.mxu2 %v8464_v25  ;;  %v6636_v9 = vld [vmem:[%s13341_s0 + $0x1b0] sm:$0xff]  ;;  %v8589_v25 = vpop.permute.xlu2 %5827 }
 0x165   :  { %2137 = vmatmul.f32.gmra.mxu1 %v8471_v7  ;;  %2521 = vmatmul.f32.gmra.mxu3 %v8475_v62  ;;  %v8497_v26 = vsel %vm1193_vm0, %v6636_v9, %v7629_v55  ;;  %v214_v55 = vld [vmem:[%s13341_s0 + $0x580] sm:$0xff]  ;;  %v5815_v9 = vunpack.i.h.bf16 %v8531_v13 }
 0x166   :  { %v13732_v13 = vld [vmem:[#allocation18_spill] sm:$0xff] }
 0x167   :  { %v8549_v36 = vsel %vm1193_vm0, %v215_v15, %v5815_v9  ;;  %v13716_v15 = vld [vmem:[#allocation6_spill] sm:$0xff] }
 0x168   :  { %13712 = vst [vmem:[#allocation98_spill] sm:$0xff] %v8549_v36 }
 0x169   :  { %v8484_v4 = vpop.f32.mrf.mxu0  ;;  %v8486_v45 = vpop.f32.mrf.mxu1  ;;  %13717 = vst [vmem:[#allocation6_spill] sm:$0xff] %v8589_v25 }
 0x16c   :  { %1523 = vmatmul.f32.gmra.mxu0 %v7637_v42  ;;  %1910 = vmatmul.f32.gmra.mxu2 %v8490_v20  ;;  %v8518_v42 = vsel %vm1193_vm0, %v214_v55, %v5809_v19  ;;  %v5823_v19 = vpop.permute.xlu1 %5822  ;;  %v8563_v20 = vpop.permute.xlu0 %5832 }
 0x16d   :  { %2140 = vmatmul.f32.gmra.mxu1 %v8497_v26  ;;  %2524 = vmatmul.f32.gmra.mxu3 %v8501_v1  ;;  %13710 = vst [vmem:[#allocation96_spill] sm:$0xff] %v8518_v42  ;;  %v5825_v55 = vunpack.i.h.bf16 %v5823_v19  ;;  %v5834_v9 = vunpack.i.l.bf16 %v8563_v20 }
 0x16e   :  { %13714 = vst [vmem:[#allocation2_spill] sm:$0xff] %v8563_v20 }
 0x16f   :  { %v8559_v18 = vsel %vm1193_vm0, %v236_v33, %v5825_v55 }
 0x171   :  { %v8513_v23 = vpop.f32.mrf.mxu0  ;;  %v8515_v48 = vpop.f32.mrf.mxu1 }
 0x174   :  { %1526 = vmatmul.f32.gmra.mxu0 %v7679_v56  ;;  %1913 = vmatmul.f32.gmra.mxu2 %v8518_v42  ;;  %v5824_v42 = vunpack.i.l.bf16 %v5823_v19  ;;  %v6639_v19 = vld [vmem:[%s13341_s0 + $0x1c8] sm:$0xff]  ;;  %v8617_v16 = vpop.permute.xlu0 %5847 }
 0x175   :  { %2143 = vmatmul.f32.gmra.mxu1 %v8525_v6  ;;  %2527 = vmatmul.f32.gmra.mxu3 %v8529_v30  ;;  %v8584_v33 = vsel %vm1193_vm0, %v6639_v19, %v13716_v15 }
 0x179   :  { %v8544_v21 = vpop.f32.mrf.mxu0  ;;  %v8546_v56 = vpop.f32.mrf.mxu1 }
 0x17c   :  { %1529 = vmatmul.f32.gmra.mxu0 %v7723_v3  ;;  %1916 = vmatmul.f32.gmra.mxu2 %v8549_v36  ;;  %v8577_v3 = vsel %vm1193_vm0, %v7702_v44, %v5824_v42  ;;  %v8587_v36 = vsel %vm1193_vm0, %v237_v53, %v5834_v9  ;;  %v5830_v44 = vunpack.i.h.bf16 %v8589_v25  ;;  %v5838_v42 = vpop.permute.xlu1 %5837  ;;  %v13719_v53 = vld [vmem:[#allocation5_spill] sm:$0xff]  ;;  %v8669_v60 = vpop.permute.xlu0 %5862 }
 0x17d   :  { %2146 = vmatmul.f32.gmra.mxu1 %v8556_v34  ;;  %2530 = vmatmul.f32.gmra.mxu3 %v8559_v18  ;;  %13715 = vst [vmem:[#allocation99_spill] sm:$0xff] %v8577_v3  ;;  %v5840_v14 = vunpack.i.h.bf16 %v5838_v42  ;;  %v5839_v63 = vunpack.i.l.bf16 %v5838_v42  ;;  %v13726_v25 = vld [vmem:[#allocation29_spill] sm:$0xff] }
 0x17e   :  { %v8602_v9 = vsel %vm1193_vm0, %v7697_v32, %v5830_v44  ;;  %13720 = vst [vmem:[#allocation5_spill] sm:$0xff] %v8617_v16  ;;  %v5849_v32 = vunpack.i.l.bf16 %v8617_v16  ;;  %v8641_v16 = vpop.permute.xlu2 %5842 }
 0x17f   :  { %13718 = vst [vmem:[#allocation100_spill] sm:$0xff] %v8602_v9 }
 0x181   :  { %v8571_v49 = vpop.f32.mrf.mxu0  ;;  %v8573_v55 = vpop.f32.mrf.mxu1 }
 0x184   :  { %1532 = vmatmul.f32.gmra.mxu0 %v7768_v8  ;;  %1919 = vmatmul.f32.gmra.mxu2 %v8577_v3  ;;  %v6640_v8 = vld [vmem:[%s13341_s0 + $0x1d0] sm:$0xff]  ;;  %v8613_v3 = vsel %vm1193_vm0, %v7752_v0, %v5840_v14  ;;  %v13723_v14 = vld [vmem:[#allocation3_spill] sm:$0xff] }
 0x185   :  { %2149 = vmatmul.f32.gmra.mxu1 %v8584_v33  ;;  %2533 = vmatmul.f32.gmra.mxu3 %v8587_v36  ;;  %v8609_v15 = vsel %vm1193_vm0, %v6640_v8, %v13719_v53  ;;  %v13721_v53 = vld [vmem:[#allocation12_spill] sm:$0xff]  ;;  %13725 = vst [vmem:[#allocation3_spill] sm:$0xff] %v8641_v16 }
 0x186   :  { %v8628_v0 = vsel %vm1193_vm0, %v13721_v53, %v5839_v63  ;;  %v5845_v63 = vunpack.i.h.bf16 %v8641_v16  ;;  %v5853_v53 = vpop.permute.xlu1 %5852 }
 0x187   :  { %13722 = vst [vmem:[#allocation12_spill] sm:$0xff] %v8628_v0  ;;  %v5855_v29 = vunpack.i.h.bf16 %v5853_v53  ;;  %v5854_v57 = vunpack.i.l.bf16 %v5853_v53 }
 0x189   :  { %v8596_v38 = vpop.f32.mrf.mxu0  ;;  %v8598_v19 = vpop.f32.mrf.mxu1  ;;  %v8665_v35 = vsel %vm1193_vm0, %v13732_v13, %v5855_v29  ;;  %v13739_v13 = vld [vmem:[#allocation8_spill] sm:$0xff] }
 0x18c   :  { %1535 = vmatmul.f32.gmra.mxu0 %v7815_v50  ;;  %1922 = vmatmul.f32.gmra.mxu2 %v8602_v9  ;;  %v6641_v50 = vld [vmem:[%s13341_s0 + $0x1d8] sm:$0xff]  ;;  %v13724_v9 = vld [vmem:[#allocation19_spill] sm:$0xff] }
 0x18d   :  { %2152 = vmatmul.f32.gmra.mxu1 %v8609_v15  ;;  %2536 = vmatmul.f32.gmra.mxu3 %v8613_v3  ;;  %v8635_v42 = vsel %vm1193_vm0, %v6641_v50, %v13723_v14  ;;  %v8639_v20 = vsel %vm1193_vm0, %v13724_v9, %v5849_v32  ;;  %v13729_v9 = vld [vmem:[#allocation11_spill] sm:$0xff] }
 0x18e   :  { %v8654_v32 = vsel %vm1193_vm0, %v13729_v9, %v5845_v63  ;;  %v5864_v63 = vunpack.i.l.bf16 %v8669_v60 }
 0x18f   :  { %13730 = vst [vmem:[#allocation11_spill] sm:$0xff] %v8654_v32 }
 0x191   :  { %v8622_v44 = vpop.f32.mrf.mxu0  ;;  %v8624_v8 = vpop.f32.mrf.mxu1 }
 0x194   :  { %1538 = vmatmul.f32.gmra.mxu0 %v13726_v25  ;;  %1925 = vmatmul.f32.gmra.mxu2 %v8628_v0  ;;  %v6642_v25 = vld [vmem:[%s13341_s0 + $0x1e0] sm:$0xff]  ;;  %v13731_v0 = vld [vmem:[#allocation9_spill] sm:$0xff] }
 0x195   :  { %2155 = vmatmul.f32.gmra.mxu1 %v8635_v42  ;;  %2539 = vmatmul.f32.gmra.mxu3 %v8639_v20  ;;  %v8661_v16 = vsel %vm1193_vm0, %v6642_v25, %v13731_v0  ;;  %13734 = vst [vmem:[#allocation9_spill] sm:$0xff] %v8669_v60  ;;  %v13736_v0 = vld [vmem:[#allocation16_spill] sm:$0xff]  ;;  %v8693_v60 = vpop.permute.xlu2 %5857 }
 0x196   :  { %v8678_v25 = vsel %vm1193_vm0, %v13736_v0, %v5854_v57  ;;  %13743 = vst [vmem:[#allocation101_spill] sm:$0xff] %v8693_v60  ;;  %v5860_v57 = vunpack.i.h.bf16 %v8693_v60  ;;  %v5868_v0 = vpop.permute.xlu1 %5867 }
 0x197   :  { %13737 = vst [vmem:[#allocation38_spill] sm:$0xff] %v8678_v25  ;;  %v5870_v10 = vunpack.i.h.bf16 %v5868_v0 }
 0x199   :  { %v8648_v50 = vpop.f32.mrf.mxu0  ;;  %v8650_v14 = vpop.f32.mrf.mxu1 }
 0x19a   :  { %13727 = vst [vmem:[#allocation19_spill] sm:$0xff] %v8648_v50 }
 0x19b   :  { %13728 = vst [vmem:[#allocation29_spill] sm:$0xff] %v8650_v14 }
 0x19c   :  { %1541 = vmatmul.f32.gmra.mxu0 %v13733_v43  ;;  %1928 = vmatmul.f32.gmra.mxu2 %v8654_v32  ;;  %v6643_v43 = vld [vmem:[%s13341_s0 + $0x1e8] sm:$0xff]  ;;  %v13741_v32 = vld [vmem:[#allocation25_spill] sm:$0xff] }
 0x19d   :  { %2158 = vmatmul.f32.gmra.mxu1 %v8661_v16  ;;  %2542 = vmatmul.f32.gmra.mxu3 %v8665_v35  ;;  %v8687_v53 = vsel %vm1193_vm0, %v6643_v43, %v13739_v13  ;;  %v8691_v39 = vsel %vm1193_vm0, %v13741_v32, %v5864_v63  ;;  %v13745_v13 = vld [vmem:[#allocation15_spill] sm:$0xff] }
 0x19e   :  { %13740 = vst [vmem:[#allocation8_spill] sm:$0xff] %v8687_v53 }
 0x19f   :  { %13742 = vst [vmem:[#allocation25_spill] sm:$0xff] %v8691_v39 }
 0x1a1   :  { %v8674_v9 = vpop.f32.mrf.mxu0  ;;  %v8680_v29 = vpop.f32.mrf.mxu1 }
 0x1a2   :  { %13735 = vst [vmem:[#allocation18_spill] sm:$0xff] %v8674_v9  ;;  %v13749_v9 = vld [vmem:[#allocation24_spill] sm:$0xff] }
 0x1a3   :  { %13738 = vst [vmem:[#allocation16_spill] sm:$0xff] %v8680_v29  ;;  %v8702_v29 = vsel %vm1193_vm0, %v13745_v13, %v5860_v57  ;;  %v8714_v14 = vsel %vm1193_vm0, %v13749_v9, %v5870_v10  ;;  %v5869_v57 = vunpack.i.l.bf16 %v5868_v0  ;;  %v13754_v9 = vld [vmem:[#allocation23_spill] sm:$0xff] }
 0x1a4   :  { %1544 = vmatmul.f32.gmra.mxu0 %v13744_v37  ;;  %1931 = vmatmul.f32.gmra.mxu2 %v8678_v25  ;;  %13746 = vst [vmem:[#allocation47_spill] sm:$0xff] %v8702_v29  ;;  %v6644_v37 = vld [vmem:[%s13341_s0 + $0x1f0] sm:$0xff] }
 0x1a5   :  { %2161 = vmatmul.f32.gmra.mxu1 %v8687_v53  ;;  %2545 = vmatmul.f32.gmra.mxu3 %v8691_v39  ;;  %v13747_v25 = vld [vmem:[#allocation4_spill] sm:$0xff]  ;;  %v13751_v53 = vld [vmem:[#allocation53_spill] sm:$0xff] }
 0x1a6   :  { %v8710_v60 = vsel %vm1193_vm0, %v6644_v37, %v13747_v25  ;;  %13750 = vst [vmem:[#allocation4_spill] sm:$0xff] %v8714_v14  ;;  %v13753_v37 = vmax.f32 %v8347_v27, 0.0  ;;  %v13758_v27 = vld [vmem:[#allocation33_spill] sm:$0xff] }
 0x1a7   :  { %13748 = vst [vmem:[#allocation15_spill] sm:$0xff] %v8710_v60 }
 0x1a9   :  { %v1500_v43 = vpop.f32.mrf.mxu0  ;;  %v2117_v63 = vpop.f32.mrf.mxu1 }
 0x1aa   :  { %v1501_v32 = vadd.f32 %v8281_v2, %v1500_v43  ;;  %v8718_v43 = vpop.permute.xlu0 %5877 }
 0x1ab   :  { %13752 = vst [vmem:[#allocation24_spill] sm:$0xff] %v8718_v43  ;;  %v5879_v13 = vunpack.i.l.bf16 %v8718_v43 }
 0x1ac   :  { %v2118_v50 = vadd.f32 %v2117_v63, %v1501_v32  ;;  %1547 = vmatmul.f32.gmra.mxu0 %v13751_v53  ;;  %1934 = vmatmul.f32.gmra.mxu2 %v8702_v29  ;;  %v8727_v32 = vsel %vm1193_vm0, %v13754_v9, %v5869_v57  ;;  %v6645_v63 = vld [vmem:[%s13341_s0 + $0x1f8] sm:$0xff]  ;;  %v13756_v29 = vld [vmem:[#allocation14_spill] sm:$0xff] }
 0x1ad   :  { %2164 = vmatmul.f32.gmra.mxu1 %v8710_v60  ;;  %2548 = vmatmul.f32.gmra.mxu3 %v8714_v14  ;;  %13755 = vst [vmem:[#allocation53_spill] sm:$0xff] %v8727_v32  ;;  %v13761_v9 = vld [vmem:[#allocation57_spill] sm:$0xff]  ;;  %v13769_v14 = vld [vmem:[#allocation32_spill] sm:$0xff] }
 0x1ae   :  { %v2673_v25 = vmax.f32 %v2118_v50, 0.0  ;;  %v8736_v50 = vsel %vm1193_vm0, %v6645_v63, %v13756_v29  ;;  %v1459_v29 = vadd.f32 %v8281_v2, %v8255_v47 }
 0x1af   :  { %13757 = vst [vmem:[#allocation23_spill] sm:$0xff] %v8736_v50 }
 0x1b0   :  { %v6031_v39 = vpack.i.bf16 %v2673_v25, %v13753_v37  ;;  %v8740_v25 = vsel %vm1193_vm0, %v13758_v27, %v5879_v13  ;;  %v8742_v37 = vpop.permute.xlu2 %5872 }
 0x1b1   :  { %v1503_v10 = vpop.f32.mrf.mxu0  ;;  %v2120_v0 = vpop.f32.mrf.mxu1  ;;  %13759 = vst [vmem:[#allocation14_spill] sm:$0xff] %v8740_v25 }
 0x1b2   :  { %v1504_v53 = vadd.f32 %v8281_v2, %v1503_v10  ;;  %6032 = vrot.lane.b32.xlu1 %v6031_v39, %s6762_s18  ;;  %13760 = vst [vmem:[#allocation33_spill] sm:$0xff] %v8742_v37  ;;  %v5875_v39 = vunpack.i.h.bf16 %v8742_v37  ;;  %v5883_v10 = vpop.permute.xlu1 %5882  ;;  %v13765_v37 = vld [vmem:[#allocation74_spill] sm:$0xff] }
 0x1b3   :  { %v5885_v63 = vunpack.i.h.bf16 %v5883_v10 }
 0x1b4   :  { %v2121_v57 = vadd.f32 %v2120_v0, %v1504_v53  ;;  %1550 = vmatmul.f32.gmra.mxu0 %v13761_v9  ;;  %1937 = vmatmul.f32.gmra.mxu2 %v8727_v32  ;;  %v104_v53 = vld [vmem:[%s13341_s0 + $0x210] sm:$0xff]  ;;  %v13762_v0 = vmax.f32 %v8338_v24, 0.0  ;;  %v13763_v32 = vld [vmem:[#allocation22_spill] sm:$0xff] }
 0x1b5   :  { %2167 = vmatmul.f32.gmra.mxu1 %v8736_v50  ;;  %2551 = vmatmul.f32.gmra.mxu3 %v8740_v25  ;;  %v8758_v43 = vsel %vm1193_vm0, %v13763_v32, %v5875_v39  ;;  %v8761_v50 = vadd.f32 %v13765_v37, %v1459_v29  ;;  %v8771_v24 = vsel %vm1193_vm0, %v13769_v14, %v5885_v63  ;;  %v13772_v32 = vld [vmem:[#allocation60_spill] sm:$0xff]  ;;  %v5884_v37 = vunpack.i.l.bf16 %v5883_v10  ;;  %v8777_v39 = vpop.permute.xlu0 %5892  ;;  %v105_v10 = vld [vmem:[%s13341_s0 + $0x218] sm:$0xff] }
 0x1b6   :  { %v2674_v13 = vmax.f32 %v2121_v57, 0.0  ;;  %13764 = vst [vmem:[#allocation57_spill] sm:$0xff] %v8758_v43  ;;  %v13767_v57 = vld [vmem:[#allocation13_spill] sm:$0xff]  ;;  %v5894_v14 = vunpack.i.l.bf16 %v8777_v39 }
 0x1b7   :  { %13766 = vst [vmem:[#allocation22_spill] sm:$0xff] %v8761_v50  ;;  %v8767_v60 = vsel %vm1193_vm0, %v104_v53, %v13767_v57  ;;  %v13457_v29 = vmax.f32 %v8761_v50, 0.0  ;;  %v13774_v53 = vld [vmem:[#allocation80_spill] sm:$0xff]  ;;  %v13781_v50 = vld [vmem:[#allocation42_spill] sm:$0xff] }
 0x1b8   :  { %v6036_v27 = vpack.i.bf16 %v2674_v13, %v13762_v0  ;;  %13768 = vst [vmem:[#allocation74_spill] sm:$0xff] %v8767_v60  ;;  %v1462_v0 = vadd.f32 %v8281_v2, %v13774_v53 }
 0x1b9   :  { %v1506_v9 = vpop.f32.mrf.mxu0  ;;  %13770 = vst [vmem:[#allocation13_spill] sm:$0xff] %v8771_v24 }
 0x1ba   :  { %v1507_v25 = vadd.f32 %v8281_v2, %v1506_v9  ;;  %v2123_v47 = vpop.f32.mrf.mxu1  ;;  %6037 = vrot.lane.b32.xlu1 %v6036_v27, %s6762_s18  ;;  %13773 = vst [vmem:[#allocation60_spill] sm:$0xff] %v8777_v39 }
 0x1bc   :  { %v8773_v13 = vadd.f32 %v2123_v47, %v1507_v25  ;;  %1553 = vmatmul.f32.gmra.mxu0 %v13772_v32  ;;  %1940 = vmatmul.f32.gmra.mxu2 %v8758_v43  ;;  %v13775_v47 = vld [vmem:[#allocation31_spill] sm:$0xff]  ;;  %v13777_v32 = vld [vmem:[#allocation81_spill] sm:$0xff] }
 0x1bd   :  { %2170 = vmatmul.f32.gmra.mxu1 %v8767_v60  ;;  %2554 = vmatmul.f32.gmra.mxu3 %v8771_v24  ;;  %v8795_v57 = vsel %vm1193_vm0, %v13775_v47, %v5884_v37  ;;  %v8798_v53 = vadd.f32 %v13777_v32, %v1462_v0  ;;  %v13779_v60 = vld [vmem:[#allocation7_spill] sm:$0xff]  ;;  %v13784_v47 = vld [vmem:[#allocation64_spill] sm:$0xff] }
 0x1be   :  { %13771 = vst [vmem:[#allocation32_spill] sm:$0xff] %v8773_v13  ;;  %v13458_v25 = vmax.f32 %v8773_v13, 0.0  ;;  %v8804_v24 = vsel %vm1193_vm0, %v105_v10, %v13779_v60 }
 0x1bf   :  { %v1893_v63 = vpop.f32.mrf.mxu2  ;;  %13776 = vst [vmem:[#allocation80_spill] sm:$0xff] %v8795_v57  ;;  %v13465_v60 = vmax.f32 %v8798_v53, 0.0 }
 0x1c0   :  { %v6041_v27 = vpack.i.bf16 %v13458_v25, %v13457_v29  ;;  %13778 = vst [vmem:[#allocation31_spill] sm:$0xff] %v8798_v53  ;;  %v8808_v29 = vsel %vm1193_vm0, %v13781_v50, %v5894_v14  ;;  %v8810_v25 = vpop.permute.xlu2 %5887  ;;  %v1465_v50 = vadd.f32 %v8281_v2, %v8357_v52  ;;  %v6646_v53 = vld [vmem:[%s13341_s0 + $0x220] sm:$0xff] }
 0x1c1   :  { %v1509_v9 = vpop.f32.mrf.mxu0  ;;  %13780 = vst [vmem:[#allocation81_spill] sm:$0xff] %v8804_v24  ;;  %v5890_v0 = vunpack.i.h.bf16 %v8810_v25 }
 0x1c2   :  { %v1510_v43 = vadd.f32 %v8281_v2, %v1509_v9  ;;  %v2126_v39 = vpop.f32.mrf.mxu1  ;;  %6042 = vrot.lane.b32.xlu2 %v6041_v27, %s6760_s29  ;;  %13782 = vst [vmem:[#allocation7_spill] sm:$0xff] %v8810_v25  ;;  %v5898_v9 = vpop.permute.xlu1 %5897  ;;  %v1894_v27 = vadd.f32 %v8281_v2, %v1893_v63  ;;  %v2082_v13 = vadd.f32 %v8359_v54, %v1465_v50 }
 0x1c3   :  { %v1468_v54 = vadd.f32 %v8281_v2, %v8400_v31 }
 0x1c4   :  { %v8812_v37 = vadd.f32 %v2126_v39, %v1510_v43  ;;  %1556 = vmatmul.f32.gmra.mxu0 %v13784_v47  ;;  %1943 = vmatmul.f32.gmra.mxu2 %v8795_v57  ;;  %v5900_v43 = vunpack.i.h.bf16 %v5898_v9  ;;  %v13786_v57 = vld [vmem:[#allocation30_spill] sm:$0xff] }
 0x1c5   :  { %2173 = vmatmul.f32.gmra.mxu1 %v8804_v24  ;;  %2557 = vmatmul.f32.gmra.mxu3 %v8808_v29  ;;  %v8832_v25 = vsel %vm1193_vm0, %v13786_v57, %v5890_v0  ;;  %v13790_v0 = vld [vmem:[#allocation68_spill] sm:$0xff] }
 0x1c6   :  { %13783 = vst [vmem:[#allocation42_spill] sm:$0xff] %v8812_v37  ;;  %v13466_v39 = vmax.f32 %v8812_v37, 0.0  ;;  %v13788_v37 = vld [vmem:[#allocation21_spill] sm:$0xff] }
 0x1c7   :  { %v1896_v14 = vpop.f32.mrf.mxu2  ;;  %13787 = vst [vmem:[#allocation30_spill] sm:$0xff] %v8832_v25 }
 0x1c8   :  { %v2510_v10 = vpop.f32.mrf.mxu3  ;;  %v6046_v32 = vpack.i.bf16 %v13466_v39, %v13465_v60  ;;  %v8852_v50 = vpop.permute.xlu2 %5902 }
 0x1c9   :  { %v8828_v63 = vadd.f32 %v2510_v10, %v1894_v27  ;;  %v1512_v47 = vpop.f32.mrf.mxu0  ;;  %v8842_v27 = vsel %vm1193_vm0, %v6646_v53, %v13788_v37  ;;  %v13789_v10 = vld [vmem:[#allocation41_spill] sm:$0xff]  ;;  %13791 = vst [vmem:[#allocation21_spill] sm:$0xff] %v8852_v50  ;;  %v2661_v53 = vmax.f32 %v2082_v13, 0.0  ;;  %v5905_v37 = vunpack.i.h.bf16 %v8852_v50  ;;  %v6647_v13 = vld [vmem:[%s13341_s0 + $0x228] sm:$0xff] }
 0x1ca   :  { %v1513_v52 = vadd.f32 %v8281_v2, %v1512_v47  ;;  %v2129_v24 = vpop.f32.mrf.mxu1  ;;  %6047 = vrot.lane.b32.xlu2 %v6046_v32, %s6760_s29  ;;  %v8846_v60 = vsel %vm1193_vm0, %v13789_v10, %v5900_v43  ;;  %v5899_v32 = vunpack.i.l.bf16 %v5898_v9  ;;  %v1897_v47 = vadd.f32 %v8281_v2, %v1896_v14 }
 0x1cb   :  { %13785 = vst [vmem:[#allocation64_spill] sm:$0xff] %v8828_v63  ;;  %v13793_v63 = vld [vmem:[#allocation40_spill] sm:$0xff] }
 0x1cc   :  { %v2130_v57 = vadd.f32 %v2129_v24, %v1513_v52  ;;  %1559 = vmatmul.f32.gmra.mxu0 %v13790_v0  ;;  %1946 = vmatmul.f32.gmra.mxu2 %v8832_v25  ;;  %v2085_v0 = vadd.f32 %v8402_v28, %v1468_v54  ;;  %v8863_v9 = vsel %vm1193_vm0, %v13793_v63, %v5899_v32  ;;  %v13796_v54 = vld [vmem:[#allocation50_spill] sm:$0xff]  ;;  %v13797_v32 = vld [vmem:[#allocation72_spill] sm:$0xff] }
 0x1cd   :  { %2176 = vmatmul.f32.gmra.mxu1 %v8842_v27  ;;  %2560 = vmatmul.f32.gmra.mxu3 %v8846_v60  ;;  %13794 = vst [vmem:[#allocation68_spill] sm:$0xff] %v8863_v9 }
 0x1ce   :  { %v2677_v24 = vmax.f32 %v2130_v57, 0.0  ;;  %v13795_v57 = vld [vmem:[#allocation20_spill] sm:$0xff] }
 0x1cf   :  { %v1899_v43 = vpop.f32.mrf.mxu2  ;;  %v8873_v28 = vsel %vm1193_vm0, %v6647_v13, %v13795_v57 }
 0x1d0   :  { %v2513_v52 = vpop.f32.mrf.mxu3  ;;  %v6056_v10 = vpack.i.bf16 %v2677_v24, %v2661_v53  ;;  %v1471_v53 = vadd.f32 %v8281_v2, %v8432_v61  ;;  %v8883_v24 = vpop.permute.xlu0 %5907 }
 0x1d1   :  { %v8859_v39 = vadd.f32 %v2513_v52, %v1897_v47  ;;  %v1515_v31 = vpop.f32.mrf.mxu0  ;;  %v8877_v47 = vsel %vm1193_vm0, %v13796_v54, %v5905_v37  ;;  %13798 = vst [vmem:[#allocation40_spill] sm:$0xff] %v8883_v24  ;;  %v1900_v52 = vadd.f32 %v8281_v2, %v1899_v43  ;;  %v5910_v37 = vunpack.i.h.bf16 %v8883_v24 }
 0x1d2   :  { %v1516_v14 = vadd.f32 %v8281_v2, %v1515_v31  ;;  %v2132_v25 = vpop.f32.mrf.mxu1  ;;  %6057 = vrot.lane.b32.xlu1 %v6056_v10, %s6762_s18  ;;  %6052 = vrot.lane.b32.xlu0 %v6056_v10, %s6761_s17  ;;  %v2662_v10 = vmax.f32 %v2085_v0, 0.0  ;;  %v8890_v57 = vadd.f32 %v8434_v40, %v1471_v53  ;;  %v6648_v0 = vld [vmem:[%s13341_s0 + $0x230] sm:$0xff]  ;;  %v13801_v40 = vld [vmem:[#allocation49_spill] sm:$0xff] }
 0x1d3   :  { %13792 = vst [vmem:[#allocation41_spill] sm:$0xff] %v8859_v39  ;;  %v8906_v53 = vsel %vm1193_vm0, %v13801_v40, %v5910_v37  ;;  %v1474_v37 = vadd.f32 %v8281_v2, %v8458_v46  ;;  %v6649_v39 = vld [vmem:[%s13341_s0 + $0x238] sm:$0xff] }
 0x1d4   :  { %v2133_v63 = vadd.f32 %v2132_v25, %v1516_v14  ;;  %1562 = vmatmul.f32.gmra.mxu0 %v13797_v32  ;;  %1949 = vmatmul.f32.gmra.mxu2 %v8863_v9  ;;  %v13805_v9 = vld [vmem:[#allocation27_spill] sm:$0xff] }
 0x1d5   :  { %2179 = vmatmul.f32.gmra.mxu1 %v8873_v28  ;;  %2563 = vmatmul.f32.gmra.mxu3 %v8877_v47 }
 0x1d6   :  { %v2678_v31 = vmax.f32 %v2133_v63, 0.0  ;;  %v13800_v63 = vld [vmem:[#allocation10_spill] sm:$0xff] }
 0x1d7   :  { %v1902_v25 = vpop.f32.mrf.mxu2 }
 0x1d8   :  { %v2516_v14 = vpop.f32.mrf.mxu3  ;;  %v6066_v13 = vpack.i.bf16 %v2678_v31, %v2662_v10  ;;  %v8902_v10 = vsel %vm1193_vm0, %v6648_v0, %v13800_v63  ;;  %v13802_v31 = vld [vmem:[#allocation76_spill] sm:$0xff] }
 0x1d9   :  { %v8892_v54 = vadd.f32 %v2516_v14, %v1900_v52  ;;  %v1518_v61 = vpop.f32.mrf.mxu0  ;;  %v8912_v14 = vpop.permute.xlu1 %5912 }
 0x1da   :  { %v1519_v32 = vadd.f32 %v8281_v2, %v1518_v61  ;;  %v2135_v43 = vpop.f32.mrf.mxu1  ;;  %6067 = vrot.lane.b32.xlu1 %v6066_v13, %s6762_s18  ;;  %6062 = vrot.lane.b32.xlu0 %v6066_v13, %s6761_s17  ;;  %13803 = vst [vmem:[#allocation50_spill] sm:$0xff] %v8912_v14  ;;  %v1903_v13 = vadd.f32 %v8281_v2, %v1902_v25  ;;  %v13473_v61 = vmax.f32 %v8890_v57, 0.0 }
 0x1db   :  { %13799 = vst [vmem:[#allocation20_spill] sm:$0xff] %v8892_v54 }
 0x1dc   :  { %v8908_v52 = vadd.f32 %v2135_v43, %v1519_v32  ;;  %1565 = vmatmul.f32.gmra.mxu0 %v13802_v31  ;;  %1952 = vmatmul.f32.gmra.mxu2 %v8331_v59  ;;  %v5915_v32 = vunpack.i.h.bf16 %v8912_v14  ;;  %v8929_v31 = vadd.f32 %v8460_v12, %v1474_v37  ;;  %v8938_v14 = vsel %vm1193_vm0, %v6649_v39, %v13805_v9 }
 0x1dd   :  { %2182 = vmatmul.f32.gmra.mxu1 %v8902_v10  ;;  %2566 = vmatmul.f32.gmra.mxu3 %v8906_v53  ;;  %v1477_v9 = vadd.f32 %v8281_v2, %v8484_v4  ;;  %v6651_v4 = vld [vmem:[%s13341_s0 + $0x240] sm:$0xff] }
 0x1de   :  { %v13474_v43 = vmax.f32 %v8908_v52, 0.0  ;;  %v13476_v39 = vmax.f32 %v8929_v31, 0.0 }
 0x1df   :  { %v1905_v0 = vpop.f32.mrf.mxu2 }
 0x1e0   :  { %v2519_v63 = vpop.f32.mrf.mxu3  ;;  %v6071_v59 = vpack.i.bf16 %v13474_v43, %v13473_v61 }
 0x1e1   :  { %v8926_v25 = vadd.f32 %v2519_v63, %v1903_v13  ;;  %v1521_v40 = vpop.f32.mrf.mxu0  ;;  %v6650_v13 = vld [vmem:[%s13341_s0 + $0x698] sm:$0xff]  ;;  %v8950_v63 = vpop.permute.xlu2 %5917 }
 0x1e2   :  { %v1522_v54 = vadd.f32 %v8281_v2, %v1521_v40  ;;  %v2138_v46 = vpop.f32.mrf.mxu1  ;;  %6072 = vrot.lane.b32.xlu2 %v6071_v59, %s6760_s29  ;;  %v8944_v12 = vsel %vm1193_vm0, %v6650_v13, %v5915_v32  ;;  %13806 = vst [vmem:[#allocation10_spill] sm:$0xff] %v8950_v63  ;;  %v1906_v59 = vadd.f32 %v8281_v2, %v1905_v0 }
 0x1e3   :  { %13804 = vst [vmem:[#allocation72_spill] sm:$0xff] %v8926_v25  ;;  %v2094_v13 = vadd.f32 %v8486_v45, %v1477_v9  ;;  %v13808_v25 = vld [vmem:[#allocation26_spill] sm:$0xff]  ;;  %v1480_v9 = vadd.f32 %v8281_v2, %v8513_v23 }
 0x1e4   :  { %v8946_v37 = vadd.f32 %v2138_v46, %v1522_v54  ;;  %1568 = vmatmul.f32.gmra.mxu0 %v8325_v41  ;;  %1955 = vmatmul.f32.gmra.mxu2 %v8378_v22  ;;  %v5920_v54 = vunpack.i.h.bf16 %v8950_v63  ;;  %v8974_v63 = vsel %vm1193_vm0, %v6651_v4, %v13808_v25 }
 0x1e5   :  { %2185 = vmatmul.f32.gmra.mxu1 %v8938_v14  ;;  %2569 = vmatmul.f32.gmra.mxu3 %v8944_v12 }
 0x1e6   :  { %v13477_v32 = vmax.f32 %v8946_v37, 0.0 }
 0x1e7   :  { %v1908_v41 = vpop.f32.mrf.mxu2 }
 0x1e8   :  { %v2522_v40 = vpop.f32.mrf.mxu3  ;;  %v6076_v22 = vpack.i.bf16 %v13477_v32, %v13476_v39  ;;  %v1909_v25 = vadd.f32 %v8281_v2, %v1908_v41  ;;  %v6653_v41 = vld [vmem:[%s13341_s0 + $0x248] sm:$0xff] }
 0x1e9   :  { %v8964_v0 = vadd.f32 %v2522_v40, %v1906_v59  ;;  %v1524_v46 = vpop.f32.mrf.mxu0  ;;  %v6652_v59 = vld [vmem:[%s13341_s0 + $0x6a0] sm:$0xff] }
 0x1ea   :  { %v1525_v61 = vadd.f32 %v8281_v2, %v1524_v46  ;;  %v2141_v43 = vpop.f32.mrf.mxu1  ;;  %6077 = vrot.lane.b32.xlu2 %v6076_v22, %s6760_s29  ;;  %v8980_v40 = vsel %vm1193_vm0, %v6652_v59, %v5920_v54  ;;  %v8986_v22 = vpop.permute.xlu0 %5922  ;;  %v2665_v46 = vmax.f32 %v2094_v13, 0.0  ;;  %v13811_v13 = vld [vmem:[#allocation17_spill] sm:$0xff] }
 0x1eb   :  { %13807 = vst [vmem:[#allocation49_spill] sm:$0xff] %v8964_v0  ;;  %v5925_v54 = vunpack.i.h.bf16 %v8986_v22 }
 0x1ec   :  { %v2142_v45 = vadd.f32 %v2141_v43, %v1525_v61  ;;  %1571 = vmatmul.f32.gmra.mxu0 %v8374_v58  ;;  %1958 = vmatmul.f32.gmra.mxu2 %v8417_v17  ;;  %13809 = vst [vmem:[#allocation76_spill] sm:$0xff] %v8986_v22  ;;  %v2097_v17 = vadd.f32 %v8515_v48, %v1480_v9  ;;  %v6654_v48 = vld [vmem:[%s13341_s0 + $0x6a8] sm:$0xff] }
 0x1ed   :  { %2188 = vmatmul.f32.gmra.mxu1 %v8974_v63  ;;  %2572 = vmatmul.f32.gmra.mxu3 %v8980_v40  ;;  %v9009_v9 = vsel %vm1193_vm0, %v6654_v48, %v5925_v54 }
 0x1ee   :  { %v2681_v4 = vmax.f32 %v2142_v45, 0.0  ;;  %v9003_v45 = vsel %vm1193_vm0, %v6653_v41, %v13811_v13  ;;  %v2666_v54 = vmax.f32 %v2097_v17, 0.0  ;;  %v6655_v17 = vld [vmem:[%s13341_s0 + $0x250] sm:$0xff] }
 0x1ef   :  { %v1911_v61 = vpop.f32.mrf.mxu2 }
 0x1f0   :  { %v2525_v43 = vpop.f32.mrf.mxu3  ;;  %v6086_v58 = vpack.i.bf16 %v2681_v4, %v2665_v46  ;;  %v1483_v46 = vadd.f32 %v8281_v2, %v8544_v21  ;;  %v9015_v4 = vpop.permute.xlu1 %5927 }
 0x1f1   :  { %v8993_v59 = vadd.f32 %v2525_v43, %v1909_v25  ;;  %v1527_v23 = vpop.f32.mrf.mxu0  ;;  %13812 = vst [vmem:[#allocation26_spill] sm:$0xff] %v9015_v4  ;;  %v1912_v43 = vadd.f32 %v8281_v2, %v1911_v61 }
 0x1f2   :  { %v1528_v39 = vadd.f32 %v8281_v2, %v1527_v23  ;;  %v2144_v32 = vpop.f32.mrf.mxu1  ;;  %6087 = vrot.lane.b32.xlu1 %v6086_v58, %s6762_s18  ;;  %6082 = vrot.lane.b32.xlu0 %v6086_v58, %s6761_s17  ;;  %v13813_v58 = vld [vmem:[#allocation35_spill] sm:$0xff]  ;;  %v2100_v13 = vadd.f32 %v8546_v56, %v1483_v46  ;;  %v6656_v56 = vld [vmem:[%s13341_s0 + $0x6b0] sm:$0xff] }
 0x1f3   :  { %13810 = vst [vmem:[#allocation27_spill] sm:$0xff] %v8993_v59  ;;  %v5639_v23 = vunpack.i.l.bf16 %v13813_v58 }
 0x1f4   :  { %v2145_v25 = vadd.f32 %v2144_v32, %v1528_v39  ;;  %1574 = vmatmul.f32.gmra.mxu0 %v8413_v5  ;;  %1961 = vmatmul.f32.gmra.mxu2 %v8449_v11  ;;  %v5930_v39 = vunpack.i.h.bf16 %v9015_v4 }
 0x1f5   :  { %2191 = vmatmul.f32.gmra.mxu1 %v9003_v45  ;;  %2575 = vmatmul.f32.gmra.mxu3 %v9009_v9 }
 0x1f6   :  { %v2682_v32 = vmax.f32 %v2145_v25, 0.0  ;;  %v9032_v25 = vsel %vm1193_vm0, %v6655_v17, %v5639_v23  ;;  %v9038_v46 = vsel %vm1193_vm0, %v6656_v56, %v5930_v39  ;;  %v1486_v39 = vadd.f32 %v8281_v2, %v8571_v49  ;;  %v6657_v49 = vld [vmem:[%s13341_s0 + $0x6b8] sm:$0xff] }
 0x1f7   :  { %v1914_v5 = vpop.f32.mrf.mxu2 }
 0x1f8   :  { %v2528_v41 = vpop.f32.mrf.mxu3  ;;  %v6096_v11 = vpack.i.bf16 %v2682_v32, %v2666_v54  ;;  %v9044_v54 = vpop.permute.xlu2 %5932  ;;  %v1915_v32 = vadd.f32 %v8281_v2, %v1914_v5  ;;  %v2103_v17 = vadd.f32 %v8573_v55, %v1486_v39  ;;  %v6658_v55 = vld [vmem:[%s13341_s0 + $0x258] sm:$0xff] }
 0x1f9   :  { %v9023_v21 = vadd.f32 %v2528_v41, %v1912_v43  ;;  %v1530_v48 = vpop.f32.mrf.mxu0  ;;  %13815 = vst [vmem:[#allocation35_spill] sm:$0xff] %v9044_v54  ;;  %v5935_v23 = vunpack.i.h.bf16 %v9044_v54  ;;  %v2667_v41 = vmax.f32 %v2100_v13, 0.0 }
 0x1fa   :  { %v1531_v61 = vadd.f32 %v8281_v2, %v1530_v48  ;;  %v2147_v0 = vpop.f32.mrf.mxu1  ;;  %6097 = vrot.lane.b32.xlu1 %v6096_v11, %s6762_s18  ;;  %6092 = vrot.lane.b32.xlu0 %v6096_v11, %s6761_s17 }
 0x1fb   :  { %13814 = vst [vmem:[#allocation17_spill] sm:$0xff] %v9023_v21 }
 0x1fc   :  { %v9040_v43 = vadd.f32 %v2147_v0, %v1531_v61  ;;  %1577 = vmatmul.f32.gmra.mxu0 %v8445_v51  ;;  %1964 = vmatmul.f32.gmra.mxu2 %v8475_v62  ;;  %v5640_v51 = vunpack.i.h.bf16 %v13813_v58  ;;  %v9065_v58 = vsel %vm1193_vm0, %v6657_v49, %v5935_v23 }
 0x1fd   :  { %2194 = vmatmul.f32.gmra.mxu1 %v9032_v25  ;;  %2578 = vmatmul.f32.gmra.mxu3 %v9038_v46 }
 0x1fe   :  { %v13478_v0 = vmax.f32 %v9040_v43, 0.0 }
 0x1ff   :  { %v1917_v11 = vpop.f32.mrf.mxu2 }
 0x200   :  { %v2531_v62 = vpop.f32.mrf.mxu3  ;;  %v6101_v48 = vpack.i.bf16 %v13478_v0, %v2667_v41  ;;  %v13817_v41 = vld [vmem:[#allocation34_spill] sm:$0xff]  ;;  %v1918_v23 = vadd.f32 %v8281_v2, %v1917_v11 }
 0x201   :  { %v9056_v5 = vadd.f32 %v2531_v62, %v1915_v32  ;;  %v1533_v61 = vpop.f32.mrf.mxu0  ;;  %v9075_v32 = vsel %vm1193_vm0, %v6658_v55, %v5640_v51  ;;  %v5644_v39 = vunpack.i.l.bf16 %v13817_v41  ;;  %v9078_v62 = vpop.permute.xlu0 %5937 }
 0x202   :  { %v1534_v56 = vadd.f32 %v8281_v2, %v1533_v61  ;;  %v2150_v13 = vpop.f32.mrf.mxu1  ;;  %6102 = vrot.lane.b32.xlu2 %v6101_v48, %s6760_s29  ;;  %13818 = vst [vmem:[#allocation34_spill] sm:$0xff] %v9078_v62  ;;  %v5940_v48 = vunpack.i.h.bf16 %v9078_v62 }
 0x203   :  { %13816 = vst [vmem:[#allocation102_spill] sm:$0xff] %v9056_v5 }
 0x204   :  { %v9067_v21 = vadd.f32 %v2150_v13, %v1534_v56  ;;  %1580 = vmatmul.f32.gmra.mxu0 %v8471_v7  ;;  %1967 = vmatmul.f32.gmra.mxu2 %v8501_v1  ;;  %v2668_v7 = vmax.f32 %v2103_v17, 0.0  ;;  %v1489_v1 = vadd.f32 %v8281_v2, %v8596_v38  ;;  %v6659_v38 = vld [vmem:[%s13341_s0 + $0x260] sm:$0xff] }
 0x205   :  { %2197 = vmatmul.f32.gmra.mxu1 %v9075_v32  ;;  %2581 = vmatmul.f32.gmra.mxu3 %v9065_v58  ;;  %v9098_v5 = vsel %vm1193_vm0, %v6659_v38, %v5644_v39 }
 0x206   :  { %v13479_v61 = vmax.f32 %v9067_v21, 0.0  ;;  %v2106_v55 = vadd.f32 %v8598_v19, %v1489_v1  ;;  %v9110_v1 = vpop.permute.xlu1 %5942 }
 0x207   :  { %v1920_v51 = vpop.f32.mrf.mxu2  ;;  %13820 = vst [vmem:[#allocation104_spill] sm:$0xff] %v9110_v1 }
 0x208   :  { %v2534_v56 = vpop.f32.mrf.mxu3  ;;  %v6106_v13 = vpack.i.bf16 %v13479_v61, %v2668_v7  ;;  %v2669_v39 = vmax.f32 %v2106_v55, 0.0  ;;  %v9126_v55 = vld [vmem:[%s13343_s2] ss:$0 sm:$0xff] }
 0x209   :  { %v9089_v49 = vadd.f32 %v2534_v56, %v1918_v23  ;;  %v1536_v11 = vpop.f32.mrf.mxu0  ;;  %v6660_v23 = vld [vmem:[%s13341_s0 + $0x6c0] sm:$0xff]  ;;  %v1921_v56 = vadd.f32 %v8281_v2, %v1920_v51 }
 0x20a   :  { %v1537_v0 = vadd.f32 %v8281_v2, %v1536_v11  ;;  %v2153_v17 = vpop.f32.mrf.mxu1  ;;  %6107 = vrot.lane.b32.xlu2 %v6106_v13, %s6760_s29  ;;  %v9104_v7 = vsel %vm1193_vm0, %v6660_v23, %v5940_v48  ;;  %v1492_v13 = vadd.f32 %v8281_v2, %v8622_v44  ;;  %v5945_v48 = vunpack.i.h.bf16 %v9110_v1 }
 0x20b   :  { %13819 = vst [vmem:[#allocation103_spill] sm:$0xff] %v9089_v49 }
 0x20c   :  { %v9106_v19 = vadd.f32 %v2153_v17, %v1537_v0  ;;  %1583 = vmatmul.f32.gmra.mxu0 %v8497_v26  ;;  %1970 = vmatmul.f32.gmra.mxu2 %v8529_v30  ;;  %v5645_v26 = vunpack.i.h.bf16 %v13817_v41  ;;  %v2109_v23 = vadd.f32 %v8624_v8, %v1492_v13  ;;  %v6662_v41 = vld [vmem:[%s13341_s0 + $0x6c8] sm:$0xff] }
 0x20d   :  { %2200 = vmatmul.f32.gmra.mxu1 %v9098_v5  ;;  %2584 = vmatmul.f32.gmra.mxu3 %v9104_v7  ;;  %v6663_v8 = vld [vmem:[%s13341_s0 + $0x268] sm:$0xff] }
 0x20e   :  { %v13480_v0 = vmax.f32 %v9106_v19, 0.0  ;;  %v9144_v13 = vsel %vm1193_vm0, %v6663_v8, %v5645_v26  ;;  %v258_v26 = vld [vmem:[%s13341_s0 + $0x6e0] sm:$0xff] }
 0x20f   :  { %v1923_v11 = vpop.f32.mrf.mxu2 }
 0x210   :  { %v2537_v30 = vpop.f32.mrf.mxu3  ;;  %v6111_v17 = vpack.i.bf16 %v13480_v0, %v2669_v39  ;;  %v9134_v39 = vsel %vm1193_vm0, %v6662_v41, %v5945_v48  ;;  %v13822_v48 = vld [vmem:[#allocation28_spill] sm:$0xff] }
 0x211   :  { %v2538_v51 = vadd.f32 %v2537_v30, %v1921_v56  ;;  %v1539_v38 = vpop.f32.mrf.mxu0  ;;  %v9146_v30 = vpop.permute.xlu2 %5947 }
 0x212   :  { %v1540_v2 = vadd.f32 %v9126_v55, %v1539_v38  ;;  %v2156_v44 = vpop.f32.mrf.mxu1  ;;  %6112 = vrot.lane.b32.xlu0 %v6111_v17, %s6761_s17  ;;  %13821 = vst [vmem:[#allocation105_spill] sm:$0xff] %v9146_v30  ;;  %v1924_v17 = vadd.f32 %v9126_v55, %v1923_v11  ;;  %v5649_v38 = vunpack.i.l.bf16 %v13822_v48 }
 0x213   :  { %v2813_v8 = vmax.f32 %v2538_v51, 0.0 }
 0x214   :  { %v9136_v56 = vadd.f32 %v2156_v44, %v1540_v2  ;;  %1586 = vmatmul.f32.gmra.mxu0 %v8525_v6  ;;  %1973 = vmatmul.f32.gmra.mxu2 %v8559_v18  ;;  %v5950_v6 = vunpack.i.h.bf16 %v9146_v30  ;;  %v2670_v18 = vmax.f32 %v2109_v23, 0.0  ;;  %v6664_v23 = vld [vmem:[%s13341_s0 + $0x270] sm:$0xff] }
 0x215   :  { %2203 = vmatmul.f32.gmra.mxu1 %v9144_v13  ;;  %2587 = vmatmul.f32.gmra.mxu3 %v9134_v39  ;;  %v9165_v30 = vsel %vm1193_vm0, %v6664_v23, %v5649_v38 }
 0x216   :  { %v13485_v2 = vmax.f32 %v9136_v56, 0.0  ;;  %v1394_v1 = vsel %vm1193_vm0, %v258_v26, %v5950_v6 }
 0x217   :  { %v1926_v44 = vpop.f32.mrf.mxu2 }
 0x218   :  { %v2540_v41 = vpop.f32.mrf.mxu3  ;;  %v6116_v11 = vpack.i.bf16 %v13485_v2, %v2670_v18  ;;  %v1927_v51 = vadd.f32 %v9126_v55, %v1926_v44 }
 0x219   :  { %v2541_v61 = vadd.f32 %v2540_v41, %v1924_v17  ;;  %v1542_v0 = vpop.f32.mrf.mxu0  ;;  %v9197_v41 = vpop.permute.xlu1 %5957 }
 0x21a   :  { %v1543_v49 = vadd.f32 %v9126_v55, %v1542_v0  ;;  %v2159_v59 = vpop.f32.mrf.mxu1  ;;  %6117 = vrot.lane.b32.xlu0 %v6116_v11, %s6761_s17  ;;  %v9172_v0 = vpop.permute.xlu0 %5952  ;;  %13826 = vst [vmem:[#allocation108_spill] sm:$0xff] %v9197_v41 }
 0x21b   :  { %v2814_v62 = vmax.f32 %v2541_v61, 0.0  ;;  %13823 = vst [vmem:[#allocation28_spill] sm:$0xff] %v9172_v0  ;;  %v5955_v38 = vunpack.i.h.bf16 %v9172_v0 }
 0x21c   :  { %v9168_v54 = vadd.f32 %v2159_v59, %v1543_v49  ;;  %1589 = vmatmul.f32.gmra.mxu0 %v8556_v34  ;;  %1976 = vmatmul.f32.gmra.mxu2 %v8587_v36  ;;  %v259_v59 = vld [vmem:[%s13341_s0 + $0x6e8] sm:$0xff]  ;;  %v5650_v34 = vunpack.i.h.bf16 %v13822_v48 }
 0x21d   :  { %v9175_v17 = vpack.i.bf16 %v2814_v62, %v2813_v8  ;;  %2206 = vmatmul.f32.gmra.mxu1 %v9165_v30  ;;  %2590 = vmatmul.f32.gmra.mxu3 %v1394_v1  ;;  %v1395_v44 = vsel %vm1193_vm0, %v259_v59, %v5955_v38  ;;  %v6665_v1 = vld [vmem:[%s13341_s0 + $0x278] sm:$0xff]  ;;  %v13827_v8 = vld [vmem:[#allocation44_spill] sm:$0xff] }
 0x21e   :  { %v9195_v48 = vsel %vm1193_vm0, %v6665_v1, %v5650_v34  ;;  %v5654_v23 = vunpack.i.l.bf16 %v13827_v8  ;;  %v9220_v1 = vpop.permute.xlu2 %5962 }
 0x21f   :  { %13824 = vst [vmem:[#allocation106_spill] sm:$0xff] %v9175_v17  ;;  %v1929_v18 = vpop.f32.mrf.mxu2 }
 0x220   :  { %v2543_v61 = vpop.f32.mrf.mxu3  ;;  %v1930_v11 = vadd.f32 %v9126_v55, %v1929_v18  ;;  %13829 = vst [vmem:[#allocation109_spill] sm:$0xff] %v9220_v1 }
 0x221   :  { %v9183_v36 = vadd.f32 %v2543_v61, %v1927_v51  ;;  %v1545_v49 = vpop.f32.mrf.mxu0 }
 0x222   :  { %v1546_v6 = vadd.f32 %v9126_v55, %v1545_v49  ;;  %v2162_v62 = vpop.f32.mrf.mxu1  ;;  %v6666_v49 = vld [vmem:[%s13341_s0 + $0x280] sm:$0xff] }
 0x223   :  { %13825 = vst [vmem:[#allocation107_spill] sm:$0xff] %v9183_v36  ;;  %v9210_v18 = vsel %vm1193_vm0, %v6666_v49, %v5654_v23  ;;  %v5965_v23 = vunpack.i.h.bf16 %v9220_v1 }
 0x224   :  { %v9187_v26 = vadd.f32 %v2162_v62, %v1546_v6  ;;  %1592 = vmatmul.f32.gmra.mxu0 %v8584_v33  ;;  %1979 = vmatmul.f32.gmra.mxu2 %v8613_v3  ;;  %v5960_v33 = vunpack.i.h.bf16 %v9197_v41  ;;  %v6667_v6 = vld [vmem:[%s13341_s0 + $0x6f0] sm:$0xff] }
 0x225   :  { %2209 = vmatmul.f32.gmra.mxu1 %v9195_v48  ;;  %2593 = vmatmul.f32.gmra.mxu3 %v1395_v44 }
 0x226   :  { %v1396_v62 = vsel %vm1193_vm0, %v6667_v6, %v5960_v33 }
 0x227   :  { %v1932_v51 = vpop.f32.mrf.mxu2 }
 0x228   :  { %v2546_v3 = vpop.f32.mrf.mxu3 }
 0x229   :  { %v9203_v38 = vadd.f32 %v2546_v3, %v1930_v11  ;;  %v1548_v59 = vpop.f32.mrf.mxu0  ;;  %v1933_v11 = vadd.f32 %v9126_v55, %v1932_v51 }
 0x22a   :  { %v1549_v61 = vadd.f32 %v9126_v55, %v1548_v59  ;;  %v2165_v34 = vpop.f32.mrf.mxu1  ;;  %v5655_v59 = vunpack.i.h.bf16 %v13827_v8  ;;  %v6669_v8 = vld [vmem:[%s13341_s0 + $0x288] sm:$0xff] }
 0x22b   :  { %13828 = vst [vmem:[#allocation44_spill] sm:$0xff] %v9203_v38 }
 0x22c   :  { %v9216_v44 = vadd.f32 %v2165_v34, %v1549_v61  ;;  %1595 = vmatmul.f32.gmra.mxu0 %v8609_v15  ;;  %1982 = vmatmul.f32.gmra.mxu2 %v8639_v20  ;;  %v6668_v20 = vld [vmem:[%s13341_s0 + $0x6f8] sm:$0xff] }
 0x22d   :  { %2212 = vmatmul.f32.gmra.mxu1 %v9210_v18  ;;  %2596 = vmatmul.f32.gmra.mxu3 %v1396_v62  ;;  %v1397_v51 = vsel %vm1193_vm0, %v6668_v20, %v5965_v23  ;;  %v9239_v62 = vsel %vm1193_vm0, %v6669_v8, %v5655_v59  ;;  %v13831_v23 = vld [vmem:[#allocation43_spill] sm:$0xff]  ;;  %v6670_v59 = vld [vmem:[%s13341_s0 + $0x290] sm:$0xff] }
 0x22f   :  { %v1935_v3 = vpop.f32.mrf.mxu2 }
 0x230   :  { %v2549_v49 = vpop.f32.mrf.mxu3 }
 0x231   :  { %v2550_v33 = vadd.f32 %v2549_v49, %v1933_v11  ;;  %v1551_v61 = vpop.f32.mrf.mxu0  ;;  %v9241_v11 = vpop.permute.xlu0 %5967  ;;  %v1936_v49 = vadd.f32 %v9126_v55, %v1935_v3 }
 0x232   :  { %v1552_v34 = vadd.f32 %v9126_v55, %v1551_v61  ;;  %v2168_v15 = vpop.f32.mrf.mxu1  ;;  %13830 = vst [vmem:[#allocation110_spill] sm:$0xff] %v9241_v11  ;;  %v5659_v61 = vunpack.i.l.bf16 %v13831_v23 }
 0x234   :  { %v9231_v6 = vadd.f32 %v2168_v15, %v1552_v34  ;;  %1598 = vmatmul.f32.gmra.mxu0 %v8635_v42  ;;  %1985 = vmatmul.f32.gmra.mxu2 %v8665_v35  ;;  %v5970_v42 = vunpack.i.h.bf16 %v9241_v11  ;;  %v2817_v15 = vmax.f32 %v2550_v33, 0.0  ;;  %v9255_v3 = vsel %vm1193_vm0, %v6670_v59, %v5659_v61  ;;  %v13832_v33 = vld [vmem:[#allocation25_spill] sm:$0xff] }
 0x235   :  { %2215 = vmatmul.f32.gmra.mxu1 %v9239_v62  ;;  %2599 = vmatmul.f32.gmra.mxu3 %v1397_v51  ;;  %v6671_v51 = vld [vmem:[%s13341_s0 + $0x700] sm:$0xff]  ;;  %v5660_v11 = vunpack.i.h.bf16 %v13831_v23  ;;  %v6673_v23 = vld [vmem:[%s13341_s0 + $0x298] sm:$0xff] }
 0x236   :  { %v1398_v8 = vsel %vm1193_vm0, %v6671_v51, %v5970_v42 }
 0x237   :  { %v1938_v34 = vpop.f32.mrf.mxu2 }
 0x238   :  { %v2552_v35 = vpop.f32.mrf.mxu3 }
 0x239   :  { %v2553_v20 = vadd.f32 %v2552_v35, %v1936_v49  ;;  %v9247_v2 = vpop.f32.mrf.mxu0  ;;  %v9263_v49 = vpop.permute.xlu1 %5972  ;;  %v1939_v35 = vadd.f32 %v9126_v55, %v1938_v34 }
 0x23a   :  { %v9249_v38 = vpop.f32.mrf.mxu1  ;;  %13833 = vst [vmem:[#allocation43_spill] sm:$0xff] %v9263_v49  ;;  %v5975_v61 = vunpack.i.h.bf16 %v9263_v49 }
 0x23b   :  { %v2818_v36 = vmax.f32 %v2553_v20, 0.0 }
 0x23c   :  { %1601 = vmatmul.f32.gmra.mxu0 %v8661_v16  ;;  %1988 = vmatmul.f32.gmra.mxu2 %v13832_v33  ;;  %v9287_v33 = vsel %vm1193_vm0, %v6673_v23, %v5660_v11  ;;  %v6674_v23 = vld [vmem:[%s13341_s0 + $0x2a0] sm:$0xff] }
 0x23d   :  { %v9266_v17 = vpack.i.bf16 %v2818_v36, %v2817_v15  ;;  %2218 = vmatmul.f32.gmra.mxu1 %v9255_v3  ;;  %2602 = vmatmul.f32.gmra.mxu3 %v1398_v8  ;;  %v6672_v36 = vld [vmem:[%s13341_s0 + $0x708] sm:$0xff]  ;;  %v13836_v15 = vld [vmem:[#allocation8_spill] sm:$0xff] }
 0x23e   :  { %v1399_v34 = vsel %vm1193_vm0, %v6672_v36, %v5975_v61  ;;  %v13837_v8 = vld [vmem:[#allocation4_spill] sm:$0xff] }
 0x23f   :  { %13834 = vst [vmem:[#allocation25_spill] sm:$0xff] %v9266_v17  ;;  %v1941_v59 = vpop.f32.mrf.mxu2 }
 0x240   :  { %v2555_v42 = vpop.f32.mrf.mxu3 }
 0x241   :  { %v9271_v20 = vadd.f32 %v2555_v42, %v1939_v35  ;;  %v9273_v16 = vpop.f32.mrf.mxu0  ;;  %v9289_v35 = vpop.permute.xlu2 %5977  ;;  %v1942_v42 = vadd.f32 %v9126_v55, %v1941_v59 }
 0x242   :  { %v9275_v51 = vpop.f32.mrf.mxu1  ;;  %13838 = vst [vmem:[#allocation8_spill] sm:$0xff] %v9289_v35  ;;  %v5980_v36 = vunpack.i.h.bf16 %v9289_v35 }
 0x243   :  { %13835 = vst [vmem:[#allocation111_spill] sm:$0xff] %v9271_v20  ;;  %v13839_v20 = vld [vmem:[#allocation39_spill] sm:$0xff] }
 0x244   :  { %1604 = vmatmul.f32.gmra.mxu0 %v13836_v15  ;;  %1991 = vmatmul.f32.gmra.mxu2 %v13837_v8  ;;  %v5664_v61 = vunpack.i.l.bf16 %v13839_v20  ;;  %v5665_v4 = vunpack.i.h.bf16 %v13839_v20  ;;  %v13845_v20 = vld [vmem:[#allocation23_spill] sm:$0xff] }
 0x245   :  { %2221 = vmatmul.f32.gmra.mxu1 %v9287_v33  ;;  %2605 = vmatmul.f32.gmra.mxu3 %v1399_v34  ;;  %v6675_v34 = vld [vmem:[%s13341_s0 + $0x710] sm:$0xff] }
 0x246   :  { %v9302_v59 = vsel %vm1193_vm0, %v6674_v23, %v5664_v61  ;;  %v1400_v35 = vsel %vm1193_vm0, %v6675_v34, %v5980_v36 }
 0x247   :  { %v1944_v15 = vpop.f32.mrf.mxu2 }
 0x248   :  { %v2558_v8 = vpop.f32.mrf.mxu3 }
 0x249   :  { %v9295_v17 = vadd.f32 %v2558_v8, %v1942_v42  ;;  %v1560_v49 = vpop.f32.mrf.mxu0  ;;  %v13841_v42 = vld [vmem:[#allocation15_spill] sm:$0xff]  ;;  %v13842_v8 = vld [vmem:[#allocation14_spill] sm:$0xff] }
 0x24a   :  { %v1561_v1 = vadd.f32 %v9126_v55, %v1560_v49  ;;  %v2177_v11 = vpop.f32.mrf.mxu1  ;;  %v9310_v49 = vpop.permute.xlu0 %5982 }
 0x24b   :  { %13840 = vst [vmem:[#allocation4_spill] sm:$0xff] %v9295_v17  ;;  %v1945_v17 = vadd.f32 %v9126_v55, %v1944_v15  ;;  %v5985_v61 = vunpack.i.h.bf16 %v9310_v49 }
 0x24c   :  { %v2178_v41 = vadd.f32 %v2177_v11, %v1561_v1  ;;  %1607 = vmatmul.f32.gmra.mxu0 %v13841_v42  ;;  %1994 = vmatmul.f32.gmra.mxu2 %v13842_v8  ;;  %13843 = vst [vmem:[#allocation39_spill] sm:$0xff] %v9310_v49  ;;  %v13844_v1 = vmax.f32 %v9106_v19, 0.0  ;;  %v13846_v49 = vld [vmem:[#allocation13_spill] sm:$0xff] }
 0x24d   :  { %2224 = vmatmul.f32.gmra.mxu1 %v9302_v59  ;;  %2608 = vmatmul.f32.gmra.mxu3 %v1400_v35  ;;  %v6676_v35 = vld [vmem:[%s13341_s0 + $0x718] sm:$0xff] }
 0x24e   :  { %v2693_v23 = vmax.f32 %v2178_v41, 0.0  ;;  %v1401_v41 = vsel %vm1193_vm0, %v6676_v35, %v5985_v61 }
 0x24f   :  { %v1947_v0 = vpop.f32.mrf.mxu2 }
 0x250   :  { %v2561_v22 = vpop.f32.mrf.mxu3  ;;  %v6121_v36 = vpack.i.bf16 %v13844_v1, %v2693_v23  ;;  %v1948_v23 = vadd.f32 %v9126_v55, %v1947_v0  ;;  %v13847_v1 = vld [vmem:[#allocation52_spill] sm:$0xff] }
 0x251   :  { %v9318_v11 = vadd.f32 %v2561_v22, %v1945_v17  ;;  %v1563_v34 = vpop.f32.mrf.mxu0  ;;  %v6677_v22 = vld [vmem:[%s13341_s0 + $0x2a8] sm:$0xff]  ;;  %v5988_v17 = vpop.permute.xlu1 %5987  ;;  %v5669_v61 = vunpack.i.l.bf16 %v13847_v1 }
 0x252   :  { %v1564_v42 = vadd.f32 %v9126_v55, %v1563_v34  ;;  %v2180_v8 = vpop.f32.mrf.mxu1  ;;  %6122 = vrot.lane.b32.xlu1 %v6121_v36, %s6762_s18  ;;  %v9332_v19 = vsel %vm1193_vm0, %v6677_v22, %v5665_v4  ;;  %v5989_v36 = vunpack.i.l.bf16 %v5988_v17 }
 0x254   :  { %v2181_v15 = vadd.f32 %v2180_v8, %v1564_v42  ;;  %1610 = vmatmul.f32.gmra.mxu0 %v13845_v20  ;;  %1997 = vmatmul.f32.gmra.mxu2 %v13846_v49  ;;  %v126_v49 = vld [vmem:[%s13341_s0 + $0x2c0] sm:$0xff]  ;;  %v13848_v8 = vmax.f32 %v9136_v56, 0.0  ;;  %v13504_v56 = vmax.f32 %v9318_v11, 0.0 }
 0x255   :  { %2227 = vmatmul.f32.gmra.mxu1 %v9332_v19  ;;  %2611 = vmatmul.f32.gmra.mxu3 %v1401_v41  ;;  %v9347_v41 = vsel %vm1193_vm0, %v126_v49, %v5669_v61  ;;  %v2687_v49 = vmax.f32 %v9168_v54, 0.0  ;;  %v6679_v54 = vld [vmem:[%s13341_s0 + $0x728] sm:$0xff] }
 0x256   :  { %v2694_v34 = vmax.f32 %v2181_v15, 0.0  ;;  %v6678_v15 = vld [vmem:[%s13341_s0 + $0x720] sm:$0xff] }
 0x257   :  { %v1950_v42 = vpop.f32.mrf.mxu2  ;;  %v1402_v50 = vsel %vm1193_vm0, %v6678_v15, %v5989_v36  ;;  %v5990_v36 = vunpack.i.h.bf16 %v5988_v17 }
 0x258   :  { %v6126_v35 = vpack.i.bf16 %v13848_v8, %v2694_v34  ;;  %v2564_v4 = vpop.f32.mrf.mxu3  ;;  %v13850_v8 = vld [vmem:[#allocation74_spill] sm:$0xff] }
 0x259   :  { %v9342_v20 = vadd.f32 %v2564_v4, %v1948_v23  ;;  %v1566_v22 = vpop.f32.mrf.mxu0 }
 0x25a   :  { %v1567_v0 = vadd.f32 %v9126_v55, %v1566_v22  ;;  %v2183_v24 = vpop.f32.mrf.mxu1  ;;  %6127 = vrot.lane.b32.xlu1 %v6126_v35, %s6762_s18  ;;  %v1951_v35 = vadd.f32 %v9126_v55, %v1950_v42  ;;  %v5670_v22 = vunpack.i.h.bf16 %v13847_v1  ;;  %v1403_v1 = vsel %vm1193_vm0, %v6679_v54, %v5990_v36 }
 0x25b   :  { %v13502_v23 = vmax.f32 %v9342_v20, 0.0  ;;  %v2688_v36 = vmax.f32 %v9187_v26, 0.0 }
 0x25c   :  { %v9355_v34 = vadd.f32 %v2183_v24, %v1567_v0  ;;  %1613 = vmatmul.f32.gmra.mxu0 %v13850_v8  ;;  %2000 = vmatmul.f32.gmra.mxu2 %v8808_v29  ;;  %v127_v8 = vld [vmem:[%s13341_s0 + $0x2c8] sm:$0xff] }
 0x25d   :  { %v9364_v61 = vpack.i.bf16 %v13502_v23, %v13504_v56  ;;  %2230 = vmatmul.f32.gmra.mxu1 %v9347_v41  ;;  %2614 = vmatmul.f32.gmra.mxu3 %v1402_v50 }
 0x25e   :  { %13849 = vst [vmem:[#allocation15_spill] sm:$0xff] %v9355_v34  ;;  %v13503_v24 = vmax.f32 %v9355_v34, 0.0 }
 0x25f   :  { %13851 = vst [vmem:[#allocation14_spill] sm:$0xff] %v9364_v61  ;;  %v1953_v4 = vpop.f32.mrf.mxu2 }
 0x260   :  { %v2567_v29 = vpop.f32.mrf.mxu3  ;;  %v6131_v42 = vpack.i.bf16 %v2687_v49, %v13503_v24  ;;  %v9388_v49 = vsel %vm1193_vm0, %v127_v8, %v5670_v22 }
 0x261   :  { %v9372_v0 = vadd.f32 %v2567_v29, %v1951_v35  ;;  %v1569_v15 = vpop.f32.mrf.mxu0  ;;  %v13854_v35 = vld [vmem:[#allocation81_spill] sm:$0xff]  ;;  %v5993_v29 = vpop.permute.xlu2 %5992 }
 0x262   :  { %v1570_v50 = vadd.f32 %v9126_v55, %v1569_v15  ;;  %v2186_v17 = vpop.f32.mrf.mxu1  ;;  %6132 = vrot.lane.b32.xlu2 %v6131_v42, %s6760_s29  ;;  %v1954_v15 = vadd.f32 %v9126_v55, %v1953_v4  ;;  %v13855_v42 = vld [vmem:[#allocation51_spill] sm:$0xff]  ;;  %v5994_v56 = vunpack.i.l.bf16 %v5993_v29 }
 0x263   :  { %13852 = vst [vmem:[#allocation23_spill] sm:$0xff] %v9372_v0  ;;  %v5674_v24 = vunpack.i.l.bf16 %v13855_v42 }
 0x264   :  { %v9383_v23 = vadd.f32 %v2186_v17, %v1570_v50  ;;  %1616 = vmatmul.f32.gmra.mxu0 %v13854_v35  ;;  %2003 = vmatmul.f32.gmra.mxu2 %v8846_v60 }
 0x265   :  { %2233 = vmatmul.f32.gmra.mxu1 %v9388_v49  ;;  %2617 = vmatmul.f32.gmra.mxu3 %v1403_v1  ;;  %v6680_v1 = vld [vmem:[%s13341_s0 + $0x2d0] sm:$0xff] }
 0x266   :  { %13853 = vst [vmem:[#allocation13_spill] sm:$0xff] %v9383_v23  ;;  %v13505_v50 = vmax.f32 %v9383_v23, 0.0  ;;  %v9405_v26 = vsel %vm1193_vm0, %v6680_v1, %v5674_v24  ;;  %v2689_v24 = vmax.f32 %v9216_v44, 0.0  ;;  %v6682_v44 = vld [vmem:[%s13341_s0 + $0x738] sm:$0xff]  ;;  %v6693_v23 = vld [vmem:[%s13341_s0 + $0x760] sm:$0xff] }
 0x267   :  { %v1956_v17 = vpop.f32.mrf.mxu2 }
 0x268   :  { %v6136_v60 = vpack.i.bf16 %v2688_v36, %v13505_v50  ;;  %v2570_v54 = vpop.f32.mrf.mxu3  ;;  %v6681_v36 = vld [vmem:[%s13341_s0 + $0x730] sm:$0xff] }
 0x269   :  { %v9397_v22 = vadd.f32 %v2570_v54, %v1954_v15  ;;  %v1572_v8 = vpop.f32.mrf.mxu0  ;;  %v1404_v15 = vsel %vm1193_vm0, %v6681_v36, %v5994_v56 }
 0x26a   :  { %v1573_v4 = vadd.f32 %v9126_v55, %v1572_v8  ;;  %v2189_v35 = vpop.f32.mrf.mxu1  ;;  %6137 = vrot.lane.b32.xlu2 %v6136_v60, %s6760_s29  ;;  %v1957_v60 = vadd.f32 %v9126_v55, %v1956_v17  ;;  %v5995_v8 = vunpack.i.h.bf16 %v5993_v29 }
 0x26b   :  { %13856 = vst [vmem:[#allocation52_spill] sm:$0xff] %v9397_v22  ;;  %v5675_v22 = vunpack.i.h.bf16 %v13855_v42  ;;  %v6683_v42 = vld [vmem:[%s13341_s0 + $0x2d8] sm:$0xff] }
 0x26c   :  { %v9411_v54 = vadd.f32 %v2189_v35, %v1573_v4  ;;  %1619 = vmatmul.f32.gmra.mxu0 %v8842_v27  ;;  %2006 = vmatmul.f32.gmra.mxu2 %v8877_v47  ;;  %v1405_v29 = vsel %vm1193_vm0, %v6682_v44, %v5995_v8  ;;  %v2866_v8 = vld [vmem:[%s13344_s3 + $0x78] sm:$0xff] }
 0x26d   :  { %2236 = vmatmul.f32.gmra.mxu1 %v9405_v26  ;;  %2620 = vmatmul.f32.gmra.mxu3 %v1404_v15  ;;  %v9438_v15 = vsel %vm1193_vm0, %v6683_v42, %v5675_v22 }
 0x26e   :  { %v13508_v1 = vmax.f32 %v9411_v54, 0.0  ;;  %4061 = vmatpush.msrb.mxu2 %v2866_v8  ;;  %v6684_v8 = vld [vmem:[%s13341_s0 + $0x2e0] sm:$0xff] }
 0x26f   :  { %v1959_v50 = vpop.f32.mrf.mxu2 }
 0x270   :  { %v6141_v56 = vpack.i.bf16 %v2689_v24, %v13508_v1  ;;  %v2573_v4 = vpop.f32.mrf.mxu3  ;;  %v1960_v24 = vadd.f32 %v9126_v55, %v1959_v50  ;;  %v2865_v50 = vld [vmem:[%s13344_s3 + $0x70] sm:$0xff] }
 0x271   :  { %v9422_v27 = vadd.f32 %v2573_v4, %v1957_v60  ;;  %v1575_v47 = vpop.f32.mrf.mxu0  ;;  %v5998_v60 = vpop.permute.xlu0 %5997  ;;  %v2690_v4 = vmax.f32 %v9231_v6, 0.0  ;;  %4062 = vmatpush.msrb.mxu2 %v2865_v50  ;;  %v2864_v6 = vld [vmem:[%s13344_s3 + $0x68] sm:$0xff] }
 0x272   :  { %v1576_v17 = vadd.f32 %v9126_v55, %v1575_v47  ;;  %v2192_v35 = vpop.f32.mrf.mxu1  ;;  %6142 = vrot.lane.b32.xlu0 %v6141_v56, %s6761_s17 }
 0x273   :  { %13857 = vst [vmem:[#allocation74_spill] sm:$0xff] %v9422_v27  ;;  %4063 = vmatpush.msrb.mxu2 %v2864_v6  ;;  %v6000_v6 = vunpack.i.h.bf16 %v5998_v60  ;;  %v6689_v27 = vld [vmem:[%s13341_s0 + $0x750] sm:$0xff] }
 0x274   :  { %v9430_v36 = vadd.f32 %v2192_v35, %v1576_v17  ;;  %1622 = vmatmul.f32.gmra.mxu0 %v8873_v28  ;;  %2009 = vmatmul.f32.gmra.mxu2 %v8906_v53  ;;  %v13858_v28 = vld [vmem:[#allocation48_spill] sm:$0xff]  ;;  %v5999_v53 = vunpack.i.l.bf16 %v5998_v60  ;;  %v2880_v60 = vld [vmem:[%s13344_s3 + $0xe8] sm:$0xff] }
 0x275   :  { %2239 = vmatmul.f32.gmra.mxu1 %v9438_v15  ;;  %2623 = vmatmul.f32.gmra.mxu3 %v1405_v29  ;;  %v5679_v56 = vunpack.i.l.bf16 %v13858_v28 }
 0x276   :  { %v13507_v47 = vmax.f32 %v9430_v36, 0.0 }
 0x277   :  { %v1962_v22 = vpop.f32.mrf.mxu2 }
 0x278   :  { %v6146_v17 = vpack.i.bf16 %v2690_v4, %v13507_v47  ;;  %v2576_v35 = vpop.f32.mrf.mxu3  ;;  %v9467_v4 = vsel %vm1193_vm0, %v6684_v8, %v5679_v56  ;;  %v2862_v56 = vld [vmem:[%s13344_s3 + $0x58] sm:$0xff] }
 0x279   :  { %v9453_v44 = vadd.f32 %v2576_v35, %v1960_v24  ;;  %v9455_v29 = vpop.f32.mrf.mxu0  ;;  %13860 = vst [vmem:[#allocation51_spill] sm:$0xff] %v9467_v4  ;;  %v6685_v24 = vld [vmem:[%s13341_s0 + $0x740] sm:$0xff] }
 0x27a   :  { %v9460_v42 = vpop.f32.mrf.mxu1  ;;  %6147 = vrot.lane.b32.xlu0 %v6146_v17, %s6761_s17  ;;  %v1406_v50 = vsel %vm1193_vm0, %v6685_v24, %v5999_v53  ;;  %v2863_v35 = vld [vmem:[%s13344_s3 + $0x60] sm:$0xff]  ;;  %v1963_v17 = vadd.f32 %v9126_v55, %v1962_v22  ;;  %v2882_v53 = vld [vmem:[%s13344_s3 + $0xf8] sm:$0xff]  ;;  %v5680_v22 = vunpack.i.h.bf16 %v13858_v28  ;;  %v2860_v28 = vld [vmem:[%s13344_s3 + $0x48] sm:$0xff] }
 0x27b   :  { %13859 = vst [vmem:[#allocation81_spill] sm:$0xff] %v9453_v44  ;;  %4064 = vmatpush.msrb.mxu2 %v2863_v35  ;;  %4174 = vmatpush.msrb.mxu3 %v2882_v53  ;;  %v6686_v53 = vld [vmem:[%s13341_s0 + $0x748] sm:$0xff] }
 0x27c   :  { %1625 = vmatmul.f32.gmra.mxu0 %v8902_v10  ;;  %2012 = vmatmul.f32.gmra.mxu2 %v8944_v12  ;;  %v2861_v10 = vld [vmem:[%s13344_s3 + $0x50] sm:$0xff]  ;;  %v1407_v1 = vsel %vm1193_vm0, %v6686_v53, %v6000_v6 }
 0x27d   :  { %2242 = vmatmul.f32.gmra.mxu1 %v9467_v4  ;;  %2626 = vmatmul.f32.gmra.mxu3 %v1406_v50  ;;  %v2881_v12 = vld [vmem:[%s13344_s3 + $0xf0] sm:$0xff] }
 0x27e   :  { %4065 = vmatpush.msrb.mxu2 %v2862_v56  ;;  %4175 = vmatpush.msrb.mxu3 %v2881_v12  ;;  %v6687_v56 = vld [vmem:[%s13341_s0 + $0x2e8] sm:$0xff] }
 0x27f   :  { %v1965_v8 = vpop.f32.mrf.mxu2  ;;  %v9518_v6 = vsel %vm1193_vm0, %v6687_v56, %v5680_v22 }
 0x280   :  { %v2579_v24 = vpop.f32.mrf.mxu3  ;;  %4066 = vmatpush.msrb.mxu2 %v2861_v10  ;;  %4176 = vmatpush.msrb.mxu3 %v2880_v60  ;;  %13862 = vst [vmem:[#allocation112_spill] sm:$0xff] %v9518_v6  ;;  %v6003_v10 = vpop.permute.xlu1 %6002  ;;  %v1966_v12 = vadd.f32 %v9126_v55, %v1965_v8  ;;  %v2858_v8 = vld [vmem:[%s13344_s3 + $0x38] sm:$0xff] }
 0x281   :  { %v9493_v50 = vadd.f32 %v2579_v24, %v1963_v17  ;;  %v9495_v47 = vpop.f32.mrf.mxu0  ;;  %v2879_v17 = vld [vmem:[%s13344_s3 + $0xe0] sm:$0xff]  ;;  %v6004_v53 = vunpack.i.l.bf16 %v6003_v10 }
 0x282   :  { %v9500_v35 = vpop.f32.mrf.mxu1  ;;  %v2859_v24 = vld [vmem:[%s13344_s3 + $0x40] sm:$0xff]  ;;  %4067 = vmatpush.msrb.mxu2 %v2860_v28  ;;  %4177 = vmatpush.msrb.mxu3 %v2879_v17  ;;  %v6688_v28 = vld [vmem:[%s13341_s0 + $0x2f0] sm:$0xff] }
 0x283   :  { %13861 = vst [vmem:[#allocation48_spill] sm:$0xff] %v9493_v50 }
 0x284   :  { %1628 = vmatmul.f32.gmra.mxu0 %v8938_v14  ;;  %2015 = vmatmul.f32.gmra.mxu2 %v8980_v40  ;;  %v2878_v14 = vld [vmem:[%s13344_s3 + $0xd8] sm:$0xff]  ;;  %v13863_v40 = vld [vmem:[#allocation56_spill] sm:$0xff] }
 0x285   :  { %2245 = vmatmul.f32.gmra.mxu1 %v9518_v6  ;;  %2629 = vmatmul.f32.gmra.mxu3 %v1407_v1  ;;  %v5684_v60 = vunpack.i.l.bf16 %v13863_v40  ;;  %v2877_v1 = vld [vmem:[%s13344_s3 + $0xd0] sm:$0xff]  ;;  %v13885_v6 = vld [vmem:[#allocation46_spill] sm:$0xff] }
 0x286   :  { %4068 = vmatpush.msrb.mxu2 %v2859_v24  ;;  %4178 = vmatpush.msrb.mxu3 %v2878_v14  ;;  %v1408_v24 = vsel %vm1193_vm0, %v6689_v27, %v6004_v53  ;;  %v2876_v14 = vld [vmem:[%s13344_s3 + $0xc8] sm:$0xff]  ;;  %v2875_v53 = vld [vmem:[%s13344_s3 + $0xc0] sm:$0xff] }
 0x287   :  { %v1968_v22 = vpop.f32.mrf.mxu2  ;;  %v9545_v17 = vsel %vm1193_vm0, %v6688_v28, %v5684_v60  ;;  %v2856_v27 = vld [vmem:[%s13344_s3 + $0x28] sm:$0xff] }
 0x288   :  { %v2582_v56 = vpop.f32.mrf.mxu3  ;;  %13865 = vst [vmem:[#allocation113_spill] sm:$0xff] %v9545_v17  ;;  %4069 = vmatpush.msrb.mxu2 %v2858_v8  ;;  %4179 = vmatpush.msrb.mxu3 %v2877_v1  ;;  %v1969_v60 = vadd.f32 %v9126_v55, %v1968_v22  ;;  %v6005_v8 = vunpack.i.h.bf16 %v6003_v10  ;;  %v5685_v22 = vunpack.i.h.bf16 %v13863_v40  ;;  %v2854_v40 = vld [vmem:[%s13344_s3 + $0x18] sm:$0xff] }
 0x289   :  { %v9535_v50 = vadd.f32 %v2582_v56, %v1966_v12  ;;  %v9537_v44 = vpop.f32.mrf.mxu0  ;;  %v2857_v12 = vld [vmem:[%s13344_s3 + $0x30] sm:$0xff] }
 0x28a   :  { %v9539_v61 = vpop.f32.mrf.mxu1  ;;  %4070 = vmatpush.msrb.mxu2 %v2857_v12  ;;  %4180 = vmatpush.msrb.mxu3 %v2876_v14  ;;  %v6690_v12 = vld [vmem:[%s13341_s0 + $0x758] sm:$0xff] }
 0x28b   :  { %13864 = vst [vmem:[#allocation56_spill] sm:$0xff] %v9535_v50  ;;  %v1409_v14 = vsel %vm1193_vm0, %v6690_v12, %v6005_v8  ;;  %v6008_v8 = vpop.permute.xlu2 %6007 }
 0x28c   :  { %1631 = vmatmul.f32.gmra.mxu0 %v8974_v63  ;;  %2018 = vmatmul.f32.gmra.mxu2 %v9009_v9  ;;  %v2855_v63 = vld [vmem:[%s13344_s3 + $0x20] sm:$0xff]  ;;  %v2874_v9 = vld [vmem:[%s13344_s3 + $0xb8] sm:$0xff]  ;;  %v6009_v12 = vunpack.i.l.bf16 %v6008_v8 }
 0x28d   :  { %2248 = vmatmul.f32.gmra.mxu1 %v9545_v17  ;;  %2632 = vmatmul.f32.gmra.mxu3 %v1408_v24 }
 0x28e   :  { %4071 = vmatpush.msrb.mxu2 %v2856_v27  ;;  %4181 = vmatpush.msrb.mxu3 %v2875_v53  ;;  %v6691_v27 = vld [vmem:[%s13341_s0 + $0x2f8] sm:$0xff] }
 0x28f   :  { %v1971_v1 = vpop.f32.mrf.mxu2  ;;  %v9596_v53 = vsel %vm1193_vm0, %v6691_v27, %v5685_v22 }
 0x290   :  { %v2585_v56 = vpop.f32.mrf.mxu3  ;;  %4072 = vmatpush.msrb.mxu2 %v2855_v63  ;;  %4182 = vmatpush.msrb.mxu3 %v2874_v9  ;;  %13867 = vst [vmem:[#allocation115_spill] sm:$0xff] %v9596_v53  ;;  %v1972_v63 = vadd.f32 %v9126_v55, %v1971_v1  ;;  %v2853_v9 = vld [vmem:[%s13344_s3 + $0x10] sm:$0xff]  ;;  %v2852_v1 = vld [vmem:[%s13344_s3 + $0x8] sm:$0xff] }
 0x291   :  { %v9574_v28 = vadd.f32 %v2585_v56, %v1969_v60  ;;  %v9576_v24 = vpop.f32.mrf.mxu0  ;;  %v2873_v60 = vld [vmem:[%s13344_s3 + $0xb0] sm:$0xff] }
 0x292   :  { %v9578_v10 = vpop.f32.mrf.mxu1  ;;  %4073 = vmatpush.msrb.mxu2 %v2854_v40  ;;  %4183 = vmatpush.msrb.mxu3 %v2873_v60  ;;  %v6692_v40 = vld [vmem:[%s13341_s0 + $0x300] sm:$0xff] }
 0x293   :  { %13866 = vst [vmem:[#allocation114_spill] sm:$0xff] %v9574_v28 }
 0x294   :  { %1634 = vmatmul.f32.gmra.mxu0 %v9003_v45  ;;  %2021 = vmatmul.f32.gmra.mxu2 %v9038_v46  ;;  %v2872_v45 = vld [vmem:[%s13344_s3 + $0xa8] sm:$0xff] }
 0x295   :  { %2251 = vmatmul.f32.gmra.mxu1 %v9596_v53  ;;  %2635 = vmatmul.f32.gmra.mxu3 %v1409_v14  ;;  %v13868_v46 = vld [vmem:[#allocation55_spill] sm:$0xff]  ;;  %v2871_v14 = vld [vmem:[%s13344_s3 + $0xa0] sm:$0xff] }
 0x296   :  { %v5689_v56 = vunpack.i.l.bf16 %v13868_v46  ;;  %4074 = vmatpush.msrb.mxu2 %v2853_v9  ;;  %4184 = vmatpush.msrb.mxu3 %v2872_v45  ;;  %v1410_v9 = vsel %vm1193_vm0, %v6693_v23, %v6009_v12  ;;  %v2870_v45 = vld [vmem:[%s13344_s3 + $0x98] sm:$0xff]  ;;  %v2869_v23 = vld [vmem:[%s13344_s3 + $0x90] sm:$0xff]  ;;  %v6010_v12 = vunpack.i.h.bf16 %v6008_v8  ;;  %v6694_v8 = vld [vmem:[%s13341_s0 + $0x768] sm:$0xff] }
 0x297   :  { %v1974_v22 = vpop.f32.mrf.mxu2 }
 0x298   :  { %v2588_v27 = vpop.f32.mrf.mxu3  ;;  %v9623_v60 = vsel %vm1193_vm0, %v6692_v40, %v5689_v56  ;;  %4075 = vmatpush.msrb.mxu2 %v2852_v1  ;;  %4185 = vmatpush.msrb.mxu3 %v2871_v14  ;;  %v1975_v56 = vadd.f32 %v9126_v55, %v1974_v22  ;;  %v2868_v1 = vld [vmem:[%s13344_s3 + $0x88] sm:$0xff]  ;;  %v6018_v22 = vpop.permute.xlu1 %6017 }
 0x299   :  { %v9613_v50 = vadd.f32 %v2588_v27, %v1972_v63  ;;  %v9615_v28 = vpop.f32.mrf.mxu0  ;;  %13871 = vst [vmem:[#allocation117_spill] sm:$0xff] %v9623_v60  ;;  %v2851_v63 = vld [vmem:[%s13344_s3] sm:$0xff]  ;;  %v9635_v27 = vpop.permute.xlu0 %6012  ;;  %v6020_v34 = vunpack.i.h.bf16 %v6018_v22 }
 0x29a   :  { %v9617_v0 = vpop.f32.mrf.mxu1  ;;  %4076 = vmatpush.msrb.mxu2 %v2851_v63  ;;  %4186 = vmatpush.msrb.mxu3 %v2870_v45  ;;  %v1411_v63 = vsel %vm1193_vm0, %v6694_v8, %v6010_v12  ;;  %v13875_v45 = vld [vmem:[#allocation36_spill] sm:$0xff]  ;;  %v9671_v12 = vpop.permute.xlu2 %6022  ;;  %v13877_v8 = vld [vmem:[#allocation54_spill] sm:$0xff]  ;;  %v6014_v53 = vunpack.i.l.bf16 %v9635_v27 }
 0x29b   :  { %13869 = vst [vmem:[#allocation55_spill] sm:$0xff] %v9613_v50 }
 0x29c   :  { %13870 = vst [vmem:[#allocation116_spill] sm:$0xff] %v9617_v0  ;;  %1637 = vmatmul.f32.gmra.mxu0 %v9032_v25  ;;  %2024 = vmatmul.f32.gmra.mxu2 %v9065_v58  ;;  %v5690_v25 = vunpack.i.h.bf16 %v13868_v46  ;;  %v1435_v46 = vadd.f32 %v9126_v55, %v13875_v45  ;;  %v5694_v45 = vunpack.i.l.bf16 %v13877_v8 }
 0x29d   :  { %2254 = vmatmul.f32.gmra.mxu1 %v9623_v60  ;;  %2638 = vmatmul.f32.gmra.mxu3 %v1410_v9 }
 0x29e   :  { %4187 = vmatpush.msrb.mxu3 %v2869_v23  ;;  %v2867_v23 = vld [vmem:[%s13344_s3 + $0x80] sm:$0xff] }
 0x29f   :  { %v1977_v14 = vpop.f32.mrf.mxu2 }
 0x2a0   :  { %v2591_v58 = vpop.f32.mrf.mxu3  ;;  %4188 = vmatpush.msrb.mxu3 %v2868_v1  ;;  %v1978_v1 = vadd.f32 %v9126_v55, %v1977_v14 }
 0x2a1   :  { %v9648_v40 = vadd.f32 %v2591_v58, %v1975_v56  ;;  %v9650_v9 = vpop.f32.mrf.mxu0  ;;  %v6695_v56 = vld [vmem:[%s13341_s0 + $0x308] sm:$0xff] }
 0x2a2   :  { %13873 = vst [vmem:[#allocation119_spill] sm:$0xff] %v9650_v9  ;;  %v9652_v50 = vpop.f32.mrf.mxu1  ;;  %v9669_v58 = vsel %vm1193_vm0, %v6695_v56, %v5690_v25  ;;  %4189 = vmatpush.msrb.mxu3 %v2867_v23  ;;  %v9680_v25 = vpop.permute.xlu1 %6032  ;;  %v6696_v23 = vld [vmem:[%s13341_s0 + $0x310] sm:$0xff]  ;;  %v6015_v9 = vunpack.i.h.bf16 %v9635_v27  ;;  %v6699_v27 = vld [vmem:[%s13341_s0 + $0x778] sm:$0xff] }
 0x2a3   :  { %13872 = vst [vmem:[#allocation118_spill] sm:$0xff] %v9648_v40  ;;  %v9676_v40 = vpop.permute.xlu0 %6027 }
 0x2a4   :  { %13874 = vst [vmem:[#allocation120_spill] sm:$0xff] %v9652_v50  ;;  %1640 = vmatmul.f32.gmra.mxu0 %v9075_v32  ;;  %2027 = vmatmul.f32.gmra.mxu2 %v9104_v7  ;;  %v13878_v32 = vld [vmem:[#allocation37_spill] sm:$0xff] }
 0x2a5   :  { %13876 = vst [vmem:[#allocation36_spill] sm:$0xff] %v9669_v58  ;;  %2257 = vmatmul.f32.gmra.mxu1 %v9669_v58  ;;  %2641 = vmatmul.f32.gmra.mxu3 %v1411_v63  ;;  %v2052_v7 = vadd.f32 %v13878_v32, %v1435_v46  ;;  %v9692_v46 = vsel %vm1193_vm0, %v6696_v23, %v5694_v45  ;;  %v6019_v58 = vunpack.i.l.bf16 %v6018_v22  ;;  %v13884_v22 = vld [vmem:[#allocation19_spill] sm:$0xff]  ;;  %v5695_v23 = vunpack.i.h.bf16 %v13877_v8 }
 0x2a6   :  { %13882 = vst [vmem:[#allocation122_spill] sm:$0xff] %v9692_v46 }
 0x2a7   :  { %v1980_v14 = vpop.f32.mrf.mxu2  ;;  %v2651_v32 = vmax.f32 %v2052_v7, 0.0 }
 0x2a8   :  { %v2594_v60 = vpop.f32.mrf.mxu3  ;;  %v1981_v45 = vadd.f32 %v9126_v55, %v1980_v14 }
 0x2a9   :  { %v9682_v56 = vadd.f32 %v2594_v60, %v1978_v1  ;;  %v9684_v17 = vpop.f32.mrf.mxu0  ;;  %v6697_v60 = vld [vmem:[%s13341_s0 + $0x770] sm:$0xff] }
 0x2aa   :  { %13880 = vst [vmem:[#allocation37_spill] sm:$0xff] %v9684_v17  ;;  %v9686_v63 = vpop.f32.mrf.mxu1  ;;  %v1412_v1 = vsel %vm1193_vm0, %v6697_v60, %v6020_v34  ;;  %v9702_v17 = vpop.permute.xlu2 %6042  ;;  %v6030_v34 = vunpack.i.h.bf16 %v9676_v40 }
 0x2ab   :  { %13879 = vst [vmem:[#allocation54_spill] sm:$0xff] %v9682_v56  ;;  %v13883_v56 = vld [vmem:[#allocation45_spill] sm:$0xff]  ;;  %v9709_v7 = vpop.permute.xlu0 %6052  ;;  %v9722_v8 = vpop.permute.xlu1 %6037 }
 0x2ac   :  { %13881 = vst [vmem:[#allocation121_spill] sm:$0xff] %v9686_v63  ;;  %1643 = vmatmul.f32.gmra.mxu0 %v9098_v5  ;;  %2030 = vmatmul.f32.gmra.mxu2 %v9134_v39  ;;  %v1438_v63 = vadd.f32 %v9126_v55, %v13883_v56  ;;  %v3817_v5 = vsel %vm3816_vm1, %v2651_v32, %v6014_v53  ;;  %v13886_v53 = vld [vmem:[#allocation29_spill] sm:$0xff] }
 0x2ad   :  { %2260 = vmatmul.f32.gmra.mxu1 %v9692_v46  ;;  %2644 = vmatmul.f32.gmra.mxu3 %v1412_v1  ;;  %v1495_v39 = vadd.f32 %v9126_v55, %v13884_v22  ;;  %v3849_v56 = vsel %vm1193_vm0, %v3817_v5, %v6019_v58  ;;  %v6024_v46 = vunpack.i.l.bf16 %v9671_v12  ;;  %v6029_v58 = vunpack.i.l.bf16 %v9676_v40 }
 0x2ae   :  { %v2055_v14 = vadd.f32 %v13885_v6, %v1438_v63  ;;  %v6035_v6 = vunpack.i.h.bf16 %v9680_v25 }
 0x2af   :  { %v2112_v32 = vadd.f32 %v13886_v53, %v1495_v39  ;;  %v3882_v0 = vsel %vm3881_vm2, %v3849_v56, %v6024_v46  ;;  %v1983_v63 = vpop.f32.mrf.mxu2  ;;  %v1413_v46 = vsel %vm1193_vm0, %v6699_v27, %v6030_v34  ;;  %v13890_v56 = vld [vmem:[#allocation59_spill] sm:$0xff]  ;;  %v13891_v53 = vld [vmem:[#allocation18_spill] sm:$0xff]  ;;  %v6025_v27 = vunpack.i.h.bf16 %v9671_v12 }
 0x2b0   :  { %v2597_v60 = vpop.f32.mrf.mxu3  ;;  %v2652_v40 = vmax.f32 %v2055_v14, 0.0  ;;  %v1984_v39 = vadd.f32 %v9126_v55, %v1983_v63  ;;  %v6055_v14 = vunpack.i.h.bf16 %v9709_v7 }
 0x2b1   :  { %v2598_v1 = vadd.f32 %v2597_v60, %v1981_v45  ;;  %v9716_v50 = vpop.f32.mrf.mxu0  ;;  %v6698_v45 = vld [vmem:[%s13341_s0 + $0x318] sm:$0xff]  ;;  %v13888_v60 = vmax.f32 %v9318_v11, 0.0 }
 0x2b2   :  { %v9719_v22 = vpop.f32.mrf.mxu1  ;;  %v9732_v5 = vsel %vm1193_vm0, %v6698_v45, %v5695_v23  ;;  %v5699_v23 = vunpack.i.l.bf16 %v13890_v56  ;;  %v1498_v45 = vadd.f32 %v9126_v55, %v13891_v53  ;;  %v13892_v55 = vld [vmem:[#allocation16_spill] sm:$0xff] }
 0x2b3   :  { %13887 = vst [vmem:[#allocation45_spill] sm:$0xff] %v9719_v22  ;;  %v2833_v4 = vmax.f32 %v2598_v1, 0.0  ;;  %v2671_v1 = vmax.f32 %v2112_v32, 0.0  ;;  %v9747_v22 = vpop.permute.xlu2 %6047  ;;  %v9752_v11 = vpop.permute.xlu0 %6062  ;;  %v6045_v32 = vunpack.i.h.bf16 %v9702_v17 }
 0x2b4   :  { %1646 = vmatmul.f32.gmra.mxu0 %v9144_v13  ;;  %4077 = vmatmul.f32.vlgmr.msrb.gmra.mxu2 %v3882_v0  ;;  %v3818_v0 = vsel %vm3816_vm1, %v2652_v40, %v6015_v9  ;;  %v2115_v53 = vadd.f32 %v13892_v55, %v1498_v45  ;;  %v6700_v9 = vld [vmem:[%s13341_s0 + $0x320] sm:$0xff]  ;;  %v9769_v40 = vpop.permute.xlu1 %6057  ;;  %v6040_v45 = vunpack.i.h.bf16 %v9722_v8  ;;  %v6044_v55 = vunpack.i.l.bf16 %v9702_v17 }
 0x2b5   :  { %v9741_v13 = vpack.i.bf16 %v13888_v60, %v2833_v4  ;;  %2263 = vmatmul.f32.gmra.mxu1 %v9732_v5  ;;  %2647 = vmatmul.f32.gmra.mxu3 %v1413_v46  ;;  %v3914_v34 = vsel %vm3816_vm1, %v2671_v1, %v6035_v6  ;;  %v3850_v63 = vsel %vm1193_vm0, %v3818_v0, %v6029_v58  ;;  %v6034_v58 = vunpack.i.l.bf16 %v9680_v25 }
 0x2b6   :  { %v9766_v6 = vsel %vm1193_vm0, %v6700_v9, %v5699_v23  ;;  %v3946_v1 = vsel %vm1193_vm0, %v3914_v34, %v6045_v32  ;;  %v2672_v25 = vmax.f32 %v2115_v53, 0.0  ;;  %v6060_v17 = vunpack.i.h.bf16 %v9769_v40 }
 0x2b7   :  { %13889 = vst [vmem:[#allocation19_spill] sm:$0xff] %v9741_v13  ;;  %v3978_v0 = vsel %vm3881_vm2, %v3946_v1, %v6055_v14  ;;  %v6065_v14 = vunpack.i.h.bf16 %v9752_v11  ;;  %v6039_v1 = vunpack.i.l.bf16 %v9722_v8  ;;  %v13898_v8 = vld [vmem:[#allocation58_spill] sm:$0xff] }
 0x2b8   :  { %v2600_v4 = vpop.f32.mrf.mxu3  ;;  %v3915_v9 = vsel %vm3816_vm1, %v2672_v25, %v6040_v45  ;;  %v6701_v45 = vld [vmem:[%s13341_s0 + $0x328] sm:$0xff] }
 0x2b9   :  { %v2601_v46 = vadd.f32 %v2600_v4, %v1984_v39  ;;  %v9757_v60 = vpop.f32.mrf.mxu0  ;;  %v3883_v39 = vsel %vm3881_vm2, %v3850_v63, %v6025_v27  ;;  %v13893_v4 = vmax.f32 %v9342_v20, 0.0  ;;  %v6054_v63 = vunpack.i.l.bf16 %v9709_v7  ;;  %v13895_v27 = vld [vmem:[#allocation83_spill] sm:$0xff] }
 0x2ba   :  { %v9760_v13 = vpop.f32.mrf.mxu1  ;;  %v13896_v34 = vmax.f32 %v13895_v27, 0.0  ;;  %v6064_v27 = vunpack.i.l.bf16 %v9752_v11  ;;  %v6702_v11 = vld [vmem:[%s13341_s0 + $0x330] sm:$0xff] }
 0x2bb   :  { %v2834_v12 = vmax.f32 %v2601_v46, 0.0  ;;  %v6073_v46 = vpop.permute.xlu2 %6072  ;;  %v6083_v20 = vpop.permute.xlu0 %6082 }
 0x2bc   :  { %1649 = vmatmul.f32.gmra.mxu0 %v9165_v30  ;;  %4080 = vmatmul.f32.gmra.mxu2 %v3883_v39  ;;  %v3819_v32 = vsel %vm3816_vm1, %v13896_v34, %v6034_v58  ;;  %v5700_v30 = vunpack.i.h.bf16 %v13890_v56  ;;  %v6068_v25 = vpop.permute.xlu1 %6067  ;;  %v13899_v34 = vld [vmem:[#allocation86_spill] sm:$0xff] }
 0x2bd   :  { %v9778_v23 = vpack.i.bf16 %v13893_v4, %v2834_v12  ;;  %2266 = vmatmul.f32.gmra.mxu1 %v9766_v6  ;;  %4190 = vmatmul.f32.vlgmr.msrb.gmra.mxu3 %v3978_v0  ;;  %v6050_v12 = vunpack.i.h.bf16 %v9747_v22  ;;  %v3851_v7 = vsel %vm1193_vm0, %v3819_v32, %v6044_v55  ;;  %v6049_v55 = vunpack.i.l.bf16 %v9747_v22 }
 0x2be   :  { %v3884_v58 = vsel %vm3881_vm2, %v3851_v7, %v6054_v63  ;;  %v9804_v0 = vsel %vm1193_vm0, %v6701_v45, %v5700_v30  ;;  %v5704_v63 = vunpack.i.l.bf16 %v13898_v8  ;;  %v13901_v30 = vld [vmem:[#allocation32_spill] sm:$0xff] }
 0x2bf   :  { %13894 = vst [vmem:[#allocation46_spill] sm:$0xff] %v9778_v23  ;;  %v3947_v56 = vsel %vm1193_vm0, %v3915_v9, %v6050_v12  ;;  %v6085_v9 = vunpack.i.h.bf16 %v6083_v20  ;;  %v13902_v12 = vmax.f32 %v13901_v30, 0.0  ;;  %v6070_v30 = vunpack.i.h.bf16 %v6068_v25 }
 0x2c0   :  { %13897 = vst [vmem:[#allocation29_spill] sm:$0xff] %v9804_v0  ;;  %v3979_v4 = vsel %vm3881_vm2, %v3947_v56, %v6065_v14  ;;  %v6075_v14 = vunpack.i.h.bf16 %v6073_v46 }
 0x2c1   :  { %v9790_v39 = vpop.f32.mrf.mxu0  ;;  %v3916_v7 = vsel %vm3816_vm1, %v13902_v12, %v6060_v17 }
 0x2c2   :  { %v9792_v53 = vpop.f32.mrf.mxu1 }
 0x2c3   :  { %v6093_v45 = vpop.permute.xlu0 %6092 }
 0x2c4   :  { %1652 = vmatmul.f32.gmra.mxu0 %v9195_v48  ;;  %4083 = vmatmul.f32.gmra.mxu2 %v3884_v58  ;;  %v13900_v48 = vmax.f32 %v13899_v34, 0.0  ;;  %v6078_v58 = vpop.permute.xlu2 %6077  ;;  %v6059_v34 = vunpack.i.l.bf16 %v9769_v40  ;;  %v6088_v23 = vpop.permute.xlu1 %6087  ;;  %v5705_v40 = vunpack.i.h.bf16 %v13898_v8 }
 0x2c5   :  { %2269 = vmatmul.f32.gmra.mxu1 %v9804_v0  ;;  %4193 = vmatmul.f32.gmra.mxu3 %v3979_v4 }
 0x2c6   :  { %v3820_v32 = vsel %vm3816_vm1, %v13900_v48, %v6039_v1  ;;  %v9825_v1 = vsel %vm1193_vm0, %v6702_v11, %v5704_v63  ;;  %v3948_v48 = vsel %vm1193_vm0, %v3916_v7, %v6075_v14  ;;  %v6084_v63 = vunpack.i.l.bf16 %v6083_v20  ;;  %v13904_v11 = vld [vmem:[#allocation22_spill] sm:$0xff] }
 0x2c7   :  { %13903 = vst [vmem:[#allocation59_spill] sm:$0xff] %v9825_v1  ;;  %v3852_v22 = vsel %vm1193_vm0, %v3820_v32, %v6049_v55  ;;  %v3980_v12 = vsel %vm3881_vm2, %v3948_v48, %v6085_v9  ;;  %v13905_v0 = vmax.f32 %v13904_v11, 0.0  ;;  %v6095_v55 = vunpack.i.h.bf16 %v6093_v45  ;;  %v13906_v7 = vld [vmem:[#allocation42_spill] sm:$0xff] }
 0x2c8   :  { %v3885_v17 = vsel %vm3881_vm2, %v3852_v22, %v6064_v27  ;;  %v6074_v27 = vunpack.i.l.bf16 %v6073_v46  ;;  %v13907_v14 = vmax.f32 %v13906_v7, 0.0  ;;  %v6080_v22 = vunpack.i.h.bf16 %v6078_v58  ;;  %v13909_v7 = vld [vmem:[#allocation31_spill] sm:$0xff] }
 0x2c9   :  { %v9817_v56 = vpop.f32.mrf.mxu0  ;;  %v3821_v32 = vsel %vm3816_vm1, %v13905_v0, %v6059_v34  ;;  %v6090_v46 = vunpack.i.h.bf16 %v6088_v23  ;;  %v6703_v34 = vld [vmem:[%s13341_s0 + $0x338] sm:$0xff] }
 0x2ca   :  { %v9819_v4 = vpop.f32.mrf.mxu1  ;;  %v3853_v20 = vsel %vm1193_vm0, %v3821_v32, %v6074_v27  ;;  %v6094_v27 = vunpack.i.l.bf16 %v6093_v45 }
 0x2cb   :  { %v6113_v48 = vpop.permute.xlu0 %6112  ;;  %v3886_v0 = vsel %vm3881_vm2, %v3853_v20, %v6084_v63  ;;  %v13911_v20 = vmax.f32 %v8908_v52, 0.0 }
 0x2cc   :  { %1655 = vmatmul.f32.gmra.mxu0 %v9210_v18  ;;  %4086 = vmatmul.f32.gmra.mxu2 %v3885_v17  ;;  %v3917_v18 = vsel %vm3816_vm1, %v13907_v14, %v6070_v30  ;;  %v6103_v17 = vpop.permute.xlu2 %6102  ;;  %v9853_v30 = vsel %vm1193_vm0, %v6703_v34, %v5705_v40  ;;  %v6098_v32 = vpop.permute.xlu1 %6097  ;;  %v13910_v14 = vmax.f32 %v13909_v7, 0.0 }
 0x2cd   :  { %2272 = vmatmul.f32.gmra.mxu1 %v9825_v1  ;;  %4196 = vmatmul.f32.gmra.mxu3 %v3980_v12  ;;  %v6069_v12 = vunpack.i.l.bf16 %v6068_v25  ;;  %v3949_v8 = vsel %vm1193_vm0, %v3917_v18, %v6080_v22  ;;  %v13908_v25 = vld [vmem:[#allocation61_spill] sm:$0xff]  ;;  %v6079_v18 = vunpack.i.l.bf16 %v6078_v58  ;;  %v6115_v22 = vunpack.i.h.bf16 %v6113_v48 }
 0x2ce   :  { %v3981_v11 = vsel %vm3881_vm2, %v3949_v8, %v6095_v55  ;;  %v5709_v63 = vunpack.i.l.bf16 %v13908_v25  ;;  %v3918_v40 = vsel %vm3816_vm1, %v13911_v20, %v6090_v46  ;;  %v6704_v8 = vld [vmem:[%s13341_s0 + $0x340] sm:$0xff]  ;;  %v6089_v58 = vunpack.i.l.bf16 %v6088_v23 }
 0x2cf   :  { %v6100_v7 = vunpack.i.h.bf16 %v6098_v32 }
 0x2d0   :  { %v9872_v45 = vsel %vm1193_vm0, %v6704_v8, %v5709_v63  ;;  %v6114_v63 = vunpack.i.l.bf16 %v6113_v48 }
 0x2d1   :  { %v9841_v9 = vpop.f32.mrf.mxu0 }
 0x2d2   :  { %v9843_v1 = vpop.f32.mrf.mxu1 }
 0x2d4   :  { %1658 = vmatmul.f32.gmra.mxu0 %v9239_v62  ;;  %4089 = vmatmul.f32.gmra.mxu2 %v3886_v0  ;;  %v3822_v62 = vsel %vm3816_vm1, %v13910_v14, %v6069_v12  ;;  %v6105_v0 = vunpack.i.h.bf16 %v6103_v17  ;;  %v6108_v46 = vpop.permute.xlu2 %6107  ;;  %v6118_v14 = vpop.permute.xlu0 %6117 }
 0x2d5   :  { %2275 = vmatmul.f32.gmra.mxu1 %v9853_v30  ;;  %4199 = vmatmul.f32.gmra.mxu3 %v3981_v11  ;;  %v3854_v12 = vsel %vm1193_vm0, %v3822_v62, %v6079_v18  ;;  %v6123_v8 = vpop.permute.xlu1 %6122  ;;  %v13912_v62 = vmax.f32 %v8890_v57, 0.0  ;;  %v6104_v18 = vunpack.i.l.bf16 %v6103_v17 }
 0x2d6   :  { %v3887_v11 = vsel %vm3881_vm2, %v3854_v12, %v6094_v27  ;;  %v3950_v52 = vsel %vm1193_vm0, %v3918_v40, %v6105_v0  ;;  %v5710_v27 = vunpack.i.h.bf16 %v13908_v25  ;;  %v6120_v40 = vunpack.i.h.bf16 %v6118_v14 }
 0x2d7   :  { %v3982_v20 = vsel %vm3881_vm2, %v3950_v52, %v6115_v22  ;;  %v3823_v23 = vsel %vm3816_vm1, %v13912_v62, %v6089_v58  ;;  %v13913_v0 = vmax.f32 %v8946_v37, 0.0  ;;  %v6110_v12 = vunpack.i.h.bf16 %v6108_v46  ;;  %v6705_v37 = vld [vmem:[%s13341_s0 + $0x348] sm:$0xff] }
 0x2d8   :  { %v3855_v48 = vsel %vm1193_vm0, %v3823_v23, %v6104_v18  ;;  %v6099_v52 = vunpack.i.l.bf16 %v6098_v32  ;;  %v6125_v25 = vunpack.i.h.bf16 %v6123_v8  ;;  %v9899_v17 = vsel %vm1193_vm0, %v6705_v37, %v5710_v27  ;;  %v9905_v32 = vld [vmem:[%s13343_s2] ss:$0 sm:$0xff] }
 0x2d9   :  { %v9864_v34 = vpop.f32.mrf.mxu0  ;;  %v3888_v57 = vsel %vm3881_vm2, %v3855_v48, %v6114_v63  ;;  %v1555_v63 = vadd.f32 %v9905_v32, %v9247_v2  ;;  %v6119_v18 = vunpack.i.l.bf16 %v6118_v14  ;;  %v13916_v27 = vmax.f32 %v8929_v31, 0.0  ;;  %v6707_v31 = vld [vmem:[%s13341_s0 + $0x350] sm:$0xff] }
 0x2da   :  { %v9866_v55 = vpop.f32.mrf.mxu1 }
 0x2dc   :  { %1661 = vmatmul.f32.gmra.mxu0 %v9255_v3  ;;  %4092 = vmatmul.f32.gmra.mxu2 %v3887_v11  ;;  %v3919_v3 = vsel %vm3816_vm1, %v13913_v0, %v6100_v7  ;;  %v3824_v0 = vsel %vm3816_vm1, %v13916_v27, %v6099_v52 }
 0x2dd   :  { %2278 = vmatmul.f32.gmra.mxu1 %v9872_v45  ;;  %4202 = vmatmul.f32.gmra.mxu3 %v3982_v20  ;;  %v3951_v58 = vsel %vm1193_vm0, %v3919_v3, %v6110_v12  ;;  %v6133_v20 = vpop.permute.xlu2 %6132  ;;  %v6109_v3 = vunpack.i.l.bf16 %v6108_v46  ;;  %v13917_v12 = vmax.f32 %v9040_v43, 0.0  ;;  %v6128_v2 = vpop.permute.xlu1 %6127  ;;  %v6124_v43 = vunpack.i.l.bf16 %v6123_v8 }
 0x2de   :  { %v3983_v62 = vsel %vm3881_vm2, %v3951_v58, %v6120_v40  ;;  %v6135_v58 = vunpack.i.h.bf16 %v6133_v20 }
 0x2df   :  { %v3920_v48 = vsel %vm3816_vm1, %v13917_v12, %v6125_v25  ;;  %v3856_v46 = vsel %vm1193_vm0, %v3824_v0, %v6109_v3  ;;  %v6130_v25 = vunpack.i.h.bf16 %v6128_v2 }
 0x2e0   :  { %v3889_v52 = vsel %vm3881_vm2, %v3856_v46, %v6119_v18 }
 0x2e1   :  { %v9887_v11 = vpop.f32.mrf.mxu0 }
 0x2e2   :  { %v9889_v22 = vpop.f32.mrf.mxu1 }
 0x2e3   :  { %13914 = vst [vmem:[#allocation18_spill] sm:$0xff] %v9889_v22 }
 0x2e4   :  { %1664 = vmatmul.f32.gmra.mxu0 %v9287_v33  ;;  %v6143_v7 = vpop.permute.xlu0 %6142  ;;  %4095 = vmatmul.f32.gmra.mxu2 %v3888_v57  ;;  %v13915_v33 = vld [vmem:[#allocation63_spill] sm:$0xff]  ;;  %v2172_v57 = vadd.f32 %v9249_v38, %v1555_v63  ;;  %v3952_v38 = vsel %vm1193_vm0, %v3920_v48, %v6135_v58  ;;  %v6134_v48 = vunpack.i.l.bf16 %v6133_v20 }
 0x2e5   :  { %2281 = vmatmul.f32.gmra.mxu1 %v9899_v17  ;;  %4205 = vmatmul.f32.gmra.mxu3 %v3983_v62  ;;  %v5714_v23 = vunpack.i.l.bf16 %v13915_v33  ;;  %v6145_v40 = vunpack.i.h.bf16 %v6143_v7  ;;  %v6138_v8 = vpop.permute.xlu2 %6137  ;;  %v5715_v18 = vunpack.i.h.bf16 %v13915_v33  ;;  %v6144_v3 = vunpack.i.l.bf16 %v6143_v7 }
 0x2e6   :  { %v2691_v12 = vmax.f32 %v2172_v57, 0.0  ;;  %v13919_v57 = vmax.f32 %v9067_v21, 0.0 }
 0x2e7   :  { %v9923_v14 = vsel %vm1193_vm0, %v6707_v31, %v5714_v23  ;;  %v3984_v27 = vsel %vm3881_vm2, %v3952_v38, %v6145_v40  ;;  %v6140_v31 = vunpack.i.h.bf16 %v6138_v8 }
 0x2e9   :  { %v1620_v37 = vpop.f32.mrf.mxu0 }
 0x2ea   :  { %v1621_v62 = vadd.f32 %v9905_v32, %v1620_v37  ;;  %v2237_v22 = vpop.f32.mrf.mxu1  ;;  %v1558_v37 = vadd.f32 %v9905_v32, %v9273_v16  ;;  %v3921_v16 = vsel %vm3816_vm1, %v13919_v57, %v6130_v25 }
 0x2eb   :  { %v3953_v21 = vsel %vm1193_vm0, %v3921_v16, %v6140_v31  ;;  %v1582_v31 = vadd.f32 %v9905_v32, %v9495_v47 }
 0x2ec   :  { %v2238_v63 = vadd.f32 %v2237_v22, %v1621_v62  ;;  %1667 = vmatmul.f32.gmra.mxu0 %v9302_v59  ;;  %4098 = vmatmul.f32.gmra.mxu2 %v3889_v52  ;;  %v6148_v23 = vpop.permute.xlu0 %6147  ;;  %v3825_v22 = vsel %vm3816_vm1, %v2691_v12, %v6124_v43  ;;  %v13918_v59 = vmax.f32 %v9411_v54, 0.0  ;;  %v2175_v62 = vadd.f32 %v9275_v51, %v1558_v37  ;;  %v9941_v52 = vpop.f32.mrf.mxu2  ;;  %v6708_v51 = vld [vmem:[%s13341_s0 + $0x358] sm:$0xff] }
 0x2ed   :  { %2284 = vmatmul.f32.gmra.mxu1 %v9923_v14  ;;  %4208 = vmatmul.f32.gmra.mxu3 %v3984_v27  ;;  %v6150_v40 = vunpack.i.h.bf16 %v6148_v23  ;;  %13920 = vst [vmem:[#allocation16_spill] sm:$0xff] %v9941_v52  ;;  %v3857_v20 = vsel %vm1193_vm0, %v3825_v22, %v6134_v48  ;;  %v6129_v54 = vunpack.i.l.bf16 %v6128_v2  ;;  %v9955_v25 = vsel %vm1193_vm0, %v6708_v51, %v5715_v18  ;;  %v13922_v27 = vld [vmem:[#allocation62_spill] sm:$0xff]  ;;  %v148_v18 = vld [vmem:[%s13341_s0 + $0x370] sm:$0xff] }
 0x2ee   :  { %v2713_v0 = vmax.f32 %v2238_v63, 0.0  ;;  %v9947_v43 = vsel %vm3881_vm2, %v3857_v20, %v6144_v3  ;;  %v2692_v2 = vmax.f32 %v2175_v62, 0.0  ;;  %v5719_v12 = vunpack.i.l.bf16 %v13922_v27  ;;  %v14017_v52 = vld [vmem:[#allocation40_spill] sm:$0xff] }
 0x2ef   :  { %13921 = vst [vmem:[#allocation83_spill] sm:$0xff] %v9947_v43  ;;  %v3985_v63 = vsel %vm3881_vm2, %v3953_v21, %v6150_v40  ;;  %v6139_v22 = vunpack.i.l.bf16 %v6138_v8  ;;  %v13923_v48 = vmax.f32 %v9430_v36, 0.0 }
 0x2f0   :  { %v6151_v58 = vpack.i.bf16 %v2713_v0, %v13918_v59  ;;  %v6149_v0 = vunpack.i.l.bf16 %v6148_v23  ;;  %v3826_v3 = vsel %vm3816_vm1, %v2692_v2, %v6129_v54  ;;  %v10001_v54 = vadd.f32 %v9500_v35, %v1582_v31 }
 0x2f1   :  { %v1623_v46 = vpop.f32.mrf.mxu0  ;;  %v3858_v23 = vsel %vm1193_vm0, %v3826_v3, %v6139_v22  ;;  %v1585_v35 = vadd.f32 %v9905_v32, %v9537_v44  ;;  %v6709_v3 = vld [vmem:[%s13341_s0 + $0x380] sm:$0xff] }
 0x2f2   :  { %v1624_v33 = vadd.f32 %v9905_v32, %v1623_v46  ;;  %v2240_v7 = vpop.f32.mrf.mxu1  ;;  %6152 = vrot.lane.b32.xlu1 %v6151_v58, %s6762_s18  ;;  %v9979_v62 = vsel %vm3881_vm2, %v3858_v23, %v6149_v0 }
 0x2f3   :  { %13924 = vst [vmem:[#allocation58_spill] sm:$0xff] %v9979_v62 }
 0x2f4   :  { %v2241_v38 = vadd.f32 %v2240_v7, %v1624_v33  ;;  %1670 = vmatmul.f32.gmra.mxu0 %v9332_v19  ;;  %4101 = vmatmul.f32.gmra.mxu2 %v9947_v43  ;;  %v1579_v19 = vadd.f32 %v9905_v32, %v9455_v29  ;;  %v9975_v29 = vsel %vm1193_vm0, %v148_v18, %v5719_v12  ;;  %v9981_v8 = vpop.f32.mrf.mxu2  ;;  %v5720_v33 = vunpack.i.h.bf16 %v13922_v27 }
 0x2f5   :  { %2287 = vmatmul.f32.gmra.mxu1 %v9955_v25  ;;  %4211 = vmatmul.f32.gmra.mxu3 %v3985_v63  ;;  %13925 = vst [vmem:[#allocation86_spill] sm:$0xff] %v9981_v8  ;;  %v13926_v63 = vld [vmem:[#allocation65_spill] sm:$0xff]  ;;  %v13528_v27 = vmax.f32 %v10001_v54, 0.0 }
 0x2f6   :  { %v2714_v37 = vmax.f32 %v2241_v38, 0.0  ;;  %v9970_v40 = vadd.f32 %v9460_v42, %v1579_v19  ;;  %v5724_v2 = vunpack.i.l.bf16 %v13926_v63 }
 0x2f8   :  { %v6156_v59 = vpack.i.bf16 %v2714_v37, %v13923_v48  ;;  %v13530_v42 = vmax.f32 %v9970_v40, 0.0  ;;  %v2202_v37 = vadd.f32 %v9539_v61, %v1585_v35  ;;  %v10028_v44 = vsel %vm1193_vm0, %v6709_v3, %v5724_v2  ;;  %v13928_v35 = vld [vmem:[#allocation116_spill] sm:$0xff] }
 0x2f9   :  { %v1626_v58 = vpop.f32.mrf.mxu0  ;;  %v1588_v61 = vadd.f32 %v9905_v32, %v9576_v24  ;;  %v6710_v24 = vld [vmem:[%s13341_s0 + $0x388] sm:$0xff] }
 0x2fa   :  { %v1627_v57 = vadd.f32 %v9905_v32, %v1626_v58  ;;  %v2243_v16 = vpop.f32.mrf.mxu1  ;;  %6157 = vrot.lane.b32.xlu1 %v6156_v59, %s6762_s18  ;;  %v2701_v48 = vmax.f32 %v2202_v37, 0.0  ;;  %v5725_v58 = vunpack.i.h.bf16 %v13926_v63  ;;  %v6711_v37 = vld [vmem:[%s13341_s0 + $0x390] sm:$0xff] }
 0x2fb   :  { %v2205_v23 = vadd.f32 %v9578_v10, %v1588_v61  ;;  %v13927_v10 = vld [vmem:[#allocation67_spill] sm:$0xff] }
 0x2fc   :  { %v9983_v36 = vadd.f32 %v2243_v16, %v1627_v57  ;;  %1673 = vmatmul.f32.gmra.mxu0 %v9347_v41  ;;  %4104 = vmatmul.f32.gmra.mxu2 %v9979_v62  ;;  %v149_v41 = vld [vmem:[%s13341_s0 + $0x378] sm:$0xff]  ;;  %v10290_v43 = vpop.f32.mrf.mxu2 }
 0x2fd   :  { %2290 = vmatmul.f32.gmra.mxu1 %v9975_v29  ;;  %v10009_v51 = vsel %vm1193_vm0, %v149_v41, %v5720_v33  ;;  %v2702_v41 = vmax.f32 %v2205_v23, 0.0  ;;  %13955 = vst [vmem:[#allocation22_spill] sm:$0xff] %v10290_v43 }
 0x2fe   :  { %v13529_v46 = vmax.f32 %v9983_v36, 0.0 }
 0x300   :  { %v6161_v7 = vpack.i.bf16 %v13529_v46, %v13530_v42  ;;  %v13952_v42 = vld [vmem:[#allocation84_spill] sm:$0xff] }
 0x301   :  { %v1629_v20 = vpop.f32.mrf.mxu0 }
 0x302   :  { %v1630_v21 = vadd.f32 %v9905_v32, %v1629_v20  ;;  %v2246_v47 = vpop.f32.mrf.mxu1  ;;  %6162 = vrot.lane.b32.xlu2 %v6161_v7, %s6760_s29  ;;  %v10044_v7 = vsel %vm1193_vm0, %v6710_v24, %v5725_v58  ;;  %v5729_v20 = vunpack.i.l.bf16 %v13927_v10  ;;  %v13932_v24 = vld [vmem:[#allocation112_spill] sm:$0xff] }
 0x304   :  { %v10005_v38 = vadd.f32 %v2246_v47, %v1630_v21  ;;  %1676 = vmatmul.f32.gmra.mxu0 %v9388_v49  ;;  %v1591_v21 = vadd.f32 %v9905_v32, %v9615_v28 }
 0x305   :  { %2293 = vmatmul.f32.gmra.mxu1 %v10009_v51 }
 0x306   :  { %v13527_v12 = vmax.f32 %v10005_v38, 0.0 }
 0x308   :  { %v6166_v19 = vpack.i.bf16 %v13527_v12, %v13528_v27  ;;  %v1618_v12 = vadd.f32 %v9905_v32, %v9887_v11 }
 0x309   :  { %v1632_v49 = vpop.f32.mrf.mxu0 }
 0x30a   :  { %v1633_v0 = vadd.f32 %v9905_v32, %v1632_v49  ;;  %v2249_v18 = vpop.f32.mrf.mxu1  ;;  %6167 = vrot.lane.b32.xlu2 %v6166_v19, %s6760_s29 }
 0x30c   :  { %v2250_v22 = vadd.f32 %v2249_v18, %v1633_v0  ;;  %1679 = vmatmul.f32.gmra.mxu0 %v9405_v26  ;;  %v10060_v0 = vsel %vm1193_vm0, %v6711_v37, %v5729_v20  ;;  %v13929_v18 = vld [vmem:[#allocation51_spill] sm:$0xff]  ;;  %v13935_v37 = vld [vmem:[#allocation121_spill] sm:$0xff] }
 0x30d   :  { %2296 = vmatmul.f32.gmra.mxu1 %v10028_v44 }
 0x30e   :  { %v2717_v59 = vmax.f32 %v2250_v22, 0.0  ;;  %v13930_v22 = vld [vmem:[#allocation119_spill] sm:$0xff] }
 0x310   :  { %v6176_v57 = vpack.i.bf16 %v2717_v59, %v2701_v48  ;;  %v1594_v48 = vadd.f32 %v9905_v32, %v13930_v22  ;;  %v5730_v59 = vunpack.i.h.bf16 %v13927_v10  ;;  %v6712_v10 = vld [vmem:[%s13341_s0 + $0x398] sm:$0xff] }
 0x311   :  { %v1635_v16 = vpop.f32.mrf.mxu0 }
 0x312   :  { %v1636_v31 = vadd.f32 %v9905_v32, %v1635_v16  ;;  %v2252_v33 = vpop.f32.mrf.mxu1  ;;  %6177 = vrot.lane.b32.xlu1 %v6176_v57, %s6762_s18  ;;  %6172 = vrot.lane.b32.xlu0 %v6176_v57, %s6761_s17  ;;  %v13931_v16 = vld [vmem:[#allocation120_spill] sm:$0xff]  ;;  %v10087_v20 = vsel %vm1193_vm0, %v6712_v10, %v5730_v59  ;;  %v6713_v59 = vld [vmem:[%s13341_s0 + $0x3a0] sm:$0xff] }
 0x313   :  { %v10076_v23 = vadd.f32 %v13931_v16, %v1594_v48  ;;  %v13936_v16 = vld [vmem:[#allocation113_spill] sm:$0xff] }
 0x314   :  { %v2253_v26 = vadd.f32 %v2252_v33, %v1636_v31  ;;  %1682 = vmatmul.f32.gmra.mxu0 %v9438_v15  ;;  %v10051_v15 = vadd.f32 %v13928_v35, %v1591_v21 }
 0x315   :  { %2299 = vmatmul.f32.gmra.mxu1 %v10044_v7 }
 0x316   :  { %v2718_v47 = vmax.f32 %v2253_v26, 0.0  ;;  %v13526_v3 = vmax.f32 %v10051_v15, 0.0 }
 0x318   :  { %v6186_v63 = vpack.i.bf16 %v2718_v47, %v2702_v41  ;;  %v13933_v41 = vld [vmem:[#allocation66_spill] sm:$0xff]  ;;  %v13524_v47 = vmax.f32 %v10076_v23, 0.0 }
 0x319   :  { %v1638_v2 = vpop.f32.mrf.mxu0  ;;  %v5734_v21 = vunpack.i.l.bf16 %v13933_v41  ;;  %v5735_v10 = vunpack.i.h.bf16 %v13933_v41 }
 0x31a   :  { %v1639_v19 = vadd.f32 %v9905_v32, %v1638_v2  ;;  %v2255_v49 = vpop.f32.mrf.mxu1  ;;  %6187 = vrot.lane.b32.xlu1 %v6186_v63, %s6762_s18  ;;  %6182 = vrot.lane.b32.xlu0 %v6186_v63, %s6761_s17  ;;  %v13934_v63 = vld [vmem:[#allocation37_spill] sm:$0xff] }
 0x31b   :  { %v1597_v2 = vadd.f32 %v9905_v32, %v13934_v63 }
 0x31c   :  { %v10062_v28 = vadd.f32 %v2255_v49, %v1639_v19  ;;  %1685 = vmatmul.f32.gmra.mxu0 %v13929_v18 }
 0x31d   :  { %2302 = vmatmul.f32.gmra.mxu1 %v10060_v0  ;;  %v2214_v18 = vadd.f32 %v13935_v37, %v1597_v2 }
 0x31e   :  { %v13525_v61 = vmax.f32 %v10062_v28, 0.0 }
 0x320   :  { %v6191_v58 = vpack.i.bf16 %v13525_v61, %v13526_v3 }
 0x321   :  { %v1641_v57 = vpop.f32.mrf.mxu0 }
 0x322   :  { %v1642_v31 = vadd.f32 %v9905_v32, %v1641_v57  ;;  %v2258_v33 = vpop.f32.mrf.mxu1  ;;  %6192 = vrot.lane.b32.xlu2 %v6191_v58, %s6760_s29  ;;  %v10106_v58 = vsel %vm1193_vm0, %v6713_v59, %v5734_v21 }
 0x324   :  { %v10080_v26 = vadd.f32 %v2258_v33, %v1642_v31  ;;  %1688 = vmatmul.f32.gmra.mxu0 %v13932_v24  ;;  %v2705_v31 = vmax.f32 %v2214_v18, 0.0  ;;  %v1600_v33 = vadd.f32 %v9905_v32, %v9716_v50  ;;  %v6714_v50 = vld [vmem:[%s13341_s0 + $0x3a8] sm:$0xff]  ;;  %v13939_v18 = vld [vmem:[#allocation69_spill] sm:$0xff] }
 0x325   :  { %2305 = vmatmul.f32.gmra.mxu1 %v10087_v20  ;;  %v10122_v41 = vsel %vm1193_vm0, %v6714_v50, %v5735_v10  ;;  %v5739_v59 = vunpack.i.l.bf16 %v13939_v18  ;;  %v6715_v10 = vld [vmem:[%s13341_s0 + $0x3b0] sm:$0xff] }
 0x326   :  { %v13523_v35 = vmax.f32 %v10080_v26, 0.0 }
 0x328   :  { %v6196_v19 = vpack.i.bf16 %v13523_v35, %v13524_v47 }
 0x329   :  { %v1644_v49 = vpop.f32.mrf.mxu0 }
 0x32a   :  { %v1645_v22 = vadd.f32 %v9905_v32, %v1644_v49  ;;  %v2261_v48 = vpop.f32.mrf.mxu1  ;;  %6197 = vrot.lane.b32.xlu2 %v6196_v19, %s6760_s29  ;;  %v13937_v19 = vld [vmem:[#allocation45_spill] sm:$0xff] }
 0x32b   :  { %v2217_v49 = vadd.f32 %v13937_v19, %v1600_v33 }
 0x32c   :  { %v2262_v57 = vadd.f32 %v2261_v48, %v1645_v22  ;;  %1691 = vmatmul.f32.gmra.mxu0 %v13936_v16  ;;  %v13938_v48 = vld [vmem:[#allocation115_spill] sm:$0xff]  ;;  %v1603_v16 = vadd.f32 %v9905_v32, %v9757_v60 }
 0x32d   :  { %2308 = vmatmul.f32.gmra.mxu1 %v10106_v58 }
 0x32e   :  { %v2721_v24 = vmax.f32 %v2262_v57, 0.0  ;;  %v2706_v57 = vmax.f32 %v2217_v49, 0.0  ;;  %v10136_v49 = vsel %vm1193_vm0, %v6715_v10, %v5739_v59 }
 0x330   :  { %v6206_v63 = vpack.i.bf16 %v2721_v24, %v2705_v31 }
 0x331   :  { %v1647_v2 = vpop.f32.mrf.mxu0 }
 0x332   :  { %v1648_v37 = vadd.f32 %v9905_v32, %v1647_v2  ;;  %v2264_v21 = vpop.f32.mrf.mxu1  ;;  %6207 = vrot.lane.b32.xlu1 %v6206_v63, %s6762_s18  ;;  %6202 = vrot.lane.b32.xlu0 %v6206_v63, %s6761_s17  ;;  %v2220_v63 = vadd.f32 %v9760_v13, %v1603_v16 }
 0x334   :  { %v2265_v22 = vadd.f32 %v2264_v21, %v1648_v37  ;;  %1694 = vmatmul.f32.gmra.mxu0 %v13938_v48  ;;  %v13940_v37 = vld [vmem:[#allocation117_spill] sm:$0xff]  ;;  %v2707_v13 = vmax.f32 %v2220_v63, 0.0  ;;  %v1606_v21 = vadd.f32 %v9905_v32, %v9790_v39  ;;  %v5740_v48 = vunpack.i.h.bf16 %v13939_v18  ;;  %v13942_v63 = vld [vmem:[#allocation71_spill] sm:$0xff] }
 0x335   :  { %2311 = vmatmul.f32.gmra.mxu1 %v10122_v41  ;;  %v6716_v39 = vld [vmem:[%s13341_s0 + $0x3b8] sm:$0xff] }
 0x336   :  { %v2722_v31 = vmax.f32 %v2265_v22, 0.0  ;;  %v2223_v59 = vadd.f32 %v9792_v53, %v1606_v21  ;;  %v10158_v18 = vsel %vm1193_vm0, %v6716_v39, %v5740_v48  ;;  %v5744_v53 = vunpack.i.l.bf16 %v13942_v63 }
 0x337   :  { %v5745_v39 = vunpack.i.h.bf16 %v13942_v63 }
 0x338   :  { %v6216_v33 = vpack.i.bf16 %v2722_v31, %v2706_v57 }
 0x339   :  { %v1650_v24 = vpop.f32.mrf.mxu0 }
 0x33a   :  { %v1651_v2 = vadd.f32 %v9905_v32, %v1650_v24  ;;  %v2267_v19 = vpop.f32.mrf.mxu1  ;;  %6217 = vrot.lane.b32.xlu1 %v6216_v33, %s6762_s18  ;;  %6212 = vrot.lane.b32.xlu0 %v6216_v33, %s6761_s17  ;;  %v13941_v24 = vld [vmem:[#allocation36_spill] sm:$0xff] }
 0x33c   :  { %v10138_v60 = vadd.f32 %v2267_v19, %v1651_v2  ;;  %1697 = vmatmul.f32.gmra.mxu0 %v13940_v37  ;;  %v2708_v2 = vmax.f32 %v2223_v59, 0.0  ;;  %v1609_v19 = vadd.f32 %v9905_v32, %v9817_v56 }
 0x33d   :  { %2314 = vmatmul.f32.gmra.mxu1 %v10136_v49 }
 0x33e   :  { %v13522_v22 = vmax.f32 %v10138_v60, 0.0  ;;  %v2226_v21 = vadd.f32 %v9819_v4, %v1609_v19  ;;  %v1612_v4 = vadd.f32 %v9905_v32, %v9841_v9  ;;  %v6718_v9 = vld [vmem:[%s13341_s0 + $0x3c8] sm:$0xff] }
 0x33f   :  { %v10196_v63 = vsel %vm1193_vm0, %v6718_v9, %v5745_v39  ;;  %v6719_v39 = vld [vmem:[%s13341_s0 + $0x3d0] sm:$0xff] }
 0x340   :  { %v6221_v50 = vpack.i.bf16 %v13522_v22, %v2707_v13 }
 0x341   :  { %v1653_v57 = vpop.f32.mrf.mxu0 }
 0x342   :  { %v1654_v16 = vadd.f32 %v9905_v32, %v1653_v57  ;;  %v2270_v31 = vpop.f32.mrf.mxu1  ;;  %6222 = vrot.lane.b32.xlu2 %v6221_v50, %s6760_s29  ;;  %v6717_v57 = vld [vmem:[%s13341_s0 + $0x3c0] sm:$0xff] }
 0x343   :  { %v10174_v59 = vsel %vm1193_vm0, %v6717_v57, %v5744_v53  ;;  %v2229_v53 = vadd.f32 %v9843_v1, %v1612_v4 }
 0x344   :  { %v10151_v33 = vadd.f32 %v2270_v31, %v1654_v16  ;;  %1700 = vmatmul.f32.gmra.mxu0 %v13941_v24  ;;  %v13943_v16 = vld [vmem:[#allocation122_spill] sm:$0xff]  ;;  %v2709_v31 = vmax.f32 %v2226_v21, 0.0 }
 0x345   :  { %2317 = vmatmul.f32.gmra.mxu1 %v10158_v18  ;;  %v13944_v21 = vld [vmem:[#allocation70_spill] sm:$0xff] }
 0x346   :  { %v13521_v10 = vmax.f32 %v10151_v33, 0.0  ;;  %v5749_v1 = vunpack.i.l.bf16 %v13944_v21 }
 0x348   :  { %v6226_v37 = vpack.i.bf16 %v13521_v10, %v2708_v2 }
 0x349   :  { %v1656_v13 = vpop.f32.mrf.mxu0 }
 0x34a   :  { %v1657_v50 = vadd.f32 %v9905_v32, %v1656_v13  ;;  %v2273_v48 = vpop.f32.mrf.mxu1  ;;  %6227 = vrot.lane.b32.xlu2 %v6226_v37, %s6760_s29 }
 0x34c   :  { %v10176_v56 = vadd.f32 %v2273_v48, %v1657_v50  ;;  %1703 = vmatmul.f32.gmra.mxu0 %v13943_v16  ;;  %v2710_v48 = vmax.f32 %v2229_v53, 0.0  ;;  %v5750_v53 = vunpack.i.h.bf16 %v13944_v21 }
 0x34d   :  { %2320 = vmatmul.f32.gmra.mxu1 %v10174_v59 }
 0x34e   :  { %v13532_v24 = vmax.f32 %v10176_v56, 0.0 }
 0x350   :  { %v6231_v2 = vpack.i.bf16 %v13532_v24, %v2709_v31  ;;  %v10287_v24 = vpop.f32.mrf.mxu3 }
 0x351   :  { %v1659_v19 = vpop.f32.mrf.mxu0  ;;  %13953 = vst [vmem:[#allocation32_spill] sm:$0xff] %v10287_v24 }
 0x352   :  { %v1660_v37 = vadd.f32 %v9905_v32, %v1659_v19  ;;  %v2276_v13 = vpop.f32.mrf.mxu1  ;;  %6232 = vrot.lane.b32.xlu0 %v6231_v2, %s6761_s17  ;;  %v10209_v2 = vsel %vm1193_vm0, %v6719_v39, %v5749_v1  ;;  %v6720_v1 = vld [vmem:[%s13341_s0 + $0x3d8] sm:$0xff] }
 0x354   :  { %v10189_v50 = vadd.f32 %v2276_v13, %v1660_v37  ;;  %1706 = vmatmul.f32.gmra.mxu0 %v9732_v5 }
 0x355   :  { %2323 = vmatmul.f32.gmra.mxu1 %v10196_v63 }
 0x356   :  { %v13531_v57 = vmax.f32 %v10189_v50, 0.0 }
 0x358   :  { %v6236_v16 = vpack.i.bf16 %v13531_v57, %v2710_v48  ;;  %v5769_v57 = vunpack.i.l.bf16 %v13952_v42 }
 0x359   :  { %v1662_v31 = vpop.f32.mrf.mxu0 }
 0x35a   :  { %v1663_v5 = vadd.f32 %v9905_v32, %v1662_v31  ;;  %v2279_v4 = vpop.f32.mrf.mxu1  ;;  %6237 = vrot.lane.b32.xlu0 %v6236_v16, %s6761_s17  ;;  %v13945_v16 = vld [vmem:[#allocation29_spill] sm:$0xff]  ;;  %v10224_v31 = vsel %vm1193_vm0, %v6720_v1, %v5750_v53 }
 0x35c   :  { %v10211_v19 = vadd.f32 %v2279_v4, %v1663_v5  ;;  %1709 = vmatmul.f32.gmra.mxu0 %v9766_v6  ;;  %v13946_v6 = vld [vmem:[#allocation75_spill] sm:$0xff]  ;;  %v6163_v35 = vpop.permute.xlu2 %6162 }
 0x35d   :  { %2326 = vmatmul.f32.gmra.mxu1 %v10209_v2  ;;  %v5754_v5 = vunpack.i.l.bf16 %v13946_v6  ;;  %v5755_v53 = vunpack.i.h.bf16 %v13946_v6  ;;  %v6164_v27 = vunpack.i.l.bf16 %v6163_v35 }
 0x361   :  { %v1665_v37 = vpop.f32.mrf.mxu0 }
 0x362   :  { %v1666_v13 = vadd.f32 %v9905_v32, %v1665_v37  ;;  %v2282_v9 = vpop.f32.mrf.mxu1  ;;  %v6721_v37 = vld [vmem:[%s13341_s0 + $0x3e0] sm:$0xff] }
 0x364   :  { %v10217_v48 = vadd.f32 %v2282_v9, %v1666_v13  ;;  %1712 = vmatmul.f32.gmra.mxu0 %v13945_v16  ;;  %v10233_v13 = vsel %vm1193_vm0, %v6721_v37, %v5754_v5  ;;  %v13947_v16 = vld [vmem:[#allocation59_spill] sm:$0xff] }
 0x365   :  { %2329 = vmatmul.f32.gmra.mxu1 %v10224_v31  ;;  %v6722_v5 = vld [vmem:[%s13341_s0 + $0x3e8] sm:$0xff] }
 0x369   :  { %v1668_v21 = vpop.f32.mrf.mxu0 }
 0x36a   :  { %v1669_v4 = vadd.f32 %v9905_v32, %v1668_v21  ;;  %v2285_v39 = vpop.f32.mrf.mxu1 }
 0x36c   :  { %v10235_v9 = vadd.f32 %v2285_v39, %v1669_v4  ;;  %1715 = vmatmul.f32.gmra.mxu0 %v13947_v16  ;;  %v10248_v4 = vsel %vm1193_vm0, %v6722_v5, %v5755_v53  ;;  %v13948_v39 = vld [vmem:[#allocation73_spill] sm:$0xff]  ;;  %v1615_v16 = vadd.f32 %v9905_v32, %v9864_v34  ;;  %v6153_v53 = vpop.permute.xlu1 %6152 }
 0x36d   :  { %2332 = vmatmul.f32.gmra.mxu1 %v10233_v13  ;;  %v5759_v37 = vunpack.i.l.bf16 %v13948_v39  ;;  %v6155_v34 = vunpack.i.h.bf16 %v6153_v53  ;;  %v6154_v47 = vunpack.i.l.bf16 %v6153_v53 }
 0x36e   :  { %v2232_v39 = vadd.f32 %v9866_v55, %v1615_v16  ;;  %v13950_v55 = vld [vmem:[#allocation15_spill] sm:$0xff] }
 0x36f   :  { %v13951_v16 = vmax.f32 %v13950_v55, 0.0 }
 0x370   :  { %v2711_v3 = vmax.f32 %v2232_v39, 0.0  ;;  %v6165_v39 = vunpack.i.h.bf16 %v6163_v35 }
 0x371   :  { %v1671_v1 = vpop.f32.mrf.mxu0  ;;  %v3827_v53 = vsel %vm3816_vm1, %v13951_v16, %v6154_v47 }
 0x372   :  { %v1672_v10 = vadd.f32 %v9905_v32, %v1671_v1  ;;  %v2288_v21 = vpop.f32.mrf.mxu1  ;;  %v3859_v47 = vsel %vm1193_vm0, %v3827_v53, %v6164_v27  ;;  %v6725_v53 = vld [vmem:[%s13341_s0 + $0x400] sm:$0xff] }
 0x374   :  { %v10241_v22 = vadd.f32 %v2288_v21, %v1672_v10  ;;  %1718 = vmatmul.f32.gmra.mxu0 %v9853_v30  ;;  %v6723_v30 = vld [vmem:[%s13341_s0 + $0x3f0] sm:$0xff]  ;;  %v13949_v21 = vld [vmem:[#allocation77_spill] sm:$0xff]  ;;  %v6158_v11 = vpop.permute.xlu1 %6157 }
 0x375   :  { %2335 = vmatmul.f32.gmra.mxu1 %v10248_v4  ;;  %v10262_v1 = vsel %vm1193_vm0, %v6723_v30, %v5759_v37  ;;  %v5764_v5 = vunpack.i.l.bf16 %v13949_v21  ;;  %v3922_v21 = vsel %vm3816_vm1, %v2711_v3, %v6155_v34  ;;  %v6160_v34 = vunpack.i.h.bf16 %v6158_v11 }
 0x376   :  { %v3954_v3 = vsel %vm1193_vm0, %v3922_v21, %v6165_v39  ;;  %v6159_v35 = vunpack.i.l.bf16 %v6158_v11  ;;  %v10307_v21 = vsel %vm1193_vm0, %v6725_v53, %v5769_v57 }
 0x379   :  { %v10252_v6 = vpop.f32.mrf.mxu0 }
 0x37a   :  { %v10256_v10 = vpop.f32.mrf.mxu1 }
 0x37c   :  { %1721 = vmatmul.f32.gmra.mxu0 %v9872_v45  ;;  %v6724_v45 = vld [vmem:[%s13341_s0 + $0x3f8] sm:$0xff] }
 0x37d   :  { %2338 = vmatmul.f32.gmra.mxu1 %v10262_v1  ;;  %v10278_v30 = vsel %vm1193_vm0, %v6724_v45, %v5764_v5  ;;  %v13954_v5 = vld [vmem:[#allocation18_spill] sm:$0xff] }
 0x37e   :  { %v2235_v45 = vadd.f32 %v13954_v5, %v1618_v12  ;;  %v6168_v12 = vpop.permute.xlu2 %6167 }
 0x381   :  { %v10268_v61 = vpop.f32.mrf.mxu0 }
 0x382   :  { %v10272_v37 = vpop.f32.mrf.mxu1 }
 0x384   :  { %1724 = vmatmul.f32.gmra.mxu0 %v9899_v17  ;;  %v6173_v46 = vpop.permute.xlu0 %6172 }
 0x385   :  { %2341 = vmatmul.f32.gmra.mxu1 %v10278_v30  ;;  %v6175_v62 = vunpack.i.h.bf16 %v6173_v46  ;;  %v6174_v17 = vunpack.i.l.bf16 %v6173_v46  ;;  %v2712_v46 = vmax.f32 %v2235_v45, 0.0 }
 0x387   :  { %v10295_v55 = vsel %vm3881_vm2, %v3859_v47, %v6174_v17  ;;  %v10298_v16 = vsel %vm3881_vm2, %v3954_v3, %v6175_v62  ;;  %v13958_v62 = vld [vmem:[#allocation13_spill] sm:$0xff]  ;;  %v3923_v45 = vsel %vm3816_vm1, %v2712_v46, %v6160_v34  ;;  %v6170_v47 = vunpack.i.h.bf16 %v6168_v12 }
 0x388   :  { %13956 = vst [vmem:[#allocation42_spill] sm:$0xff] %v10295_v55  ;;  %4107 = vmatmul.f32.gmra.mxu2 %v10295_v55  ;;  %4214 = vmatmul.f32.gmra.mxu3 %v10298_v16  ;;  %v13959_v11 = vmax.f32 %v13958_v62, 0.0  ;;  %v6169_v3 = vunpack.i.l.bf16 %v6168_v12  ;;  %v10328_v12 = vpop.f32.mrf.mxu2 }
 0x389   :  { %13957 = vst [vmem:[#allocation61_spill] sm:$0xff] %v10298_v16  ;;  %v1680_v42 = vpop.f32.mrf.mxu0  ;;  %v13960_v16 = vld [vmem:[#allocation79_spill] sm:$0xff] }
 0x38a   :  { %v1681_v5 = vadd.f32 %v9905_v32, %v1680_v42  ;;  %v2297_v27 = vpop.f32.mrf.mxu1  ;;  %v3828_v17 = vsel %vm3816_vm1, %v13959_v11, %v6159_v35  ;;  %v5775_v55 = vunpack.i.h.bf16 %v13960_v16  ;;  %v13962_v35 = vmax.f32 %v10176_v56, 0.0  ;;  %13965 = vst [vmem:[#allocation65_spill] sm:$0xff] %v10328_v12  ;;  %v13966_v11 = vld [vmem:[#allocation89_spill] sm:$0xff] }
 0x38c   :  { %v2298_v39 = vadd.f32 %v2297_v27, %v1681_v5  ;;  %1727 = vmatmul.f32.gmra.mxu0 %v9923_v14  ;;  %v6183_v42 = vpop.permute.xlu0 %6182  ;;  %v3860_v5 = vsel %vm1193_vm0, %v3828_v17, %v6169_v3  ;;  %v3955_v14 = vsel %vm1193_vm0, %v3923_v45, %v6170_v47  ;;  %v10318_v27 = vpop.f32.mrf.mxu3  ;;  %v5784_v17 = vunpack.i.l.bf16 %v13966_v11  ;;  %v170_v47 = vld [vmem:[%s13341_s0 + $0x420] sm:$0xff] }
 0x38d   :  { %2344 = vmatmul.f32.gmra.mxu1 %v10307_v21  ;;  %v6185_v24 = vunpack.i.h.bf16 %v6183_v42  ;;  %v6184_v57 = vunpack.i.l.bf16 %v6183_v42  ;;  %13961 = vst [vmem:[#allocation31_spill] sm:$0xff] %v10318_v27  ;;  %v13967_v3 = vmax.f32 %v10189_v50, 0.0  ;;  %v2727_v50 = vmax.f32 %v10211_v19, 0.0  ;;  %v6740_v27 = vld [vmem:[%s13341_s0 + $0x498] sm:$0xff] }
 0x38e   :  { %v2733_v8 = vmax.f32 %v2298_v39, 0.0 }
 0x38f   :  { %v10323_v34 = vsel %vm3881_vm2, %v3860_v5, %v6184_v57  ;;  %v10326_v46 = vsel %vm3881_vm2, %v3955_v14, %v6185_v24  ;;  %v6178_v5 = vpop.permute.xlu1 %6177 }
 0x390   :  { %v6241_v53 = vpack.i.bf16 %v13962_v35, %v2733_v8  ;;  %13963 = vst [vmem:[#allocation63_spill] sm:$0xff] %v10323_v34  ;;  %4110 = vmatmul.f32.gmra.mxu2 %v10323_v34  ;;  %4217 = vmatmul.f32.gmra.mxu3 %v10326_v46  ;;  %v6726_v8 = vld [vmem:[%s13341_s0 + $0x408] sm:$0xff]  ;;  %v6179_v11 = vunpack.i.l.bf16 %v6178_v5  ;;  %v13996_v34 = vld [vmem:[#allocation2_spill] sm:$0xff] }
 0x391   :  { %13964 = vst [vmem:[#allocation62_spill] sm:$0xff] %v10326_v46  ;;  %v1683_v16 = vpop.f32.mrf.mxu0  ;;  %v10338_v56 = vsel %vm1193_vm0, %v6726_v8, %v5775_v55  ;;  %v6193_v8 = vpop.permute.xlu2 %6192 }
 0x392   :  { %v1684_v39 = vadd.f32 %v9905_v32, %v1683_v16  ;;  %v2300_v62 = vpop.f32.mrf.mxu1  ;;  %6242 = vrot.lane.b32.xlu1 %v6241_v53, %s6762_s18  ;;  %v13969_v53 = vld [vmem:[#allocation87_spill] sm:$0xff] }
 0x393   :  { %v5790_v16 = vunpack.i.h.bf16 %v13969_v53  ;;  %v13973_v53 = vld [vmem:[#allocation93_spill] sm:$0xff] }
 0x394   :  { %v2301_v24 = vadd.f32 %v2300_v62, %v1684_v39  ;;  %1730 = vmatmul.f32.gmra.mxu0 %v9955_v25  ;;  %v10351_v25 = vsel %vm1193_vm0, %v170_v47, %v5784_v17  ;;  %v171_v62 = vld [vmem:[%s13341_s0 + $0x428] sm:$0xff] }
 0x395   :  { %2347 = vmatmul.f32.gmra.mxu1 %v10338_v56  ;;  %v10368_v19 = vsel %vm1193_vm0, %v171_v62, %v5790_v16  ;;  %v10381_v62 = vpop.f32.mrf.mxu3 }
 0x396   :  { %v2734_v45 = vmax.f32 %v2301_v24, 0.0  ;;  %v6180_v24 = vunpack.i.h.bf16 %v6178_v5  ;;  %13974 = vst [vmem:[#allocation51_spill] sm:$0xff] %v10381_v62 }
 0x398   :  { %v6246_v42 = vpack.i.bf16 %v13967_v3, %v2734_v45  ;;  %v6188_v3 = vpop.permute.xlu1 %6187 }
 0x399   :  { %v1686_v57 = vpop.f32.mrf.mxu0 }
 0x39a   :  { %v1687_v55 = vadd.f32 %v9905_v32, %v1686_v57  ;;  %v2303_v14 = vpop.f32.mrf.mxu1  ;;  %6247 = vrot.lane.b32.xlu1 %v6246_v42, %s6762_s18  ;;  %v13971_v57 = vmax.f32 %v9970_v40, 0.0 }
 0x39c   :  { %v10353_v35 = vadd.f32 %v2303_v14, %v1687_v55  ;;  %1733 = vmatmul.f32.gmra.mxu0 %v9975_v29  ;;  %v3829_v5 = vsel %vm3816_vm1, %v13971_v57, %v6179_v11  ;;  %v13972_v55 = vmax.f32 %v9983_v36, 0.0  ;;  %v10385_v11 = vpop.f32.mrf.mxu2  ;;  %v6190_v36 = vunpack.i.h.bf16 %v6188_v3 }
 0x39d   :  { %2350 = vmatmul.f32.gmra.mxu1 %v10351_v25  ;;  %13975 = vst [vmem:[#allocation119_spill] sm:$0xff] %v10385_v11  ;;  %v6739_v11 = vld [vmem:[%s13341_s0 + $0x490] sm:$0xff] }
 0x39e   :  { %13968 = vst [vmem:[#allocation67_spill] sm:$0xff] %v10353_v35  ;;  %v13537_v39 = vmax.f32 %v10353_v35, 0.0  ;;  %v3924_v14 = vsel %vm3816_vm1, %v13972_v55, %v6180_v24  ;;  %v6189_v55 = vunpack.i.l.bf16 %v6188_v3  ;;  %v6727_v3 = vld [vmem:[%s13341_s0 + $0x430] sm:$0xff] }
 0x3a0   :  { %v6251_v17 = vpack.i.bf16 %v2727_v50, %v13537_v39  ;;  %v5799_v50 = vunpack.i.l.bf16 %v13973_v53  ;;  %v6198_v39 = vpop.permute.xlu2 %6197 }
 0x3a1   :  { %v1689_v45 = vpop.f32.mrf.mxu0 }
 0x3a2   :  { %v1690_v29 = vadd.f32 %v9905_v32, %v1689_v45  ;;  %v2306_v47 = vpop.f32.mrf.mxu1  ;;  %6252 = vrot.lane.b32.xlu2 %v6251_v17, %s6760_s29  ;;  %v6195_v45 = vunpack.i.h.bf16 %v6193_v8  ;;  %v6194_v17 = vunpack.i.l.bf16 %v6193_v8 }
 0x3a4   :  { %v10370_v42 = vadd.f32 %v2306_v47, %v1690_v29  ;;  %1736 = vmatmul.f32.gmra.mxu0 %v10009_v51  ;;  %v6203_v16 = vpop.permute.xlu0 %6202  ;;  %v2728_v29 = vmax.f32 %v10217_v48, 0.0  ;;  %v3861_v24 = vsel %vm1193_vm0, %v3829_v5, %v6194_v17  ;;  %v3956_v57 = vsel %vm1193_vm0, %v3924_v14, %v6195_v45 }
 0x3a5   :  { %2353 = vmatmul.f32.gmra.mxu1 %v10368_v19  ;;  %v6205_v40 = vunpack.i.h.bf16 %v6203_v16  ;;  %v6204_v47 = vunpack.i.l.bf16 %v6203_v16  ;;  %v10405_v14 = vsel %vm1193_vm0, %v6727_v3, %v5799_v50 }
 0x3a6   :  { %13970 = vst [vmem:[#allocation116_spill] sm:$0xff] %v10370_v42  ;;  %v13538_v51 = vmax.f32 %v10370_v42, 0.0 }
 0x3a7   :  { %v10392_v53 = vsel %vm3881_vm2, %v3861_v24, %v6204_v47  ;;  %v10395_v48 = vsel %vm3881_vm2, %v3956_v57, %v6205_v40  ;;  %v13979_v47 = vmax.f32 %v10005_v38, 0.0  ;;  %v13980_v57 = vld [vmem:[#allocation91_spill] sm:$0xff]  ;;  %v10422_v38 = vpop.f32.mrf.mxu3 }
 0x3a8   :  { %v6256_v8 = vpack.i.bf16 %v2728_v29, %v13538_v51  ;;  %13976 = vst [vmem:[#allocation120_spill] sm:$0xff] %v10392_v53  ;;  %4113 = vmatmul.f32.gmra.mxu2 %v10392_v53  ;;  %4220 = vmatmul.f32.gmra.mxu3 %v10395_v48  ;;  %v13978_v29 = vmax.f32 %v10001_v54, 0.0  ;;  %v6199_v51 = vunpack.i.l.bf16 %v6198_v39 }
 0x3a9   :  { %13977 = vst [vmem:[#allocation112_spill] sm:$0xff] %v10395_v48  ;;  %v1692_v16 = vpop.f32.mrf.mxu0  ;;  %v3925_v24 = vsel %vm3816_vm1, %v13979_v47, %v6190_v36 }
 0x3aa   :  { %v1693_v5 = vadd.f32 %v9905_v32, %v1692_v16  ;;  %v2309_v17 = vpop.f32.mrf.mxu1  ;;  %6257 = vrot.lane.b32.xlu2 %v6256_v8, %s6760_s29  ;;  %v3830_v40 = vsel %vm3816_vm1, %v13978_v29, %v6189_v55  ;;  %v5805_v8 = vunpack.i.h.bf16 %v13980_v57  ;;  %v6200_v16 = vunpack.i.h.bf16 %v6198_v39  ;;  %13981 = vst [vmem:[#allocation66_spill] sm:$0xff] %v10422_v38 }
 0x3ab   :  { %v3862_v54 = vsel %vm1193_vm0, %v3830_v40, %v6199_v51 }
 0x3ac   :  { %v10407_v45 = vadd.f32 %v2309_v17, %v1693_v5  ;;  %1739 = vmatmul.f32.gmra.mxu0 %v10028_v44  ;;  %v6213_v50 = vpop.permute.xlu0 %6212  ;;  %v2729_v5 = vmax.f32 %v10235_v9, 0.0  ;;  %v3957_v55 = vsel %vm1193_vm0, %v3925_v24, %v6200_v16  ;;  %v10432_v9 = vpop.f32.mrf.mxu2  ;;  %v6728_v24 = vld [vmem:[%s13341_s0 + $0x438] sm:$0xff] }
 0x3ad   :  { %2356 = vmatmul.f32.gmra.mxu1 %v10405_v14  ;;  %v6215_v44 = vunpack.i.h.bf16 %v6213_v50  ;;  %v6214_v3 = vunpack.i.l.bf16 %v6213_v50  ;;  %13984 = vst [vmem:[#allocation113_spill] sm:$0xff] %v10432_v9  ;;  %v10442_v57 = vsel %vm1193_vm0, %v6728_v24, %v5805_v8  ;;  %v13985_v50 = vld [vmem:[#allocation97_spill] sm:$0xff] }
 0x3ae   :  { %v13540_v17 = vmax.f32 %v10407_v45, 0.0 }
 0x3af   :  { %v10427_v39 = vsel %vm3881_vm2, %v3862_v54, %v6214_v3  ;;  %v10430_v29 = vsel %vm3881_vm2, %v3957_v55, %v6215_v44  ;;  %v6208_v55 = vpop.permute.xlu1 %6207  ;;  %v10486_v46 = vpop.f32.mrf.mxu3 }
 0x3b0   :  { %v6261_v36 = vpack.i.bf16 %v2729_v5, %v13540_v17  ;;  %13982 = vst [vmem:[#allocation37_spill] sm:$0xff] %v10427_v39  ;;  %4116 = vmatmul.f32.gmra.mxu2 %v10427_v39  ;;  %4223 = vmatmul.f32.gmra.mxu3 %v10430_v29  ;;  %v5814_v5 = vunpack.i.l.bf16 %v13985_v50  ;;  %v6209_v24 = vunpack.i.l.bf16 %v6208_v55 }
 0x3b1   :  { %13983 = vst [vmem:[#allocation121_spill] sm:$0xff] %v10430_v29  ;;  %v1695_v51 = vpop.f32.mrf.mxu0 }
 0x3b2   :  { %v1696_v40 = vadd.f32 %v9905_v32, %v1695_v51  ;;  %v2312_v47 = vpop.f32.mrf.mxu1  ;;  %6262 = vrot.lane.b32.xlu0 %v6261_v36, %s6761_s17  ;;  %v2730_v32 = vmax.f32 %v10241_v22, 0.0  ;;  %v13986_v22 = vld [vmem:[#allocation95_spill] sm:$0xff]  ;;  %13990 = vst [vmem:[#allocation45_spill] sm:$0xff] %v10486_v46 }
 0x3b3   :  { %v5820_v51 = vunpack.i.h.bf16 %v13986_v22  ;;  %v13988_v22 = vmax.f32 %v10062_v28, 0.0  ;;  %v6738_v46 = vld [vmem:[%s13341_s0 + $0x488] sm:$0xff] }
 0x3b4   :  { %v10444_v16 = vadd.f32 %v2312_v47, %v1696_v40  ;;  %1742 = vmatmul.f32.gmra.mxu0 %v10044_v7  ;;  %v6729_v7 = vld [vmem:[%s13341_s0 + $0x440] sm:$0xff]  ;;  %v6223_v40 = vpop.permute.xlu2 %6222  ;;  %v6210_v47 = vunpack.i.h.bf16 %v6208_v55 }
 0x3b5   :  { %2359 = vmatmul.f32.gmra.mxu1 %v10442_v57  ;;  %v10462_v36 = vsel %vm1193_vm0, %v6729_v7, %v5814_v5  ;;  %v6225_v55 = vunpack.i.h.bf16 %v6223_v40  ;;  %v6224_v17 = vunpack.i.l.bf16 %v6223_v40 }
 0x3b6   :  { %v13539_v44 = vmax.f32 %v10444_v16, 0.0 }
 0x3b7   :  { %v6218_v29 = vpop.permute.xlu1 %6217 }
 0x3b8   :  { %v6266_v3 = vpack.i.bf16 %v2730_v32, %v13539_v44  ;;  %v3926_v44 = vsel %vm3816_vm1, %v13988_v22, %v6210_v47  ;;  %v6219_v40 = vunpack.i.l.bf16 %v6218_v29 }
 0x3b9   :  { %v10453_v54 = vpop.f32.mrf.mxu0  ;;  %v3958_v47 = vsel %vm1193_vm0, %v3926_v44, %v6225_v55  ;;  %v13995_v44 = vmax.f32 %v10080_v26, 0.0 }
 0x3ba   :  { %v10455_v8 = vpop.f32.mrf.mxu1  ;;  %6267 = vrot.lane.b32.xlu0 %v6266_v3, %s6761_s17  ;;  %v6730_v3 = vld [vmem:[%s13341_s0 + $0x448] sm:$0xff] }
 0x3bb   :  { %v10475_v5 = vsel %vm1193_vm0, %v6730_v3, %v5820_v51  ;;  %v13989_v51 = vld [vmem:[#allocation6_spill] sm:$0xff] }
 0x3bc   :  { %1745 = vmatmul.f32.gmra.mxu0 %v10060_v0  ;;  %v13987_v0 = vmax.f32 %v10051_v15, 0.0  ;;  %v5829_v3 = vunpack.i.l.bf16 %v13989_v51  ;;  %v10488_v15 = vpop.f32.mrf.mxu2 }
 0x3bd   :  { %2362 = vmatmul.f32.gmra.mxu1 %v10462_v36  ;;  %13991 = vst [vmem:[#allocation115_spill] sm:$0xff] %v10488_v15 }
 0x3be   :  { %v3831_v7 = vsel %vm3816_vm1, %v13987_v0, %v6209_v24  ;;  %v6220_v24 = vunpack.i.h.bf16 %v6218_v29 }
 0x3bf   :  { %v3863_v28 = vsel %vm1193_vm0, %v3831_v7, %v6224_v17  ;;  %v6731_v17 = vld [vmem:[%s13341_s0 + $0x450] sm:$0xff] }
 0x3c0   :  { %v10508_v29 = vsel %vm1193_vm0, %v6731_v17, %v5829_v3  ;;  %v3927_v7 = vsel %vm3816_vm1, %v13995_v44, %v6220_v24  ;;  %v5835_v3 = vunpack.i.h.bf16 %v13996_v34  ;;  %v10527_v24 = vpop.f32.mrf.mxu3 }
 0x3c1   :  { %v10467_v50 = vpop.f32.mrf.mxu0  ;;  %13999 = vst [vmem:[#allocation122_spill] sm:$0xff] %v10527_v24 }
 0x3c2   :  { %v10469_v32 = vpop.f32.mrf.mxu1 }
 0x3c4   :  { %1748 = vmatmul.f32.gmra.mxu0 %v10087_v20  ;;  %v6233_v39 = vpop.permute.xlu0 %6232 }
 0x3c5   :  { %2365 = vmatmul.f32.gmra.mxu1 %v10475_v5  ;;  %v6235_v48 = vunpack.i.h.bf16 %v6233_v39  ;;  %v6234_v53 = vunpack.i.l.bf16 %v6233_v39  ;;  %v6228_v39 = vpop.permute.xlu2 %6227 }
 0x3c6   :  { %v6230_v55 = vunpack.i.h.bf16 %v6228_v39 }
 0x3c7   :  { %v10493_v0 = vsel %vm3881_vm2, %v3863_v28, %v6234_v53  ;;  %v10496_v20 = vsel %vm3881_vm2, %v3958_v47, %v6235_v48  ;;  %v13994_v53 = vmax.f32 %v10076_v23, 0.0  ;;  %v6229_v28 = vunpack.i.l.bf16 %v6228_v39 }
 0x3c8   :  { %13992 = vst [vmem:[#allocation69_spill] sm:$0xff] %v10493_v0  ;;  %4119 = vmatmul.f32.gmra.mxu2 %v10493_v0  ;;  %4226 = vmatmul.f32.gmra.mxu3 %v10496_v20  ;;  %v3959_v23 = vsel %vm1193_vm0, %v3927_v7, %v6230_v55  ;;  %v6733_v55 = vld [vmem:[%s13341_s0 + $0x460] sm:$0xff] }
 0x3c9   :  { %13993 = vst [vmem:[#allocation117_spill] sm:$0xff] %v10496_v20  ;;  %v10500_v22 = vpop.f32.mrf.mxu0  ;;  %v3832_v48 = vsel %vm3816_vm1, %v13994_v53, %v6219_v40 }
 0x3ca   :  { %v10502_v51 = vpop.f32.mrf.mxu1  ;;  %v3864_v17 = vsel %vm1193_vm0, %v3832_v48, %v6229_v28 }
 0x3cc   :  { %1751 = vmatmul.f32.gmra.mxu0 %v10106_v58  ;;  %v6238_v47 = vpop.permute.xlu0 %6237  ;;  %v10529_v58 = vpop.f32.mrf.mxu2 }
 0x3cd   :  { %2368 = vmatmul.f32.gmra.mxu1 %v10508_v29  ;;  %v6240_v20 = vunpack.i.h.bf16 %v6238_v47  ;;  %v6239_v0 = vunpack.i.l.bf16 %v6238_v47  ;;  %14000 = vst [vmem:[#allocation70_spill] sm:$0xff] %v10529_v58  ;;  %v6737_v58 = vld [vmem:[%s13341_s0 + $0x480] sm:$0xff] }
 0x3cf   :  { %v10522_v40 = vsel %vm3881_vm2, %v3864_v17, %v6239_v0  ;;  %v10525_v26 = vsel %vm3881_vm2, %v3959_v23, %v6240_v20  ;;  %v6732_v0 = vld [vmem:[%s13341_s0 + $0x458] sm:$0xff]  ;;  %v14001_v20 = vld [vmem:[#allocation3_spill] sm:$0xff] }
 0x3d0   :  { %13997 = vst [vmem:[#allocation36_spill] sm:$0xff] %v10522_v40  ;;  %4122 = vmatmul.f32.gmra.mxu2 %v10522_v40  ;;  %4229 = vmatmul.f32.gmra.mxu3 %v10525_v26  ;;  %v10541_v53 = vsel %vm1193_vm0, %v6732_v0, %v5835_v3  ;;  %v5844_v48 = vunpack.i.l.bf16 %v14001_v20  ;;  %v6734_v23 = vld [vmem:[%s13341_s0 + $0x468] sm:$0xff]  ;;  %v6736_v40 = vld [vmem:[%s13341_s0 + $0x478] sm:$0xff] }
 0x3d1   :  { %13998 = vst [vmem:[#allocation71_spill] sm:$0xff] %v10525_v26  ;;  %v10533_v39 = vpop.f32.mrf.mxu0 }
 0x3d2   :  { %v10535_v34 = vpop.f32.mrf.mxu1  ;;  %v10554_v28 = vsel %vm1193_vm0, %v6733_v55, %v5844_v48 }
 0x3d4   :  { %1754 = vmatmul.f32.gmra.mxu0 %v10122_v41  ;;  %v14002_v41 = vld [vmem:[#allocation5_spill] sm:$0xff] }
 0x3d5   :  { %2371 = vmatmul.f32.gmra.mxu1 %v10541_v53  ;;  %v5850_v47 = vunpack.i.h.bf16 %v14002_v41  ;;  %v6735_v41 = vld [vmem:[%s13341_s0 + $0x470] sm:$0xff] }
 0x3d7   :  { %v10567_v0 = vsel %vm1193_vm0, %v6734_v23, %v5850_v47 }
 0x3d9   :  { %v10546_v44 = vpop.f32.mrf.mxu0 }
 0x3da   :  { %v10548_v7 = vpop.f32.mrf.mxu1 }
 0x3dc   :  { %1757 = vmatmul.f32.gmra.mxu0 %v10136_v49  ;;  %v14003_v49 = vld [vmem:[#allocation101_spill] sm:$0xff] }
 0x3dd   :  { %2374 = vmatmul.f32.gmra.mxu1 %v10554_v28  ;;  %v5859_v20 = vunpack.i.l.bf16 %v14003_v49 }
 0x3df   :  { %v10580_v26 = vsel %vm1193_vm0, %v6735_v41, %v5859_v20 }
 0x3e1   :  { %v10559_v3 = vpop.f32.mrf.mxu0 }
 0x3e2   :  { %v10561_v17 = vpop.f32.mrf.mxu1 }
 0x3e4   :  { %1760 = vmatmul.f32.gmra.mxu0 %v10158_v18  ;;  %v14004_v18 = vld [vmem:[#allocation9_spill] sm:$0xff] }
 0x3e5   :  { %2377 = vmatmul.f32.gmra.mxu1 %v10567_v0  ;;  %v5865_v47 = vunpack.i.h.bf16 %v14004_v18 }
 0x3e7   :  { %v10593_v24 = vsel %vm1193_vm0, %v6736_v40, %v5865_v47 }
 0x3e9   :  { %v10572_v48 = vpop.f32.mrf.mxu0 }
 0x3ea   :  { %v10574_v55 = vpop.f32.mrf.mxu1 }
 0x3ec   :  { %1763 = vmatmul.f32.gmra.mxu0 %v10174_v59  ;;  %v14005_v59 = vld [vmem:[#allocation33_spill] sm:$0xff] }
 0x3ed   :  { %2380 = vmatmul.f32.gmra.mxu1 %v10580_v26  ;;  %v5874_v20 = vunpack.i.l.bf16 %v14005_v59 }
 0x3ef   :  { %v10606_v9 = vsel %vm1193_vm0, %v6737_v58, %v5874_v20 }
 0x3f0   :  { %14006 = vst [vmem:[#allocation29_spill] sm:$0xff] %v10606_v9 }
 0x3f1   :  { %v10585_v23 = vpop.f32.mrf.mxu0 }
 0x3f2   :  { %v10587_v49 = vpop.f32.mrf.mxu1 }
 0x3f4   :  { %1766 = vmatmul.f32.gmra.mxu0 %v10196_v63  ;;  %v14007_v63 = vld [vmem:[#allocation24_spill] sm:$0xff] }
 0x3f5   :  { %2383 = vmatmul.f32.gmra.mxu1 %v10593_v24  ;;  %v5880_v40 = vunpack.i.h.bf16 %v14007_v63 }
 0x3f7   :  { %v10619_v15 = vsel %vm1193_vm0, %v6738_v46, %v5880_v40 }
 0x3f8   :  { %14008 = vst [vmem:[#allocation75_spill] sm:$0xff] %v10619_v15 }
 0x3f9   :  { %v10598_v41 = vpop.f32.mrf.mxu0 }
 0x3fa   :  { %v10600_v18 = vpop.f32.mrf.mxu1 }
 0x3fc   :  { %1769 = vmatmul.f32.gmra.mxu0 %v10209_v2  ;;  %v14009_v2 = vld [vmem:[#allocation7_spill] sm:$0xff] }
 0x3fd   :  { %2386 = vmatmul.f32.gmra.mxu1 %v10606_v9  ;;  %v5889_v58 = vunpack.i.l.bf16 %v14009_v2 }
 0x3ff   :  { %v10632_v38 = vsel %vm1193_vm0, %v6739_v11, %v5889_v58  ;;  %v10653_v58 = vld [vmem:[%s13343_s2] ss:$0 sm:$0xff] }
 0x400   :  { %14010 = vst [vmem:[#allocation59_spill] sm:$0xff] %v10632_v38 }
 0x401   :  { %v10611_v47 = vpop.f32.mrf.mxu0 }
 0x402   :  { %v10613_v59 = vpop.f32.mrf.mxu1 }
 0x404   :  { %1772 = vmatmul.f32.gmra.mxu0 %v10224_v31  ;;  %v14011_v31 = vld [vmem:[#allocation60_spill] sm:$0xff] }
 0x405   :  { %2389 = vmatmul.f32.gmra.mxu1 %v10619_v15  ;;  %v5895_v46 = vunpack.i.h.bf16 %v14011_v31  ;;  %v1675_v31 = vadd.f32 %v10653_v58, %v10252_v6  ;;  %v5909_v6 = vunpack.i.l.bf16 %v14017_v52  ;;  %v14021_v15 = vld [vmem:[#allocation50_spill] sm:$0xff] }
 0x406   :  { %v5914_v9 = vunpack.i.l.bf16 %v14021_v15 }
 0x407   :  { %v10645_v12 = vsel %vm1193_vm0, %v6740_v27, %v5895_v46  ;;  %v6243_v46 = vpop.permute.xlu1 %6242 }
 0x408   :  { %14012 = vst [vmem:[#allocation73_spill] sm:$0xff] %v10645_v12  ;;  %v6245_v42 = vunpack.i.h.bf16 %v6243_v46  ;;  %v6244_v35 = vunpack.i.l.bf16 %v6243_v46 }
 0x409   :  { %v10624_v20 = vpop.f32.mrf.mxu0 }
 0x40a   :  { %v10626_v63 = vpop.f32.mrf.mxu1 }
 0x40c   :  { %1775 = vmatmul.f32.gmra.mxu0 %v10233_v13  ;;  %v14013_v13 = vld [vmem:[#allocation21_spill] sm:$0xff] }
 0x40d   :  { %2392 = vmatmul.f32.gmra.mxu1 %v10632_v38  ;;  %v5904_v11 = vunpack.i.l.bf16 %v14013_v13  ;;  %v2292_v13 = vadd.f32 %v10256_v10, %v1675_v31  ;;  %v1678_v38 = vadd.f32 %v10653_v58, %v10268_v61  ;;  %v14020_v31 = vmax.f32 %v10138_v60, 0.0 }
 0x411   :  { %v10637_v40 = vpop.f32.mrf.mxu0 }
 0x412   :  { %v10639_v2 = vpop.f32.mrf.mxu1 }
 0x414   :  { %1778 = vmatmul.f32.gmra.mxu0 %v10248_v4  ;;  %v6742_v4 = vld [vmem:[%s13341_s0 + $0x4a0] sm:$0xff] }
 0x415   :  { %2395 = vmatmul.f32.gmra.mxu1 %v10645_v12  ;;  %v10665_v27 = vsel %vm1193_vm0, %v6742_v4, %v5904_v11  ;;  %v3928_v4 = vsel %vm3816_vm1, %v14020_v31, %v6245_v42  ;;  %v10695_v42 = vpop.f32.mrf.mxu2 }
 0x416   :  { %14016 = vst [vmem:[#allocation84_spill] sm:$0xff] %v10665_v27 }
 0x417   :  { %14022 = vst [vmem:[#allocation79_spill] sm:$0xff] %v10695_v42 }
 0x419   :  { %v10657_v62 = vpop.f32.mrf.mxu0 }
 0x41a   :  { %14014 = vst [vmem:[#allocation77_spill] sm:$0xff] %v10657_v62  ;;  %v10659_v43 = vpop.f32.mrf.mxu1  ;;  %v6253_v62 = vpop.permute.xlu2 %6252 }
 0x41b   :  { %14015 = vst [vmem:[#allocation15_spill] sm:$0xff] %v10659_v43  ;;  %v2731_v43 = vmax.f32 %v2292_v13, 0.0  ;;  %v6255_v46 = vunpack.i.h.bf16 %v6253_v62  ;;  %v6254_v13 = vunpack.i.l.bf16 %v6253_v62 }
 0x41c   :  { %1781 = vmatmul.f32.gmra.mxu0 %v10262_v1  ;;  %v6743_v1 = vld [vmem:[%s13341_s0 + $0x4a8] sm:$0xff] }
 0x41d   :  { %2398 = vmatmul.f32.gmra.mxu1 %v10665_v27  ;;  %v10681_v10 = vsel %vm1193_vm0, %v6743_v1, %v5909_v6  ;;  %v3833_v52 = vsel %vm3816_vm1, %v2731_v43, %v6244_v35  ;;  %v10690_v6 = vpop.f32.mrf.mxu3  ;;  %v2295_v43 = vadd.f32 %v10272_v37, %v1678_v38  ;;  %v3960_v35 = vsel %vm1193_vm0, %v3928_v4, %v6255_v46 }
 0x41e   :  { %v3865_v60 = vsel %vm1193_vm0, %v3833_v52, %v6254_v13  ;;  %v14025_v13 = vmax.f32 %v10151_v33, 0.0  ;;  %v14027_v33 = vmax.f32 %v10407_v45, 0.0  ;;  %v6745_v45 = vld [vmem:[%s13341_s0 + $0x4b8] sm:$0xff] }
 0x41f   :  { %v2732_v37 = vmax.f32 %v2295_v43, 0.0 }
 0x421   :  { %v10671_v12 = vpop.f32.mrf.mxu0 }
 0x422   :  { %14018 = vst [vmem:[#allocation18_spill] sm:$0xff] %v10671_v12  ;;  %v10675_v11 = vpop.f32.mrf.mxu1  ;;  %v6248_v12 = vpop.permute.xlu1 %6247 }
 0x423   :  { %14019 = vst [vmem:[#allocation13_spill] sm:$0xff] %v10675_v11  ;;  %v6250_v1 = vunpack.i.h.bf16 %v6248_v12  ;;  %v6249_v31 = vunpack.i.l.bf16 %v6248_v12  ;;  %v6258_v38 = vpop.permute.xlu2 %6257 }
 0x424   :  { %1784 = vmatmul.f32.gmra.mxu0 %v10278_v30  ;;  %v6263_v61 = vpop.permute.xlu0 %6262  ;;  %v6260_v43 = vunpack.i.h.bf16 %v6258_v38 }
 0x425   :  { %2401 = vmatmul.f32.gmra.mxu1 %v10681_v10  ;;  %v6265_v11 = vunpack.i.h.bf16 %v6263_v61  ;;  %v6264_v27 = vunpack.i.l.bf16 %v6263_v61  ;;  %v3834_v12 = vsel %vm3816_vm1, %v2732_v37, %v6249_v31  ;;  %v3929_v61 = vsel %vm3816_vm1, %v14025_v13, %v6250_v1  ;;  %v14029_v13 = vld [vmem:[#allocation76_spill] sm:$0xff] }
 0x427   :  { %v10698_v30 = vsel %vm3881_vm2, %v3865_v60, %v6264_v27  ;;  %v10701_v62 = vsel %vm3881_vm2, %v3960_v35, %v6265_v11  ;;  %v6744_v27 = vld [vmem:[%s13341_s0 + $0x4b0] sm:$0xff]  ;;  %v6259_v60 = vunpack.i.l.bf16 %v6258_v38  ;;  %v10731_v38 = vpop.f32.mrf.mxu2 }
 0x428   :  { %14023 = vst [vmem:[#allocation89_spill] sm:$0xff] %v10698_v30  ;;  %4125 = vmatmul.f32.gmra.mxu2 %v10698_v30  ;;  %4232 = vmatmul.f32.gmra.mxu3 %v10701_v62  ;;  %v10710_v46 = vsel %vm1193_vm0, %v6744_v27, %v5914_v9 }
 0x429   :  { %14024 = vst [vmem:[#allocation87_spill] sm:$0xff] %v10701_v62  ;;  %v1740_v15 = vpop.f32.mrf.mxu0 }
 0x42a   :  { %v1741_v52 = vadd.f32 %v10653_v58, %v1740_v15  ;;  %v2357_v4 = vpop.f32.mrf.mxu1  ;;  %v14026_v15 = vld [vmem:[#allocation10_spill] sm:$0xff]  ;;  %14028 = vst [vmem:[#allocation93_spill] sm:$0xff] %v10731_v38 }
 0x42b   :  { %v5919_v42 = vunpack.i.l.bf16 %v14026_v15  ;;  %v14030_v15 = vmax.f32 %v10444_v16, 0.0  ;;  %v14031_v16 = vld [vmem:[#allocation26_spill] sm:$0xff] }
 0x42c   :  { %v2358_v11 = vadd.f32 %v2357_v4, %v1741_v52  ;;  %1787 = vmatmul.f32.gmra.mxu0 %v10307_v21  ;;  %v6268_v35 = vpop.permute.xlu0 %6267  ;;  %v3866_v52 = vsel %vm1193_vm0, %v3834_v12, %v6259_v60  ;;  %v3961_v21 = vsel %vm1193_vm0, %v3929_v61, %v6260_v43  ;;  %v10721_v4 = vpop.f32.mrf.mxu3  ;;  %v5924_v61 = vunpack.i.l.bf16 %v14029_v13 }
 0x42d   :  { %2404 = vmatmul.f32.gmra.mxu1 %v10710_v46  ;;  %v6270_v30 = vunpack.i.h.bf16 %v6268_v35  ;;  %v6269_v9 = vunpack.i.l.bf16 %v6268_v35  ;;  %v1699_v43 = vadd.f32 %v10653_v58, %v10453_v54  ;;  %v192_v35 = vld [vmem:[%s13341_s0 + $0x4d0] sm:$0xff] }
 0x42e   :  { %v2753_v62 = vmax.f32 %v2358_v11, 0.0 }
 0x42f   :  { %v10726_v1 = vsel %vm3881_vm2, %v3866_v52, %v6269_v9  ;;  %v10729_v37 = vsel %vm3881_vm2, %v3961_v21, %v6270_v30  ;;  %v10754_v52 = vadd.f32 %v10455_v8, %v1699_v43  ;;  %v1702_v8 = vadd.f32 %v10653_v58, %v10467_v50 }
 0x430   :  { %v6271_v31 = vpack.i.bf16 %v2753_v62, %v14027_v33  ;;  %4128 = vmatmul.f32.gmra.mxu2 %v10726_v1  ;;  %4235 = vmatmul.f32.gmra.mxu3 %v10729_v37  ;;  %v10741_v62 = vsel %vm1193_vm0, %v6745_v45, %v5919_v42  ;;  %v10759_v33 = vsel %vm1193_vm0, %v192_v35, %v5924_v61 }
 0x431   :  { %v1743_v27 = vpop.f32.mrf.mxu0 }
 0x432   :  { %v1744_v11 = vadd.f32 %v10653_v58, %v1743_v27  ;;  %v2360_v12 = vpop.f32.mrf.mxu1  ;;  %6272 = vrot.lane.b32.xlu1 %v6271_v31, %s6762_s18  ;;  %v5929_v31 = vunpack.i.l.bf16 %v14031_v16  ;;  %v13569_v27 = vmax.f32 %v10754_v52, 0.0 }
 0x434   :  { %v2361_v30 = vadd.f32 %v2360_v12, %v1744_v11  ;;  %1790 = vmatmul.f32.gmra.mxu0 %v10338_v56  ;;  %v193_v12 = vld [vmem:[%s13341_s0 + $0x4d8] sm:$0xff] }
 0x435   :  { %2407 = vmatmul.f32.gmra.mxu1 %v10741_v62  ;;  %v10783_v50 = vsel %vm1193_vm0, %v193_v12, %v5929_v31  ;;  %v6746_v31 = vld [vmem:[%s13341_s0 + $0x4e0] sm:$0xff] }
 0x436   :  { %v2754_v60 = vmax.f32 %v2361_v30, 0.0  ;;  %v10778_v30 = vadd.f32 %v10469_v32, %v1702_v8  ;;  %v1705_v32 = vadd.f32 %v10653_v58, %v10500_v22  ;;  %v14033_v12 = vld [vmem:[#allocation34_spill] sm:$0xff] }
 0x438   :  { %v6276_v9 = vpack.i.bf16 %v2754_v60, %v14030_v15  ;;  %v14032_v60 = vld [vmem:[#allocation35_spill] sm:$0xff]  ;;  %v13567_v15 = vmax.f32 %v10778_v30, 0.0 }
 0x439   :  { %v1746_v42 = vpop.f32.mrf.mxu0  ;;  %v5934_v35 = vunpack.i.l.bf16 %v14032_v60 }
 0x43a   :  { %v1747_v56 = vadd.f32 %v10653_v58, %v1746_v42  ;;  %v2363_v21 = vpop.f32.mrf.mxu1  ;;  %6277 = vrot.lane.b32.xlu1 %v6276_v9, %s6762_s18 }
 0x43b   :  { %v10805_v22 = vsel %vm1193_vm0, %v6746_v31, %v5934_v35 }
 0x43c   :  { %v10761_v54 = vadd.f32 %v2363_v21, %v1747_v56  ;;  %1793 = vmatmul.f32.gmra.mxu0 %v10351_v25  ;;  %v2322_v21 = vadd.f32 %v10502_v51, %v1705_v32 }
 0x43d   :  { %2410 = vmatmul.f32.gmra.mxu1 %v10759_v33 }
 0x43e   :  { %v13568_v11 = vmax.f32 %v10761_v54, 0.0  ;;  %v2741_v51 = vmax.f32 %v2322_v21, 0.0 }
 0x440   :  { %v6281_v25 = vpack.i.bf16 %v13568_v11, %v13569_v27  ;;  %v11031_v27 = vpop.f32.mrf.mxu2 }
 0x441   :  { %v1749_v45 = vpop.f32.mrf.mxu0 }
 0x442   :  { %v1750_v13 = vadd.f32 %v10653_v58, %v1749_v45  ;;  %v2366_v61 = vpop.f32.mrf.mxu1  ;;  %6282 = vrot.lane.b32.xlu2 %v6281_v25, %s6760_s29  ;;  %v5939_v25 = vunpack.i.l.bf16 %v14033_v12  ;;  %v1708_v45 = vadd.f32 %v10653_v58, %v10533_v39 }
 0x444   :  { %v10785_v43 = vadd.f32 %v2366_v61, %v1750_v13  ;;  %1796 = vmatmul.f32.gmra.mxu0 %v10368_v19  ;;  %v2325_v32 = vadd.f32 %v10535_v34, %v1708_v45  ;;  %v14034_v34 = vld [vmem:[#allocation104_spill] sm:$0xff] }
 0x445   :  { %2413 = vmatmul.f32.gmra.mxu1 %v10783_v50  ;;  %v5944_v21 = vunpack.i.l.bf16 %v14034_v34 }
 0x446   :  { %v13566_v9 = vmax.f32 %v10785_v43, 0.0 }
 0x448   :  { %v6286_v42 = vpack.i.bf16 %v13566_v9, %v13567_v15  ;;  %v14059_v9 = vld [vmem:[#allocation13_spill] sm:$0xff] }
 0x449   :  { %v1752_v56 = vpop.f32.mrf.mxu0 }
 0x44a   :  { %v1753_v19 = vadd.f32 %v10653_v58, %v1752_v56  ;;  %v2369_v16 = vpop.f32.mrf.mxu1  ;;  %6287 = vrot.lane.b32.xlu2 %v6286_v42, %s6760_s29 }
 0x44c   :  { %v2370_v8 = vadd.f32 %v2369_v16, %v1753_v19  ;;  %1799 = vmatmul.f32.gmra.mxu0 %v10405_v14  ;;  %v6747_v14 = vld [vmem:[%s13341_s0 + $0x4e8] sm:$0xff]  ;;  %v2742_v19 = vmax.f32 %v2325_v32, 0.0  ;;  %v1711_v16 = vadd.f32 %v10653_v58, %v10546_v44  ;;  %v1714_v32 = vadd.f32 %v10653_v58, %v10559_v3  ;;  %v6749_v3 = vld [vmem:[%s13341_s0 + $0x4f8] sm:$0xff] }
 0x44d   :  { %2416 = vmatmul.f32.gmra.mxu1 %v10805_v22  ;;  %v10820_v56 = vsel %vm1193_vm0, %v6747_v14, %v5939_v25 }
 0x44e   :  { %v2757_v13 = vmax.f32 %v2370_v8, 0.0 }
 0x450   :  { %v6296_v61 = vpack.i.bf16 %v2757_v13, %v2741_v51  ;;  %v10828_v51 = vadd.f32 %v10548_v7, %v1711_v16  ;;  %v14035_v7 = vld [vmem:[#allocation105_spill] sm:$0xff] }
 0x451   :  { %v1755_v60 = vpop.f32.mrf.mxu0 }
 0x452   :  { %v1756_v42 = vadd.f32 %v10653_v58, %v1755_v60  ;;  %v2372_v35 = vpop.f32.mrf.mxu1  ;;  %6297 = vrot.lane.b32.xlu1 %v6296_v61, %s6762_s18  ;;  %6292 = vrot.lane.b32.xlu0 %v6296_v61, %s6761_s17  ;;  %v5949_v61 = vunpack.i.l.bf16 %v14035_v7  ;;  %v13565_v60 = vmax.f32 %v10828_v51, 0.0 }
 0x454   :  { %v2373_v39 = vadd.f32 %v2372_v35, %v1756_v42  ;;  %1802 = vmatmul.f32.gmra.mxu0 %v10442_v57  ;;  %v6748_v57 = vld [vmem:[%s13341_s0 + $0x4f0] sm:$0xff] }
 0x455   :  { %2419 = vmatmul.f32.gmra.mxu1 %v10820_v56  ;;  %v10837_v13 = vsel %vm1193_vm0, %v6748_v57, %v5944_v21  ;;  %v10861_v21 = vsel %vm1193_vm0, %v6749_v3, %v5949_v61  ;;  %v6750_v61 = vld [vmem:[%s13341_s0 + $0x500] sm:$0xff] }
 0x456   :  { %v2758_v31 = vmax.f32 %v2373_v39, 0.0  ;;  %v10853_v39 = vadd.f32 %v10561_v17, %v1714_v32  ;;  %v14036_v17 = vld [vmem:[#allocation28_spill] sm:$0xff] }
 0x457   :  { %v5954_v16 = vunpack.i.l.bf16 %v14036_v17 }
 0x458   :  { %v6306_v8 = vpack.i.bf16 %v2758_v31, %v2742_v19  ;;  %v13563_v31 = vmax.f32 %v10853_v39, 0.0 }
 0x459   :  { %v1758_v12 = vpop.f32.mrf.mxu0 }
 0x45a   :  { %v1759_v25 = vadd.f32 %v10653_v58, %v1758_v12  ;;  %v2375_v45 = vpop.f32.mrf.mxu1  ;;  %6307 = vrot.lane.b32.xlu1 %v6306_v8, %s6762_s18  ;;  %6302 = vrot.lane.b32.xlu0 %v6306_v8, %s6761_s17  ;;  %v1717_v8 = vadd.f32 %v10653_v58, %v10572_v48  ;;  %v10883_v48 = vsel %vm1193_vm0, %v6750_v61, %v5954_v16 }
 0x45c   :  { %v10839_v44 = vadd.f32 %v2375_v45, %v1759_v25  ;;  %1805 = vmatmul.f32.gmra.mxu0 %v10462_v36  ;;  %v2334_v57 = vadd.f32 %v10574_v55, %v1717_v8 }
 0x45d   :  { %2422 = vmatmul.f32.gmra.mxu1 %v10837_v13 }
 0x45e   :  { %v13564_v42 = vmax.f32 %v10839_v44, 0.0  ;;  %v2745_v55 = vmax.f32 %v2334_v57, 0.0 }
 0x460   :  { %v6311_v35 = vpack.i.bf16 %v13564_v42, %v13565_v60 }
 0x461   :  { %v1761_v14 = vpop.f32.mrf.mxu0 }
 0x462   :  { %v1762_v36 = vadd.f32 %v10653_v58, %v1761_v14  ;;  %v2378_v34 = vpop.f32.mrf.mxu1  ;;  %6312 = vrot.lane.b32.xlu2 %v6311_v35, %s6760_s29  ;;  %v14037_v35 = vld [vmem:[#allocation108_spill] sm:$0xff] }
 0x463   :  { %v5959_v14 = vunpack.i.l.bf16 %v14037_v35 }
 0x464   :  { %v10863_v19 = vadd.f32 %v2378_v34, %v1762_v36  ;;  %1808 = vmatmul.f32.gmra.mxu0 %v10475_v5  ;;  %v1720_v36 = vadd.f32 %v10653_v58, %v10585_v23 }
 0x465   :  { %2425 = vmatmul.f32.gmra.mxu1 %v10861_v21 }
 0x466   :  { %v13562_v12 = vmax.f32 %v10863_v19, 0.0  ;;  %v2337_v8 = vadd.f32 %v10587_v49, %v1720_v36  ;;  %v14038_v49 = vld [vmem:[#allocation109_spill] sm:$0xff] }
 0x467   :  { %v5964_v57 = vunpack.i.l.bf16 %v14038_v49 }
 0x468   :  { %v6316_v25 = vpack.i.bf16 %v13562_v12, %v13563_v31 }
 0x469   :  { %v1764_v45 = vpop.f32.mrf.mxu0 }
 0x46a   :  { %v1765_v5 = vadd.f32 %v10653_v58, %v1764_v45  ;;  %v2381_v7 = vpop.f32.mrf.mxu1  ;;  %6317 = vrot.lane.b32.xlu2 %v6316_v25, %s6760_s29 }
 0x46c   :  { %v2382_v32 = vadd.f32 %v2381_v7, %v1765_v5  ;;  %1811 = vmatmul.f32.gmra.mxu0 %v10508_v29  ;;  %v6751_v29 = vld [vmem:[%s13341_s0 + $0x508] sm:$0xff]  ;;  %v2746_v5 = vmax.f32 %v2337_v8, 0.0  ;;  %v1723_v7 = vadd.f32 %v10653_v58, %v10598_v41  ;;  %v1726_v8 = vadd.f32 %v10653_v58, %v10611_v47 }
 0x46d   :  { %2428 = vmatmul.f32.gmra.mxu1 %v10883_v48  ;;  %v10898_v45 = vsel %vm1193_vm0, %v6751_v29, %v5959_v14 }
 0x46e   :  { %v2761_v34 = vmax.f32 %v2382_v32, 0.0 }
 0x470   :  { %v6326_v3 = vpack.i.bf16 %v2761_v34, %v2745_v55  ;;  %v2340_v55 = vadd.f32 %v10600_v18, %v1723_v7  ;;  %v14039_v18 = vld [vmem:[#allocation110_spill] sm:$0xff]  ;;  %v14040_v7 = vld [vmem:[#allocation43_spill] sm:$0xff] }
 0x471   :  { %v1767_v17 = vpop.f32.mrf.mxu0 }
 0x472   :  { %v1768_v25 = vadd.f32 %v10653_v58, %v1767_v17  ;;  %v2384_v16 = vpop.f32.mrf.mxu1  ;;  %6327 = vrot.lane.b32.xlu1 %v6326_v3, %s6762_s18  ;;  %6322 = vrot.lane.b32.xlu0 %v6326_v3, %s6761_s17  ;;  %v5969_v3 = vunpack.i.l.bf16 %v14039_v18  ;;  %v2747_v17 = vmax.f32 %v2340_v55, 0.0 }
 0x474   :  { %v2385_v23 = vadd.f32 %v2384_v16, %v1768_v25  ;;  %1814 = vmatmul.f32.gmra.mxu0 %v10541_v53  ;;  %v6752_v53 = vld [vmem:[%s13341_s0 + $0x510] sm:$0xff] }
 0x475   :  { %2431 = vmatmul.f32.gmra.mxu1 %v10898_v45  ;;  %v10913_v34 = vsel %vm1193_vm0, %v6752_v53, %v5964_v57 }
 0x476   :  { %v2762_v61 = vmax.f32 %v2385_v23, 0.0  ;;  %v2343_v23 = vadd.f32 %v10613_v59, %v1726_v8  ;;  %v5974_v59 = vunpack.i.l.bf16 %v14040_v7 }
 0x478   :  { %v6336_v32 = vpack.i.bf16 %v2762_v61, %v2746_v5  ;;  %v2748_v61 = vmax.f32 %v2343_v23, 0.0 }
 0x479   :  { %v1770_v35 = vpop.f32.mrf.mxu0 }
 0x47a   :  { %v1771_v36 = vadd.f32 %v10653_v58, %v1770_v35  ;;  %v2387_v14 = vpop.f32.mrf.mxu1  ;;  %6337 = vrot.lane.b32.xlu1 %v6336_v32, %s6762_s18  ;;  %6332 = vrot.lane.b32.xlu0 %v6336_v32, %s6761_s17  ;;  %v1729_v32 = vadd.f32 %v10653_v58, %v10624_v20 }
 0x47c   :  { %v10915_v41 = vadd.f32 %v2387_v14, %v1771_v36  ;;  %1817 = vmatmul.f32.gmra.mxu0 %v10554_v28  ;;  %v6753_v28 = vld [vmem:[%s13341_s0 + $0x518] sm:$0xff]  ;;  %v2346_v14 = vadd.f32 %v10626_v63, %v1729_v32 }
 0x47d   :  { %2434 = vmatmul.f32.gmra.mxu1 %v10913_v34  ;;  %v10932_v5 = vsel %vm1193_vm0, %v6753_v28, %v5969_v3 }
 0x47e   :  { %v13561_v25 = vmax.f32 %v10915_v41, 0.0  ;;  %v2749_v8 = vmax.f32 %v2346_v14, 0.0 }
 0x480   :  { %v6341_v16 = vpack.i.bf16 %v13561_v25, %v2747_v17  ;;  %v14041_v17 = vld [vmem:[#allocation8_spill] sm:$0xff] }
 0x481   :  { %v1773_v29 = vpop.f32.mrf.mxu0  ;;  %v5979_v63 = vunpack.i.l.bf16 %v14041_v17 }
 0x482   :  { %v1774_v49 = vadd.f32 %v10653_v58, %v1773_v29  ;;  %v2390_v57 = vpop.f32.mrf.mxu1  ;;  %6342 = vrot.lane.b32.xlu2 %v6341_v16, %s6760_s29  ;;  %v1732_v16 = vadd.f32 %v10653_v58, %v10637_v40 }
 0x484   :  { %v10934_v47 = vadd.f32 %v2390_v57, %v1774_v49  ;;  %1820 = vmatmul.f32.gmra.mxu0 %v10567_v0  ;;  %v6754_v0 = vld [vmem:[%s13341_s0 + $0x520] sm:$0xff]  ;;  %v2349_v57 = vadd.f32 %v10639_v2, %v1732_v16 }
 0x485   :  { %2437 = vmatmul.f32.gmra.mxu1 %v10932_v5  ;;  %v10951_v3 = vsel %vm1193_vm0, %v6754_v0, %v5974_v59 }
 0x486   :  { %v13560_v35 = vmax.f32 %v10934_v47, 0.0  ;;  %v2750_v32 = vmax.f32 %v2349_v57, 0.0  ;;  %v14044_v57 = vld [vmem:[#allocation75_spill] sm:$0xff] }
 0x488   :  { %v6346_v55 = vpack.i.bf16 %v13560_v35, %v2748_v61  ;;  %v14042_v61 = vld [vmem:[#allocation39_spill] sm:$0xff]  ;;  %v14054_v35 = vld [vmem:[#allocation18_spill] sm:$0xff] }
 0x489   :  { %v1776_v36 = vpop.f32.mrf.mxu0  ;;  %v5984_v2 = vunpack.i.l.bf16 %v14042_v61  ;;  %v1738_v25 = vadd.f32 %v10653_v58, %v14054_v35 }
 0x48a   :  { %v1777_v53 = vadd.f32 %v10653_v58, %v1776_v36  ;;  %v2393_v18 = vpop.f32.mrf.mxu1  ;;  %6347 = vrot.lane.b32.xlu2 %v6346_v55, %s6760_s29 }
 0x48b   :  { %v2355_v35 = vadd.f32 %v14059_v9, %v1738_v25 }
 0x48c   :  { %v10953_v20 = vadd.f32 %v2393_v18, %v1777_v53  ;;  %1823 = vmatmul.f32.gmra.mxu0 %v10580_v26  ;;  %v6755_v26 = vld [vmem:[%s13341_s0 + $0x528] sm:$0xff] }
 0x48d   :  { %2440 = vmatmul.f32.gmra.mxu1 %v10951_v3  ;;  %v10970_v59 = vsel %vm1193_vm0, %v6755_v26, %v5979_v63  ;;  %v14043_v63 = vld [vmem:[#allocation29_spill] sm:$0xff] }
 0x48e   :  { %v13571_v29 = vmax.f32 %v10953_v20, 0.0 }
 0x490   :  { %v6351_v23 = vpack.i.bf16 %v13571_v29, %v2749_v8 }
 0x491   :  { %v1779_v49 = vpop.f32.mrf.mxu0 }
 0x492   :  { %v1780_v28 = vadd.f32 %v10653_v58, %v1779_v49  ;;  %v2396_v7 = vpop.f32.mrf.mxu1  ;;  %6352 = vrot.lane.b32.xlu0 %v6351_v23, %s6761_s17 }
 0x494   :  { %v10972_v40 = vadd.f32 %v2396_v7, %v1780_v28  ;;  %1826 = vmatmul.f32.gmra.mxu0 %v10593_v24  ;;  %v6756_v24 = vld [vmem:[%s13341_s0 + $0x530] sm:$0xff]  ;;  %v14045_v28 = vld [vmem:[#allocation78_spill] sm:$0xff] }
 0x495   :  { %2443 = vmatmul.f32.gmra.mxu1 %v10970_v59  ;;  %v10986_v0 = vsel %vm1193_vm0, %v6756_v24, %v5984_v2 }
 0x496   :  { %v13570_v55 = vmax.f32 %v10972_v40, 0.0 }
 0x498   :  { %v6356_v36 = vpack.i.bf16 %v13570_v55, %v2750_v32  ;;  %v14046_v32 = vld [vmem:[#allocation59_spill] sm:$0xff] }
 0x499   :  { %v1782_v14 = vpop.f32.mrf.mxu0 }
 0x49a   :  { %v1783_v53 = vadd.f32 %v10653_v58, %v1782_v14  ;;  %v2399_v18 = vpop.f32.mrf.mxu1  ;;  %6357 = vrot.lane.b32.xlu0 %v6356_v36, %s6761_s17  ;;  %v14047_v36 = vld [vmem:[#allocation82_spill] sm:$0xff] }
 0x49c   :  { %v10988_v17 = vadd.f32 %v2399_v18, %v1783_v53  ;;  %1829 = vmatmul.f32.gmra.mxu0 %v14043_v63  ;;  %v14048_v63 = vld [vmem:[#allocation73_spill] sm:$0xff] }
 0x49d   :  { %2446 = vmatmul.f32.gmra.mxu1 %v10986_v0 }
 0x4a1   :  { %v1785_v8 = vpop.f32.mrf.mxu0 }
 0x4a2   :  { %v1786_v16 = vadd.f32 %v10653_v58, %v1785_v8  ;;  %v2402_v23 = vpop.f32.mrf.mxu1  ;;  %v14049_v8 = vld [vmem:[#allocation85_spill] sm:$0xff] }
 0x4a4   :  { %v10993_v49 = vadd.f32 %v2402_v23, %v1786_v16  ;;  %1832 = vmatmul.f32.gmra.mxu0 %v14044_v57  ;;  %v14050_v23 = vld [vmem:[#allocation77_spill] sm:$0xff] }
 0x4a5   :  { %2449 = vmatmul.f32.gmra.mxu1 %v14045_v28  ;;  %v1735_v57 = vadd.f32 %v10653_v58, %v14050_v23  ;;  %v14055_v23 = vld [vmem:[#allocation67_spill] sm:$0xff] }
 0x4a6   :  { %v14056_v31 = vmax.f32 %v14055_v23, 0.0 }
 0x4a9   :  { %v1788_v7 = vpop.f32.mrf.mxu0 }
 0x4aa   :  { %v1789_v26 = vadd.f32 %v10653_v58, %v1788_v7  ;;  %v2405_v61 = vpop.f32.mrf.mxu1  ;;  %v6273_v7 = vpop.permute.xlu1 %6272 }
 0x4ac   :  { %v10998_v2 = vadd.f32 %v2405_v61, %v1789_v26  ;;  %1835 = vmatmul.f32.gmra.mxu0 %v14046_v32  ;;  %v14051_v26 = vld [vmem:[#allocation84_spill] sm:$0xff]  ;;  %v14053_v32 = vld [vmem:[#allocation15_spill] sm:$0xff] }
 0x4ad   :  { %2452 = vmatmul.f32.gmra.mxu1 %v14047_v36  ;;  %v14052_v61 = vld [vmem:[#allocation88_spill] sm:$0xff]  ;;  %v2352_v36 = vadd.f32 %v14053_v32, %v1735_v57 }
 0x4b1   :  { %v1791_v14 = vpop.f32.mrf.mxu0 }
 0x4b2   :  { %v1792_v53 = vadd.f32 %v10653_v58, %v1791_v14  ;;  %v2408_v18 = vpop.f32.mrf.mxu1  ;;  %v6283_v14 = vpop.permute.xlu2 %6282 }
 0x4b3   :  { %v6285_v57 = vunpack.i.h.bf16 %v6283_v14  ;;  %v6284_v32 = vunpack.i.l.bf16 %v6283_v14  ;;  %v6278_v42 = vpop.permute.xlu1 %6277 }
 0x4b4   :  { %v11003_v24 = vadd.f32 %v2408_v18, %v1792_v53  ;;  %1838 = vmatmul.f32.gmra.mxu0 %v14048_v63  ;;  %v6275_v53 = vunpack.i.h.bf16 %v6273_v7  ;;  %v6274_v18 = vunpack.i.l.bf16 %v6273_v7  ;;  %v14057_v7 = vld [vmem:[#allocation90_spill] sm:$0xff] }
 0x4b5   :  { %2455 = vmatmul.f32.gmra.mxu1 %v14049_v8  ;;  %v2751_v8 = vmax.f32 %v2352_v36, 0.0  ;;  %v11028_v36 = vpop.f32.mrf.mxu3 }
 0x4b6   :  { %14058 = vst [vmem:[#allocation91_spill] sm:$0xff] %v11028_v36 }
 0x4b9   :  { %v11007_v16 = vpop.f32.mrf.mxu0 }
 0x4ba   :  { %v11011_v28 = vpop.f32.mrf.mxu1  ;;  %v6288_v25 = vpop.permute.xlu2 %6287 }
 0x4bc   :  { %1841 = vmatmul.f32.gmra.mxu0 %v14051_v26  ;;  %v3835_v26 = vsel %vm3816_vm1, %v14056_v31, %v6274_v18  ;;  %v6280_v18 = vunpack.i.h.bf16 %v6278_v42 }
 0x4bd   :  { %2458 = vmatmul.f32.gmra.mxu1 %v14052_v61  ;;  %v3930_v61 = vsel %vm3816_vm1, %v2751_v8, %v6275_v53  ;;  %v6279_v53 = vunpack.i.l.bf16 %v6278_v42  ;;  %v14060_v42 = vld [vmem:[#allocation116_spill] sm:$0xff] }
 0x4be   :  { %v3962_v31 = vsel %vm1193_vm0, %v3930_v61, %v6285_v57  ;;  %v14061_v61 = vmax.f32 %v14060_v42, 0.0  ;;  %v6290_v57 = vunpack.i.h.bf16 %v6288_v25 }
 0x4c1   :  { %v11016_v63 = vpop.f32.mrf.mxu0 }
 0x4c2   :  { %v11020_v12 = vpop.f32.mrf.mxu1 }
 0x4c4   :  { %1844 = vmatmul.f32.gmra.mxu0 %v10681_v10  ;;  %v6293_v60 = vpop.permute.xlu0 %6292  ;;  %v3867_v10 = vsel %vm1193_vm0, %v3835_v26, %v6284_v32 }
 0x4c5   :  { %2461 = vmatmul.f32.gmra.mxu1 %v14057_v7  ;;  %v6295_v15 = vunpack.i.h.bf16 %v6293_v60  ;;  %v6294_v11 = vunpack.i.l.bf16 %v6293_v60  ;;  %v2752_v60 = vmax.f32 %v2355_v35, 0.0  ;;  %v6289_v7 = vunpack.i.l.bf16 %v6288_v25 }
 0x4c7   :  { %v11036_v14 = vsel %vm3881_vm2, %v3867_v10, %v6294_v11  ;;  %v11039_v8 = vsel %vm3881_vm2, %v3962_v31, %v6295_v15  ;;  %v3836_v11 = vsel %vm3816_vm1, %v14061_v61, %v6279_v53  ;;  %v3931_v15 = vsel %vm3816_vm1, %v2752_v60, %v6280_v18  ;;  %v14062_v10 = vld [vmem:[#allocation92_spill] sm:$0xff]  ;;  %v11062_v60 = vpop.f32.mrf.mxu2 }
 0x4c8   :  { %4131 = vmatmul.f32.gmra.mxu2 %v11036_v14  ;;  %4238 = vmatmul.f32.gmra.mxu3 %v11039_v8 }
 0x4c9   :  { %v1800_v9 = vpop.f32.mrf.mxu0 }
 0x4ca   :  { %v1801_v23 = vadd.f32 %v10653_v58, %v1800_v9  ;;  %v2417_v26 = vpop.f32.mrf.mxu1  ;;  %v3868_v9 = vsel %vm1193_vm0, %v3836_v11, %v6289_v7  ;;  %v14066_v11 = vmax.f32 %v10972_v40, 0.0  ;;  %v6298_v7 = vpop.permute.xlu1 %6297 }
 0x4cb   :  { %v6300_v40 = vunpack.i.h.bf16 %v6298_v7 }
 0x4cc   :  { %v2418_v32 = vadd.f32 %v2417_v26, %v1801_v23  ;;  %1847 = vmatmul.f32.gmra.mxu0 %v10710_v46  ;;  %v6303_v31 = vpop.permute.xlu0 %6302  ;;  %v3963_v23 = vsel %vm1193_vm0, %v3931_v15, %v6290_v57  ;;  %v11052_v26 = vpop.f32.mrf.mxu3  ;;  %v14064_v46 = vmax.f32 %v10953_v20, 0.0 }
 0x4cd   :  { %2464 = vmatmul.f32.gmra.mxu1 %v14062_v10  ;;  %v6305_v35 = vunpack.i.h.bf16 %v6303_v31  ;;  %v6304_v29 = vunpack.i.l.bf16 %v6303_v31  ;;  %14063 = vst [vmem:[#allocation97_spill] sm:$0xff] %v11052_v26 }
 0x4ce   :  { %v2773_v55 = vmax.f32 %v2418_v32, 0.0 }
 0x4cf   :  { %v11057_v53 = vsel %vm3881_vm2, %v3868_v9, %v6304_v29  ;;  %v11060_v18 = vsel %vm3881_vm2, %v3963_v23, %v6305_v35  ;;  %v14065_v29 = vld [vmem:[#allocation94_spill] sm:$0xff]  ;;  %v14067_v9 = vld [vmem:[#allocation96_spill] sm:$0xff] }
 0x4d0   :  { %v6361_v42 = vpack.i.bf16 %v14064_v46, %v2773_v55  ;;  %4134 = vmatmul.f32.gmra.mxu2 %v11057_v53  ;;  %4241 = vmatmul.f32.gmra.mxu3 %v11060_v18  ;;  %v6313_v46 = vpop.permute.xlu2 %6312 }
 0x4d1   :  { %v1803_v25 = vpop.f32.mrf.mxu0 }
 0x4d2   :  { %v1804_v32 = vadd.f32 %v10653_v58, %v1803_v25  ;;  %v2420_v61 = vpop.f32.mrf.mxu1  ;;  %6362 = vrot.lane.b32.xlu1 %v6361_v42, %s6762_s18  ;;  %v6299_v42 = vunpack.i.l.bf16 %v6298_v7  ;;  %v6314_v7 = vunpack.i.l.bf16 %v6313_v46 }
 0x4d4   :  { %v2421_v20 = vadd.f32 %v2420_v61, %v1804_v32  ;;  %1850 = vmatmul.f32.gmra.mxu0 %v10741_v62  ;;  %v2767_v62 = vmax.f32 %v10988_v17, 0.0  ;;  %v14068_v17 = vmax.f32 %v10754_v52, 0.0  ;;  %v11098_v52 = vpop.f32.mrf.mxu2 }
 0x4d5   :  { %2467 = vmatmul.f32.gmra.mxu1 %v14065_v29  ;;  %v6308_v29 = vpop.permute.xlu1 %6307  ;;  %14071 = vst [vmem:[#allocation95_spill] sm:$0xff] %v11098_v52 }
 0x4d6   :  { %v2774_v55 = vmax.f32 %v2421_v20, 0.0 }
 0x4d8   :  { %v6366_v15 = vpack.i.bf16 %v14066_v11, %v2774_v55  ;;  %v3837_v55 = vsel %vm3816_vm1, %v14068_v17, %v6299_v42  ;;  %v14069_v11 = vmax.f32 %v10761_v54, 0.0  ;;  %v6310_v42 = vunpack.i.h.bf16 %v6308_v29 }
 0x4d9   :  { %v1806_v57 = vpop.f32.mrf.mxu0  ;;  %v3869_v54 = vsel %vm1193_vm0, %v3837_v55, %v6314_v7 }
 0x4da   :  { %v1807_v10 = vadd.f32 %v10653_v58, %v1806_v57  ;;  %v2423_v31 = vpop.f32.mrf.mxu1  ;;  %6367 = vrot.lane.b32.xlu1 %v6366_v15, %s6762_s18  ;;  %v3932_v15 = vsel %vm3816_vm1, %v14069_v11, %v6300_v40  ;;  %v6315_v57 = vunpack.i.h.bf16 %v6313_v46  ;;  %v6318_v11 = vpop.permute.xlu2 %6317 }
 0x4dc   :  { %v11074_v35 = vadd.f32 %v2423_v31, %v1807_v10  ;;  %1853 = vmatmul.f32.gmra.mxu0 %v10759_v33  ;;  %v14070_v10 = vld [vmem:[#allocation98_spill] sm:$0xff]  ;;  %v3964_v40 = vsel %vm1193_vm0, %v3932_v15, %v6315_v57  ;;  %v14072_v15 = vmax.f32 %v10778_v30, 0.0 }
 0x4dd   :  { %2470 = vmatmul.f32.gmra.mxu1 %v14067_v9  ;;  %v11094_v9 = vpop.f32.mrf.mxu3 }
 0x4de   :  { %v13573_v23 = vmax.f32 %v11074_v35, 0.0 }
 0x4e0   :  { %v6371_v25 = vpack.i.bf16 %v2767_v62, %v13573_v23  ;;  %v2768_v62 = vmax.f32 %v10993_v49, 0.0 }
 0x4e1   :  { %v1809_v32 = vpop.f32.mrf.mxu0 }
 0x4e2   :  { %v1810_v61 = vadd.f32 %v10653_v58, %v1809_v32  ;;  %v2426_v20 = vpop.f32.mrf.mxu1  ;;  %6372 = vrot.lane.b32.xlu2 %v6371_v25, %s6760_s29 }
 0x4e4   :  { %v11084_v33 = vadd.f32 %v2426_v20, %v1810_v61  ;;  %1856 = vmatmul.f32.gmra.mxu0 %v10783_v50  ;;  %v6323_v31 = vpop.permute.xlu0 %6322  ;;  %v6309_v61 = vunpack.i.l.bf16 %v6308_v29 }
 0x4e5   :  { %2473 = vmatmul.f32.gmra.mxu1 %v14070_v10  ;;  %v6325_v50 = vunpack.i.h.bf16 %v6323_v31  ;;  %v6324_v32 = vunpack.i.l.bf16 %v6323_v31  ;;  %v14073_v10 = vmax.f32 %v10785_v43, 0.0 }
 0x4e6   :  { %v13572_v25 = vmax.f32 %v11084_v33, 0.0  ;;  %v3838_v57 = vsel %vm3816_vm1, %v14072_v15, %v6309_v61  ;;  %v11128_v61 = vpop.f32.mrf.mxu3 }
 0x4e7   :  { %v11105_v20 = vsel %vm3881_vm2, %v3869_v54, %v6324_v32  ;;  %v11108_v49 = vsel %vm3881_vm2, %v3964_v40, %v6325_v50  ;;  %v3933_v31 = vsel %vm3816_vm1, %v14073_v10, %v6310_v42  ;;  %v6319_v50 = vunpack.i.l.bf16 %v6318_v11  ;;  %v14074_v32 = vld [vmem:[#allocation99_spill] sm:$0xff] }
 0x4e8   :  { %v6376_v46 = vpack.i.bf16 %v2768_v62, %v13572_v25  ;;  %4137 = vmatmul.f32.gmra.mxu2 %v11105_v20  ;;  %4244 = vmatmul.f32.gmra.mxu3 %v11108_v49  ;;  %v6320_v62 = vunpack.i.h.bf16 %v6318_v11  ;;  %v2769_v40 = vmax.f32 %v10998_v2, 0.0  ;;  %v11138_v2 = vpop.f32.mrf.mxu2 }
 0x4e9   :  { %v1812_v17 = vpop.f32.mrf.mxu0  ;;  %14075 = vst [vmem:[#allocation6_spill] sm:$0xff] %v11138_v2 }
 0x4ea   :  { %v1813_v55 = vadd.f32 %v10653_v58, %v1812_v17  ;;  %v2429_v7 = vpop.f32.mrf.mxu1  ;;  %6377 = vrot.lane.b32.xlu2 %v6376_v46, %s6760_s29  ;;  %v3965_v30 = vsel %vm1193_vm0, %v3933_v31, %v6320_v62  ;;  %v14076_v31 = vld [vmem:[#allocation100_spill] sm:$0xff]  ;;  %v2770_v62 = vmax.f32 %v11003_v24, 0.0 }
 0x4ec   :  { %v11114_v29 = vadd.f32 %v2429_v7, %v1813_v55  ;;  %1859 = vmatmul.f32.gmra.mxu0 %v10805_v22  ;;  %v6333_v54 = vpop.permute.xlu0 %6332  ;;  %v3870_v22 = vsel %vm1193_vm0, %v3838_v57, %v6319_v50 }
 0x4ed   :  { %2476 = vmatmul.f32.gmra.mxu1 %v14074_v32  ;;  %v6335_v17 = vunpack.i.h.bf16 %v6333_v54  ;;  %v6334_v55 = vunpack.i.l.bf16 %v6333_v54 }
 0x4ee   :  { %v13575_v46 = vmax.f32 %v11114_v29, 0.0 }
 0x4ef   :  { %v11133_v42 = vsel %vm3881_vm2, %v3870_v22, %v6334_v55  ;;  %v11136_v11 = vsel %vm3881_vm2, %v3965_v30, %v6335_v17  ;;  %v14077_v55 = vld [vmem:[#allocation12_spill] sm:$0xff] }
 0x4f0   :  { %v6381_v43 = vpack.i.bf16 %v2769_v40, %v13575_v46  ;;  %4140 = vmatmul.f32.gmra.mxu2 %v11133_v42  ;;  %4247 = vmatmul.f32.gmra.mxu3 %v11136_v11  ;;  %v6328_v40 = vpop.permute.xlu1 %6327  ;;  %v11170_v46 = vpop.f32.mrf.mxu3 }
 0x4f1   :  { %v1815_v7 = vpop.f32.mrf.mxu0  ;;  %v6330_v22 = vunpack.i.h.bf16 %v6328_v40  ;;  %v6329_v30 = vunpack.i.l.bf16 %v6328_v40  ;;  %14081 = vst [vmem:[#allocation2_spill] sm:$0xff] %v11170_v46 }
 0x4f2   :  { %v1816_v15 = vadd.f32 %v10653_v58, %v1815_v7  ;;  %v2432_v57 = vpop.f32.mrf.mxu1  ;;  %6382 = vrot.lane.b32.xlu0 %v6381_v43, %s6761_s17 }
 0x4f4   :  { %v11144_v10 = vadd.f32 %v2432_v57, %v1816_v15  ;;  %1862 = vmatmul.f32.gmra.mxu0 %v10820_v56  ;;  %v6343_v56 = vpop.permute.xlu2 %6342  ;;  %v14078_v15 = vmax.f32 %v10828_v51, 0.0  ;;  %v11172_v51 = vpop.f32.mrf.mxu2 }
 0x4f5   :  { %2479 = vmatmul.f32.gmra.mxu1 %v14076_v31  ;;  %v14079_v31 = vmax.f32 %v10839_v44, 0.0  ;;  %v6344_v25 = vunpack.i.l.bf16 %v6343_v56  ;;  %14082 = vst [vmem:[#allocation3_spill] sm:$0xff] %v11172_v51 }
 0x4f6   :  { %v13574_v50 = vmax.f32 %v11144_v10, 0.0  ;;  %v3839_v57 = vsel %vm3816_vm1, %v14078_v15, %v6329_v30 }
 0x4f7   :  { %v3871_v44 = vsel %vm1193_vm0, %v3839_v57, %v6344_v25  ;;  %v14083_v25 = vmax.f32 %v10853_v39, 0.0 }
 0x4f8   :  { %v6386_v32 = vpack.i.bf16 %v2770_v62, %v13574_v50  ;;  %v3934_v62 = vsel %vm3816_vm1, %v14079_v31, %v6330_v22 }
 0x4f9   :  { %v11152_v54 = vpop.f32.mrf.mxu0 }
 0x4fa   :  { %v11154_v17 = vpop.f32.mrf.mxu1  ;;  %6387 = vrot.lane.b32.xlu0 %v6386_v32, %s6761_s17  ;;  %v6345_v32 = vunpack.i.h.bf16 %v6343_v56 }
 0x4fc   :  { %1865 = vmatmul.f32.gmra.mxu0 %v10837_v13  ;;  %v6338_v13 = vpop.permute.xlu1 %6337  ;;  %v3966_v22 = vsel %vm1193_vm0, %v3934_v62, %v6345_v32  ;;  %v14084_v62 = vmax.f32 %v10863_v19, 0.0 }
 0x4fd   :  { %2482 = vmatmul.f32.gmra.mxu1 %v14077_v55  ;;  %v14080_v55 = vld [vmem:[#allocation11_spill] sm:$0xff]  ;;  %v6340_v30 = vunpack.i.h.bf16 %v6338_v13  ;;  %v6339_v56 = vunpack.i.l.bf16 %v6338_v13 }
 0x4ff   :  { %v3840_v57 = vsel %vm3816_vm1, %v14083_v25, %v6339_v56 }
 0x501   :  { %v1821_v24 = vpop.f32.mrf.mxu0 }
 0x502   :  { %v1822_v43 = vadd.f32 %v10653_v58, %v1821_v24  ;;  %v2438_v7 = vpop.f32.mrf.mxu1 }
 0x504   :  { %v11166_v23 = vadd.f32 %v2438_v7, %v1822_v43  ;;  %1868 = vmatmul.f32.gmra.mxu0 %v10861_v21  ;;  %v6353_v40 = vpop.permute.xlu0 %6352  ;;  %v6348_v7 = vpop.permute.xlu2 %6347 }
 0x505   :  { %2485 = vmatmul.f32.gmra.mxu1 %v14080_v55  ;;  %v6355_v24 = vunpack.i.h.bf16 %v6353_v40  ;;  %v6354_v50 = vunpack.i.l.bf16 %v6353_v40  ;;  %v6350_v32 = vunpack.i.h.bf16 %v6348_v7  ;;  %v6349_v13 = vunpack.i.l.bf16 %v6348_v7  ;;  %v11205_v7 = vpop.f32.mrf.mxu2 }
 0x506   :  { %14087 = vst [vmem:[#allocation101_spill] sm:$0xff] %v11205_v7  ;;  %v2896_v7 = vld [vmem:[%s13344_s3 + $0x168] sm:$0xff] }
 0x507   :  { %v11177_v43 = vsel %vm3881_vm2, %v3871_v44, %v6354_v50  ;;  %v11180_v21 = vsel %vm3881_vm2, %v3966_v22, %v6355_v24  ;;  %v3935_v50 = vsel %vm3816_vm1, %v14084_v62, %v6340_v30  ;;  %v14085_v44 = vld [vmem:[#allocation38_spill] sm:$0xff]  ;;  %v3872_v2 = vsel %vm1193_vm0, %v3840_v57, %v6349_v13  ;;  %v11203_v30 = vpop.f32.mrf.mxu3  ;;  %v14089_v13 = vld [vmem:[#allocation53_spill] sm:$0xff] }
 0x508   :  { %4143 = vmatmul.f32.gmra.mxu2 %v11177_v43  ;;  %4250 = vmatmul.f32.gmra.mxu3 %v11180_v21  ;;  %v3967_v39 = vsel %vm1193_vm0, %v3935_v50, %v6350_v32  ;;  %14086 = vst [vmem:[#allocation5_spill] sm:$0xff] %v11203_v30 }
 0x509   :  { %v1824_v15 = vpop.f32.mrf.mxu0 }
 0x50a   :  { %v1825_v31 = vadd.f32 %v10653_v58, %v1824_v15  ;;  %v2441_v40 = vpop.f32.mrf.mxu1 }
 0x50c   :  { %v11191_v55 = vadd.f32 %v2441_v40, %v1825_v31  ;;  %1871 = vmatmul.f32.gmra.mxu0 %v10883_v48  ;;  %v6358_v24 = vpop.permute.xlu0 %6357 }
 0x50d   :  { %2488 = vmatmul.f32.gmra.mxu1 %v14085_v44  ;;  %v6360_v22 = vunpack.i.h.bf16 %v6358_v24  ;;  %v6359_v15 = vunpack.i.l.bf16 %v6358_v24 }
 0x50f   :  { %v11198_v56 = vsel %vm3881_vm2, %v3872_v2, %v6359_v15  ;;  %v11201_v19 = vsel %vm3881_vm2, %v3967_v39, %v6360_v22  ;;  %v14088_v2 = vld [vmem:[#allocation47_spill] sm:$0xff]  ;;  %v11289_v36 = vpop.f32.mrf.mxu3 }
 0x510   :  { %4146 = vmatmul.f32.gmra.mxu2 %v11198_v56  ;;  %4253 = vmatmul.f32.gmra.mxu3 %v11201_v19  ;;  %14097 = vst [vmem:[#allocation9_spill] sm:$0xff] %v11289_v36 }
 0x511   :  { %v1827_v48 = vpop.f32.mrf.mxu0 }
 0x512   :  { %v1828_v31 = vadd.f32 %v10653_v58, %v1827_v48  ;;  %v2444_v40 = vpop.f32.mrf.mxu1 }
 0x514   :  { %v11210_v25 = vadd.f32 %v2444_v40, %v1828_v31  ;;  %1874 = vmatmul.f32.gmra.mxu0 %v10898_v45  ;;  %v14090_v45 = vld [vmem:[#allocation57_spill] sm:$0xff] }
 0x515   :  { %2491 = vmatmul.f32.gmra.mxu1 %v14088_v2 }
 0x519   :  { %v1830_v57 = vpop.f32.mrf.mxu0 }
 0x51a   :  { %v1831_v62 = vadd.f32 %v10653_v58, %v1830_v57  ;;  %v2447_v50 = vpop.f32.mrf.mxu1 }
 0x51c   :  { %v11215_v32 = vadd.f32 %v2447_v50, %v1831_v62  ;;  %1877 = vmatmul.f32.gmra.mxu0 %v10913_v34  ;;  %v14091_v34 = vld [vmem:[#allocation80_spill] sm:$0xff] }
 0x51d   :  { %2494 = vmatmul.f32.gmra.mxu1 %v14089_v13 }
 0x521   :  { %v1833_v24 = vpop.f32.mrf.mxu0 }
 0x522   :  { %v1834_v44 = vadd.f32 %v10653_v58, %v1833_v24  ;;  %v2450_v22 = vpop.f32.mrf.mxu1  ;;  %v11237_v24 = vld [vmem:[%s13343_s2] ss:$0 sm:$0xff] }
 0x524   :  { %v11220_v15 = vadd.f32 %v2450_v22, %v1834_v44  ;;  %1880 = vmatmul.f32.gmra.mxu0 %v10932_v5  ;;  %v14092_v5 = vld [vmem:[#allocation30_spill] sm:$0xff] }
 0x525   :  { %2497 = vmatmul.f32.gmra.mxu1 %v14090_v45 }
 0x529   :  { %v1836_v39 = vpop.f32.mrf.mxu0 }
 0x52a   :  { %v1837_v48 = vadd.f32 %v10653_v58, %v1836_v39  ;;  %v2453_v31 = vpop.f32.mrf.mxu1 }
 0x52c   :  { %v11225_v40 = vadd.f32 %v2453_v31, %v1837_v48  ;;  %1883 = vmatmul.f32.gmra.mxu0 %v10951_v3 }
 0x52d   :  { %2500 = vmatmul.f32.gmra.mxu1 %v14091_v34  ;;  %v2914_v34 = vld [vmem:[%s13344_s3 + $0x1f8] sm:$0xff] }
 0x52e   :  { %4400 = vmatpush.msra.mxu3 %v2914_v34  ;;  %v14095_v34 = vld [vmem:[#allocation20_spill] sm:$0xff] }
 0x531   :  { %v1839_v2 = vpop.f32.mrf.mxu0 }
 0x532   :  { %v1840_v57 = vadd.f32 %v10653_v58, %v1839_v2  ;;  %v2456_v62 = vpop.f32.mrf.mxu1  ;;  %v14093_v58 = vld [vmem:[#allocation68_spill] sm:$0xff] }
 0x534   :  { %v11230_v50 = vadd.f32 %v2456_v62, %v1840_v57  ;;  %1886 = vmatmul.f32.gmra.mxu0 %v10970_v59  ;;  %v2898_v59 = vld [vmem:[%s13344_s3 + $0x178] sm:$0xff] }
 0x535   :  { %2503 = vmatmul.f32.gmra.mxu1 %v14092_v5  ;;  %4287 = vmatpush.msra.mxu2 %v2898_v59  ;;  %v14094_v5 = vld [vmem:[#allocation41_spill] sm:$0xff] }
 0x539   :  { %v1842_v13 = vpop.f32.mrf.mxu0 }
 0x53a   :  { %v1843_v3 = vadd.f32 %v11237_v24, %v1842_v13  ;;  %v2459_v44 = vpop.f32.mrf.mxu1  ;;  %v13576_v13 = vmax.f32 %v14094_v5, 0.0 }
 0x53c   :  { %v11240_v22 = vadd.f32 %v2459_v44, %v1843_v3  ;;  %1889 = vmatmul.f32.gmra.mxu0 %v10986_v0 }
 0x53d   :  { %2506 = vmatmul.f32.gmra.mxu1 %v14093_v58  ;;  %v2897_v58 = vld [vmem:[%s13344_s3 + $0x170] sm:$0xff] }
 0x53e   :  { %4288 = vmatpush.msra.mxu2 %v2897_v58 }
 0x540   :  { %4289 = vmatpush.msra.mxu2 %v2896_v7 }
 0x541   :  { %v1845_v45 = vpop.f32.mrf.mxu0 }
 0x542   :  { %v1846_v39 = vadd.f32 %v11237_v24, %v1845_v45  ;;  %v2462_v48 = vpop.f32.mrf.mxu1 }
 0x544   :  { %v11248_v31 = vadd.f32 %v2462_v48, %v1846_v39 }
 0x549   :  { %v1848_v2 = vpop.f32.mrf.mxu0 }
 0x54a   :  { %v1849_v0 = vadd.f32 %v11237_v24, %v1848_v2  ;;  %v2465_v57 = vpop.f32.mrf.mxu1  ;;  %v13577_v2 = vmax.f32 %v14095_v34, 0.0 }
 0x54c   :  { %v2466_v62 = vadd.f32 %v2465_v57, %v1849_v0 }
 0x54e   :  { %v2789_v3 = vmax.f32 %v2466_v62, 0.0  ;;  %v2913_v62 = vld [vmem:[%s13344_s3 + $0x1f0] sm:$0xff] }
 0x54f   :  { %4401 = vmatpush.msra.mxu3 %v2913_v62 }
 0x550   :  { %v11257_v44 = vpack.i.bf16 %v13576_v13, %v2789_v3  ;;  %v1795_v3 = vadd.f32 %v11237_v24, %v11007_v16  ;;  %v1798_v16 = vadd.f32 %v11237_v24, %v11016_v63 }
 0x551   :  { %v1851_v59 = vpop.f32.mrf.mxu0 }
 0x552   :  { %v1852_v45 = vadd.f32 %v11237_v24, %v1851_v59  ;;  %v2468_v39 = vpop.f32.mrf.mxu1  ;;  %v2415_v63 = vadd.f32 %v11020_v12, %v1798_v16  ;;  %v2912_v12 = vld [vmem:[%s13344_s3 + $0x1e8] sm:$0xff] }
 0x553   :  { %4402 = vmatpush.msra.mxu3 %v2912_v12 }
 0x554   :  { %v2469_v48 = vadd.f32 %v2468_v39, %v1852_v45  ;;  %v6363_v45 = vpop.permute.xlu1 %6362  ;;  %v2772_v16 = vmax.f32 %v2415_v63, 0.0 }
 0x555   :  { %v6365_v30 = vunpack.i.h.bf16 %v6363_v45 }
 0x556   :  { %v2790_v0 = vmax.f32 %v2469_v48, 0.0  ;;  %v2412_v48 = vadd.f32 %v11011_v28, %v1795_v3  ;;  %v14096_v28 = vmax.f32 %v10915_v41, 0.0 }
 0x558   :  { %v11266_v57 = vpack.i.bf16 %v13577_v2, %v2790_v0  ;;  %v6364_v0 = vunpack.i.l.bf16 %v6363_v45  ;;  %v6373_v2 = vpop.permute.xlu2 %6372  ;;  %v2771_v46 = vmax.f32 %v2412_v48, 0.0  ;;  %v3936_v3 = vsel %vm3816_vm1, %v14096_v28, %v6365_v30 }
 0x559   :  { %v1854_v13 = vpop.f32.mrf.mxu0  ;;  %v6374_v45 = vunpack.i.l.bf16 %v6373_v2 }
 0x55a   :  { %v1855_v58 = vadd.f32 %v11237_v24, %v1854_v13  ;;  %v2471_v59 = vpop.f32.mrf.mxu1 }
 0x55c   :  { %v11274_v39 = vadd.f32 %v2471_v59, %v1855_v58  ;;  %v3841_v58 = vsel %vm3816_vm1, %v2771_v46, %v6364_v0  ;;  %v6375_v59 = vunpack.i.h.bf16 %v6373_v2  ;;  %v6368_v48 = vpop.permute.xlu1 %6367  ;;  %v11294_v0 = vpop.f32.mrf.mxu2 }
 0x55d   :  { %14098 = vst [vmem:[#allocation33_spill] sm:$0xff] %v11294_v0  ;;  %v6370_v2 = vunpack.i.h.bf16 %v6368_v48 }
 0x55e   :  { %v3968_v46 = vsel %vm1193_vm0, %v3936_v3, %v6375_v59  ;;  %v14100_v59 = vmax.f32 %v10934_v47, 0.0 }
 0x561   :  { %v1857_v51 = vpop.f32.mrf.mxu0 }
 0x562   :  { %v1858_v13 = vadd.f32 %v11237_v24, %v1857_v51  ;;  %v2474_v62 = vpop.f32.mrf.mxu1  ;;  %v3873_v51 = vsel %vm1193_vm0, %v3841_v58, %v6374_v45  ;;  %v3937_v45 = vsel %vm3816_vm1, %v14100_v59, %v6370_v2  ;;  %v2895_v2 = vld [vmem:[%s13344_s3 + $0x160] sm:$0xff] }
 0x563   :  { %4290 = vmatpush.msra.mxu2 %v2895_v2 }
 0x564   :  { %v11287_v52 = vadd.f32 %v2474_v62, %v1858_v13  ;;  %v6383_v26 = vpop.permute.xlu0 %6382  ;;  %v6369_v13 = vunpack.i.l.bf16 %v6368_v48  ;;  %v6378_v62 = vpop.permute.xlu2 %6377 }
 0x565   :  { %v6385_v38 = vunpack.i.h.bf16 %v6383_v26  ;;  %v6384_v7 = vunpack.i.l.bf16 %v6383_v26  ;;  %v6380_v48 = vunpack.i.h.bf16 %v6378_v62 }
 0x567   :  { %v11297_v41 = vsel %vm3881_vm2, %v3873_v51, %v6384_v7  ;;  %v11300_v30 = vsel %vm3881_vm2, %v3968_v46, %v6385_v38  ;;  %v3842_v38 = vsel %vm3816_vm1, %v2772_v16, %v6369_v13  ;;  %v6379_v7 = vunpack.i.l.bf16 %v6378_v62  ;;  %v11327_v16 = vpop.f32.mrf.mxu2 }
 0x568   :  { %14099 = vst [vmem:[#allocation24_spill] sm:$0xff] %v11300_v30  ;;  %4149 = vmatmul.f32.gmra.mxu2 %v11297_v41  ;;  %4256 = vmatmul.f32.gmra.mxu3 %v11300_v30  ;;  %v3969_v63 = vsel %vm1193_vm0, %v3937_v45, %v6380_v48  ;;  %v11314_v30 = vpop.f32.mrf.mxu3  ;;  %v2911_v45 = vld [vmem:[%s13344_s3 + $0x1e0] sm:$0xff] }
 0x569   :  { %v1860_v26 = vpop.f32.mrf.mxu0  ;;  %v3874_v12 = vsel %vm1193_vm0, %v3842_v38, %v6379_v7  ;;  %14101 = vst [vmem:[#allocation7_spill] sm:$0xff] %v11314_v30  ;;  %v14103_v38 = vmax.f32 %v11144_v10, 0.0  ;;  %4403 = vmatpush.msra.mxu3 %v2911_v45  ;;  %v14128_v30 = vld [vmem:[#allocation46_spill] sm:$0xff] }
 0x56a   :  { %v1861_v58 = vadd.f32 %v11237_v24, %v1860_v26  ;;  %v2477_v28 = vpop.f32.mrf.mxu1  ;;  %v14102_v26 = vmax.f32 %v11114_v29, 0.0 }
 0x56c   :  { %v2478_v3 = vadd.f32 %v2477_v28, %v1861_v58  ;;  %v6388_v51 = vpop.permute.xlu0 %6387 }
 0x56d   :  { %v6390_v36 = vunpack.i.h.bf16 %v6388_v51  ;;  %v6389_v0 = vunpack.i.l.bf16 %v6388_v51 }
 0x56e   :  { %v2793_v46 = vmax.f32 %v2478_v3, 0.0 }
 0x56f   :  { %v11319_v13 = vsel %vm3881_vm2, %v3874_v12, %v6389_v0  ;;  %v11322_v47 = vsel %vm3881_vm2, %v3969_v63, %v6390_v36  ;;  %v1819_v36 = vadd.f32 %v11237_v24, %v11152_v54 }
 0x570   :  { %v6391_v58 = vpack.i.bf16 %v2793_v46, %v14102_v26  ;;  %4152 = vmatmul.f32.gmra.mxu2 %v11319_v13  ;;  %4259 = vmatmul.f32.gmra.mxu3 %v11322_v47 }
 0x571   :  { %v1863_v62 = vpop.f32.mrf.mxu0  ;;  %v11341_v7 = vadd.f32 %v11154_v17, %v1819_v36  ;;  %v2894_v17 = vld [vmem:[%s13344_s3 + $0x158] sm:$0xff] }
 0x572   :  { %v1864_v29 = vadd.f32 %v11237_v24, %v1863_v62  ;;  %v2480_v28 = vpop.f32.mrf.mxu1  ;;  %6392 = vrot.lane.b32.xlu1 %v6391_v58, %s6762_s18  ;;  %4291 = vmatpush.msra.mxu2 %v2894_v17  ;;  %v2910_v36 = vld [vmem:[%s13344_s3 + $0x1d8] sm:$0xff] }
 0x573   :  { %v13590_v54 = vmax.f32 %v11341_v7, 0.0  ;;  %4404 = vmatpush.msra.mxu3 %v2910_v36 }
 0x574   :  { %v2481_v0 = vadd.f32 %v2480_v28, %v1864_v29  ;;  %v13586_v29 = vmax.f32 %v11166_v23, 0.0 }
 0x576   :  { %v2794_v3 = vmax.f32 %v2481_v0, 0.0 }
 0x578   :  { %v6396_v59 = vpack.i.bf16 %v2794_v3, %v14103_v38 }
 0x579   :  { %v1866_v48 = vpop.f32.mrf.mxu0 }
 0x57a   :  { %v1867_v51 = vadd.f32 %v11237_v24, %v1866_v48  ;;  %v2483_v46 = vpop.f32.mrf.mxu1  ;;  %6397 = vrot.lane.b32.xlu1 %v6396_v59, %s6762_s18  ;;  %v2781_v48 = vmax.f32 %v11191_v55, 0.0 }
 0x57c   :  { %v11345_v12 = vadd.f32 %v2483_v46, %v1867_v51 }
 0x57e   :  { %v13587_v10 = vmax.f32 %v11345_v12, 0.0 }
 0x580   :  { %v6401_v63 = vpack.i.bf16 %v13587_v10, %v13590_v54  ;;  %v14123_v10 = vld [vmem:[#allocation22_spill] sm:$0xff] }
 0x581   :  { %v1869_v26 = vpop.f32.mrf.mxu0 }
 0x582   :  { %v1870_v58 = vadd.f32 %v11237_v24, %v1869_v26  ;;  %v2486_v2 = vpop.f32.mrf.mxu1  ;;  %6402 = vrot.lane.b32.xlu2 %v6401_v63, %s6760_s29  ;;  %v2893_v63 = vld [vmem:[%s13344_s3 + $0x150] sm:$0xff] }
 0x583   :  { %4292 = vmatpush.msra.mxu2 %v2893_v63  ;;  %v2892_v63 = vld [vmem:[%s13344_s3 + $0x148] sm:$0xff] }
 0x584   :  { %v11358_v62 = vadd.f32 %v2486_v2, %v1870_v58 }
 0x585   :  { %4293 = vmatpush.msra.mxu2 %v2892_v63  ;;  %v2907_v63 = vld [vmem:[%s13344_s3 + $0x1c0] sm:$0xff] }
 0x586   :  { %v13583_v28 = vmax.f32 %v11358_v62, 0.0 }
 0x588   :  { %v6406_v0 = vpack.i.bf16 %v13583_v28, %v13586_v29 }
 0x589   :  { %v1872_v3 = vpop.f32.mrf.mxu0 }
 0x58a   :  { %v1873_v38 = vadd.f32 %v11237_v24, %v1872_v3  ;;  %v2489_v59 = vpop.f32.mrf.mxu1  ;;  %6407 = vrot.lane.b32.xlu2 %v6406_v0, %s6760_s29  ;;  %v2782_v0 = vmax.f32 %v11210_v25, 0.0  ;;  %v2909_v3 = vld [vmem:[%s13344_s3 + $0x1d0] sm:$0xff] }
 0x58b   :  { %4405 = vmatpush.msra.mxu3 %v2909_v3 }
 0x58c   :  { %v2490_v45 = vadd.f32 %v2489_v59, %v1873_v38 }
 0x58e   :  { %v2797_v51 = vmax.f32 %v2490_v45, 0.0 }
 0x590   :  { %v6416_v46 = vpack.i.bf16 %v2797_v51, %v2781_v48  ;;  %v13582_v51 = vmax.f32 %v11215_v32, 0.0 }
 0x591   :  { %v1875_v17 = vpop.f32.mrf.mxu0 }
 0x592   :  { %v1876_v26 = vadd.f32 %v11237_v24, %v1875_v17  ;;  %v2492_v58 = vpop.f32.mrf.mxu1  ;;  %6417 = vrot.lane.b32.xlu1 %v6416_v46, %s6762_s18  ;;  %6412 = vrot.lane.b32.xlu0 %v6416_v46, %s6761_s17  ;;  %v2908_v17 = vld [vmem:[%s13344_s3 + $0x1c8] sm:$0xff] }
 0x593   :  { %4406 = vmatpush.msra.mxu3 %v2908_v17 }
 0x594   :  { %v2493_v2 = vadd.f32 %v2492_v58, %v1876_v26 }
 0x595   :  { %4407 = vmatpush.msra.mxu3 %v2907_v63 }
 0x596   :  { %v2798_v36 = vmax.f32 %v2493_v2, 0.0 }
 0x598   :  { %v6426_v55 = vpack.i.bf16 %v2798_v36, %v2782_v0  ;;  %v13580_v36 = vmax.f32 %v11220_v15, 0.0 }
 0x599   :  { %v1878_v38 = vpop.f32.mrf.mxu0 }
 0x59a   :  { %v1879_v59 = vadd.f32 %v11237_v24, %v1878_v38  ;;  %v2495_v45 = vpop.f32.mrf.mxu1  ;;  %6427 = vrot.lane.b32.xlu1 %v6426_v55, %s6762_s18  ;;  %6422 = vrot.lane.b32.xlu0 %v6426_v55, %s6761_s17 }
 0x59c   :  { %v11385_v48 = vadd.f32 %v2495_v45, %v1879_v59 }
 0x59e   :  { %v13581_v25 = vmax.f32 %v11385_v48, 0.0 }
 0x5a0   :  { %v6431_v46 = vpack.i.bf16 %v13581_v25, %v13582_v51  ;;  %v2786_v25 = vmax.f32 %v11230_v50, 0.0  ;;  %v2890_v50 = vld [vmem:[%s13344_s3 + $0x138] sm:$0xff] }
 0x5a1   :  { %v1881_v26 = vpop.f32.mrf.mxu0 }
 0x5a2   :  { %v1882_v58 = vadd.f32 %v11237_v24, %v1881_v26  ;;  %v2498_v2 = vpop.f32.mrf.mxu1  ;;  %6432 = vrot.lane.b32.xlu2 %v6431_v46, %s6760_s29  ;;  %v2891_v46 = vld [vmem:[%s13344_s3 + $0x140] sm:$0xff]  ;;  %v2785_v26 = vmax.f32 %v11225_v40, 0.0  ;;  %v11425_v40 = vpop.f32.mrf.mxu2 }
 0x5a3   :  { %4294 = vmatpush.msra.mxu2 %v2891_v46  ;;  %v11427_v46 = vpop.f32.mrf.mxu3 }
 0x5a4   :  { %v11401_v0 = vadd.f32 %v2498_v2, %v1882_v58 }
 0x5a5   :  { %4295 = vmatpush.msra.mxu2 %v2890_v50 }
 0x5a6   :  { %v13579_v55 = vmax.f32 %v11401_v0, 0.0 }
 0x5a8   :  { %v6436_v3 = vpack.i.bf16 %v13579_v55, %v13580_v36 }
 0x5a9   :  { %v1884_v38 = vpop.f32.mrf.mxu0 }
 0x5aa   :  { %v1885_v59 = vadd.f32 %v11237_v24, %v1884_v38  ;;  %v2501_v45 = vpop.f32.mrf.mxu1  ;;  %6437 = vrot.lane.b32.xlu2 %v6436_v3, %s6760_s29 }
 0x5ac   :  { %v2502_v17 = vadd.f32 %v2501_v45, %v1885_v59 }
 0x5ae   :  { %v2801_v58 = vmax.f32 %v2502_v17, 0.0  ;;  %v14104_v17 = vmax.f32 %v14094_v5, 0.0  ;;  %v14106_v5 = vmax.f32 %v14095_v34, 0.0  ;;  %v14109_v34 = vld [vmem:[#allocation27_spill] sm:$0xff] }
 0x5b0   :  { %v6446_v2 = vpack.i.bf16 %v2801_v58, %v2785_v26  ;;  %v2788_v26 = vmax.f32 %v11248_v31, 0.0  ;;  %v11448_v58 = vpop.f32.mrf.mxu2  ;;  %v2889_v31 = vld [vmem:[%s13344_s3 + $0x130] sm:$0xff] }
 0x5b1   :  { %v1887_v55 = vpop.f32.mrf.mxu0  ;;  %4296 = vmatpush.msra.mxu2 %v2889_v31  ;;  %v14115_v31 = vld [vmem:[#allocation25_spill] sm:$0xff] }
 0x5b2   :  { %v1888_v38 = vadd.f32 %v11237_v24, %v1887_v55  ;;  %v2504_v36 = vpop.f32.mrf.mxu1  ;;  %6447 = vrot.lane.b32.xlu1 %v6446_v2, %s6762_s18  ;;  %6442 = vrot.lane.b32.xlu0 %v6446_v2, %s6761_s17 }
 0x5b4   :  { %v2505_v3 = vadd.f32 %v2504_v36, %v1888_v38  ;;  %v11451_v38 = vpop.f32.mrf.mxu3 }
 0x5b6   :  { %v2802_v51 = vmax.f32 %v2505_v3, 0.0 }
 0x5b8   :  { %v6461_v28 = vpack.i.bf16 %v2802_v51, %v2786_v25  ;;  %v2906_v51 = vld [vmem:[%s13344_s3 + $0x1b8] sm:$0xff]  ;;  %v2787_v25 = vmax.f32 %v11240_v22, 0.0  ;;  %v14105_v22 = vld [vmem:[#allocation64_spill] sm:$0xff] }
 0x5b9   :  { %v1890_v59 = vpop.f32.mrf.mxu0  ;;  %4408 = vmatpush.msra.mxu3 %v2906_v51  ;;  %v13584_v2 = vmax.f32 %v14105_v22, 0.0  ;;  %v2809_v51 = vmax.f32 %v14109_v34, 0.0 }
 0x5ba   :  { %v1891_v45 = vadd.f32 %v11237_v24, %v1890_v59  ;;  %6462 = vrot.lane.b32.xlu1 %v6461_v28, %s6762_s18  ;;  %6452 = vrot.lane.b32.xlu0 %v6461_v28, %s6761_s17  ;;  %v2507_v55 = vpop.f32.mrf.mxu1  ;;  %v11467_v59 = vpop.f32.mrf.mxu2 }
 0x5bb   :  { %v6471_v3 = vpack.i.bf16 %v13584_v2, %v2788_v26  ;;  %14107 = vst [vmem:[#allocation60_spill] sm:$0xff] %v11467_v59 }
 0x5bc   :  { %v11429_v63 = vadd.f32 %v2507_v55, %v1891_v45  ;;  %v14108_v45 = vld [vmem:[#allocation72_spill] sm:$0xff]  ;;  %v11470_v50 = vpop.f32.mrf.mxu3 }
 0x5bd   :  { %v2807_v55 = vmax.f32 %v14108_v45, 0.0 }
 0x5be   :  { %v13585_v36 = vmax.f32 %v11429_v63, 0.0 }
 0x5c0   :  { %v6466_v28 = vpack.i.bf16 %v13585_v36, %v2787_v25  ;;  %v14111_v25 = vld [vmem:[#allocation49_spill] sm:$0xff]  ;;  %v14121_v36 = vld [vmem:[#allocation4_spill] sm:$0xff] }
 0x5c2   :  { %6467 = vrot.lane.b32.xlu2 %v6466_v28, %s6760_s29  ;;  %3368 = vrot.lane.b32.xlu1 %v14104_v17, %s6762_s18  ;;  %v2808_v28 = vmax.f32 %v14111_v25, 0.0  ;;  %v14112_v17 = vld [vmem:[#allocation17_spill] sm:$0xff] }
 0x5c3   :  { %6457 = vrot.lane.b32.xlu0 %v11257_v44, %s6761_s17  ;;  %v2905_v44 = vld [vmem:[%s13344_s3 + $0x1b0] sm:$0xff]  ;;  %v2810_v26 = vmax.f32 %v14112_v17, 0.0 }
 0x5c4   :  { %4409 = vmatpush.msra.mxu3 %v2905_v44  ;;  %v14116_v44 = vld [vmem:[#allocation107_spill] sm:$0xff] }
 0x5c5   :  { %v13589_v45 = vmax.f32 %v14116_v44, 0.0  ;;  %v14131_v44 = vld [vmem:[#allocation14_spill] sm:$0xff] }
 0x5ca   :  { %6472 = vrot.lane.b32.xlu2 %v6471_v3, %s6760_s29  ;;  %3370 = vrot.lane.b32.xlu1 %v14106_v5, %s6762_s18  ;;  %v11479_v3 = vpop.f32.mrf.mxu2  ;;  %v11481_v5 = vpop.f32.mrf.mxu3 }
 0x5cb   :  { %6477 = vrot.lane.b32.xlu0 %v11266_v57, %s6761_s17  ;;  %v14110_v57 = vld [vmem:[#allocation106_spill] sm:$0xff]  ;;  %14113 = vst [vmem:[#allocation21_spill] sm:$0xff] %v11479_v3 }
 0x5cc   :  { %14114 = vst [vmem:[#allocation40_spill] sm:$0xff] %v11481_v5  ;;  %v2791_v5 = vmax.f32 %v11274_v39, 0.0 }
 0x5d2   :  { %3496 = vrot.lane.b32.xlu2 %v2807_v55, %s6760_s29  ;;  %6482 = vrot.lane.b32.xlu1 %v14110_v57, %s6762_s18  ;;  %v14117_v55 = vld [vmem:[#allocation44_spill] sm:$0xff]  ;;  %v2904_v57 = vld [vmem:[%s13344_s3 + $0x1a8] sm:$0xff]  ;;  %v11502_v17 = vpop.f32.mrf.mxu2 }
 0x5d3   :  { %3600 = vrot.lane.b32.xlu0 %v2809_v51, %s6761_s17  ;;  %v13588_v34 = vmax.f32 %v14117_v55, 0.0  ;;  %v2888_v51 = vld [vmem:[%s13344_s3 + $0x128] sm:$0xff]  ;;  %4410 = vmatpush.msra.mxu3 %v2904_v57  ;;  %14119 = vst [vmem:[#allocation50_spill] sm:$0xff] %v11502_v17  ;;  %v14122_v57 = vld [vmem:[#allocation16_spill] sm:$0xff] }
 0x5d4   :  { %4297 = vmatpush.msra.mxu2 %v2888_v51  ;;  %v13594_v51 = vmax.f32 %v14121_v36, 0.0  ;;  %v1987_v29 = vadd.f32 %v11237_v24, %v14122_v57  ;;  %v14129_v57 = vld [vmem:[#allocation23_spill] sm:$0xff] }
 0x5d5   :  { %v6486_v25 = vpack.i.bf16 %v13588_v34, %v13589_v45  ;;  %v1993_v34 = vadd.f32 %v11237_v24, %v14123_v10  ;;  %v11512_v45 = vpop.f32.mrf.mxu3  ;;  %v13597_v3 = vmax.f32 %v14129_v57, 0.0  ;;  %v14130_v10 = vld [vmem:[#allocation74_spill] sm:$0xff] }
 0x5d6   :  { %14124 = vst [vmem:[#allocation10_spill] sm:$0xff] %v11512_v45  ;;  %v2825_v55 = vmax.f32 %v14130_v10, 0.0 }
 0x5da   :  { %3498 = vrot.lane.b32.xlu2 %v2808_v28, %s6760_s29  ;;  %6497 = vrot.lane.b32.xlu1 %v14115_v31, %s6762_s18  ;;  %v14118_v28 = vld [vmem:[#allocation19_spill] sm:$0xff] }
 0x5db   :  { %3602 = vrot.lane.b32.xlu0 %v2810_v26, %s6761_s17  ;;  %v14120_v26 = vld [vmem:[#allocation111_spill] sm:$0xff] }
 0x5dc   :  { %v13595_v2 = vmax.f32 %v14120_v26, 0.0  ;;  %v14132_v26 = vld [vmem:[#allocation86_spill] sm:$0xff] }
 0x5e2   :  { %6487 = vrot.lane.b32.xlu2 %v6486_v25, %s6760_s29  ;;  %6512 = vrot.lane.b32.xlu1 %v14118_v28, %s6762_s18  ;;  %v6501_v25 = vpack.i.bf16 %v13594_v51, %v13595_v2  ;;  %v14125_v28 = vld [vmem:[#allocation32_spill] sm:$0xff]  ;;  %v1990_v51 = vadd.f32 %v11237_v24, %v14132_v26  ;;  %v11536_v2 = vpop.f32.mrf.mxu3  ;;  %v14136_v26 = vld [vmem:[#allocation31_spill] sm:$0xff] }
 0x5e3   :  { %6492 = vrot.lane.b32.xlu0 %v14115_v31, %s6761_s17  ;;  %v11519_v54 = vadd.f32 %v14125_v28, %v1987_v29  ;;  %v14127_v31 = vld [vmem:[#allocation51_spill] sm:$0xff]  ;;  %v14133_v28 = vld [vmem:[#allocation65_spill] sm:$0xff]  ;;  %14135 = vst [vmem:[#allocation35_spill] sm:$0xff] %v11536_v2 }
 0x5e4   :  { %v2610_v17 = vadd.f32 %v14127_v31, %v1993_v34  ;;  %v1996_v34 = vadd.f32 %v11237_v24, %v14133_v28  ;;  %v11546_v10 = vadd.f32 %v14136_v26, %v1990_v51  ;;  %v14138_v28 = vld [vmem:[#allocation66_spill] sm:$0xff]  ;;  %v14142_v26 = vld [vmem:[#allocation115_spill] sm:$0xff] }
 0x5e5   :  { %14126 = vst [vmem:[#allocation76_spill] sm:$0xff] %v11519_v54  ;;  %v13598_v29 = vmax.f32 %v11519_v54, 0.0 }
 0x5e6   :  { %v2837_v31 = vmax.f32 %v2610_v17, 0.0  ;;  %14137 = vst [vmem:[#allocation34_spill] sm:$0xff] %v11546_v10  ;;  %v2613_v17 = vadd.f32 %v14138_v28, %v1996_v34  ;;  %v13602_v51 = vmax.f32 %v11546_v10, 0.0  ;;  %v2005_v28 = vadd.f32 %v11237_v24, %v14142_v26  ;;  %v6393_v26 = vpop.permute.xlu1 %6392 }
 0x5e8   :  { %v6541_v36 = vpack.i.bf16 %v2825_v55, %v2837_v31  ;;  %v14141_v55 = vld [vmem:[#allocation119_spill] sm:$0xff]  ;;  %v2838_v31 = vmax.f32 %v2613_v17, 0.0  ;;  %v2622_v45 = vadd.f32 %v10690_v6, %v2005_v28  ;;  %v14147_v17 = vld [vmem:[#allocation113_spill] sm:$0xff] }
 0x5e9   :  { %v1999_v34 = vadd.f32 %v11237_v24, %v14141_v55  ;;  %v2002_v55 = vadd.f32 %v11237_v24, %v14147_v17  ;;  %v2886_v28 = vld [vmem:[%s13344_s3 + $0x118] sm:$0xff] }
 0x5ea   :  { %6502 = vrot.lane.b32.xlu2 %v6501_v25, %s6760_s29  ;;  %6527 = vrot.lane.b32.xlu1 %v14128_v30, %s6762_s18  ;;  %v11534_v25 = vpop.f32.mrf.mxu2  ;;  %v2887_v30 = vld [vmem:[%s13344_s3 + $0x120] sm:$0xff]  ;;  %v2841_v6 = vmax.f32 %v2622_v45, 0.0 }
 0x5eb   :  { %6507 = vrot.lane.b32.xlu0 %v14131_v44, %s6761_s17  ;;  %14134 = vst [vmem:[#allocation26_spill] sm:$0xff] %v11534_v25  ;;  %4298 = vmatpush.msra.mxu2 %v2887_v30  ;;  %v6516_v44 = vpack.i.bf16 %v13597_v3, %v13598_v29  ;;  %v2903_v25 = vld [vmem:[%s13344_s3 + $0x1a0] sm:$0xff]  ;;  %v14139_v30 = vld [vmem:[#allocation52_spill] sm:$0xff]  ;;  %v14140_v3 = vld [vmem:[#allocation81_spill] sm:$0xff] }
 0x5ec   :  { %v13601_v2 = vmax.f32 %v14139_v30, 0.0  ;;  %4411 = vmatpush.msra.mxu3 %v2903_v25  ;;  %v2826_v29 = vmax.f32 %v14140_v3, 0.0  ;;  %v14144_v25 = vld [vmem:[#allocation45_spill] sm:$0xff]  ;;  %v11571_v3 = vpop.f32.mrf.mxu3 }
 0x5ed   :  { %v11569_v54 = vadd.f32 %v14144_v25, %v1999_v34  ;;  %14146 = vst [vmem:[#allocation28_spill] sm:$0xff] %v11571_v3  ;;  %v14149_v34 = vld [vmem:[#allocation114_spill] sm:$0xff]  ;;  %4299 = vmatpush.msra.mxu2 %v2886_v28  ;;  %v6395_v3 = vunpack.i.h.bf16 %v6393_v26 }
 0x5ee   :  { %v14150_v25 = vld [vmem:[#allocation70_spill] sm:$0xff] }
 0x5ef   :  { %14145 = vst [vmem:[#allocation105_spill] sm:$0xff] %v11569_v54 }
 0x5f2   :  { %6517 = vrot.lane.b32.xlu2 %v6516_v44, %s6760_s29  ;;  %6542 = vrot.lane.b32.xlu1 %v6541_v36, %s6762_s18  ;;  %v11562_v57 = vpop.f32.mrf.mxu2  ;;  %v6531_v44 = vpack.i.bf16 %v13601_v2, %v13602_v51  ;;  %v2008_v51 = vadd.f32 %v11237_v24, %v14150_v25  ;;  %v6394_v25 = vunpack.i.l.bf16 %v6393_v26  ;;  %v14156_v26 = vmax.f32 %v11074_v35, 0.0 }
 0x5f3   :  { %6522 = vrot.lane.b32.xlu0 %v6541_v36, %s6761_s17  ;;  %14143 = vst [vmem:[#allocation104_spill] sm:$0xff] %v11562_v57  ;;  %v6556_v36 = vpack.i.bf16 %v2826_v29, %v2838_v31  ;;  %v14148_v57 = vld [vmem:[#allocation48_spill] sm:$0xff]  ;;  %v13605_v29 = vmax.f32 %v11569_v54, 0.0  ;;  %v2829_v31 = vmax.f32 %v14149_v34, 0.0  ;;  %v6403_v34 = vpop.permute.xlu2 %6402 }
 0x5f4   :  { %v2827_v2 = vmax.f32 %v14148_v57, 0.0  ;;  %v2625_v30 = vadd.f32 %v10721_v4, %v2008_v51  ;;  %v11598_v59 = vpop.f32.mrf.mxu3  ;;  %v3843_v4 = vsel %vm3816_vm1, %v14156_v26, %v6394_v25  ;;  %v3938_v51 = vsel %vm3816_vm1, %v2791_v5, %v6395_v3 }
 0x5f5   :  { %v6551_v45 = vpack.i.bf16 %v2829_v31, %v2841_v6  ;;  %14154 = vst [vmem:[#allocation110_spill] sm:$0xff] %v11598_v59  ;;  %v14157_v31 = vld [vmem:[#allocation55_spill] sm:$0xff]  ;;  %v6405_v39 = vunpack.i.h.bf16 %v6403_v34 }
 0x5f6   :  { %v6546_v17 = vpack.i.bf16 %v2827_v2, %v13605_v29  ;;  %v6404_v29 = vunpack.i.l.bf16 %v6403_v34  ;;  %v2017_v34 = vadd.f32 %v11237_v24, %v11031_v27 }
 0x5f7   :  { %v3970_v35 = vsel %vm1193_vm0, %v3938_v51, %v6405_v39 }
 0x5f8   :  { %v11638_v51 = vadd.f32 %v11094_v9, %v2017_v34 }
 0x5fa   :  { %6532 = vrot.lane.b32.xlu2 %v6531_v44, %s6760_s29  ;;  %6557 = vrot.lane.b32.xlu1 %v6556_v36, %s6762_s18  ;;  %v2902_v44 = vld [vmem:[%s13344_s3 + $0x198] sm:$0xff]  ;;  %v11596_v10 = vpop.f32.mrf.mxu2 }
 0x5fb   :  { %6537 = vrot.lane.b32.xlu0 %v6556_v36, %s6761_s17  ;;  %4412 = vmatpush.msra.mxu3 %v2902_v44  ;;  %v14151_v36 = vld [vmem:[#allocation122_spill] sm:$0xff]  ;;  %14153 = vst [vmem:[#allocation109_spill] sm:$0xff] %v11596_v10  ;;  %v2830_v44 = vmax.f32 %v14157_v31, 0.0  ;;  %v6408_v26 = vpop.permute.xlu2 %6407 }
 0x5fc   :  { %v11591_v57 = vadd.f32 %v14151_v36, %v2002_v55  ;;  %v14155_v55 = vld [vmem:[#allocation56_spill] sm:$0xff]  ;;  %v2842_v36 = vmax.f32 %v2625_v30, 0.0  ;;  %v6410_v31 = vunpack.i.h.bf16 %v6408_v26 }
 0x5fd   :  { %v2828_v28 = vmax.f32 %v14155_v55, 0.0 }
 0x5fe   :  { %14152 = vst [vmem:[#allocation108_spill] sm:$0xff] %v11591_v57  ;;  %v13607_v2 = vmax.f32 %v11591_v57, 0.0  ;;  %v6566_v3 = vpack.i.bf16 %v2830_v44, %v2842_v36  ;;  %v6409_v44 = vunpack.i.l.bf16 %v6408_v26 }
 0x600   :  { %v6561_v55 = vpack.i.bf16 %v2828_v28, %v13607_v2  ;;  %v2792_v28 = vmax.f32 %v11287_v52, 0.0 }
 0x602   :  { %6547 = vrot.lane.b32.xlu2 %v6546_v17, %s6760_s29  ;;  %3742 = vrot.lane.b32.xlu1 %v2841_v6, %s6762_s18  ;;  %v6398_v17 = vpop.permute.xlu1 %6397 }
 0x603   :  { %6552 = vrot.lane.b32.xlu0 %v6551_v45, %s6761_s17  ;;  %v3875_v45 = vsel %vm1193_vm0, %v3843_v4, %v6404_v29  ;;  %v6400_v10 = vunpack.i.h.bf16 %v6398_v17  ;;  %v6399_v25 = vunpack.i.l.bf16 %v6398_v17  ;;  %v11627_v29 = vpop.f32.mrf.mxu3 }
 0x604   :  { %v6413_v59 = vpop.permute.xlu0 %6412 }
 0x605   :  { %v6415_v6 = vunpack.i.h.bf16 %v6413_v59  ;;  %v6414_v54 = vunpack.i.l.bf16 %v6413_v59  ;;  %v11623_v59 = vpop.f32.mrf.mxu2  ;;  %v3939_v4 = vsel %vm3816_vm1, %v2792_v28, %v6400_v10  ;;  %v2020_v10 = vadd.f32 %v11237_v24, %v11062_v60 }
 0x607   :  { %v11616_v5 = vsel %vm3881_vm2, %v3875_v45, %v6414_v54  ;;  %v11619_v30 = vsel %vm3881_vm2, %v3970_v35, %v6415_v6  ;;  %v14158_v54 = vmax.f32 %v11084_v33, 0.0  ;;  %v3971_v33 = vsel %vm1193_vm0, %v3939_v4, %v6410_v31  ;;  %v2901_v35 = vld [vmem:[%s13344_s3 + $0x190] sm:$0xff]  ;;  %v2900_v31 = vld [vmem:[%s13344_s3 + $0x188] sm:$0xff] }
 0x608   :  { %4155 = vmatmul.f32.gmra.mxu2 %v11616_v5  ;;  %4262 = vmatmul.f32.gmra.mxu3 %v11619_v30  ;;  %v13609_v45 = vmax.f32 %v11638_v51, 0.0  ;;  %v11667_v60 = vadd.f32 %v11128_v61, %v2020_v10 }
 0x609   :  { %v3844_v27 = vsel %vm3816_vm1, %v14158_v54, %v6399_v25  ;;  %4413 = vmatpush.msra.mxu3 %v2901_v35  ;;  %v6433_v54 = vpop.permute.xlu2 %6432  ;;  %v2883_v35 = vld [vmem:[%s13344_s3 + $0x100] sm:$0xff] }
 0x60a   :  { %6562 = vrot.lane.b32.xlu2 %v6561_v55, %s6760_s29  ;;  %3744 = vrot.lane.b32.xlu1 %v2842_v36, %s6762_s18  ;;  %v2885_v36 = vld [vmem:[%s13344_s3 + $0x110] sm:$0xff]  ;;  %v3876_v6 = vsel %vm1193_vm0, %v3844_v27, %v6409_v44  ;;  %v13608_v24 = vmax.f32 %v11667_v60, 0.0  ;;  %v6418_v34 = vpop.permute.xlu1 %6417  ;;  %v2884_v27 = vld [vmem:[%s13344_s3 + $0x108] sm:$0xff] }
 0x60b   :  { %6567 = vrot.lane.b32.xlu0 %v6566_v3, %s6761_s17  ;;  %4300 = vmatpush.msra.mxu2 %v2885_v36  ;;  %v11664_v3 = vpop.f32.mrf.mxu3  ;;  %v6420_v4 = vunpack.i.h.bf16 %v6418_v34  ;;  %v6419_v61 = vunpack.i.l.bf16 %v6418_v34 }
 0x60c   :  { %v6423_v39 = vpop.permute.xlu0 %6422  ;;  %14159 = vst [vmem:[#allocation43_spill] sm:$0xff] %v11664_v3  ;;  %4414 = vmatpush.msra.mxu3 %v2900_v31 }
 0x60d   :  { %v6425_v52 = vunpack.i.h.bf16 %v6423_v39  ;;  %v6424_v17 = vunpack.i.l.bf16 %v6423_v39  ;;  %v11662_v25 = vpop.f32.mrf.mxu2  ;;  %4301 = vmatpush.msra.mxu2 %v2884_v27  ;;  %v14160_v39 = vmax.f32 %v11341_v7, 0.0 }
 0x60f   :  { %v11646_v55 = vsel %vm3881_vm2, %v3876_v6, %v6424_v17  ;;  %v11649_v9 = vsel %vm3881_vm2, %v3971_v33, %v6425_v52  ;;  %v3845_v52 = vsel %vm3816_vm1, %v14160_v39, %v6419_v61  ;;  %v14161_v17 = vmax.f32 %v11345_v12, 0.0  ;;  %4302 = vmatpush.msra.mxu2 %v2883_v35 }
 0x610   :  { %4158 = vmatmul.f32.gmra.mxu2 %v11646_v55  ;;  %4265 = vmatmul.f32.gmra.mxu3 %v11649_v9  ;;  %v6435_v6 = vunpack.i.h.bf16 %v6433_v54  ;;  %v6434_v33 = vunpack.i.l.bf16 %v6433_v54 }
 0x611   :  { %v3940_v36 = vsel %vm3816_vm1, %v14161_v17, %v6420_v4  ;;  %v6438_v61 = vpop.permute.xlu2 %6437 }
 0x612   :  { %v6428_v44 = vpop.permute.xlu1 %6427  ;;  %v3877_v7 = vsel %vm1193_vm0, %v3845_v52, %v6434_v33  ;;  %v3972_v12 = vsel %vm1193_vm0, %v3940_v36, %v6435_v6  ;;  %v14163_v36 = vmax.f32 %v11358_v62, 0.0  ;;  %v6439_v33 = vunpack.i.l.bf16 %v6438_v61 }
 0x613   :  { %3800 = vrot.lane.b32.xlu0 %v13609_v45, %s6761_s17  ;;  %v11675_v26 = vpop.f32.mrf.mxu3  ;;  %v6430_v4 = vunpack.i.h.bf16 %v6428_v44  ;;  %v6429_v39 = vunpack.i.l.bf16 %v6428_v44  ;;  %v6440_v44 = vunpack.i.h.bf16 %v6438_v61  ;;  %v2899_v61 = vld [vmem:[%s13344_s3 + $0x180] sm:$0xff] }
 0x614   :  { %4415 = vmatpush.msra.mxu3 %v2899_v61 }
 0x615   :  { %v11673_v28 = vpop.f32.mrf.mxu2  ;;  %v3941_v6 = vsel %vm3816_vm1, %v14163_v36, %v6430_v4 }
 0x616   :  { %v3973_v57 = vsel %vm1193_vm0, %v3941_v6, %v6440_v44 }
 0x61b   :  { %3802 = vrot.lane.b32.xlu0 %v13608_v24, %s6761_s17  ;;  %v11694_v27 = vpop.f32.mrf.mxu3 }
 0x61d   :  { %v11692_v34 = vpop.f32.mrf.mxu2 }
 0x624   :  { %v6443_v10 = vpop.permute.xlu0 %6442  ;;  %v6448_v24 = vpop.permute.xlu1 %6447 }
 0x625   :  { %v6445_v31 = vunpack.i.h.bf16 %v6443_v10  ;;  %v6444_v2 = vunpack.i.l.bf16 %v6443_v10  ;;  %v14162_v10 = vmax.f32 %v11166_v23, 0.0  ;;  %v11712_v35 = vpop.f32.mrf.mxu2  ;;  %v6468_v23 = vpop.permute.xlu2 %6467  ;;  %v6450_v3 = vunpack.i.h.bf16 %v6448_v24 }
 0x626   :  { %14164 = vst [vmem:[#allocation8_spill] sm:$0xff] %v11712_v35  ;;  %v6470_v36 = vunpack.i.h.bf16 %v6468_v23 }
 0x627   :  { %v11699_v54 = vsel %vm3881_vm2, %v3877_v7, %v6444_v2  ;;  %v11702_v17 = vsel %vm3881_vm2, %v3972_v12, %v6445_v31  ;;  %v3846_v52 = vsel %vm3816_vm1, %v14162_v10, %v6429_v39  ;;  %v11714_v31 = vpop.f32.mrf.mxu3  ;;  %v6449_v39 = vunpack.i.l.bf16 %v6448_v24 }
 0x628   :  { %4161 = vmatmul.f32.gmra.mxu2 %v11699_v54  ;;  %4268 = vmatmul.f32.gmra.mxu3 %v11702_v17  ;;  %v3878_v45 = vsel %vm1193_vm0, %v3846_v52, %v6439_v33  ;;  %v14165_v10 = vmax.f32 %v11215_v32, 0.0  ;;  %v14166_v24 = vmax.f32 %v11385_v48, 0.0 }
 0x62a   :  { %v3847_v52 = vsel %vm3816_vm1, %v14165_v10, %v6449_v39  ;;  %v14169_v10 = vmax.f32 %v11220_v15, 0.0 }
 0x62c   :  { %v6453_v2 = vpop.permute.xlu0 %6452  ;;  %v6463_v6 = vpop.permute.xlu1 %6462 }
 0x62d   :  { %v6455_v7 = vunpack.i.h.bf16 %v6453_v2  ;;  %v6454_v12 = vunpack.i.l.bf16 %v6453_v2  ;;  %v11737_v35 = vpop.f32.mrf.mxu2  ;;  %v6465_v32 = vunpack.i.h.bf16 %v6463_v6  ;;  %v6464_v39 = vunpack.i.l.bf16 %v6463_v6 }
 0x62e   :  { %14167 = vst [vmem:[#allocation39_spill] sm:$0xff] %v11737_v35 }
 0x62f   :  { %v11719_v62 = vsel %vm3881_vm2, %v3878_v45, %v6454_v12  ;;  %v11722_v4 = vsel %vm3881_vm2, %v3973_v57, %v6455_v7  ;;  %v3942_v45 = vsel %vm3816_vm1, %v14166_v24, %v6450_v3  ;;  %v6469_v57 = vunpack.i.l.bf16 %v6468_v23  ;;  %v11739_v61 = vpop.f32.mrf.mxu3  ;;  %v6473_v23 = vpop.permute.xlu2 %6472 }
 0x630   :  { %4164 = vmatmul.f32.gmra.mxu2 %v11719_v62  ;;  %4271 = vmatmul.f32.gmra.mxu3 %v11722_v4  ;;  %v3974_v12 = vsel %vm1193_vm0, %v3942_v45, %v6470_v36  ;;  %14168 = vst [vmem:[#allocation29_spill] sm:$0xff] %v11739_v61  ;;  %v14170_v24 = vmax.f32 %v11401_v0, 0.0  ;;  %v6475_v36 = vunpack.i.h.bf16 %v6473_v23 }
 0x631   :  { %v3879_v7 = vsel %vm1193_vm0, %v3847_v52, %v6469_v57  ;;  %v3848_v52 = vsel %vm3816_vm1, %v14169_v10, %v6464_v39  ;;  %v6474_v57 = vunpack.i.l.bf16 %v6473_v23  ;;  %v14171_v39 = vmax.f32 %v11429_v63, 0.0 }
 0x632   :  { %v3943_v45 = vsel %vm3816_vm1, %v14170_v24, %v6465_v32 }
 0x635   :  { %v6458_v44 = vpop.permute.xlu0 %6457  ;;  %v11757_v35 = vpop.f32.mrf.mxu2 }
 0x636   :  { %v6460_v33 = vunpack.i.h.bf16 %v6458_v44  ;;  %v6459_v2 = vunpack.i.l.bf16 %v6458_v44 }
 0x637   :  { %v11759_v61 = vpop.f32.mrf.mxu3  ;;  %v3497_v32 = vpop.permute.xlu2 %3496 }
 0x638   :  { %v11742_v48 = vsel %vm3881_vm2, %v3879_v7, %v6459_v2  ;;  %v11745_v3 = vsel %vm3881_vm2, %v3974_v12, %v6460_v33  ;;  %v3369_v33 = vpop.permute.xlu1 %3368  ;;  %v3880_v7 = vsel %vm1193_vm0, %v3848_v52, %v6474_v57  ;;  %v3975_v12 = vsel %vm1193_vm0, %v3943_v45, %v6475_v36  ;;  %v14172_v36 = vld [vmem:[#allocation83_spill] sm:$0xff] }
 0x639   :  { %4167 = vmatmul.f32.gmra.mxu2 %v11742_v48  ;;  %4274 = vmatmul.f32.gmra.mxu3 %v11745_v3  ;;  %v3944_v23 = vsel %vm3816_vm1, %v14171_v39, %v3369_v33 }
 0x63a   :  { %v3976_v52 = vsel %vm1193_vm0, %v3944_v23, %v3497_v32  ;;  %v14174_v32 = vld [vmem:[#allocation58_spill] sm:$0xff] }
 0x63d   :  { %v6478_v6 = vpop.permute.xlu0 %6477  ;;  %v11778_v57 = vpop.f32.mrf.mxu2 }
 0x63e   :  { %v6480_v44 = vunpack.i.h.bf16 %v6478_v6  ;;  %v6479_v2 = vunpack.i.l.bf16 %v6478_v6 }
 0x63f   :  { %v11780_v6 = vpop.f32.mrf.mxu3  ;;  %v3499_v33 = vpop.permute.xlu2 %3498 }
 0x640   :  { %v11762_v15 = vsel %vm3881_vm2, %v3880_v7, %v6479_v2  ;;  %v11765_v0 = vsel %vm3881_vm2, %v3975_v12, %v6480_v44  ;;  %v3371_v45 = vpop.permute.xlu1 %3370  ;;  %v14173_v44 = vmax.f32 %v14105_v22, 0.0  ;;  %v14177_v22 = vld [vmem:[#allocation61_spill] sm:$0xff] }
 0x641   :  { %4170 = vmatmul.f32.gmra.mxu2 %v11762_v15  ;;  %4277 = vmatmul.f32.gmra.mxu3 %v11765_v0 }
 0x642   :  { %v3945_v63 = vsel %vm3816_vm1, %v14173_v44, %v3371_v45  ;;  %v14181_v44 = vld [vmem:[#allocation62_spill] sm:$0xff] }
 0x643   :  { %v3977_v7 = vsel %vm1193_vm0, %v3945_v63, %v3499_v33  ;;  %v14183_v33 = vld [vmem:[#allocation120_spill] sm:$0xff] }
 0x645   :  { %v3601_v10 = vpop.permute.xlu0 %3600  ;;  %v11791_v39 = vpop.f32.mrf.mxu2 }
 0x646   :  { %v11774_v24 = vsel %vm3881_vm2, %v3976_v52, %v3601_v10  ;;  %14175 = vst [vmem:[#allocation75_spill] sm:$0xff] %v11791_v39  ;;  %v14176_v10 = vld [vmem:[#allocation42_spill] sm:$0xff] }
 0x647   :  { %v11793_v23 = vpop.f32.mrf.mxu3 }
 0x649   :  { %4280 = vmatmul.f32.gmra.mxu3 %v11774_v24  ;;  %4303 = vmatmul.f32.vlgmr.msra.gmra.mxu2 %v14172_v36  ;;  %v14180_v36 = vld [vmem:[#allocation63_spill] sm:$0xff] }
 0x64d   :  { %v3603_v2 = vpop.permute.xlu0 %3602  ;;  %v11797_v52 = vpop.f32.mrf.mxu2 }
 0x64e   :  { %v11787_v12 = vsel %vm3881_vm2, %v3977_v7, %v3603_v2  ;;  %14178 = vst [vmem:[#allocation78_spill] sm:$0xff] %v11797_v52  ;;  %v14184_v7 = vld [vmem:[#allocation112_spill] sm:$0xff]  ;;  %v14188_v52 = vld [vmem:[#allocation121_spill] sm:$0xff] }
 0x64f   :  { %v11799_v45 = vpop.f32.mrf.mxu3 }
 0x650   :  { %14179 = vst [vmem:[#allocation59_spill] sm:$0xff] %v11799_v45  ;;  %v14191_v45 = vld [vmem:[#allocation117_spill] sm:$0xff] }
 0x651   :  { %4283 = vmatmul.f32.gmra.mxu3 %v11787_v12  ;;  %4306 = vmatmul.f32.gmra.mxu2 %v14174_v32 }
 0x655   :  { %v11803_v63 = vpop.f32.mrf.mxu2 }
 0x657   :  { %v11805_v2 = vpop.f32.mrf.mxu3 }
 0x658   :  { %14182 = vst [vmem:[#allocation82_spill] sm:$0xff] %v11805_v2 }
 0x659   :  { %4309 = vmatmul.f32.gmra.mxu2 %v14176_v10  ;;  %4416 = vmatmul.f32.vlgmr.msra.gmra.mxu3 %v14177_v22  ;;  %v14187_v22 = vld [vmem:[#allocation37_spill] sm:$0xff] }
 0x65d   :  { %v11809_v32 = vpop.f32.mrf.mxu2 }
 0x65e   :  { %14185 = vst [vmem:[#allocation73_spill] sm:$0xff] %v11809_v32  ;;  %v14193_v32 = vld [vmem:[#allocation71_spill] sm:$0xff] }
 0x65f   :  { %v11811_v10 = vpop.f32.mrf.mxu3 }
 0x660   :  { %14186 = vst [vmem:[#allocation85_spill] sm:$0xff] %v11811_v10 }
 0x661   :  { %4312 = vmatmul.f32.gmra.mxu2 %v14180_v36  ;;  %4419 = vmatmul.f32.gmra.mxu3 %v14181_v44  ;;  %v14190_v44 = vld [vmem:[#allocation69_spill] sm:$0xff] }
 0x665   :  { %v11815_v39 = vpop.f32.mrf.mxu2 }
 0x666   :  { %14189 = vst [vmem:[#allocation77_spill] sm:$0xff] %v11815_v39  ;;  %v14196_v39 = vld [vmem:[#allocation87_spill] sm:$0xff] }
 0x667   :  { %v11817_v36 = vpop.f32.mrf.mxu3 }
 0x669   :  { %4315 = vmatmul.f32.gmra.mxu2 %v14183_v33  ;;  %4422 = vmatmul.f32.gmra.mxu3 %v14184_v7  ;;  %v14192_v7 = vld [vmem:[#allocation36_spill] sm:$0xff] }
 0x66d   :  { %v11821_v2 = vpop.f32.mrf.mxu2 }
 0x66f   :  { %v11823_v33 = vpop.f32.mrf.mxu3 }
 0x671   :  { %4318 = vmatmul.f32.gmra.mxu2 %v14187_v22  ;;  %4425 = vmatmul.f32.gmra.mxu3 %v14188_v52  ;;  %v14195_v52 = vld [vmem:[#allocation89_spill] sm:$0xff] }
 0x675   :  { %v11827_v10 = vpop.f32.mrf.mxu2 }
 0x676   :  { %14194 = vst [vmem:[#allocation84_spill] sm:$0xff] %v11827_v10 }
 0x677   :  { %v11829_v22 = vpop.f32.mrf.mxu3 }
 0x679   :  { %4321 = vmatmul.f32.gmra.mxu2 %v14190_v44  ;;  %4428 = vmatmul.f32.gmra.mxu3 %v14191_v45  ;;  %v4560_v45 = vld [vmem:[%s13346_s5 + $0x78] sm:$0xff] }
 0x67a   :  { %4763 = vmatpush.msrb.mxu2 %v4560_v45 }
 0x67d   :  { %v11838_v44 = vpop.f32.mrf.mxu2 }
 0x67e   :  { %14197 = vst [vmem:[#allocation88_spill] sm:$0xff] %v11838_v44 }
 0x681   :  { %4324 = vmatmul.f32.gmra.mxu2 %v14192_v7  ;;  %4431 = vmatmul.f32.gmra.mxu3 %v14193_v32  ;;  %v11840_v32 = vpop.f32.mrf.mxu3 }
 0x689   :  { %4327 = vmatmul.f32.gmra.mxu2 %v14195_v52  ;;  %4434 = vmatmul.f32.gmra.mxu3 %v14196_v39  ;;  %v4559_v39 = vld [vmem:[%s13346_s5 + $0x70] sm:$0xff] }
 0x68a   :  { %4764 = vmatpush.msrb.mxu2 %v4559_v39 }
 0x68b   :  { %v11847_v7 = vpop.f32.mrf.mxu2  ;;  %v11849_v52 = vpop.f32.mrf.mxu3 }
 0x68c   :  { %14198 = vst [vmem:[#allocation15_spill] sm:$0xff] %v11849_v52 }
 0x691   :  { %4330 = vmatmul.f32.gmra.mxu2 %v10726_v1  ;;  %4437 = vmatmul.f32.gmra.mxu3 %v10729_v37 }
 0x693   :  { %v11853_v1 = vpop.f32.mrf.mxu2  ;;  %v11855_v37 = vpop.f32.mrf.mxu3 }
 0x694   :  { %14199 = vst [vmem:[#allocation18_spill] sm:$0xff] %v11855_v37 }
 0x699   :  { %4333 = vmatmul.f32.gmra.mxu2 %v11036_v14  ;;  %4440 = vmatmul.f32.gmra.mxu3 %v11039_v8  ;;  %v4558_v14 = vld [vmem:[%s13346_s5 + $0x68] sm:$0xff] }
 0x69a   :  { %4765 = vmatpush.msrb.mxu2 %v4558_v14 }
 0x6a1   :  { %4336 = vmatmul.f32.gmra.mxu2 %v11057_v53  ;;  %4443 = vmatmul.f32.gmra.mxu3 %v11060_v18 }
 0x6a9   :  { %4339 = vmatmul.f32.gmra.mxu2 %v11105_v20  ;;  %4446 = vmatmul.f32.gmra.mxu3 %v11108_v49  ;;  %v11871_v20 = vld [vmem:[%s13345_s4] ss:$0 sm:$0xff] }
 0x6aa   :  { %v4557_v49 = vld [vmem:[%s13346_s5 + $0x60] sm:$0xff] }
 0x6ab   :  { %v4162_v8 = vpop.f32.mrf.mxu2  ;;  %v11862_v45 = vpop.f32.mrf.mxu3  ;;  %4766 = vmatpush.msrb.mxu2 %v4557_v49  ;;  %v4576_v49 = vld [vmem:[%s13346_s5 + $0xf8] sm:$0xff] }
 0x6ac   :  { %4804 = vmatpush.msrb.mxu3 %v4576_v49 }
 0x6b1   :  { %4342 = vmatmul.f32.gmra.mxu2 %v11133_v42  ;;  %4449 = vmatmul.f32.gmra.mxu3 %v11136_v11  ;;  %v4163_v42 = vadd.f32 %v11871_v20, %v4162_v8  ;;  %v14202_v8 = vld [vmem:[#allocation24_spill] sm:$0xff] }
 0x6b3   :  { %v4165_v53 = vpop.f32.mrf.mxu2  ;;  %v11866_v18 = vpop.f32.mrf.mxu3 }
 0x6b4   :  { %v4166_v37 = vadd.f32 %v11871_v20, %v4165_v53 }
 0x6b9   :  { %4345 = vmatmul.f32.gmra.mxu2 %v11177_v43  ;;  %4452 = vmatmul.f32.gmra.mxu3 %v11180_v21 }
 0x6bc   :  { %v4168_v11 = vpop.f32.mrf.mxu2  ;;  %v4275_v39 = vpop.f32.mrf.mxu3 }
 0x6bd   :  { %v11879_v14 = vadd.f32 %v4275_v39, %v4163_v42 }
 0x6bf   :  { %14200 = vst [vmem:[#allocation67_spill] sm:$0xff] %v11879_v14 }
 0x6c1   :  { %4348 = vmatmul.f32.gmra.mxu2 %v11198_v56  ;;  %4455 = vmatmul.f32.gmra.mxu3 %v11201_v19  ;;  %v4556_v56 = vld [vmem:[%s13346_s5 + $0x58] sm:$0xff]  ;;  %v4169_v19 = vadd.f32 %v11871_v20, %v4168_v11  ;;  %v4575_v11 = vld [vmem:[%s13346_s5 + $0xf0] sm:$0xff] }
 0x6c2   :  { %4767 = vmatpush.msrb.mxu2 %v4556_v56  ;;  %4805 = vmatpush.msrb.mxu3 %v4575_v11 }
 0x6c4   :  { %v4171_v43 = vpop.f32.mrf.mxu2  ;;  %v4278_v44 = vpop.f32.mrf.mxu3 }
 0x6c5   :  { %v11884_v21 = vadd.f32 %v4278_v44, %v4166_v37  ;;  %v4172_v37 = vadd.f32 %v11871_v20, %v4171_v43 }
 0x6c7   :  { %14201 = vst [vmem:[#allocation90_spill] sm:$0xff] %v11884_v21 }
 0x6c9   :  { %4351 = vmatmul.f32.gmra.mxu2 %v11297_v41  ;;  %4458 = vmatmul.f32.gmra.mxu3 %v14202_v8  ;;  %v14205_v8 = vld [vmem:[#allocation33_spill] sm:$0xff] }
 0x6ca   :  { %v4079_v52 = vadd.f32 %v11871_v20, %v14205_v8  ;;  %v14206_v8 = vld [vmem:[#allocation79_spill] sm:$0xff] }
 0x6cc   :  { %v4281_v53 = vpop.f32.mrf.mxu3  ;;  %v4304_v42 = vpop.f32.mrf.mxu2  ;;  %v4192_v56 = vadd.f32 %v11427_v46, %v4079_v52 }
 0x6cd   :  { %v11895_v44 = vadd.f32 %v4281_v53, %v4169_v19 }
 0x6cf   :  { %14203 = vst [vmem:[#allocation13_spill] sm:$0xff] %v11895_v44 }
 0x6d1   :  { %4354 = vmatmul.f32.gmra.mxu2 %v11319_v13  ;;  %4461 = vmatmul.f32.gmra.mxu3 %v11322_v47  ;;  %v4555_v13 = vld [vmem:[%s13346_s5 + $0x50] sm:$0xff]  ;;  %v4305_v47 = vadd.f32 %v4304_v42, %v4192_v56  ;;  %v11925_v42 = vld [vmem:[%s13343_s2] ss:$0 sm:$0xff] }
 0x6d2   :  { %4768 = vmatpush.msrb.mxu2 %v4555_v13  ;;  %v2011_v11 = vadd.f32 %v11925_v42, %v14206_v8  ;;  %v6483_v8 = vpop.permute.xlu1 %6482 }
 0x6d4   :  { %v4284_v41 = vpop.f32.mrf.mxu3  ;;  %v4307_v39 = vpop.f32.mrf.mxu2 }
 0x6d5   :  { %v11900_v49 = vadd.f32 %v4284_v41, %v4172_v37  ;;  %v4082_v37 = vadd.f32 %v11871_v20, %v11327_v16  ;;  %v4085_v16 = vadd.f32 %v11871_v20, %v11425_v40 }
 0x6d7   :  { %14204 = vst [vmem:[#allocation116_spill] sm:$0xff] %v11900_v49  ;;  %v4195_v41 = vadd.f32 %v11451_v38, %v4082_v37  ;;  %v4574_v38 = vld [vmem:[%s13346_s5 + $0xe8] sm:$0xff] }
 0x6d8   :  { %4806 = vmatpush.msrb.mxu3 %v4574_v38  ;;  %v14210_v38 = vld [vmem:[#allocation97_spill] sm:$0xff] }
 0x6d9   :  { %4357 = vmatmul.f32.gmra.mxu2 %v11616_v5  ;;  %4464 = vmatmul.f32.gmra.mxu3 %v11619_v30  ;;  %v4308_v46 = vadd.f32 %v4307_v39, %v4195_v41  ;;  %v14207_v39 = vld [vmem:[#allocation91_spill] sm:$0xff] }
 0x6da   :  { %v11941_v56 = vadd.f32 %v14207_v39, %v2011_v11  ;;  %v14211_v39 = vld [vmem:[#allocation60_spill] sm:$0xff] }
 0x6dc   :  { %v4310_v43 = vpop.f32.mrf.mxu2  ;;  %v4417_v19 = vpop.f32.mrf.mxu3  ;;  %v13613_v37 = vmax.f32 %v11941_v56, 0.0 }
 0x6dd   :  { %v11913_v53 = vadd.f32 %v4417_v19, %v4305_v47 }
 0x6e1   :  { %4360 = vmatmul.f32.gmra.mxu2 %v11646_v55  ;;  %4467 = vmatmul.f32.gmra.mxu3 %v11649_v9  ;;  %v4198_v55 = vadd.f32 %v11470_v50, %v4085_v16  ;;  %v4554_v9 = vld [vmem:[%s13346_s5 + $0x48] sm:$0xff]  ;;  %v4088_v50 = vadd.f32 %v11871_v20, %v11448_v58 }
 0x6e2   :  { %4769 = vmatpush.msrb.mxu2 %v4554_v9 }
 0x6e3   :  { %v4311_v40 = vadd.f32 %v4310_v43, %v4198_v55 }
 0x6e4   :  { %v4313_v5 = vpop.f32.mrf.mxu2  ;;  %v4420_v30 = vpop.f32.mrf.mxu3 }
 0x6e5   :  { %v11920_v52 = vadd.f32 %v4420_v30, %v4308_v46  ;;  %v14209_v46 = vld [vmem:[#allocation40_spill] sm:$0xff] }
 0x6e6   :  { %v4201_v30 = vadd.f32 %v14209_v46, %v4088_v50  ;;  %v6493_v50 = vpop.permute.xlu0 %6492 }
 0x6e8   :  { %v4314_v11 = vadd.f32 %v4313_v5, %v4201_v30 }
 0x6e9   :  { %4363 = vmatmul.f32.gmra.mxu2 %v11699_v54  ;;  %4470 = vmatmul.f32.gmra.mxu3 %v11702_v17  ;;  %v14208_v17 = vld [vmem:[#allocation93_spill] sm:$0xff] }
 0x6ea   :  { %v2014_v41 = vadd.f32 %v11925_v42, %v14208_v17  ;;  %v14212_v17 = vld [vmem:[#allocation10_spill] sm:$0xff] }
 0x6ec   :  { %v4316_v13 = vpop.f32.mrf.mxu2  ;;  %v4423_v47 = vpop.f32.mrf.mxu3  ;;  %v11962_v55 = vadd.f32 %v14210_v38, %v2014_v41  ;;  %v4553_v41 = vld [vmem:[%s13346_s5 + $0x40] sm:$0xff]  ;;  %v14215_v38 = vmax.f32 %v11667_v60, 0.0 }
 0x6ed   :  { %v11943_v19 = vadd.f32 %v4423_v47, %v4311_v40  ;;  %v4091_v40 = vadd.f32 %v11871_v20, %v14211_v39  ;;  %v6488_v47 = vpop.permute.xlu2 %6487  ;;  %4770 = vmatpush.msrb.mxu2 %v4553_v41 }
 0x6ee   :  { %v13612_v5 = vmax.f32 %v11962_v55, 0.0 }
 0x6ef   :  { %v13615_v54 = vmax.f32 %v11943_v19, 0.0  ;;  %v4204_v46 = vadd.f32 %v14212_v17, %v4091_v40  ;;  %v6484_v40 = vunpack.i.l.bf16 %v6483_v8 }
 0x6f1   :  { %v6571_v43 = vpack.i.bf16 %v13615_v54, %v13613_v37  ;;  %4366 = vmatmul.f32.gmra.mxu2 %v11719_v62  ;;  %4473 = vmatmul.f32.gmra.mxu3 %v11722_v4  ;;  %v4573_v4 = vld [vmem:[%s13346_s5 + $0xe0] sm:$0xff]  ;;  %v4317_v30 = vadd.f32 %v4316_v13, %v4204_v46  ;;  %v11997_v13 = vpop.permute.xlu0 %6507 }
 0x6f2   :  { %4807 = vmatpush.msrb.mxu3 %v4573_v4  ;;  %v14216_v46 = vld [vmem:[#allocation102_spill] sm:$0xff]  ;;  %v6509_v54 = vunpack.i.l.bf16 %v11997_v13 }
 0x6f3   :  { %6572 = vrot.lane.b32.xlu2 %v6571_v43, %s6760_s29  ;;  %v2811_v41 = vmax.f32 %v14216_v46, 0.0 }
 0x6f4   :  { %v11959_v58 = vpop.f32.mrf.mxu2  ;;  %v4426_v16 = vpop.f32.mrf.mxu3 }
 0x6f5   :  { %v11964_v9 = vadd.f32 %v4426_v16, %v4314_v11  ;;  %v14214_v16 = vmax.f32 %v11638_v51, 0.0  ;;  %v11995_v4 = vpop.permute.xlu2 %6502  ;;  %v6494_v51 = vunpack.i.l.bf16 %v6493_v50 }
 0x6f6   :  { %v6505_v14 = vunpack.i.h.bf16 %v11995_v4 }
 0x6f7   :  { %v13614_v62 = vmax.f32 %v11964_v9, 0.0  ;;  %v6581_v39 = vpack.i.bf16 %v14215_v38, %v14214_v16  ;;  %v6489_v16 = vunpack.i.l.bf16 %v6488_v47 }
 0x6f9   :  { %4369 = vmatmul.f32.gmra.mxu2 %v11742_v48  ;;  %4476 = vmatmul.f32.gmra.mxu3 %v11745_v3  ;;  %v11987_v48 = vpop.permute.xlu1 %6497 }
 0x6fa   :  { %4628 = vrot.lane.b32.xlu1 %v13614_v62, %s6760_s29  ;;  %v6500_v21 = vunpack.i.h.bf16 %v11987_v48 }
 0x6fb   :  { %3776 = vrot.lane.b32.xlu2 %v13612_v5, %s6760_s29 }
 0x6fc   :  { %v11985_v43 = vpop.f32.mrf.mxu2  ;;  %v4429_v11 = vpop.f32.mrf.mxu3 }
 0x6fd   :  { %14213 = vst [vmem:[#allocation92_spill] sm:$0xff] %v11985_v43  ;;  %v11989_v3 = vadd.f32 %v4429_v11, %v4317_v30  ;;  %v4010_v11 = vsel %vm3816_vm1, %v2811_v41, %v6484_v40  ;;  %v4552_v40 = vld [vmem:[%s13346_s5 + $0x38] sm:$0xff]  ;;  %v14218_v41 = vld [vmem:[#allocation103_spill] sm:$0xff]  ;;  %v12024_v5 = vpop.permute.xlu2 %6517 }
 0x6fe   :  { %4771 = vmatpush.msrb.mxu2 %v4552_v40 }
 0x6ff   :  { %v13611_v17 = vmax.f32 %v11989_v3, 0.0 }
 0x701   :  { %4372 = vmatmul.f32.gmra.mxu2 %v11762_v15  ;;  %4479 = vmatmul.f32.gmra.mxu3 %v11765_v0  ;;  %v12012_v38 = vpop.permute.xlu1 %6512  ;;  %v4018_v15 = vsel %vm1193_vm0, %v4010_v11, %v6489_v16  ;;  %v4572_v0 = vld [vmem:[%s13346_s5 + $0xd8] sm:$0xff]  ;;  %v12026_v11 = vpop.permute.xlu0 %6522  ;;  %v6495_v16 = vunpack.i.h.bf16 %v6493_v50  ;;  %v14220_v50 = vld [vmem:[#allocation118_spill] sm:$0xff] }
 0x702   :  { %6582 = vrot.lane.b32.xlu1 %v6581_v39, %s6762_s18  ;;  %v6485_v39 = vunpack.i.h.bf16 %v6483_v8  ;;  %v4026_v46 = vsel %vm3881_vm2, %v4018_v15, %v6494_v51  ;;  %4808 = vmatpush.msrb.mxu3 %v4572_v0  ;;  %v6490_v15 = vunpack.i.h.bf16 %v6488_v47  ;;  %v6499_v0 = vunpack.i.l.bf16 %v11987_v48 }
 0x703   :  { %4630 = vrot.lane.b32.xlu2 %v13611_v17, %s6760_s29  ;;  %v2812_v17 = vmax.f32 %v14218_v41, 0.0  ;;  %v2831_v62 = vmax.f32 %v14220_v50, 0.0 }
 0x704   :  { %v12007_v60 = vpop.f32.mrf.mxu2  ;;  %v12009_v30 = vpop.f32.mrf.mxu3 }
 0x705   :  { %14217 = vst [vmem:[#allocation94_spill] sm:$0xff] %v12007_v60  ;;  %v4011_v51 = vsel %vm3816_vm1, %v2812_v17, %v6485_v39  ;;  %v6524_v17 = vunpack.i.l.bf16 %v12026_v11  ;;  %v12055_v50 = vpop.permute.xlu2 %6532 }
 0x709   :  { %4375 = vmatmul.f32.gmra.mxu2 %v4026_v46  ;;  %4482 = vmatmul.f32.gmra.mxu3 %v11774_v24  ;;  %v4019_v24 = vsel %vm1193_vm0, %v4011_v51, %v6490_v15  ;;  %v6514_v46 = vunpack.i.l.bf16 %v12012_v38  ;;  %v12037_v41 = vpop.permute.xlu1 %6527  ;;  %v14222_v51 = vld [vmem:[#allocation107_spill] sm:$0xff] }
 0x70a   :  { %v4027_v40 = vsel %vm3881_vm2, %v4019_v24, %v6495_v16  ;;  %v14223_v15 = vmax.f32 %v14222_v51, 0.0  ;;  %v6504_v24 = vunpack.i.l.bf16 %v11995_v4  ;;  %v6529_v51 = vunpack.i.l.bf16 %v12037_v41 }
 0x70b   :  { %v4034_v16 = vsel %vm3816_vm1, %v2831_v62, %v6514_v46  ;;  %v4571_v46 = vld [vmem:[%s13346_s5 + $0xd0] sm:$0xff]  ;;  %v6525_v4 = vunpack.i.h.bf16 %v12026_v11 }
 0x70c   :  { %v12028_v37 = vpop.f32.mrf.mxu2  ;;  %v12030_v8 = vpop.f32.mrf.mxu3  ;;  %v4012_v49 = vsel %vm3816_vm1, %v14223_v15, %v6499_v0  ;;  %v14224_v15 = vld [vmem:[#allocation54_spill] sm:$0xff]  ;;  %4809 = vmatpush.msrb.mxu3 %v4571_v46  ;;  %v6534_v46 = vunpack.i.l.bf16 %v12055_v50 }
 0x70d   :  { %14219 = vst [vmem:[#allocation96_spill] sm:$0xff] %v12030_v8  ;;  %v4020_v44 = vsel %vm1193_vm0, %v4012_v49, %v6504_v24  ;;  %v4551_v49 = vld [vmem:[%s13346_s5 + $0x30] sm:$0xff]  ;;  %v12087_v60 = vpop.permute.xlu2 %6547 }
 0x70e   :  { %v4028_v0 = vsel %vm3881_vm2, %v4020_v44, %v6509_v54  ;;  %4772 = vmatpush.msrb.mxu2 %v4551_v49  ;;  %v6510_v44 = vunpack.i.h.bf16 %v11997_v13  ;;  %v14225_v24 = vld [vmem:[#allocation44_spill] sm:$0xff]  ;;  %v6549_v11 = vunpack.i.l.bf16 %v12087_v60 }
 0x711   :  { %4378 = vmatmul.f32.gmra.mxu2 %v4027_v40  ;;  %4485 = vmatmul.f32.gmra.mxu3 %v11787_v12  ;;  %v6519_v12 = vunpack.i.l.bf16 %v12024_v5  ;;  %v12053_v40 = vpop.permute.xlu0 %6537  ;;  %v12070_v48 = vpop.permute.xlu1 %6542 }
 0x713   :  { %v4042_v10 = vsel %vm1193_vm0, %v4034_v16, %v6519_v12  ;;  %v2832_v16 = vmax.f32 %v14224_v15, 0.0  ;;  %v14226_v12 = vmax.f32 %v14225_v24, 0.0  ;;  %v6544_v24 = vunpack.i.l.bf16 %v12070_v48 }
 0x714   :  { %v12043_v47 = vpop.f32.mrf.mxu2  ;;  %v12045_v39 = vpop.f32.mrf.mxu3  ;;  %v4050_v62 = vsel %vm3881_vm2, %v4042_v10, %v6524_v17  ;;  %v6539_v10 = vunpack.i.l.bf16 %v12053_v40 }
 0x715   :  { %14221 = vst [vmem:[#allocation98_spill] sm:$0xff] %v12045_v39  ;;  %v6515_v39 = vunpack.i.h.bf16 %v12012_v38 }
 0x719   :  { %4381 = vmatmul.f32.gmra.mxu2 %v4028_v0  ;;  %4488 = vmatmul.f32.gmra.mxu3 %v4050_v62  ;;  %v4013_v0 = vsel %vm3816_vm1, %v14226_v12, %v6500_v21  ;;  %v4035_v62 = vsel %vm3816_vm1, %v2832_v16, %v6529_v51  ;;  %v12082_v49 = vpop.permute.xlu0 %6552 }
 0x71a   :  { %v4021_v15 = vsel %vm1193_vm0, %v4013_v0, %v6505_v14  ;;  %v4043_v13 = vsel %vm1193_vm0, %v4035_v62, %v6534_v46  ;;  %v6554_v16 = vunpack.i.l.bf16 %v12082_v49  ;;  %v14227_v0 = vld [vmem:[#allocation111_spill] sm:$0xff]  ;;  %v14229_v46 = vld [vmem:[#allocation76_spill] sm:$0xff] }
 0x71b   :  { %v4029_v21 = vsel %vm3881_vm2, %v4021_v15, %v6510_v44  ;;  %v4051_v51 = vsel %vm3881_vm2, %v4043_v13, %v6539_v10  ;;  %v14228_v62 = vmax.f32 %v14227_v0, 0.0  ;;  %v14230_v8 = vmax.f32 %v14229_v46, 0.0  ;;  %v14231_v44 = vld [vmem:[#allocation21_spill] sm:$0xff]  ;;  %v12106_v13 = vpop.permute.xlu1 %6557 }
 0x71c   :  { %v4334_v54 = vpop.f32.mrf.mxu2  ;;  %v12074_v17 = vpop.f32.mrf.mxu3  ;;  %v4094_v10 = vadd.f32 %v11871_v20, %v14231_v44  ;;  %v6520_v15 = vunpack.i.h.bf16 %v12024_v5  ;;  %v4570_v5 = vld [vmem:[%s13346_s5 + $0xc8] sm:$0xff]  ;;  %v6530_v46 = vunpack.i.h.bf16 %v12037_v41  ;;  %v6559_v44 = vunpack.i.l.bf16 %v12106_v13 }
 0x71d   :  { %v4014_v38 = vsel %vm3816_vm1, %v14228_v62, %v6515_v39  ;;  %v4036_v43 = vsel %vm3816_vm1, %v14230_v8, %v6544_v24  ;;  %v4109_v39 = vadd.f32 %v11871_v20, %v11623_v59  ;;  %v4549_v62 = vld [vmem:[%s13346_s5 + $0x20] sm:$0xff]  ;;  %4810 = vmatpush.msrb.mxu3 %v4570_v5  ;;  %v12133_v41 = vpop.permute.xlu2 %6562 }
 0x71e   :  { %v4022_v8 = vsel %vm1193_vm0, %v4014_v38, %v6520_v15  ;;  %v4044_v24 = vsel %vm1193_vm0, %v4036_v43, %v6549_v11  ;;  %v4548_v11 = vld [vmem:[%s13346_s5 + $0x18] sm:$0xff] }
 0x71f   :  { %v4052_v59 = vsel %vm3881_vm2, %v4044_v24, %v6554_v16  ;;  %v4222_v43 = vadd.f32 %v11675_v26, %v4109_v39  ;;  %v14235_v24 = vld [vmem:[#allocation34_spill] sm:$0xff] }
 0x720   :  { %v14236_v5 = vmax.f32 %v14235_v24, 0.0  ;;  %v14238_v24 = vld [vmem:[#allocation3_spill] sm:$0xff] }
 0x721   :  { %4384 = vmatmul.f32.gmra.mxu2 %v4029_v21  ;;  %4491 = vmatmul.f32.gmra.mxu3 %v4051_v51  ;;  %v4550_v21 = vld [vmem:[%s13346_s5 + $0x28] sm:$0xff]  ;;  %v12127_v38 = vpop.permute.xlu0 %6567  ;;  %v4335_v16 = vadd.f32 %v4334_v54, %v4222_v43  ;;  %v6535_v54 = vunpack.i.h.bf16 %v12055_v50 }
 0x722   :  { %v14232_v51 = vld [vmem:[#allocation35_spill] sm:$0xff]  ;;  %4773 = vmatpush.msrb.mxu2 %v4550_v21  ;;  %v6540_v21 = vunpack.i.h.bf16 %v12053_v40  ;;  %v6569_v26 = vunpack.i.l.bf16 %v12127_v38  ;;  %v6564_v40 = vunpack.i.l.bf16 %v12133_v41 }
 0x723   :  { %v4207_v0 = vadd.f32 %v14232_v51, %v4094_v10  ;;  %v4030_v10 = vsel %vm3881_vm2, %v4022_v8, %v6525_v4 }
 0x724   :  { %v4337_v12 = vpop.f32.mrf.mxu2  ;;  %v12094_v14 = vpop.f32.mrf.mxu3  ;;  %4774 = vmatpush.msrb.mxu2 %v4549_v62 }
 0x725   :  { %v4320_v15 = vadd.f32 %v11959_v58, %v4207_v0  ;;  %v14233_v58 = vld [vmem:[#allocation4_spill] sm:$0xff] }
 0x726   :  { %v14234_v0 = vmax.f32 %v14233_v58, 0.0  ;;  %4775 = vmatpush.msrb.mxu2 %v4548_v11  ;;  %v6545_v58 = vunpack.i.h.bf16 %v12070_v48 }
 0x727   :  { %v12136_v4 = vadd.f32 %v12009_v30, %v4320_v15  ;;  %v4547_v30 = vld [vmem:[%s13346_s5 + $0x10] sm:$0xff] }
 0x728   :  { %v4015_v8 = vsel %vm3816_vm1, %v14234_v0, %v6530_v46  ;;  %v4112_v46 = vadd.f32 %v11871_v20, %v11662_v25  ;;  %4776 = vmatpush.msrb.mxu2 %v4547_v30 }
 0x729   :  { %4387 = vmatmul.f32.gmra.mxu2 %v4030_v10  ;;  %4494 = vmatmul.f32.gmra.mxu3 %v4052_v59  ;;  %v4037_v10 = vsel %vm3816_vm1, %v14236_v5, %v6559_v44  ;;  %v14237_v59 = vld [vmem:[#allocation95_spill] sm:$0xff]  ;;  %v4518_v15 = vmax.f32 %v12136_v4, 0.0  ;;  %v4023_v50 = vsel %vm1193_vm0, %v4015_v8, %v6535_v54  ;;  %v2029_v5 = vadd.f32 %v11925_v42, %v14238_v24  ;;  %v14275_v4 = vld [vmem:[#allocation26_spill] sm:$0xff] }
 0x72a   :  { %v2023_v43 = vadd.f32 %v11925_v42, %v14237_v59  ;;  %v4546_v44 = vld [vmem:[%s13346_s5 + $0x8] sm:$0xff]  ;;  %v4031_v25 = vsel %vm3881_vm2, %v4023_v50, %v6540_v21  ;;  %v4225_v30 = vadd.f32 %v11694_v27, %v4112_v46  ;;  %v6555_v21 = vunpack.i.h.bf16 %v12082_v49  ;;  %v14242_v46 = vld [vmem:[#allocation9_spill] sm:$0xff] }
 0x72b   :  { %4777 = vmatpush.msrb.mxu2 %v4546_v44  ;;  %v14240_v59 = vld [vmem:[#allocation23_spill] sm:$0xff]  ;;  %v2646_v50 = vadd.f32 %v14242_v46, %v2029_v5  ;;  %v14244_v5 = vld [vmem:[#allocation101_spill] sm:$0xff]  ;;  %v14247_v46 = vld [vmem:[#allocation52_spill] sm:$0xff] }
 0x72c   :  { %v4340_v51 = vpop.f32.mrf.mxu2  ;;  %v4447_v39 = vpop.f32.mrf.mxu3  ;;  %v4338_v54 = vadd.f32 %v4337_v12, %v4225_v30  ;;  %v14241_v44 = vmax.f32 %v14240_v59, 0.0  ;;  %v6560_v30 = vunpack.i.h.bf16 %v12106_v13  ;;  %v6570_v13 = vunpack.i.h.bf16 %v12127_v38 }
 0x72d   :  { %v12151_v62 = vadd.f32 %v4447_v39, %v4335_v16  ;;  %v4045_v16 = vsel %vm1193_vm0, %v4037_v10, %v6564_v40  ;;  %v4545_v39 = vld [vmem:[%s13346_s5] sm:$0xff] }
 0x72e   :  { %v4053_v0 = vsel %vm3881_vm2, %v4045_v16, %v6569_v26  ;;  %4778 = vmatpush.msrb.mxu2 %v4545_v39  ;;  %v14239_v10 = vld [vmem:[#allocation2_spill] sm:$0xff]  ;;  %v4016_v27 = vsel %vm3816_vm1, %v14241_v44, %v6545_v58  ;;  %v6550_v16 = vunpack.i.h.bf16 %v12087_v60  ;;  %v2032_v60 = vadd.f32 %v11925_v42, %v14244_v5 }
 0x72f   :  { %v4523_v11 = vmax.f32 %v12151_v62, 0.0  ;;  %v2640_v48 = vadd.f32 %v14239_v10, %v2023_v43  ;;  %v14243_v39 = vld [vmem:[#allocation6_spill] sm:$0xff]  ;;  %v2849_v10 = vmax.f32 %v2646_v50, 0.0  ;;  %v14248_v50 = vmax.f32 %v14247_v46, 0.0  ;;  %v14253_v46 = vld [vmem:[#allocation8_spill] sm:$0xff] }
 0x730   :  { %v2026_v43 = vadd.f32 %v11925_v42, %v14243_v39  ;;  %v4024_v24 = vsel %vm1193_vm0, %v4016_v27, %v6550_v16  ;;  %v4569_v58 = vld [vmem:[%s13346_s5 + $0xc0] sm:$0xff]  ;;  %v14246_v42 = vld [vmem:[#allocation7_spill] sm:$0xff]  ;;  %v6565_v16 = vunpack.i.h.bf16 %v12133_v41 }
 0x731   :  { %v6576_v8 = vpack.i.bf16 %v4523_v11, %v4518_v15  ;;  %4390 = vmatmul.f32.gmra.mxu2 %v4031_v25  ;;  %4497 = vmatmul.f32.gmra.mxu3 %v4053_v0  ;;  %v2847_v12 = vmax.f32 %v2640_v48, 0.0  ;;  %v4115_v0 = vadd.f32 %v11871_v20, %v11673_v28  ;;  %v2649_v44 = vadd.f32 %v14246_v42, %v2032_v60 }
 0x732   :  { %4811 = vmatpush.msrb.mxu3 %v4569_v58  ;;  %v4118_v58 = vadd.f32 %v11871_v20, %v11692_v34 }
 0x733   :  { %6577 = vrot.lane.b32.xlu0 %v6576_v8, %s6760_s29  ;;  %v4032_v8 = vsel %vm3881_vm2, %v4024_v24, %v6555_v21  ;;  %v4228_v48 = vadd.f32 %v11714_v31, %v4115_v0  ;;  %v4017_v31 = vsel %vm3816_vm1, %v14248_v50, %v6560_v30  ;;  %v14250_v0 = vld [vmem:[#allocation109_spill] sm:$0xff]  ;;  %v2850_v60 = vmax.f32 %v2649_v44, 0.0 }
 0x734   :  { %v4343_v26 = vpop.f32.mrf.mxu2  ;;  %v4450_v40 = vpop.f32.mrf.mxu3  ;;  %v4106_v24 = vadd.f32 %v11871_v20, %v14250_v0  ;;  %v4025_v5 = vsel %vm1193_vm0, %v4017_v31, %v6565_v16  ;;  %v4121_v50 = vadd.f32 %v11871_v20, %v14253_v46  ;;  %v4513_v0 = vmax.f32 %v11913_v53, 0.0 }
 0x735   :  { %v12185_v25 = vadd.f32 %v4450_v40, %v4338_v54  ;;  %v14245_v54 = vld [vmem:[#allocation5_spill] sm:$0xff]  ;;  %v4341_v59 = vadd.f32 %v4340_v51, %v4228_v48  ;;  %v4033_v30 = vsel %vm3881_vm2, %v4025_v5, %v6570_v13  ;;  %v14254_v5 = vld [vmem:[#allocation39_spill] sm:$0xff] }
 0x736   :  { %v2643_v40 = vadd.f32 %v14245_v54, %v2026_v43  ;;  %v14249_v43 = vld [vmem:[#allocation104_spill] sm:$0xff]  ;;  %v14252_v48 = vld [vmem:[#allocation29_spill] sm:$0xff]  ;;  %v4234_v31 = vadd.f32 %v11759_v61, %v4121_v50 }
 0x737   :  { %v4524_v49 = vmax.f32 %v12185_v25, 0.0  ;;  %v4103_v51 = vadd.f32 %v11871_v20, %v14249_v43  ;;  %v4606_v25 = vld [vmem:[%s13346_s5 + $0x1e8] sm:$0xff] }
 0x739   :  { %v6586_v28 = vpack.i.bf16 %v4524_v49, %v2847_v12  ;;  %4393 = vmatmul.f32.gmra.mxu2 %v4032_v8  ;;  %v2848_v12 = vmax.f32 %v2643_v40, 0.0  ;;  %v4216_v41 = vadd.f32 %v11627_v29, %v4103_v51  ;;  %v14251_v8 = vld [vmem:[#allocation43_spill] sm:$0xff]  ;;  %v3801_v51 = vpop.permute.xlu0 %3800 }
 0x73b   :  { %3804 = vrot.lane.b32.xlu0 %v2849_v10, %s6761_s17  ;;  %6587 = vrot.lane.b32.xlu2 %v6586_v28, %s6760_s29  ;;  %v4219_v10 = vadd.f32 %v14251_v8, %v4106_v24  ;;  %v4231_v28 = vadd.f32 %v14252_v48, %v4118_v58  ;;  %v4329_v40 = vadd.f32 %v12028_v37, %v4216_v41 }
 0x73c   :  { %v4346_v21 = vpop.f32.mrf.mxu2  ;;  %v4453_v27 = vpop.f32.mrf.mxu3 }
 0x73d   :  { %v4454_v39 = vadd.f32 %v4453_v27, %v4341_v59  ;;  %v4332_v34 = vadd.f32 %v12043_v47, %v4219_v10  ;;  %v4344_v59 = vadd.f32 %v4343_v26, %v4231_v28  ;;  %v12231_v29 = vadd.f32 %v12074_v17, %v4329_v40  ;;  %v4568_v47 = vld [vmem:[%s13346_s5 + $0xb8] sm:$0xff]  ;;  %v3743_v26 = vpop.permute.xlu1 %3742 }
 0x73e   :  { %4812 = vmatpush.msrb.mxu3 %v4568_v47 }
 0x73f   :  { %v12218_v38 = vmax.f32 %v4454_v39, 0.0  ;;  %v12234_v13 = vadd.f32 %v12094_v14, %v4332_v34  ;;  %v4521_v17 = vmax.f32 %v12231_v29, 0.0  ;;  %v4347_v14 = vadd.f32 %v4346_v21, %v4234_v31 }
 0x740   :  { %v4124_v21 = vadd.f32 %v11871_v20, %v14254_v5 }
 0x741   :  { %v6591_v54 = vpack.i.bf16 %v12218_v38, %v2848_v12  ;;  %4396 = vmatmul.f32.gmra.mxu2 %v4033_v30  ;;  %v4522_v16 = vmax.f32 %v12234_v13, 0.0  ;;  %v3803_v31 = vpop.permute.xlu0 %3802  ;;  %v14270_v13 = vmax.f32 %v11989_v3, 0.0  ;;  %v14272_v3 = vld [vmem:[#allocation28_spill] sm:$0xff] }
 0x742   :  { %v4237_v28 = vadd.f32 %v11780_v6, %v4124_v21 }
 0x743   :  { %6592 = vrot.lane.b32.xlu1 %v6591_v54, %s6760_s29  ;;  %3806 = vrot.lane.b32.xlu2 %v2850_v60, %s6761_s17  ;;  %v14255_v60 = vld [vmem:[#allocation105_spill] sm:$0xff] }
 0x744   :  { %v4349_v42 = vpop.f32.mrf.mxu2  ;;  %v4456_v44 = vpop.f32.mrf.mxu3  ;;  %v14256_v30 = vmax.f32 %v14255_v60, 0.0 }
 0x745   :  { %v4457_v27 = vadd.f32 %v4456_v44, %v4344_v59  ;;  %v3745_v54 = vpop.permute.xlu1 %3744  ;;  %v4350_v40 = vadd.f32 %v4349_v42, %v4237_v28  ;;  %v14257_v44 = vld [vmem:[#allocation108_spill] sm:$0xff]  ;;  %v14259_v28 = vmax.f32 %v11943_v19, 0.0 }
 0x746   :  { %v4038_v41 = vsel %vm3816_vm1, %v14256_v30, %v3743_v26 }
 0x747   :  { %v12238_v37 = vmax.f32 %v4457_v27, 0.0  ;;  %v14258_v27 = vmax.f32 %v14257_v44, 0.0 }
 0x749   :  { %4640 = vrot.lane.b32.xlu0 %v12238_v37, %s6760_s29  ;;  %v4039_v46 = vsel %vm3816_vm1, %v14258_v27, %v3745_v54  ;;  %v4127_v54 = vadd.f32 %v11871_v20, %v11757_v35  ;;  %v4565_v27 = vld [vmem:[%s13346_s5 + $0xa0] sm:$0xff]  ;;  %v4130_v35 = vadd.f32 %v11871_v20, %v11778_v57 }
 0x74b   :  { %4656 = vrot.lane.b32.xlu1 %v4521_v17, %s6760_s29  ;;  %4658 = vrot.lane.b32.xlu2 %v4522_v16, %s6760_s29 }
 0x74c   :  { %v4352_v39 = vpop.f32.mrf.mxu2  ;;  %v4459_v12 = vpop.f32.mrf.mxu3 }
 0x74d   :  { %v12254_v43 = vadd.f32 %v4459_v12, %v4347_v14  ;;  %v6573_v61 = vpop.permute.xlu2 %6572  ;;  %v4567_v14 = vld [vmem:[%s13346_s5 + $0xb0] sm:$0xff] }
 0x74e   :  { %v6575_v24 = vunpack.i.h.bf16 %v6573_v61  ;;  %v6574_v58 = vunpack.i.l.bf16 %v6573_v61  ;;  %4813 = vmatpush.msrb.mxu3 %v4567_v14 }
 0x74f   :  { %v4527_v8 = vmax.f32 %v12254_v43, 0.0 }
 0x750   :  { %v4714_v10 = vsel %vm1193_vm0, %v4513_v0, %v6575_v24  ;;  %v4046_v48 = vsel %vm1193_vm0, %v4038_v41, %v6574_v58  ;;  %v4566_v24 = vld [vmem:[%s13346_s5 + $0xa8] sm:$0xff]  ;;  %v4514_v58 = vmax.f32 %v11920_v52, 0.0  ;;  %v4240_v52 = vadd.f32 %v11793_v23, %v4127_v54 }
 0x751   :  { %4680 = vrot.lane.b32.xlu0 %v4527_v8, %s6760_s29  ;;  %4779 = vmatmul.f32.vlgmr.msrb.gmra.mxu2 %v4714_v10  ;;  %v4054_v53 = vsel %vm3881_vm2, %v4046_v48, %v3801_v51 }
 0x752   :  { %4500 = vmatmul.f32.gmra.mxu3 %v4054_v53  ;;  %v4353_v44 = vadd.f32 %v4352_v39, %v4240_v52  ;;  %v14264_v52 = vld [vmem:[#allocation77_spill] sm:$0xff] }
 0x753   :  { %4814 = vmatpush.msrb.mxu3 %v4566_v24 }
 0x754   :  { %v4355_v34 = vpop.f32.mrf.mxu2  ;;  %v4462_v59 = vpop.f32.mrf.mxu3 }
 0x755   :  { %v12273_v50 = vadd.f32 %v4462_v59, %v4350_v40  ;;  %v3777_v47 = vpop.permute.xlu2 %3776  ;;  %v4139_v40 = vadd.f32 %v11871_v20, %v11803_v63  ;;  %4815 = vmatpush.msrb.mxu3 %v4565_v27  ;;  %v14261_v63 = vld [vmem:[#allocation73_spill] sm:$0xff] }
 0x756   :  { %v4047_v6 = vsel %vm1193_vm0, %v4039_v46, %v3777_v47 }
 0x757   :  { %v4528_v26 = vmax.f32 %v12273_v50, 0.0  ;;  %v4055_v42 = vsel %vm3881_vm2, %v4047_v6, %v3803_v31  ;;  %v4252_v59 = vadd.f32 %v11817_v36, %v4139_v40  ;;  %v14260_v31 = vld [vmem:[#allocation59_spill] sm:$0xff]  ;;  %v4142_v36 = vadd.f32 %v11871_v20, %v14261_v63 }
 0x758   :  { %v4243_v14 = vadd.f32 %v14260_v31, %v4130_v35  ;;  %v14265_v31 = vld [vmem:[#allocation78_spill] sm:$0xff] }
 0x759   :  { %4682 = vrot.lane.b32.xlu1 %v4528_v26, %s6760_s29  ;;  %v4255_v24 = vadd.f32 %v11823_v33, %v4142_v36  ;;  %v4145_v33 = vadd.f32 %v11871_v20, %v14264_v52  ;;  %v14266_v36 = vld [vmem:[#allocation85_spill] sm:$0xff]  ;;  %v4563_v52 = vld [vmem:[%s13346_s5 + $0x90] sm:$0xff] }
 0x75a   :  { %4503 = vmatmul.f32.gmra.mxu3 %v4055_v42 }
 0x75c   :  { %v4358_v12 = vpop.f32.mrf.mxu2  ;;  %v4465_v61 = vpop.f32.mrf.mxu3 }
 0x75d   :  { %v4631_v41 = vpop.permute.xlu2 %4630  ;;  %v12303_v19 = vadd.f32 %v4465_v61, %v4353_v44  ;;  %v4356_v61 = vadd.f32 %v4355_v34, %v4243_v14  ;;  %v4258_v44 = vadd.f32 %v11829_v22, %v4145_v33  ;;  %v4136_v14 = vadd.f32 %v11871_v20, %v14265_v31 }
 0x75e   :  { %v4716_v53 = vsel %vm1193_vm0, %v14259_v28, %v4631_v41  ;;  %v4148_v22 = vadd.f32 %v11871_v20, %v11821_v2 }
 0x75f   :  { %v4529_v39 = vmax.f32 %v12303_v19, 0.0 }
 0x764   :  { %v12284_v51 = vpop.f32.mrf.mxu2  ;;  %v4468_v0 = vpop.f32.mrf.mxu3 }
 0x76c   :  { %v4629_v5 = vpop.permute.xlu1 %4628  ;;  %v4364_v21 = vpop.f32.mrf.mxu2 }
 0x76d   :  { %v4471_v60 = vpop.f32.mrf.mxu3  ;;  %v4715_v30 = vsel %vm1193_vm0, %v4514_v58, %v4629_v5  ;;  %v4365_v46 = vadd.f32 %v4364_v21, %v4252_v59  ;;  %v12317_v5 = vadd.f32 %v4468_v0, %v4356_v61  ;;  %v4564_v0 = vld [vmem:[%s13346_s5 + $0x98] sm:$0xff] }
 0x76e   :  { %4782 = vmatmul.f32.gmra.mxu2 %v4715_v30  ;;  %v14262_v30 = vld [vmem:[#allocation75_spill] sm:$0xff]  ;;  %4816 = vmatpush.msrb.mxu3 %v4564_v0  ;;  %v4592_v59 = vld [vmem:[%s13346_s5 + $0x178] sm:$0xff]  ;;  %v4587_v0 = vld [vmem:[%s13346_s5 + $0x150] sm:$0xff] }
 0x76f   :  { %v4133_v41 = vadd.f32 %v11871_v20, %v14262_v30  ;;  %v4530_v34 = vmax.f32 %v12317_v5, 0.0  ;;  %4845 = vmatpush.msra.mxu2 %v4592_v59 }
 0x770   :  { %4817 = vmatpush.msrb.mxu3 %v4563_v52 }
 0x774   :  { %v4367_v10 = vpop.f32.mrf.mxu2  ;;  %v6583_v31 = vpop.permute.xlu1 %6582 }
 0x775   :  { %v4474_v48 = vpop.f32.mrf.mxu3  ;;  %v4368_v57 = vadd.f32 %v4367_v10, %v4255_v24  ;;  %v4249_v24 = vadd.f32 %v14266_v36, %v4136_v14  ;;  %v4583_v14 = vld [vmem:[%s13346_s5 + $0x130] sm:$0xff] }
 0x776   :  { %4785 = vmatmul.f32.gmra.mxu2 %v4716_v53  ;;  %v14263_v53 = vld [vmem:[#allocation82_spill] sm:$0xff] }
 0x777   :  { %v4246_v54 = vadd.f32 %v14263_v53, %v4133_v41 }
 0x779   :  { %v4359_v27 = vadd.f32 %v4358_v12, %v4246_v54  ;;  %v4589_v54 = vld [vmem:[%s13346_s5 + $0x160] sm:$0xff] }
 0x77c   :  { %v4370_v23 = vpop.f32.mrf.mxu2 }
 0x77d   :  { %v4477_v47 = vpop.f32.mrf.mxu3  ;;  %v4371_v35 = vadd.f32 %v4370_v23, %v4258_v44  ;;  %v4590_v23 = vld [vmem:[%s13346_s5 + $0x168] sm:$0xff] }
 0x77e   :  { %v4478_v6 = vadd.f32 %v4477_v47, %v4365_v46  ;;  %v12338_v47 = vadd.f32 %v4471_v60, %v4359_v27  ;;  %v4591_v60 = vld [vmem:[%s13346_s5 + $0x170] sm:$0xff]  ;;  %v4586_v44 = vld [vmem:[%s13346_s5 + $0x148] sm:$0xff] }
 0x77f   :  { %4846 = vmatpush.msra.mxu2 %v4591_v60  ;;  %v4562_v27 = vld [vmem:[%s13346_s5 + $0x88] sm:$0xff] }
 0x780   :  { %v12311_v42 = vmax.f32 %v4478_v6, 0.0  ;;  %v4531_v12 = vmax.f32 %v12338_v47, 0.0  ;;  %4818 = vmatpush.msrb.mxu3 %v4562_v27  ;;  %v4610_v47 = vld [vmem:[%s13346_s5 + $0x208] sm:$0xff] }
 0x781   :  { %4847 = vmatpush.msra.mxu2 %v4590_v23 }
 0x782   :  { %v6596_v58 = vpack.i.bf16 %v12311_v42, %v4529_v39 }
 0x783   :  { %4848 = vmatpush.msra.mxu2 %v4589_v54 }
 0x784   :  { %6597 = vrot.lane.b32.xlu2 %v6596_v58, %s6760_s29  ;;  %v4373_v10 = vpop.f32.mrf.mxu2  ;;  %v4261_v58 = vadd.f32 %v11840_v32, %v4148_v22  ;;  %v4582_v22 = vld [vmem:[%s13346_s5 + $0x128] sm:$0xff] }
 0x785   :  { %v4480_v21 = vpop.f32.mrf.mxu3 }
 0x786   :  { %v4481_v28 = vadd.f32 %v4480_v21, %v4368_v57  ;;  %v4362_v57 = vadd.f32 %v12284_v51, %v4249_v24  ;;  %v4374_v41 = vadd.f32 %v4373_v10, %v4261_v58 }
 0x788   :  { %v12326_v40 = vmax.f32 %v4481_v28, 0.0  ;;  %v12364_v30 = vadd.f32 %v4474_v48, %v4362_v57  ;;  %v4588_v48 = vld [vmem:[%s13346_s5 + $0x158] sm:$0xff]  ;;  %v4581_v57 = vld [vmem:[%s13346_s5 + $0x120] sm:$0xff] }
 0x789   :  { %4849 = vmatpush.msra.mxu2 %v4588_v48 }
 0x78a   :  { %v6601_v46 = vpack.i.bf16 %v12326_v40, %v4530_v34  ;;  %v4532_v32 = vmax.f32 %v12364_v30, 0.0 }
 0x78b   :  { %4850 = vmatpush.msra.mxu2 %v4587_v0  ;;  %v4579_v0 = vld [vmem:[%s13346_s5 + $0x110] sm:$0xff] }
 0x78c   :  { %6602 = vrot.lane.b32.xlu0 %v6601_v46, %s6760_s29  ;;  %v12362_v21 = vpop.f32.mrf.mxu2  ;;  %v4585_v46 = vld [vmem:[%s13346_s5 + $0x140] sm:$0xff] }
 0x78d   :  { %v4483_v6 = vpop.f32.mrf.mxu3  ;;  %4851 = vmatpush.msra.mxu2 %v4586_v44 }
 0x78e   :  { %v12343_v63 = vadd.f32 %v4483_v6, %v4371_v35  ;;  %v4561_v35 = vld [vmem:[%s13346_s5 + $0x80] sm:$0xff]  ;;  %v4584_v6 = vld [vmem:[%s13346_s5 + $0x138] sm:$0xff] }
 0x78f   :  { %4852 = vmatpush.msra.mxu2 %v4585_v46  ;;  %4819 = vmatpush.msrb.mxu3 %v4561_v35 }
 0x790   :  { %v4535_v61 = vmax.f32 %v12343_v63, 0.0  ;;  %v14283_v63 = vld [vmem:[#allocation88_spill] sm:$0xff] }
 0x791   :  { %4853 = vmatpush.msra.mxu2 %v4584_v6  ;;  %v4578_v6 = vld [vmem:[%s13346_s5 + $0x108] sm:$0xff] }
 0x792   :  { %v6606_v2 = vpack.i.bf16 %v4535_v61, %v4531_v12 }
 0x793   :  { %4854 = vmatpush.msra.mxu2 %v4583_v14 }
 0x794   :  { %6607 = vrot.lane.b32.xlu1 %v6606_v2, %s6760_s29  ;;  %v12388_v10 = vpop.f32.mrf.mxu2  ;;  %v4157_v2 = vadd.f32 %v11871_v20, %v11847_v7 }
 0x795   :  { %v4486_v28 = vpop.f32.mrf.mxu3  ;;  %v12417_v60 = vpop.permute.xlu2 %6587  ;;  %4855 = vmatpush.msra.mxu2 %v4582_v22 }
 0x796   :  { %v12367_v53 = vadd.f32 %v4486_v28, %v4374_v41  ;;  %v6584_v41 = vunpack.i.l.bf16 %v6583_v31  ;;  %v14267_v28 = vmax.f32 %v11964_v9, 0.0  ;;  %v6589_v52 = vunpack.i.l.bf16 %v12417_v60 }
 0x797   :  { %v4270_v48 = vadd.f32 %v11862_v45, %v4157_v2  ;;  %4856 = vmatpush.msra.mxu2 %v4581_v57  ;;  %v14268_v9 = vmax.f32 %v11941_v56, 0.0  ;;  %v4577_v56 = vld [vmem:[%s13346_s5 + $0x100] sm:$0xff] }
 0x798   :  { %v4536_v51 = vmax.f32 %v12367_v53, 0.0 }
 0x799   :  { %v4040_v27 = vsel %vm3816_vm1, %v14268_v9, %v6584_v41 }
 0x79a   :  { %v6611_v33 = vpack.i.bf16 %v4536_v51, %v4532_v32  ;;  %v4048_v45 = vsel %vm1193_vm0, %v4040_v27, %v6589_v52 }
 0x79c   :  { %6612 = vrot.lane.b32.xlu2 %v6611_v33, %s6760_s29  ;;  %v4382_v58 = vpop.f32.mrf.mxu2  ;;  %v4580_v33 = vld [vmem:[%s13346_s5 + $0x118] sm:$0xff] }
 0x79d   :  { %v12390_v59 = vpop.f32.mrf.mxu3  ;;  %v4383_v7 = vadd.f32 %v4382_v58, %v4270_v48  ;;  %4857 = vmatpush.msra.mxu2 %v4580_v33 }
 0x79f   :  { %4858 = vmatpush.msra.mxu2 %v4579_v0  ;;  %v3807_v0 = vpop.permute.xlu2 %3806 }
 0x7a1   :  { %4859 = vmatpush.msra.mxu2 %v4578_v6  ;;  %v14271_v6 = vld [vmem:[#allocation50_spill] sm:$0xff] }
 0x7a3   :  { %4860 = vmatpush.msra.mxu2 %v4577_v56 }
 0x7a4   :  { %v4385_v2 = vpop.f32.mrf.mxu2 }
 0x7a5   :  { %v12410_v36 = vpop.f32.mrf.mxu3  ;;  %v12412_v24 = vpop.permute.xlu0 %6577 }
 0x7a6   :  { %v6579_v23 = vunpack.i.l.bf16 %v12412_v24  ;;  %v6580_v44 = vunpack.i.h.bf16 %v12412_v24 }
 0x7a8   :  { %v4717_v54 = vsel %vm1193_vm0, %v14267_v28, %v6579_v23  ;;  %v4160_v23 = vadd.f32 %v11871_v20, %v11853_v1  ;;  %v4718_v57 = vsel %vm1193_vm0, %v4521_v17, %v6580_v44  ;;  %v6585_v28 = vunpack.i.h.bf16 %v6583_v31 }
 0x7a9   :  { %4788 = vmatmul.f32.gmra.mxu2 %v4717_v54  ;;  %v6590_v1 = vunpack.i.h.bf16 %v12417_v60  ;;  %v14269_v17 = vmax.f32 %v11962_v55, 0.0 }
 0x7aa   :  { %v4273_v41 = vadd.f32 %v11866_v18, %v4160_v23 }
 0x7ab   :  { %v4041_v33 = vsel %vm3816_vm1, %v14269_v17, %v6585_v28  ;;  %v4719_v31 = vsel %vm1193_vm0, %v4522_v16, %v6590_v1  ;;  %v4616_v28 = vld [vmem:[%s13346_s5 + $0x238] sm:$0xff] }
 0x7ac   :  { %v4386_v20 = vadd.f32 %v4385_v2, %v4273_v41  ;;  %4935 = vmatpush.msrb.mxu2 %v4616_v28 }
 0x7ad   :  { %v4495_v46 = vpop.f32.mrf.mxu3  ;;  %v3805_v35 = vpop.permute.xlu0 %3804 }
 0x7ae   :  { %v12444_v14 = vadd.f32 %v4495_v46, %v4383_v7  ;;  %v4056_v22 = vsel %vm3881_vm2, %v4048_v45, %v3805_v35  ;;  %v4608_v35 = vld [vmem:[%s13346_s5 + $0x1f8] sm:$0xff]  ;;  %v12491_v45 = vld [vmem:[%s13345_s4] ss:$0 sm:$0xff] }
 0x7af   :  { %4506 = vmatmul.f32.gmra.mxu3 %v4056_v22  ;;  %v4097_v62 = vadd.f32 %v12491_v45, %v14271_v6  ;;  %v4659_v22 = vpop.permute.xlu2 %4658 }
 0x7b0   :  { %v4539_v58 = vmax.f32 %v12444_v14, 0.0  ;;  %4886 = vmatpush.msra.mxu3 %v4608_v35  ;;  %v4723_v41 = vsel %vm1193_vm0, %v4518_v15, %v4659_v22  ;;  %v4100_v15 = vadd.f32 %v12491_v45, %v14275_v4  ;;  %v4613_v4 = vld [vmem:[%s13346_s5 + $0x220] sm:$0xff] }
 0x7b1   :  { %4791 = vmatmul.f32.gmra.mxu2 %v4718_v57  ;;  %v4210_v56 = vadd.f32 %v14272_v3, %v4097_v62  ;;  %v14273_v57 = vld [vmem:[#allocation92_spill] sm:$0xff]  ;;  %v4614_v3 = vld [vmem:[%s13346_s5 + $0x228] sm:$0xff] }
 0x7b2   :  { %4702 = vrot.lane.b32.xlu0 %v4539_v58, %s6760_s29 }
 0x7b3   :  { %v4323_v2 = vadd.f32 %v14273_v57, %v4210_v56  ;;  %v4603_v56 = vld [vmem:[%s13346_s5 + $0x1d0] sm:$0xff] }
 0x7b5   :  { %v4498_v54 = vpop.f32.mrf.mxu3  ;;  %v6593_v52 = vpop.permute.xlu1 %6592 }
 0x7b6   :  { %v12463_v48 = vadd.f32 %v4498_v54, %v4386_v20  ;;  %v6594_v29 = vunpack.i.l.bf16 %v6593_v52  ;;  %v6595_v55 = vunpack.i.h.bf16 %v6593_v52  ;;  %v4607_v20 = vld [vmem:[%s13346_s5 + $0x1f0] sm:$0xff]  ;;  %v14276_v52 = vld [vmem:[#allocation110_spill] sm:$0xff] }
 0x7b7   :  { %4887 = vmatpush.msra.mxu3 %v4607_v20  ;;  %v4602_v20 = vld [vmem:[%s13346_s5 + $0x1c8] sm:$0xff] }
 0x7b8   :  { %v4540_v18 = vmax.f32 %v12463_v48, 0.0  ;;  %v4049_v7 = vsel %vm1193_vm0, %v4041_v33, %v6594_v29  ;;  %v4720_v46 = vsel %vm1193_vm0, %v4523_v11, %v6595_v55  ;;  %v4213_v29 = vadd.f32 %v14276_v52, %v4100_v15  ;;  %v4388_v33 = vpop.f32.mrf.mxu2  ;;  %v4605_v55 = vld [vmem:[%s13346_s5 + $0x1e0] sm:$0xff] }
 0x7b9   :  { %4794 = vmatmul.f32.gmra.mxu2 %v4719_v31  ;;  %v4057_v9 = vsel %vm3881_vm2, %v4049_v7, %v3807_v0  ;;  %4888 = vmatpush.msra.mxu3 %v4606_v25  ;;  %v14277_v0 = vld [vmem:[#allocation94_spill] sm:$0xff] }
 0x7ba   :  { %4704 = vrot.lane.b32.xlu1 %v4540_v18, %s6760_s29  ;;  %4509 = vmatmul.f32.gmra.mxu3 %v4057_v9  ;;  %v4326_v31 = vadd.f32 %v14277_v0, %v4213_v29  ;;  %v4615_v9 = vld [vmem:[%s13346_s5 + $0x230] sm:$0xff]  ;;  %v4601_v15 = vld [vmem:[%s13346_s5 + $0x1c0] sm:$0xff]  ;;  %v4598_v0 = vld [vmem:[%s13346_s5 + $0x1a8] sm:$0xff] }
 0x7bb   :  { %v4641_v11 = vpop.permute.xlu0 %4640  ;;  %4936 = vmatpush.msrb.mxu2 %v4615_v9  ;;  %4889 = vmatpush.msra.mxu3 %v4605_v55  ;;  %v4611_v55 = vld [vmem:[%s13346_s5 + $0x210] sm:$0xff]  ;;  %v12687_v48 = vld [vmem:[%s13347_s6] ss:$0 sm:$0xff] }
 0x7bc   :  { %v4721_v23 = vsel %vm1193_vm0, %v4524_v49, %v4641_v11  ;;  %v14274_v49 = vld [vmem:[#allocation96_spill] sm:$0xff] }
 0x7bd   :  { %v4657_v27 = vpop.permute.xlu1 %4656  ;;  %v4436_v54 = vadd.f32 %v14274_v49, %v4323_v2  ;;  %4937 = vmatpush.msrb.mxu2 %v4614_v3 }
 0x7be   :  { %v4722_v16 = vsel %vm1193_vm0, %v14270_v13, %v4657_v27  ;;  %v14278_v27 = vld [vmem:[#allocation98_spill] sm:$0xff] }
 0x7bf   :  { %v4519_v17 = vmax.f32 %v4436_v54, 0.0  ;;  %v4439_v13 = vadd.f32 %v14278_v27, %v4326_v31  ;;  %4938 = vmatpush.msrb.mxu2 %v4613_v4  ;;  %v4596_v27 = vld [vmem:[%s13346_s5 + $0x198] sm:$0xff] }
 0x7c0   :  { %v4391_v11 = vpop.f32.mrf.mxu2 }
 0x7c1   :  { %4797 = vmatmul.f32.gmra.mxu2 %v4720_v46  ;;  %v4724_v7 = vsel %vm1193_vm0, %v4519_v17, %v6580_v44  ;;  %v4520_v24 = vmax.f32 %v4439_v13, 0.0  ;;  %v4604_v44 = vld [vmem:[%s13346_s5 + $0x1d8] sm:$0xff]  ;;  %v4595_v13 = vld [vmem:[%s13346_s5 + $0x190] sm:$0xff] }
 0x7c2   :  { %4820 = vmatmul.f32.vlgmr.msrb.gmra.mxu3 %v4722_v16  ;;  %v14279_v16 = vld [vmem:[#allocation67_spill] sm:$0xff]  ;;  %v4612_v17 = vld [vmem:[%s13346_s5 + $0x218] sm:$0xff] }
 0x7c3   :  { %v4389_v35 = vadd.f32 %v4388_v33, %v14279_v16  ;;  %4890 = vmatpush.msra.mxu3 %v4604_v44  ;;  %v4725_v22 = vsel %vm1193_vm0, %v4520_v24, %v6590_v1  ;;  %v4681_v60 = vpop.permute.xlu0 %4680  ;;  %v4599_v33 = vld [vmem:[%s13346_s5 + $0x1b0] sm:$0xff]  ;;  %4939 = vmatpush.msrb.mxu2 %v4612_v17  ;;  %v4609_v16 = vld [vmem:[%s13346_s5 + $0x200] sm:$0xff] }
 0x7c4   :  { %v4730_v49 = vsel %vm1193_vm0, %v12218_v38, %v4681_v60 }
 0x7c5   :  { %4891 = vmatpush.msra.mxu3 %v4603_v56  ;;  %4940 = vmatpush.msrb.mxu2 %v4611_v55 }
 0x7c7   :  { %4892 = vmatpush.msra.mxu3 %v4602_v20  ;;  %4941 = vmatpush.msrb.mxu2 %v4610_v47 }
 0x7c9   :  { %4800 = vmatmul.f32.gmra.mxu2 %v4721_v23  ;;  %4893 = vmatpush.msra.mxu3 %v4601_v15 }
 0x7ca   :  { %4823 = vmatmul.f32.gmra.mxu3 %v4723_v41  ;;  %4942 = vmatpush.msrb.mxu2 %v4609_v16 }
 0x7cb   :  { %v4683_v52 = vpop.permute.xlu1 %4682 }
 0x7cc   :  { %v4731_v29 = vsel %vm1193_vm0, %v12238_v37, %v4683_v52  ;;  %v14284_v52 = vld [vmem:[#allocation18_spill] sm:$0xff] }
 0x7d1   :  { %4861 = vmatmul.f32.vlgmr.msra.gmra.mxu2 %v4720_v46 }
 0x7d2   :  { %4826 = vmatmul.f32.gmra.mxu3 %v4724_v7  ;;  %v4597_v7 = vld [vmem:[%s13346_s5 + $0x1a0] sm:$0xff] }
 0x7d5   :  { %v4501_v46 = vpop.f32.mrf.mxu3 }
 0x7d6   :  { %v12528_v6 = vadd.f32 %v4501_v46, %v4389_v35  ;;  %v4593_v35 = vld [vmem:[%s13346_s5 + $0x180] sm:$0xff] }
 0x7d8   :  { %v4541_v62 = vmax.f32 %v12528_v6, 0.0 }
 0x7d9   :  { %4864 = vmatmul.f32.gmra.mxu2 %v4721_v23  ;;  %v14280_v23 = vld [vmem:[#allocation90_spill] sm:$0xff] }
 0x7da   :  { %4829 = vmatmul.f32.gmra.mxu3 %v4725_v22  ;;  %4706 = vrot.lane.b32.xlu2 %v4541_v62, %s6760_s29  ;;  %v4392_v57 = vadd.f32 %v4391_v11, %v14280_v23  ;;  %v4394_v11 = vpop.f32.mrf.mxu2 }
 0x7dd   :  { %v4504_v2 = vpop.f32.mrf.mxu3 }
 0x7de   :  { %v6598_v1 = vpop.permute.xlu2 %6597  ;;  %v12547_v41 = vadd.f32 %v4504_v2, %v4392_v57 }
 0x7df   :  { %v6599_v28 = vunpack.i.l.bf16 %v6598_v1  ;;  %v6600_v31 = vunpack.i.h.bf16 %v6598_v1 }
 0x7e0   :  { %v4542_v25 = vmax.f32 %v12547_v41, 0.0 }
 0x7e1   :  { %4867 = vmatmul.f32.gmra.mxu2 %v4730_v49  ;;  %v4726_v54 = vsel %vm1193_vm0, %v12218_v38, %v6599_v28  ;;  %v4600_v38 = vld [vmem:[%s13346_s5 + $0x1b8] sm:$0xff]  ;;  %v4732_v9 = vsel %vm1193_vm0, %v4531_v12, %v6600_v31  ;;  %v4594_v12 = vld [vmem:[%s13346_s5 + $0x188] sm:$0xff] }
 0x7e2   :  { %4832 = vmatmul.f32.gmra.mxu3 %v4726_v54  ;;  %4708 = vrot.lane.b32.xlu0 %v4542_v25, %s6760_s29  ;;  %v4397_v1 = vpop.f32.mrf.mxu2  ;;  %v14282_v54 = vld [vmem:[#allocation15_spill] sm:$0xff]  ;;  %v14285_v31 = vld [vmem:[#allocation13_spill] sm:$0xff] }
 0x7e3   :  { %4894 = vmatpush.msra.mxu3 %v4600_v38 }
 0x7e5   :  { %4895 = vmatpush.msra.mxu3 %v4599_v33 }
 0x7e7   :  { %4896 = vmatpush.msra.mxu3 %v4598_v0 }
 0x7e9   :  { %4870 = vmatmul.f32.gmra.mxu2 %v4731_v29  ;;  %4897 = vmatpush.msra.mxu3 %v4597_v7  ;;  %v4395_v7 = vadd.f32 %v4394_v11, %v14285_v31 }
 0x7ea   :  { %v12622_v49 = vpop.f32.mrf.mxu2 }
 0x7eb   :  { %4898 = vmatpush.msra.mxu3 %v4596_v27  ;;  %v14286_v27 = vld [vmem:[#allocation116_spill] sm:$0xff] }
 0x7ed   :  { %4899 = vmatpush.msra.mxu3 %v4595_v13  ;;  %v4398_v13 = vadd.f32 %v4397_v1, %v14286_v27 }
 0x7ef   :  { %4900 = vmatpush.msra.mxu3 %v4594_v12 }
 0x7f1   :  { %4873 = vmatmul.f32.gmra.mxu2 %v4732_v9  ;;  %4901 = vmatpush.msra.mxu3 %v4593_v35 }
 0x7f6   :  { %v6613_v28 = vpop.permute.xlu2 %6612 }
 0x7f7   :  { %v6614_v30 = vunpack.i.l.bf16 %v6613_v28 }
 0x7f9   :  { %v4737_v50 = vsel %vm1193_vm0, %v4530_v34, %v6614_v30 }
 0x7fe   :  { %v6603_v46 = vpop.permute.xlu0 %6602 }
 0x7ff   :  { %v6605_v24 = vunpack.i.h.bf16 %v6603_v46  ;;  %v6604_v44 = vunpack.i.l.bf16 %v6603_v46 }
 0x801   :  { %v4727_v22 = vsel %vm1193_vm0, %v12238_v37, %v6604_v44  ;;  %v4733_v3 = vsel %vm1193_vm0, %v4532_v32, %v6605_v24  ;;  %v6615_v37 = vunpack.i.h.bf16 %v6613_v28  ;;  %v4729_v32 = vsel %vm1193_vm0, %v4528_v26, %v6614_v30 }
 0x802   :  { %4835 = vmatmul.f32.gmra.mxu3 %v4727_v22  ;;  %4876 = vmatmul.f32.gmra.mxu2 %v4733_v3  ;;  %v4781_v30 = vadd.f32 %v12687_v48, %v12622_v49 }
 0x803   :  { %v4735_v20 = vsel %vm1193_vm0, %v12326_v40, %v6615_v37 }
 0x806   :  { %v6608_v56 = vpop.permute.xlu1 %6607 }
 0x807   :  { %v6610_v23 = vunpack.i.h.bf16 %v6608_v56  ;;  %v6609_v57 = vunpack.i.l.bf16 %v6608_v56 }
 0x809   :  { %v4728_v60 = vsel %vm1193_vm0, %v4527_v8, %v6609_v57  ;;  %v4734_v2 = vsel %vm1193_vm0, %v12311_v42, %v6610_v23  ;;  %v4736_v43 = vsel %vm1193_vm0, %v4529_v39, %v6609_v57  ;;  %v12627_v8 = vpop.f32.mrf.mxu2  ;;  %v14281_v39 = vld [vmem:[#allocation84_spill] sm:$0xff] }
 0x80a   :  { %4838 = vmatmul.f32.gmra.mxu3 %v4728_v60  ;;  %4879 = vmatmul.f32.gmra.mxu2 %v4734_v2 }
 0x811   :  { %v12636_v26 = vpop.f32.mrf.mxu2 }
 0x812   :  { %4841 = vmatmul.f32.gmra.mxu3 %v4729_v32  ;;  %4882 = vmatmul.f32.gmra.mxu2 %v4735_v20  ;;  %v4787_v49 = vadd.f32 %v12687_v48, %v12636_v26 }
 0x81a   :  { %4902 = vmatmul.f32.vlgmr.msra.gmra.mxu3 %v4736_v43  ;;  %5493 = vmatmul.msk.f32.vlgmr.msrb.gmra.mxu2 %vm1193_vm0, %v12311_v42  ;;  %v4151_v42 = vadd.f32 %v12491_v45, %v14281_v39 }
 0x81c   :  { %v4264_v5 = vadd.f32 %v14282_v54, %v4151_v42  ;;  %v4784_v54 = vadd.f32 %v12687_v48, %v12627_v8 }
 0x81e   :  { %v4377_v34 = vadd.f32 %v12362_v21, %v4264_v5 }
 0x822   :  { %4905 = vmatmul.f32.gmra.mxu3 %v4737_v50  ;;  %5494 = vmatmul.msk.f32.gmra.mxu2 %vm1193_vm0, %v12326_v40  ;;  %v4490_v40 = vadd.f32 %v12390_v59, %v4377_v34 }
 0x824   :  { %v4703_v15 = vpop.permute.xlu0 %4702  ;;  %v4537_v29 = vmax.f32 %v4490_v40, 0.0 }
 0x826   :  { %v4738_v21 = vsel %vm1193_vm0, %v4537_v29, %v4703_v15 }
 0x82a   :  { %4908 = vmatmul.f32.gmra.mxu3 %v4732_v9  ;;  %5495 = vmatmul.msk.f32.gmra.mxu2 %vm1193_vm0, %v4535_v61  ;;  %v4154_v61 = vadd.f32 %v12491_v45, %v14283_v63 }
 0x82c   :  { %v12641_v19 = vpop.f32.mrf.mxu2  ;;  %v4267_v38 = vadd.f32 %v14284_v52, %v4154_v61  ;;  %v4705_v59 = vpop.permute.xlu1 %4704 }
 0x82d   :  { %v4790_v8 = vadd.f32 %v12687_v48, %v12641_v19 }
 0x82e   :  { %v4380_v17 = vadd.f32 %v12388_v10, %v4267_v38 }
 0x830   :  { %v4493_v53 = vadd.f32 %v12410_v36, %v4380_v17 }
 0x832   :  { %4911 = vmatmul.f32.gmra.mxu3 %v4733_v3  ;;  %5496 = vmatmul.msk.f32.gmra.mxu2 %vm1193_vm0, %v4536_v51  ;;  %v4538_v33 = vmax.f32 %v4493_v53, 0.0  ;;  %v4507_v45 = vpop.f32.mrf.mxu3 }
 0x833   :  { %v4508_v10 = vadd.f32 %v4507_v45, %v4395_v7 }
 0x834   :  { %v12651_v4 = vpop.f32.mrf.mxu2  ;;  %v4739_v0 = vsel %vm1193_vm0, %v4538_v33, %v4705_v59 }
 0x835   :  { %v4543_v9 = vmax.f32 %v4508_v10, 0.0  ;;  %v4793_v26 = vadd.f32 %v12687_v48, %v12651_v4  ;;  %v5057_v4 = vld [vmem:[%s13348_s7 + $0x1e8] sm:$0xff] }
 0x836   :  { %5180 = vmatpush.msra.mxu2 %v5057_v4  ;;  %v5096_v4 = vld [vmem:[%s13348_s7 + $0x320] sm:$0xff] }
 0x83a   :  { %4914 = vmatmul.f32.gmra.mxu3 %v4738_v21  ;;  %5497 = vmatmul.msk.f32.gmra.mxu2 %vm1193_vm0, %v4541_v62  ;;  %v4707_v62 = vpop.permute.xlu2 %4706 }
 0x83b   :  { %v4740_v55 = vsel %vm1193_vm0, %v4539_v58, %v4707_v62 }
 0x83c   :  { %v12662_v51 = vpop.f32.mrf.mxu2 }
 0x83d   :  { %v4510_v36 = vpop.f32.mrf.mxu3 }
 0x83e   :  { %v4511_v47 = vadd.f32 %v4510_v36, %v4398_v13  ;;  %v4796_v13 = vadd.f32 %v12687_v48, %v12662_v51  ;;  %v5053_v51 = vld [vmem:[%s13348_s7 + $0x1c8] sm:$0xff] }
 0x83f   :  { %5181 = vmatpush.msra.mxu2 %v5053_v51  ;;  %v5092_v51 = vld [vmem:[%s13348_s7 + $0x300] sm:$0xff] }
 0x840   :  { %v4544_v41 = vmax.f32 %v4511_v47, 0.0 }
 0x842   :  { %4917 = vmatmul.f32.gmra.mxu3 %v4739_v0  ;;  %5498 = vmatmul.msk.f32.gmra.mxu2 %vm1193_vm0, %v4542_v25 }
 0x844   :  { %v12669_v6 = vpop.f32.mrf.mxu2 }
 0x845   :  { %v4821_v16 = vpop.f32.mrf.mxu3 }
 0x846   :  { %v4822_v20 = vadd.f32 %v4821_v16, %v4781_v30  ;;  %v5052_v16 = vld [vmem:[%s13348_s7 + $0x1c0] sm:$0xff]  ;;  %v5029_v30 = vld [vmem:[%s13348_s7 + $0x108] sm:$0xff] }
 0x84a   :  { %4920 = vmatmul.f32.gmra.mxu3 %v4740_v55  ;;  %5499 = vmatmul.msk.f32.gmra.mxu2 %vm1193_vm0, %v4543_v9 }
 0x84c   :  { %v4801_v12 = vpop.f32.mrf.mxu2 }
 0x84d   :  { %v4824_v14 = vpop.f32.mrf.mxu3 }
 0x84e   :  { %v4825_v34 = vadd.f32 %v4824_v14, %v4784_v54  ;;  %v5020_v54 = vld [vmem:[%s13348_s7 + $0xc0] sm:$0xff] }
 0x852   :  { %5500 = vmatmul.msk.f32.gmra.mxu2 %vm1193_vm0, %v4544_v41 }
 0x854   :  { %v4709_v25 = vpop.permute.xlu0 %4708  ;;  %v4862_v35 = vpop.f32.mrf.mxu2 }
 0x855   :  { %v4741_v46 = vsel %vm1193_vm0, %v4540_v18, %v4709_v25  ;;  %v4827_v24 = vpop.f32.mrf.mxu3  ;;  %v4802_v18 = vadd.f32 %v12687_v48, %v4801_v12  ;;  %v4863_v43 = vadd.f32 %v4862_v35, %v4822_v20  ;;  %v5056_v25 = vld [vmem:[%s13348_s7 + $0x1e0] sm:$0xff] }
 0x856   :  { %4923 = vmatmul.f32.gmra.mxu3 %v4741_v46  ;;  %v4828_v38 = vadd.f32 %v4827_v24, %v4787_v49  ;;  %v5048_v35 = vld [vmem:[%s13348_s7 + $0x1a0] sm:$0xff]  ;;  %v5049_v46 = vld [vmem:[%s13348_s7 + $0x1a8] sm:$0xff] }
 0x857   :  { %5134 = vmatpush.msrb.mxu3 %v5056_v25  ;;  %v5045_v24 = vld [vmem:[%s13348_s7 + $0x188] sm:$0xff]  ;;  %5182 = vmatpush.msra.mxu2 %v5049_v46  ;;  %v5038_v25 = vld [vmem:[%s13348_s7 + $0x150] sm:$0xff]  ;;  %v5088_v46 = vld [vmem:[%s13348_s7 + $0x2e0] sm:$0xff] }
 0x858   :  { %v5013_v49 = vld [vmem:[%s13348_s7 + $0x88] sm:$0xff] }
 0x859   :  { %5135 = vmatpush.msrb.mxu3 %v5052_v16  ;;  %5183 = vmatpush.msra.mxu2 %v5045_v24  ;;  %v5034_v16 = vld [vmem:[%s13348_s7 + $0x130] sm:$0xff] }
 0x85a   :  { %v5022_v24 = vld [vmem:[%s13348_s7 + $0xd0] sm:$0xff] }
 0x85b   :  { %5136 = vmatpush.msrb.mxu3 %v5048_v35  ;;  %v5030_v35 = vld [vmem:[%s13348_s7 + $0x110] sm:$0xff] }
 0x85c   :  { %v4865_v58 = vpop.f32.mrf.mxu2 }
 0x85d   :  { %v4830_v11 = vpop.f32.mrf.mxu3  ;;  %v4866_v40 = vadd.f32 %v4865_v58, %v4825_v34  ;;  %v5044_v58 = vld [vmem:[%s13348_s7 + $0x180] sm:$0xff]  ;;  %v5021_v34 = vld [vmem:[%s13348_s7 + $0xc8] sm:$0xff] }
 0x85e   :  { %v4831_v33 = vadd.f32 %v4830_v11, %v4790_v8  ;;  %5137 = vmatpush.msrb.mxu3 %v5044_v58  ;;  %v5084_v58 = vld [vmem:[%s13348_s7 + $0x2c0] sm:$0xff] }
 0x864   :  { %v4868_v44 = vpop.f32.mrf.mxu2 }
 0x865   :  { %v4833_v3 = vpop.f32.mrf.mxu3  ;;  %v4869_v29 = vadd.f32 %v4868_v44, %v4828_v38  ;;  %v5008_v38 = vld [vmem:[%s13348_s7 + $0x60] sm:$0xff] }
 0x866   :  { %v4834_v9 = vadd.f32 %v4833_v3, %v4793_v26  ;;  %v5058_v26 = vld [vmem:[%s13348_s7 + $0x1f0] sm:$0xff] }
 0x86c   :  { %v4871_v22 = vpop.f32.mrf.mxu2 }
 0x86d   :  { %v4872_v0 = vadd.f32 %v4871_v22, %v4831_v33  ;;  %v4799_v22 = vadd.f32 %v12687_v48, %v12669_v6  ;;  %v5037_v6 = vld [vmem:[%s13348_s7 + $0x148] sm:$0xff]  ;;  %v5032_v48 = vld [vmem:[%s13348_s7 + $0x120] sm:$0xff] }
 0x86e   :  { %v5001_v33 = vld [vmem:[%s13348_s7 + $0x28] sm:$0xff] }
 0x874   :  { %v4874_v56 = vpop.f32.mrf.mxu2 }
 0x875   :  { %v4875_v55 = vadd.f32 %v4874_v56, %v4834_v9  ;;  %v5040_v56 = vld [vmem:[%s13348_s7 + $0x160] sm:$0xff]  ;;  %v5054_v9 = vld [vmem:[%s13348_s7 + $0x1d0] sm:$0xff] }
 0x876   :  { %5138 = vmatpush.msrb.mxu3 %v5040_v56  ;;  %v5072_v56 = vld [vmem:[%s13348_s7 + $0x260] sm:$0xff] }
 0x885   :  { %v4836_v23 = vpop.f32.mrf.mxu3  ;;  %v4877_v57 = vpop.f32.mrf.mxu2 }
 0x886   :  { %v4837_v12 = vadd.f32 %v4836_v23, %v4796_v13  ;;  %v5041_v23 = vld [vmem:[%s13348_s7 + $0x168] sm:$0xff]  ;;  %v5104_v13 = vld [vmem:[%s13348_s7 + $0x360] sm:$0xff] }
 0x887   :  { %5184 = vmatpush.msra.mxu2 %v5041_v23  ;;  %v5010_v23 = vld [vmem:[%s13348_s7 + $0x70] sm:$0xff] }
 0x888   :  { %v4878_v14 = vadd.f32 %v4877_v57, %v4837_v12  ;;  %v5100_v12 = vld [vmem:[%s13348_s7 + $0x340] sm:$0xff] }
 0x889   :  { %5185 = vmatpush.msra.mxu2 %v5037_v6  ;;  %v5064_v6 = vld [vmem:[%s13348_s7 + $0x220] sm:$0xff] }
 0x88d   :  { %v12680_v60 = vpop.f32.mrf.mxu3  ;;  %v12682_v2 = vpop.f32.mrf.mxu2 }
 0x88e   :  { %v4840_v57 = vadd.f32 %v12680_v60, %v4799_v22  ;;  %v5033_v60 = vld [vmem:[%s13348_s7 + $0x128] sm:$0xff]  ;;  %v5076_v22 = vld [vmem:[%s13348_s7 + $0x280] sm:$0xff] }
 0x88f   :  { %5186 = vmatpush.msra.mxu2 %v5033_v60  ;;  %v5060_v60 = vld [vmem:[%s13348_s7 + $0x200] sm:$0xff] }
 0x891   :  { %5187 = vmatpush.msra.mxu2 %v5029_v30 }
 0x895   :  { %v4842_v1 = vpop.f32.mrf.mxu3  ;;  %v4883_v28 = vpop.f32.mrf.mxu2 }
 0x896   :  { %v4843_v37 = vadd.f32 %v4842_v1, %v4802_v18  ;;  %v5036_v1 = vld [vmem:[%s13348_s7 + $0x140] sm:$0xff] }
 0x897   :  { %5139 = vmatpush.msrb.mxu3 %v5036_v1  ;;  %v5006_v1 = vld [vmem:[%s13348_s7 + $0x50] sm:$0xff] }
 0x898   :  { %v12692_v32 = vadd.f32 %v4883_v28, %v4843_v37  ;;  %v4881_v28 = vadd.f32 %v12682_v2, %v4840_v57  ;;  %v5028_v37 = vld [vmem:[%s13348_s7 + $0x100] sm:$0xff]  ;;  %v5025_v2 = vld [vmem:[%s13348_s7 + $0xe8] sm:$0xff] }
 0x899   :  { %5140 = vmatpush.msrb.mxu3 %v5032_v48  ;;  %5188 = vmatpush.msra.mxu2 %v5025_v2  ;;  %v5068_v57 = vld [vmem:[%s13348_s7 + $0x240] sm:$0xff]  ;;  %v5002_v48 = vld [vmem:[%s13348_s7 + $0x30] sm:$0xff]  ;;  %v5055_v2 = vld [vmem:[%s13348_s7 + $0x1d8] sm:$0xff] }
 0x89b   :  { %5141 = vmatpush.msrb.mxu3 %v5028_v37  ;;  %5189 = vmatpush.msra.mxu2 %v5021_v34  ;;  %v5109_v34 = vld [vmem:[%s13348_s7 + $0x388] sm:$0xff] }
 0x89d   :  { %v4903_v50 = vpop.f32.mrf.mxu3  ;;  %v4944_v39 = vpop.f32.mrf.mxu2 }
 0x89e   :  { %v4904_v42 = vadd.f32 %v4903_v50, %v4863_v43  ;;  %v5024_v50 = vld [vmem:[%s13348_s7 + $0xe0] sm:$0xff] }
 0x89f   :  { %5142 = vmatpush.msrb.mxu3 %v5024_v50 }
 0x8a0   :  { %v12696_v5 = vadd.f32 %v4944_v39, %v4904_v42 }
 0x8a1   :  { %5143 = vmatpush.msrb.mxu3 %v5020_v54 }
 0x8a2   :  { %v4968_v37 = vmax.f32 %v12696_v5, 0.0  ;;  %v5117_v5 = vld [vmem:[%s13348_s7 + $0x3c8] sm:$0xff] }
 0x8a5   :  { %v4906_v63 = vpop.f32.mrf.mxu3  ;;  %v4947_v61 = vpop.f32.mrf.mxu2 }
 0x8a6   :  { %v4907_v15 = vadd.f32 %v4906_v63, %v4866_v40  ;;  %v5016_v63 = vld [vmem:[%s13348_s7 + $0xa0] sm:$0xff] }
 0x8a7   :  { %5144 = vmatpush.msrb.mxu3 %v5016_v63 }
 0x8a8   :  { %v12700_v52 = vadd.f32 %v4947_v61, %v4907_v15  ;;  %v5017_v61 = vld [vmem:[%s13348_s7 + $0xa8] sm:$0xff]  ;;  %v5012_v15 = vld [vmem:[%s13348_s7 + $0x80] sm:$0xff] }
 0x8a9   :  { %5190 = vmatpush.msra.mxu2 %v5017_v61  ;;  %5145 = vmatpush.msrb.mxu3 %v5012_v15  ;;  %v5105_v61 = vld [vmem:[%s13348_s7 + $0x368] sm:$0xff]  ;;  %v5043_v15 = vld [vmem:[%s13348_s7 + $0x178] sm:$0xff] }
 0x8aa   :  { %v4969_v63 = vmax.f32 %v12700_v52, 0.0  ;;  %v5101_v52 = vld [vmem:[%s13348_s7 + $0x348] sm:$0xff] }
 0x8ab   :  { %5191 = vmatpush.msra.mxu2 %v5013_v49  ;;  %5146 = vmatpush.msrb.mxu3 %v5008_v38  ;;  %v5039_v38 = vld [vmem:[%s13348_s7 + $0x158] sm:$0xff] }
 0x8ad   :  { %v4909_v17 = vpop.f32.mrf.mxu3  ;;  %v4950_v21 = vpop.f32.mrf.mxu2 }
 0x8ae   :  { %v4910_v53 = vadd.f32 %v4909_v17, %v4869_v29  ;;  %v5009_v29 = vld [vmem:[%s13348_s7 + $0x68] sm:$0xff]  ;;  %v5004_v17 = vld [vmem:[%s13348_s7 + $0x40] sm:$0xff] }
 0x8af   :  { %5192 = vmatpush.msra.mxu2 %v5009_v29  ;;  %5147 = vmatpush.msrb.mxu3 %v5004_v17  ;;  %v5097_v29 = vld [vmem:[%s13348_s7 + $0x328] sm:$0xff]  ;;  %v5035_v17 = vld [vmem:[%s13348_s7 + $0x138] sm:$0xff] }
 0x8b0   :  { %v4951_v59 = vadd.f32 %v4950_v21, %v4910_v53  ;;  %v5005_v21 = vld [vmem:[%s13348_s7 + $0x48] sm:$0xff] }
 0x8b1   :  { %5193 = vmatpush.msra.mxu2 %v5005_v21  ;;  %v5093_v21 = vld [vmem:[%s13348_s7 + $0x308] sm:$0xff] }
 0x8b2   :  { %v4970_v45 = vmax.f32 %v4951_v59, 0.0  ;;  %v5000_v59 = vld [vmem:[%s13348_s7 + $0x20] sm:$0xff] }
 0x8b3   :  { %5148 = vmatpush.msrb.mxu3 %v5000_v59  ;;  %5194 = vmatpush.msra.mxu2 %v5001_v33  ;;  %v5027_v59 = vld [vmem:[%s13348_s7 + $0xf8] sm:$0xff]  ;;  %v5085_v33 = vld [vmem:[%s13348_s7 + $0x2c8] sm:$0xff] }
 0x8b4   :  { %4978 = vrot.lane.b32.xlu1 %v4970_v45, %s6760_s29 }
 0x8b5   :  { %v4912_v31 = vpop.f32.mrf.mxu3  ;;  %v4953_v7 = vpop.f32.mrf.mxu2 }
 0x8b6   :  { %v4913_v10 = vadd.f32 %v4912_v31, %v4872_v0  ;;  %v4996_v31 = vld [vmem:[%s13348_s7] sm:$0xff] }
 0x8b7   :  { %5149 = vmatpush.msrb.mxu3 %v4996_v31  ;;  %v5019_v31 = vld [vmem:[%s13348_s7 + $0xb8] sm:$0xff] }
 0x8b8   :  { %v4954_v62 = vadd.f32 %v4953_v7, %v4913_v10  ;;  %v5120_v7 = vld [vmem:[%s13348_s7 + $0x3e0] sm:$0xff] }
 0x8b9   :  { %5157 = vmatpush.msra.mxu3 %v5120_v7  ;;  %v5015_v7 = vld [vmem:[%s13348_s7 + $0x98] sm:$0xff] }
 0x8ba   :  { %v4971_v36 = vmax.f32 %v4954_v62, 0.0  ;;  %v5116_v62 = vld [vmem:[%s13348_s7 + $0x3c0] sm:$0xff] }
 0x8bb   :  { %5158 = vmatpush.msra.mxu3 %v5116_v62  ;;  %v5069_v62 = vld [vmem:[%s13348_s7 + $0x248] sm:$0xff] }
 0x8bc   :  { %4980 = vrot.lane.b32.xlu2 %v4971_v36, %s6760_s29  ;;  %v5112_v36 = vld [vmem:[%s13348_s7 + $0x3a0] sm:$0xff] }
 0x8bd   :  { %v4915_v27 = vpop.f32.mrf.mxu3  ;;  %v4956_v19 = vpop.f32.mrf.mxu2  ;;  %5159 = vmatpush.msra.mxu3 %v5112_v36  ;;  %v5065_v36 = vld [vmem:[%s13348_s7 + $0x228] sm:$0xff] }
 0x8be   :  { %v4916_v47 = vadd.f32 %v4915_v27, %v4875_v55  ;;  %v5050_v55 = vld [vmem:[%s13348_s7 + $0x1b0] sm:$0xff]  ;;  %v5108_v27 = vld [vmem:[%s13348_s7 + $0x380] sm:$0xff] }
 0x8bf   :  { %5160 = vmatpush.msra.mxu3 %v5108_v27  ;;  %v5061_v27 = vld [vmem:[%s13348_s7 + $0x208] sm:$0xff] }
 0x8c0   :  { %v12710_v41 = vadd.f32 %v4956_v19, %v4916_v47  ;;  %v5046_v19 = vld [vmem:[%s13348_s7 + $0x190] sm:$0xff] }
 0x8c1   :  { %v5042_v47 = vld [vmem:[%s13348_s7 + $0x170] sm:$0xff]  ;;  %5161 = vmatpush.msra.mxu3 %v5104_v13 }
 0x8c2   :  { %v4972_v13 = vmax.f32 %v12710_v41, 0.0  ;;  %v5118_v41 = vld [vmem:[%s13348_s7 + $0x3d0] sm:$0xff] }
 0x8c3   :  { %5162 = vmatpush.msra.mxu3 %v5100_v12  ;;  %v5122_v12 = vld [vmem:[%s13348_s7 + $0x3f0] sm:$0xff] }
 0x8c5   :  { %v4918_v44 = vpop.f32.mrf.mxu3  ;;  %v4959_v11 = vpop.f32.mrf.mxu2  ;;  %5163 = vmatpush.msra.mxu3 %v5096_v4  ;;  %v5114_v4 = vld [vmem:[%s13348_s7 + $0x3b0] sm:$0xff] }
 0x8c6   :  { %v4919_v3 = vadd.f32 %v4918_v44, %v4878_v14  ;;  %v5026_v14 = vld [vmem:[%s13348_s7 + $0xf0] sm:$0xff]  ;;  %v5080_v44 = vld [vmem:[%s13348_s7 + $0x2a0] sm:$0xff] }
 0x8c7   :  { %5164 = vmatpush.msra.mxu3 %v5092_v51  ;;  %v5106_v51 = vld [vmem:[%s13348_s7 + $0x370] sm:$0xff] }
 0x8c8   :  { %v12745_v18 = vadd.f32 %v4959_v11, %v4919_v3  ;;  %v5018_v11 = vld [vmem:[%s13348_s7 + $0xb0] sm:$0xff] }
 0x8c9   :  { %5165 = vmatpush.msra.mxu3 %v5088_v46  ;;  %v5014_v3 = vld [vmem:[%s13348_s7 + $0x90] sm:$0xff] }
 0x8ca   :  { %v4973_v46 = vmax.f32 %v12745_v18, 0.0  ;;  %v5086_v18 = vld [vmem:[%s13348_s7 + $0x2d0] sm:$0xff] }
 0x8cb   :  { %5166 = vmatpush.msra.mxu3 %v5084_v58  ;;  %v5098_v58 = vld [vmem:[%s13348_s7 + $0x330] sm:$0xff] }
 0x8cd   :  { %v4921_v20 = vpop.f32.mrf.mxu3  ;;  %v4962_v39 = vpop.f32.mrf.mxu2  ;;  %5167 = vmatpush.msra.mxu3 %v5080_v44  ;;  %v5094_v44 = vld [vmem:[%s13348_s7 + $0x310] sm:$0xff] }
 0x8ce   :  { %v4922_v43 = vadd.f32 %v4921_v20, %v4881_v28  ;;  %v4998_v28 = vld [vmem:[%s13348_s7 + $0x10] sm:$0xff]  ;;  %v5121_v20 = vld [vmem:[%s13348_s7 + $0x3e8] sm:$0xff] }
 0x8cf   :  { %5168 = vmatpush.msra.mxu3 %v5076_v22  ;;  %v5082_v22 = vld [vmem:[%s13348_s7 + $0x2b0] sm:$0xff] }
 0x8d0   :  { %v4963_v42 = vadd.f32 %v4962_v39, %v4922_v43  ;;  %v5059_v43 = vld [vmem:[%s13348_s7 + $0x1f8] sm:$0xff]  ;;  %v5113_v39 = vld [vmem:[%s13348_s7 + $0x3a8] sm:$0xff] }
 0x8d1   :  { %5169 = vmatpush.msra.mxu3 %v5072_v56  ;;  %v5074_v56 = vld [vmem:[%s13348_s7 + $0x270] sm:$0xff] }
 0x8d2   :  { %v4974_v40 = vmax.f32 %v4963_v42, 0.0  ;;  %v5051_v42 = vld [vmem:[%s13348_s7 + $0x1b8] sm:$0xff] }
 0x8d3   :  { %5170 = vmatpush.msra.mxu3 %v5068_v57  ;;  %v5066_v57 = vld [vmem:[%s13348_s7 + $0x230] sm:$0xff] }
 0x8d4   :  { %4986 = vrot.lane.b32.xlu0 %v4974_v40, %s6760_s29  ;;  %v5047_v40 = vld [vmem:[%s13348_s7 + $0x198] sm:$0xff] }
 0x8d5   :  { %v4965_v45 = vpop.f32.mrf.mxu2  ;;  %5171 = vmatpush.msra.mxu3 %v5064_v6  ;;  %v5123_v6 = vld [vmem:[%s13348_s7 + $0x3f8] sm:$0xff] }
 0x8d7   :  { %5172 = vmatpush.msra.mxu3 %v5060_v60  ;;  %v5115_v60 = vld [vmem:[%s13348_s7 + $0x3b8] sm:$0xff] }
 0x8d9   :  { %v4924_v53 = vpop.f32.mrf.mxu3 }
 0x8da   :  { %v4925_v8 = vadd.f32 %v4924_v53, %v12692_v32  ;;  %v4997_v32 = vld [vmem:[%s13348_s7 + $0x8] sm:$0xff]  ;;  %v5031_v53 = vld [vmem:[%s13348_s7 + $0x118] sm:$0xff] }
 0x8db   :  { %5195 = vmatpush.msra.mxu2 %v4997_v32  ;;  %v5077_v32 = vld [vmem:[%s13348_s7 + $0x288] sm:$0xff] }
 0x8dc   :  { %v4966_v0 = vadd.f32 %v4965_v45, %v4925_v8  ;;  %v5089_v8 = vld [vmem:[%s13348_s7 + $0x2e8] sm:$0xff]  ;;  %v5023_v45 = vld [vmem:[%s13348_s7 + $0xd8] sm:$0xff] }
 0x8dd   :  { %5226 = vmatpush.msrb.mxu2 %v5058_v26  ;;  %v5011_v26 = vld [vmem:[%s13348_s7 + $0x78] sm:$0xff] }
 0x8de   :  { %v4975_v10 = vmax.f32 %v4966_v0, 0.0  ;;  %v5081_v0 = vld [vmem:[%s13348_s7 + $0x2a8] sm:$0xff] }
 0x8df   :  { %5227 = vmatpush.msrb.mxu2 %v5054_v9  ;;  %v5007_v9 = vld [vmem:[%s13348_s7 + $0x58] sm:$0xff] }
 0x8e0   :  { %4988 = vrot.lane.b32.xlu1 %v4975_v10, %s6760_s29  ;;  %v5073_v10 = vld [vmem:[%s13348_s7 + $0x268] sm:$0xff] }
 0x8e1   :  { %5228 = vmatpush.msrb.mxu2 %v5050_v55  ;;  %v5003_v55 = vld [vmem:[%s13348_s7 + $0x38] sm:$0xff] }
 0x8e3   :  { %5229 = vmatpush.msrb.mxu2 %v5046_v19  ;;  %v4999_v19 = vld [vmem:[%s13348_s7 + $0x18] sm:$0xff] }
 0x8e5   :  { %5230 = vmatpush.msrb.mxu2 %v5042_v47 }
 0x8e7   :  { %5231 = vmatpush.msrb.mxu2 %v5038_v25 }
 0x8e9   :  { %5232 = vmatpush.msrb.mxu2 %v5034_v16  ;;  %v5110_v16 = vld [vmem:[%s13348_s7 + $0x390] sm:$0xff] }
 0x8eb   :  { %5233 = vmatpush.msrb.mxu2 %v5030_v35  ;;  %v5102_v35 = vld [vmem:[%s13348_s7 + $0x350] sm:$0xff] }
 0x8ed   :  { %5234 = vmatpush.msrb.mxu2 %v5026_v14 }
 0x8ef   :  { %5235 = vmatpush.msrb.mxu2 %v5022_v24 }
 0x8f1   :  { %5236 = vmatpush.msrb.mxu2 %v5018_v11  ;;  %v5090_v11 = vld [vmem:[%s13348_s7 + $0x2f0] sm:$0xff] }
 0x8f3   :  { %5237 = vmatpush.msrb.mxu2 %v5014_v3  ;;  %v5078_v3 = vld [vmem:[%s13348_s7 + $0x290] sm:$0xff] }
 0x8f5   :  { %5238 = vmatpush.msrb.mxu2 %v5010_v23  ;;  %v5070_v23 = vld [vmem:[%s13348_s7 + $0x250] sm:$0xff] }
 0x8f7   :  { %5239 = vmatpush.msrb.mxu2 %v5006_v1  ;;  %v5062_v1 = vld [vmem:[%s13348_s7 + $0x210] sm:$0xff] }
 0x8f9   :  { %5240 = vmatpush.msrb.mxu2 %v5002_v48  ;;  %v5119_v48 = vld [vmem:[%s13348_s7 + $0x3d8] sm:$0xff] }
 0x8fb   :  { %5241 = vmatpush.msrb.mxu2 %v4998_v28  ;;  %v5111_v28 = vld [vmem:[%s13348_s7 + $0x398] sm:$0xff] }
 0x916   :  { %v4981_v54 = vpop.permute.xlu2 %4980 }
 0x917   :  { %v12951_v49 = vsel %vm1193_vm0, %v4969_v63, %v4981_v54  ;;  %v5071_v54 = vld [vmem:[%s13348_s7 + $0x258] sm:$0xff] }
 0x918   :  { %v5341_v63 = vld [vmem:[%s13349_s9 + $0x78] sm:$0xff] }
 0x926   :  { %v4979_v30 = vpop.permute.xlu1 %4978 }
 0x927   :  { %v12921_v50 = vsel %vm1193_vm0, %v4968_v37, %v4979_v30  ;;  %v5107_v37 = vld [vmem:[%s13348_s7 + $0x378] sm:$0xff] }
 0x928   :  { %5150 = vmatmul.f32.vlgmr.msrb.gmra.mxu3 %v12921_v50  ;;  %5196 = vmatmul.f32.vlgmr.msra.gmra.mxu2 %v12921_v50  ;;  %v5103_v30 = vld [vmem:[%s13348_s7 + $0x358] sm:$0xff] }
 0x929   :  { %5203 = vmatpush.msrb.mxu3 %v5121_v20  ;;  %5272 = vmatpush.msra.mxu2 %v5059_v43  ;;  %v5099_v20 = vld [vmem:[%s13348_s7 + $0x338] sm:$0xff] }
 0x92a   :  { %v5095_v43 = vld [vmem:[%s13348_s7 + $0x318] sm:$0xff] }
 0x92b   :  { %5204 = vmatpush.msrb.mxu3 %v5117_v5  ;;  %5273 = vmatpush.msra.mxu2 %v5055_v2  ;;  %v5087_v5 = vld [vmem:[%s13348_s7 + $0x2d8] sm:$0xff] }
 0x92c   :  { %v5083_v2 = vld [vmem:[%s13348_s7 + $0x2b8] sm:$0xff] }
 0x92d   :  { %5205 = vmatpush.msrb.mxu3 %v5113_v39  ;;  %5274 = vmatpush.msra.mxu2 %v5051_v42  ;;  %v5079_v39 = vld [vmem:[%s13348_s7 + $0x298] sm:$0xff] }
 0x92e   :  { %v5075_v42 = vld [vmem:[%s13348_s7 + $0x278] sm:$0xff] }
 0x92f   :  { %5206 = vmatpush.msrb.mxu3 %v5109_v34  ;;  %5275 = vmatpush.msra.mxu2 %v5047_v40  ;;  %v5067_v34 = vld [vmem:[%s13348_s7 + $0x238] sm:$0xff] }
 0x930   :  { %5153 = vmatmul.f32.gmra.mxu3 %v12951_v49  ;;  %5199 = vmatmul.f32.gmra.mxu2 %v12951_v49  ;;  %v5063_v40 = vld [vmem:[%s13348_s7 + $0x218] sm:$0xff] }
 0x931   :  { %5207 = vmatpush.msrb.mxu3 %v5105_v61  ;;  %5276 = vmatpush.msra.mxu2 %v5043_v15  ;;  %v5340_v61 = vld [vmem:[%s13349_s9 + $0x70] sm:$0xff]  ;;  %v5339_v15 = vld [vmem:[%s13349_s9 + $0x68] sm:$0xff] }
 0x933   :  { %5208 = vmatpush.msrb.mxu3 %v5101_v52  ;;  %5277 = vmatpush.msra.mxu2 %v5039_v38  ;;  %v5337_v52 = vld [vmem:[%s13349_s9 + $0x58] sm:$0xff]  ;;  %v5336_v38 = vld [vmem:[%s13349_s9 + $0x50] sm:$0xff] }
 0x935   :  { %5209 = vmatpush.msrb.mxu3 %v5097_v29  ;;  %5278 = vmatpush.msra.mxu2 %v5035_v17  ;;  %v5335_v29 = vld [vmem:[%s13349_s9 + $0x48] sm:$0xff]  ;;  %v5334_v17 = vld [vmem:[%s13349_s9 + $0x40] sm:$0xff] }
 0x937   :  { %5210 = vmatpush.msrb.mxu3 %v5093_v21  ;;  %5279 = vmatpush.msra.mxu2 %v5031_v53  ;;  %v5333_v21 = vld [vmem:[%s13349_s9 + $0x38] sm:$0xff]  ;;  %v5332_v53 = vld [vmem:[%s13349_s9 + $0x30] sm:$0xff] }
 0x938   :  { %5242 = vmatmul.f32.vlgmr.msrb.gmra.mxu2 %v12921_v50 }
 0x939   :  { %5211 = vmatpush.msrb.mxu3 %v5089_v8  ;;  %5280 = vmatpush.msra.mxu2 %v5027_v59  ;;  %v5331_v8 = vld [vmem:[%s13349_s9 + $0x28] sm:$0xff]  ;;  %v5357_v59 = vld [vmem:[%s13349_s9 + $0xf8] sm:$0xff] }
 0x93b   :  { %5212 = vmatpush.msrb.mxu3 %v5085_v33  ;;  %5281 = vmatpush.msra.mxu2 %v5023_v45  ;;  %v5330_v33 = vld [vmem:[%s13349_s9 + $0x20] sm:$0xff]  ;;  %v5356_v45 = vld [vmem:[%s13349_s9 + $0xf0] sm:$0xff] }
 0x93d   :  { %5213 = vmatpush.msrb.mxu3 %v5081_v0  ;;  %5282 = vmatpush.msra.mxu2 %v5019_v31  ;;  %v5355_v0 = vld [vmem:[%s13349_s9 + $0xe8] sm:$0xff]  ;;  %v5329_v31 = vld [vmem:[%s13349_s9 + $0x18] sm:$0xff] }
 0x93f   :  { %5214 = vmatpush.msrb.mxu3 %v5077_v32  ;;  %5283 = vmatpush.msra.mxu2 %v5015_v7  ;;  %v5328_v32 = vld [vmem:[%s13349_s9 + $0x10] sm:$0xff]  ;;  %v5354_v7 = vld [vmem:[%s13349_s9 + $0xe0] sm:$0xff] }
 0x940   :  { %5245 = vmatmul.f32.gmra.mxu2 %v12951_v49 }
 0x941   :  { %5215 = vmatpush.msrb.mxu3 %v5073_v10  ;;  %5284 = vmatpush.msra.mxu2 %v5011_v26  ;;  %v5327_v10 = vld [vmem:[%s13349_s9 + $0x8] sm:$0xff]  ;;  %v5353_v26 = vld [vmem:[%s13349_s9 + $0xd8] sm:$0xff] }
 0x943   :  { %5216 = vmatpush.msrb.mxu3 %v5069_v62  ;;  %5285 = vmatpush.msra.mxu2 %v5007_v9  ;;  %v5326_v62 = vld [vmem:[%s13349_s9] sm:$0xff]  ;;  %v5352_v9 = vld [vmem:[%s13349_s9 + $0xd0] sm:$0xff] }
 0x945   :  { %5217 = vmatpush.msrb.mxu3 %v5065_v36  ;;  %5286 = vmatpush.msra.mxu2 %v5003_v55  ;;  %v5351_v36 = vld [vmem:[%s13349_s9 + $0xc8] sm:$0xff]  ;;  %v5350_v55 = vld [vmem:[%s13349_s9 + $0xc0] sm:$0xff] }
 0x946   :  { %v4987_v47 = vpop.permute.xlu0 %4986 }
 0x947   :  { %v13028_v25 = vsel %vm1193_vm0, %v4972_v13, %v4987_v47  ;;  %5218 = vmatpush.msrb.mxu3 %v5061_v27  ;;  %5287 = vmatpush.msra.mxu2 %v4999_v19  ;;  %v5349_v27 = vld [vmem:[%s13349_s9 + $0xb8] sm:$0xff]  ;;  %v5348_v13 = vld [vmem:[%s13349_s9 + $0xb0] sm:$0xff] }
 0x948   :  { %5173 = vmatmul.f32.vlgmr.msra.gmra.mxu3 %v13028_v25  ;;  %5288 = vmatmul.f32.vlgmr.msra.gmra.mxu2 %v12921_v50  ;;  %v5091_v50 = vld [vmem:[%s13348_s7 + $0x2f8] sm:$0xff]  ;;  %v5372_v47 = vld [vmem:[%s13349_s9 + $0x170] sm:$0xff] }
 0x949   :  { %5249 = vmatpush.msra.mxu3 %v5122_v12  ;;  %5394 = vmatpush.msrb.mxu2 %v5341_v63  ;;  %v5373_v19 = vld [vmem:[%s13349_s9 + $0x178] sm:$0xff] }
 0x94b   :  { %5250 = vmatpush.msra.mxu3 %v5118_v41  ;;  %5395 = vmatpush.msrb.mxu2 %v5340_v61  ;;  %v5371_v41 = vld [vmem:[%s13349_s9 + $0x168] sm:$0xff]  ;;  %v5384_v61 = vld [vmem:[%s13349_s9 + $0x1d0] sm:$0xff] }
 0x94d   :  { %5251 = vmatpush.msra.mxu3 %v5114_v4  ;;  %5396 = vmatpush.msrb.mxu2 %v5339_v15  ;;  %v5346_v4 = vld [vmem:[%s13349_s9 + $0xa0] sm:$0xff] }
 0x94f   :  { %5252 = vmatpush.msra.mxu3 %v5110_v16  ;;  %v5370_v16 = vld [vmem:[%s13349_s9 + $0x160] sm:$0xff] }
 0x950   :  { %5291 = vmatmul.f32.gmra.mxu2 %v12951_v49  ;;  %v5338_v49 = vld [vmem:[%s13349_s9 + $0x60] sm:$0xff] }
 0x951   :  { %5253 = vmatpush.msra.mxu3 %v5106_v51  ;;  %5397 = vmatpush.msrb.mxu2 %v5338_v49  ;;  %v5345_v51 = vld [vmem:[%s13349_s9 + $0x98] sm:$0xff] }
 0x952   :  { %v4989_v14 = vpop.permute.xlu1 %4988 }
 0x953   :  { %5254 = vmatpush.msra.mxu3 %v5102_v35  ;;  %v4995_v24 = vsel %vm1193_vm0, %v4973_v46, %v4989_v14  ;;  %5398 = vmatpush.msrb.mxu2 %v5337_v52  ;;  %v5369_v35 = vld [vmem:[%s13349_s9 + $0x158] sm:$0xff]  ;;  %v5344_v46 = vld [vmem:[%s13349_s9 + $0x90] sm:$0xff]  ;;  %v5383_v52 = vld [vmem:[%s13349_s9 + $0x1c8] sm:$0xff] }
 0x954   :  { %5176 = vmatmul.f32.gmra.mxu3 %v4995_v24  ;;  %v5368_v14 = vld [vmem:[%s13349_s9 + $0x150] sm:$0xff] }
 0x955   :  { %5255 = vmatpush.msra.mxu3 %v5098_v58  ;;  %5399 = vmatpush.msrb.mxu2 %v5336_v38  ;;  %v5343_v58 = vld [vmem:[%s13349_s9 + $0x88] sm:$0xff]  ;;  %v5382_v38 = vld [vmem:[%s13349_s9 + $0x1c0] sm:$0xff] }
 0x957   :  { %5256 = vmatpush.msra.mxu3 %v5094_v44  ;;  %5400 = vmatpush.msrb.mxu2 %v5335_v29  ;;  %v5342_v44 = vld [vmem:[%s13349_s9 + $0x80] sm:$0xff]  ;;  %v5381_v29 = vld [vmem:[%s13349_s9 + $0x1b8] sm:$0xff] }
 0x959   :  { %5257 = vmatpush.msra.mxu3 %v5090_v11  ;;  %5401 = vmatpush.msrb.mxu2 %v5334_v17  ;;  %v13251_v11 = vld [vmem:[%s13351_s8] sm:$0xf] }
 0x95a   :  { %v5127_v15 = vperm.slane %v13251_v11, 1 }
 0x95b   :  { %5258 = vmatpush.msra.mxu3 %v5086_v18  ;;  %5402 = vmatpush.msrb.mxu2 %v5333_v21 }
 0x95c   :  { %5219 = vmatmul.f32.vlgmr.msrb.gmra.mxu3 %v13028_v25 }
 0x95d   :  { %5259 = vmatpush.msra.mxu3 %v5082_v22  ;;  %5403 = vmatpush.msrb.mxu2 %v5332_v53  ;;  %v5366_v22 = vld [vmem:[%s13349_s9 + $0x140] sm:$0xff]  ;;  %v5380_v53 = vld [vmem:[%s13349_s9 + $0x1b0] sm:$0xff] }
 0x95f   :  { %5260 = vmatpush.msra.mxu3 %v5078_v3  ;;  %5404 = vmatpush.msrb.mxu2 %v5331_v8  ;;  %v5365_v3 = vld [vmem:[%s13349_s9 + $0x138] sm:$0xff] }
 0x961   :  { %5261 = vmatpush.msra.mxu3 %v5074_v56  ;;  %5405 = vmatpush.msrb.mxu2 %v5330_v33  ;;  %v5126_v56 = vperm.slane %v13251_v11, 0 }
 0x963   :  { %5262 = vmatpush.msra.mxu3 %v5070_v23  ;;  %5406 = vmatpush.msrb.mxu2 %v5329_v31  ;;  %v5364_v23 = vld [vmem:[%s13349_s9 + $0x130] sm:$0xff] }
 0x964   :  { %5222 = vmatmul.f32.gmra.mxu3 %v4995_v24 }
 0x965   :  { %5263 = vmatpush.msra.mxu3 %v5066_v57  ;;  %5407 = vmatpush.msrb.mxu2 %v5328_v32  ;;  %v5377_v32 = vld [vmem:[%s13349_s9 + $0x198] sm:$0xff] }
 0x967   :  { %5264 = vmatpush.msra.mxu3 %v5062_v1  ;;  %5408 = vmatpush.msrb.mxu2 %v5327_v10  ;;  %v5363_v1 = vld [vmem:[%s13349_s9 + $0x128] sm:$0xff] }
 0x969   :  { %5295 = vmatpush.msrb.mxu3 %v5123_v6  ;;  %5409 = vmatpush.msrb.mxu2 %v5326_v62  ;;  %v5362_v6 = vld [vmem:[%s13349_s9 + $0x120] sm:$0xff] }
 0x96b   :  { %5296 = vmatpush.msrb.mxu3 %v5119_v48  ;;  %5440 = vmatpush.msra.mxu2 %v5373_v19 }
 0x96c   :  { %5265 = vmatmul.f32.vlgmr.msra.gmra.mxu3 %v13028_v25 }
 0x96d   :  { %5297 = vmatpush.msrb.mxu3 %v5115_v60  ;;  %5441 = vmatpush.msra.mxu2 %v5372_v47 }
 0x96f   :  { %5298 = vmatpush.msrb.mxu3 %v5111_v28  ;;  %5442 = vmatpush.msra.mxu2 %v5371_v41  ;;  %v5361_v28 = vld [vmem:[%s13349_s9 + $0x118] sm:$0xff] }
 0x971   :  { %5299 = vmatpush.msrb.mxu3 %v5107_v37  ;;  %5443 = vmatpush.msra.mxu2 %v5370_v16  ;;  %v5389_v37 = vld [vmem:[%s13349_s9 + $0x1f8] sm:$0xff] }
 0x973   :  { %5300 = vmatpush.msrb.mxu3 %v5103_v30  ;;  %5444 = vmatpush.msra.mxu2 %v5369_v35 }
 0x974   :  { %5268 = vmatmul.f32.gmra.mxu3 %v4995_v24 }
 0x975   :  { %5301 = vmatpush.msrb.mxu3 %v5099_v20  ;;  %5445 = vmatpush.msra.mxu2 %v5368_v14  ;;  %v5360_v20 = vld [vmem:[%s13349_s9 + $0x110] sm:$0xff] }
 0x977   :  { %5302 = vmatpush.msrb.mxu3 %v5095_v43  ;;  %v5388_v43 = vld [vmem:[%s13349_s9 + $0x1f0] sm:$0xff] }
 0x979   :  { %5303 = vmatpush.msrb.mxu3 %v5091_v50  ;;  %v5359_v50 = vld [vmem:[%s13349_s9 + $0x108] sm:$0xff] }
 0x97b   :  { %5304 = vmatpush.msrb.mxu3 %v5087_v5  ;;  %v5387_v5 = vld [vmem:[%s13349_s9 + $0x1e8] sm:$0xff] }
 0x97d   :  { %5305 = vmatpush.msrb.mxu3 %v5083_v2  ;;  %v5358_v2 = vld [vmem:[%s13349_s9 + $0x100] sm:$0xff] }
 0x97f   :  { %5306 = vmatpush.msrb.mxu3 %v5079_v39  ;;  %v5386_v39 = vld [vmem:[%s13349_s9 + $0x1e0] sm:$0xff] }
 0x981   :  { %5307 = vmatpush.msrb.mxu3 %v5075_v42  ;;  %v5385_v42 = vld [vmem:[%s13349_s9 + $0x1d8] sm:$0xff] }
 0x983   :  { %5308 = vmatpush.msrb.mxu3 %v5071_v54 }
 0x985   :  { %5309 = vmatpush.msrb.mxu3 %v5067_v34 }
 0x987   :  { %5310 = vmatpush.msrb.mxu3 %v5063_v40 }
 0x988   :  { %5311 = vmatmul.f32.vlgmr.msrb.gmra.mxu3 %v13028_v25  ;;  %v5347_v25 = vld [vmem:[%s13349_s9 + $0xa8] sm:$0xff] }
 0x989   :  { %5417 = vmatpush.msra.mxu3 %v5357_v59 }
 0x98b   :  { %5418 = vmatpush.msra.mxu3 %v5356_v45  ;;  %v5379_v45 = vld [vmem:[%s13349_s9 + $0x1a8] sm:$0xff] }
 0x98d   :  { %5419 = vmatpush.msra.mxu3 %v5355_v0  ;;  %v5378_v0 = vld [vmem:[%s13349_s9 + $0x1a0] sm:$0xff] }
 0x98f   :  { %5420 = vmatpush.msra.mxu3 %v5354_v7 }
 0x990   :  { %5314 = vmatmul.f32.gmra.mxu3 %v4995_v24  ;;  %v5367_v24 = vld [vmem:[%s13349_s9 + $0x148] sm:$0xff] }
 0x991   :  { %5421 = vmatpush.msra.mxu3 %v5353_v26  ;;  %5446 = vmatpush.msra.mxu2 %v5367_v24  ;;  %v5376_v26 = vld [vmem:[%s13349_s9 + $0x190] sm:$0xff] }
 0x993   :  { %5422 = vmatpush.msra.mxu3 %v5352_v9  ;;  %5447 = vmatpush.msra.mxu2 %v5366_v22 }
 0x995   :  { %5423 = vmatpush.msra.mxu3 %v5351_v36  ;;  %5448 = vmatpush.msra.mxu2 %v5365_v3  ;;  %v5128_v36 = vperm.slane %v13251_v11, 2 }
 0x997   :  { %5424 = vmatpush.msra.mxu3 %v5350_v55  ;;  %5449 = vmatpush.msra.mxu2 %v5364_v23  ;;  %v5375_v55 = vld [vmem:[%s13349_s9 + $0x188] sm:$0xff] }
 0x999   :  { %5425 = vmatpush.msra.mxu3 %v5349_v27  ;;  %5450 = vmatpush.msra.mxu2 %v5363_v1  ;;  %v5374_v27 = vld [vmem:[%s13349_s9 + $0x180] sm:$0xff] }
 0x99b   :  { %5426 = vmatpush.msra.mxu3 %v5348_v13  ;;  %5451 = vmatpush.msra.mxu2 %v5362_v6 }
 0x99d   :  { %5427 = vmatpush.msra.mxu3 %v5347_v25  ;;  %5452 = vmatpush.msra.mxu2 %v5361_v28 }
 0x99f   :  { %5428 = vmatpush.msra.mxu3 %v5346_v4  ;;  %5453 = vmatpush.msra.mxu2 %v5360_v20 }
 0x9a1   :  { %5429 = vmatpush.msra.mxu3 %v5345_v51  ;;  %5454 = vmatpush.msra.mxu2 %v5359_v50 }
 0x9a3   :  { %5430 = vmatpush.msra.mxu3 %v5344_v46  ;;  %5455 = vmatpush.msra.mxu2 %v5358_v2  ;;  %v5129_v46 = vperm.slane %v13251_v11, 3 }
 0x9a5   :  { %5431 = vmatpush.msra.mxu3 %v5343_v58 }
 0x9a7   :  { %5432 = vmatpush.msra.mxu3 %v5342_v44 }
 0x9a9   :  { %5463 = vmatpush.msrb.mxu3 %v5389_v37 }
 0x9ab   :  { %v5151_v12 = vpop.f32.mrf.mxu3  ;;  %5464 = vmatpush.msrb.mxu3 %v5388_v43  ;;  %v5197_v54 = vpop.f32.mrf.mxu2 }
 0x9ac   :  { %v5152_v57 = vadd.f32 %v5151_v12, %v5126_v56  ;;  %v5198_v17 = vadd.f32 %v5197_v54, %v5127_v15 }
 0x9ad   :  { %5465 = vmatpush.msrb.mxu3 %v5387_v5 }
 0x9af   :  { %5466 = vmatpush.msrb.mxu3 %v5386_v39 }
 0x9b1   :  { %5467 = vmatpush.msrb.mxu3 %v5385_v42 }
 0x9b3   :  { %v5154_v18 = vpop.f32.mrf.mxu3  ;;  %5468 = vmatpush.msrb.mxu3 %v5384_v61  ;;  %v5200_v8 = vpop.f32.mrf.mxu2 }
 0x9b4   :  { %v5155_v34 = vadd.f32 %v5154_v18, %v5126_v56  ;;  %v5201_v31 = vadd.f32 %v5200_v8, %v5127_v15 }
 0x9b5   :  { %5469 = vmatpush.msrb.mxu3 %v5383_v52 }
 0x9b7   :  { %5470 = vmatpush.msrb.mxu3 %v5382_v38 }
 0x9b9   :  { %5471 = vmatpush.msrb.mxu3 %v5381_v29 }
 0x9bb   :  { %5472 = vmatpush.msrb.mxu3 %v5380_v53  ;;  %v5243_v62 = vpop.f32.mrf.mxu2 }
 0x9bc   :  { %v5244_v19 = vadd.f32 %v5243_v62, %v5128_v36 }
 0x9bd   :  { %5473 = vmatpush.msrb.mxu3 %v5379_v45 }
 0x9bf   :  { %5474 = vmatpush.msrb.mxu3 %v5378_v0 }
 0x9c1   :  { %5475 = vmatpush.msrb.mxu3 %v5377_v32 }
 0x9c3   :  { %5476 = vmatpush.msrb.mxu3 %v5376_v26  ;;  %v5246_v25 = vpop.f32.mrf.mxu2 }
 0x9c4   :  { %v5247_v41 = vadd.f32 %v5246_v25, %v5128_v36 }
 0x9c5   :  { %5477 = vmatpush.msrb.mxu3 %v5375_v55 }
 0x9c7   :  { %5478 = vmatpush.msrb.mxu3 %v5374_v27 }
 0x9cb   :  { %v5174_v48 = vpop.f32.mrf.mxu3  ;;  %v5289_v35 = vpop.f32.mrf.mxu2 }
 0x9cc   :  { %v5175_v60 = vadd.f32 %v5174_v48, %v5152_v57  ;;  %v5290_v14 = vadd.f32 %v5289_v35, %v5129_v46  ;;  %v6619_v48 = vld [vmem:[%s13350_s10] ss:$0 sm:$0xff] }
 0x9ce   :  { %v5318_v30 = vmax.f32 %v5175_v60, 0.0 }
 0x9d0   :  { %5410 = vmatmul.f32.vlgmr.msrb.gmra.mxu2 %v5318_v30 }
 0x9d3   :  { %v5292_v18 = vpop.f32.mrf.mxu2 }
 0x9d4   :  { %v5293_v22 = vadd.f32 %v5292_v18, %v5129_v46 }
 0x9d7   :  { %v5177_v40 = vpop.f32.mrf.mxu3 }
 0x9d8   :  { %v5178_v63 = vadd.f32 %v5177_v40, %v5155_v34 }
 0x9da   :  { %v5322_v49 = vmax.f32 %v5178_v63, 0.0 }
 0x9dc   :  { %5413 = vmatmul.f32.gmra.mxu2 %v5322_v49 }
 0x9df   :  { %v5220_v21 = vpop.f32.mrf.mxu3 }
 0x9e0   :  { %v5221_v59 = vadd.f32 %v5220_v21, %v5198_v17 }
 0x9e2   :  { %v5319_v33 = vmax.f32 %v5221_v59, 0.0 }
 0x9e4   :  { %5433 = vmatmul.f32.vlgmr.msra.gmra.mxu3 %v5319_v33 }
 0x9e7   :  { %v5223_v7 = vpop.f32.mrf.mxu3 }
 0x9e8   :  { %v5224_v10 = vadd.f32 %v5223_v7, %v5201_v31 }
 0x9ea   :  { %v5323_v9 = vmax.f32 %v5224_v10, 0.0 }
 0x9ec   :  { %5436 = vmatmul.f32.gmra.mxu3 %v5323_v9 }
 0x9ef   :  { %v5266_v13 = vpop.f32.mrf.mxu3 }
 0x9f0   :  { %v5267_v47 = vadd.f32 %v5266_v13, %v5244_v19 }
 0x9f2   :  { %v5320_v12 = vmax.f32 %v5267_v47, 0.0 }
 0x9f4   :  { %5456 = vmatmul.f32.vlgmr.msra.gmra.mxu2 %v5320_v12 }
 0x9f7   :  { %v5269_v4 = vpop.f32.mrf.mxu3 }
 0x9f8   :  { %v5270_v16 = vadd.f32 %v5269_v4, %v5247_v41 }
 0x9fa   :  { %v5324_v51 = vmax.f32 %v5270_v16, 0.0 }
 0x9fc   :  { %5459 = vmatmul.f32.gmra.mxu2 %v5324_v51 }
 0xa0b   :  { %v5312_v58 = vpop.f32.mrf.mxu3 }
 0xa0c   :  { %v5313_v24 = vadd.f32 %v5312_v58, %v5290_v14 }
 0xa0e   :  { %v5321_v44 = vmax.f32 %v5313_v24, 0.0 }
 0xa10   :  { %5479 = vmatmul.f32.vlgmr.msrb.gmra.mxu3 %v5321_v44 }
 0xa13   :  { %v5315_v3 = vpop.f32.mrf.mxu3 }
 0xa14   :  { %v5316_v56 = vadd.f32 %v5315_v3, %v5293_v22 }
 0xa16   :  { %v5325_v23 = vmax.f32 %v5316_v56, 0.0 }
 0xa18   :  { %5482 = vmatmul.f32.gmra.mxu3 %v5325_v23 }
 0xa53   :  { %v5411_v57 = vpop.f32.mrf.mxu2 }
 0xa54   :  { %v5412_v28 = vadd.f32 %v6619_v48, %v5411_v57 }
 0xa5f   :  { %v5414_v6 = vpop.f32.mrf.mxu2 }
 0xa60   :  { %v5415_v50 = vadd.f32 %v6619_v48, %v5414_v6 }
 0xa67   :  { %v5434_v1 = vpop.f32.mrf.mxu3 }
 0xa68   :  { %v5435_v37 = vadd.f32 %v5434_v1, %v5412_v28 }
 0xa6f   :  { %v5437_v60 = vpop.f32.mrf.mxu3 }
 0xa70   :  { %v5438_v2 = vadd.f32 %v5437_v60, %v5415_v50 }
 0xa77   :  { %v5457_v11 = vpop.f32.mrf.mxu2 }
 0xa78   :  { %v5458_v30 = vadd.f32 %v5457_v11, %v5435_v37 }
 0xa7f   :  { %v5460_v5 = vpop.f32.mrf.mxu2 }
 0xa80   :  { %v5461_v39 = vadd.f32 %v5460_v5, %v5438_v2 }
 0xa93   :  { %v5480_v20 = vpop.f32.mrf.mxu3 }
 0xa94   :  { %v5481_v43 = vadd.f32 %v5480_v20, %v5458_v30 }
 0xa96   :  { %5487 = vst.msk [vmem:[%s13352_s11] sm:$0xff] %vm5486_vm3, %v5481_v43 }
 0xa9b   :  { %v5483_v42 = vpop.f32.mrf.mxu3 }
 0xa9c   :  { %v5484_v54 = vadd.f32 %v5483_v42, %v5461_v39 }
 0xa9e   :  { %5488 = vst.msk [vmem:[%s13352_s11 + $0x8] sm:$0xff] %vm5486_vm3, %v5484_v54 }

</bundles_post_ra>
